<compile_context>
chip_gen: v7x
topology: tpu7x:2x2x1
jax: 0.10.0
libtpu: 0.0.40
codegen_flags: <defaults>
</compile_context>

<pallas_src>
import jax
import jax.numpy as jnp
from jax.experimental import pallas as pl
from jax.experimental.pallas import tpu as pltpu

# ---- module hyper-parameters (small, consistent with the PyTorch module) ----
DIM = 3        # input point dimension
KPAD = 8       # fc_p contraction dim padded for the MXU
CDIM = 16      # conditioning code dimension (c_dim)
H = 64         # hidden_size
B = 2          # batch size
T = 64         # number of points per batch element
NBLOCK = 5     # number of CResnetBlockConv1d blocks
NBN = 2 * NBLOCK + 1     # CBN count: 2 per resnet block + final
NFC = 2 * NBLOCK         # fc_0 / fc_1 per resnet block
N = B * T
EPS = 1e-5     # BatchNorm eps


def decoder_kernel(p_ref, c_ref, sel_ref,
                   fcp_w_ref, fcp_b_ref,
                   aff_w_ref, aff_b_ref,
                   fc_w_ref, fc_b_ref,
                   fcout_w_ref, fcout_b_ref,
                   out_ref,
                   aff_ref):
    # ---- per-batch CBN affine for all 11 CBNs in one tiny matmul: (2*NBN*H, B) ----
    aff_ref[...] = (
        jnp.dot(aff_w_ref[...], c_ref[...], preferred_element_type=jnp.float32)
        + aff_b_ref[...])

    sel = sel_ref[...]          # (B, N) 0/1 batch selector, hoisted once
    inv_n = 1.0 / N

    def cbn_relu(x, i):
        # x: (H, N) channels-first. Fused one-pass stats over [x ; x*x].
        sums = jnp.sum(jnp.concatenate([x, x * x], axis=0),
                       axis=1, keepdims=True)                     # (2H, 1)
        mean = sums[0:H, :] * inv_n                               # (H, 1)
        var = jnp.maximum(sums[H:2 * H, :] * inv_n - mean * mean, 0.0)
        inv_std = jax.lax.rsqrt(var + EPS)                        # (H, 1)
        gamma = aff_ref[i * H:(i + 1) * H, :]                     # (H, B)
        beta = aff_ref[(NBN + i) * H:(NBN + i + 1) * H, :]        # (H, B)
        scale = gamma * inv_std                                   # (H, B)
        shift = beta - mean * scale                               # (H, B)
        # broadcast per-batch scale/shift to per-point columns on the idle MXU
        full = jnp.dot(jnp.concatenate([scale, shift], axis=0), sel,
                       preferred_element_type=jnp.float32)        # (2H, N)
        return jnp.maximum(x * full[0:H, :] + full[H:2 * H, :], 0.0)

    def conv1x1(x, w, b):
        # channels-first 1x1 conv: w (Cout, Cin), x (Cin, N), b (Cout, 1)
        return jnp.dot(w, x, preferred_element_type=jnp.float32) + b

    # ---- fc_p: Conv1d(DIM, H, 1) as one (H, 8) x (8, N) MXU matmul ----
    net = conv1x1(p_ref[...], fcp_w_ref[...], fcp_b_ref[...])    # (H, N)

    # ---- 5 x CResnetBlockConv1d (identity shortcut since Cin == Cout == H) ----
    for blk in range(NBLOCK):
        h = conv1x1(cbn_relu(net, 2 * blk), fc_w_ref[2 * blk], fc_b_ref[2 * blk])
        dx = conv1x1(cbn_relu(h, 2 * blk + 1), fc_w_ref[2 * blk + 1], fc_b_ref[2 * blk + 1])
        net = net + dx

    # ---- final CBN -> ReLU -> fc_out: (1, H) x (H, N), lane-dense (1, N) row ----
    final = cbn_relu(net, 2 * NBLOCK)                             # (H, N)
    out_ref[...] = (
        jnp.dot(fcout_w_ref[...], final, preferred_element_type=jnp.float32)
        + fcout_b_ref[...])                                       # (1, N)


def decoder_forward(p, c, params):
    # Layout prep (pure XLA, outside the kernel): channels-first points (8, N) with
    # zero-padded contraction dim, code transposed to (CDIM, B), fused CBN affine
    # weights as (2*NBN*H, CDIM), and a (B, N) 0/1 batch selector for the in-kernel
    # per-batch -> per-point broadcast. Conv weights stay in native (Cout, Cin).
    p_cf = p.reshape(N, DIM).T                                            # (DIM, N)
    p_pad = jnp.pad(p_cf, ((0, KPAD - DIM), (0, 0)))                      # (8, N)
    c_t = c.T                                                             # (CDIM, B)
    sel = (jnp.arange(N)[None, :] // T == jnp.arange(B)[:, None]).astype(jnp.float32)

    fcp_w = jnp.pad(params["fcp_w"], ((0, 0), (0, KPAD - DIM)))           # (H, 8)
    fcp_b = params["fcp_b"].reshape(H, 1)
    aff_w = jnp.concatenate([params["bn_gw"].reshape(NBN * H, CDIM),
                             params["bn_bw"].reshape(NBN * H, CDIM)], axis=0)
    aff_b = jnp.concatenate([params["bn_gb"].reshape(NBN * H, 1),
                             params["bn_bb"].reshape(NBN * H, 1)], axis=0)
    fc_w = params["fc_w"]                                                 # (NFC, H, H)
    fc_b = params["fc_b"].reshape(NFC, H, 1)
    fcout_w = params["fcout_w"]                                           # (1, H)
    fcout_b = params["fcout_b"].reshape(1, 1)

    args = (p_pad, c_t, sel, fcp_w, fcp_b, aff_w, aff_b,
            fc_w, fc_b, fcout_w, fcout_b)
    in_specs = [pl.BlockSpec(memory_space=pltpu.MemorySpace.VMEM) for _ in args]
    out = pl.pallas_call(
        decoder_kernel,
        out_shape=jax.ShapeDtypeStruct((1, N), jnp.float32),
        in_specs=in_specs,
        out_specs=pl.BlockSpec(memory_space=pltpu.MemorySpace.VMEM),
        scratch_shapes=[pltpu.VMEM((2 * NBN * H, B), jnp.float32)],
    )(*args)
    return out.reshape(B, T)


# ------------------------ pure-JAX reference for validation ------------------------
def decoder_ref(p, c, params):
    def conv1x1(x, w, b):
        return jnp.einsum("btc,oc->bto", x, w) + b.reshape(1, 1, -1)

    def cbn(x, i):
        gamma = c @ params["bn_gw"][i].T + params["bn_gb"][i]
        beta = c @ params["bn_bw"][i].T + params["bn_bb"][i]
        mean = jnp.mean(x, axis=(0, 1), keepdims=True)
        var = jnp.mean((x - mean) ** 2, axis=(0, 1), keepdims=True)
        xn = (x - mean) * jax.lax.rsqrt(var + EPS)
        return gamma[:, None, :] * xn + beta[:, None, :]

    relu = lambda v: jnp.maximum(v, 0.0)
    net = conv1x1(p, params["fcp_w"], params["fcp_b"])
    for blk in range(NBLOCK):
        h = conv1x1(relu(cbn(net, 2 * blk)), params["fc_w"][2 * blk], params["fc_b"][2 * blk])
        dx = conv1x1(relu(cbn(h, 2 * blk + 1)), params["fc_w"][2 * blk + 1], params["fc_b"][2 * blk + 1])
        net = net + dx
    final = relu(cbn(net, 2 * NBLOCK))
    out = jnp.einsum("bth,oh->bto", final, params["fcout_w"]) + params["fcout_b"].reshape(1, 1, 1)
    return out[..., 0]


def make_params(key):
    ks = jax.random.split(key, 10)

    def init(k, shape, scale):
        return (scale * jax.random.normal(k, shape)).astype(jnp.float32)

    return {
        # fc_p: Conv1d(DIM, H, 1)
        "fcp_w": init(ks[0], (H, DIM), DIM ** -0.5),
        "fcp_b": init(ks[1], (H,), 0.1),
        # conditional BN affine maps (conv_gamma / conv_beta, 1x1 convs on c)
        "bn_gw": init(ks[2], (NBN, H, CDIM), CDIM ** -0.5),
        "bn_gb": 1.0 + init(ks[3], (NBN, H), 0.1),
        "bn_bw": init(ks[4], (NBN, H, CDIM), CDIM ** -0.5),
        "bn_bb": init(ks[5], (NBN, H), 0.1),
        # resnet-block 1x1 convs (fc_0, fc_1) x 5
        "fc_w": init(ks[6], (NFC, H, H), H ** -0.5),
        "fc_b": init(ks[7], (NFC, H), 0.1),
        # fc_out: Conv1d(H, 1, 1)
        "fcout_w": init(ks[8], (1, H), H ** -0.5),
        "fcout_b": init(ks[9], (1,), 0.1),
    }


if __name__ == "__main__":
    key = jax.random.PRNGKey(0)
    kp, kc, kw = jax.random.split(key, 3)
    params = make_params(kw)
    p = jax.random.normal(kp, (B, T, DIM), dtype=jnp.float32)   # points (B, T, dim)
    c = jax.random.normal(kc, (B, CDIM), dtype=jnp.float32)     # latent code (B, c_dim)

    out = decoder_forward(p, c, params)
    out = jax.block_until_ready(out)

    ref = jax.block_until_ready(decoder_ref(p, c, params))
    assert out.shape == (B, T)
    assert jnp.allclose(out, ref, rtol=1e-3, atol=1e-3), "Pallas kernel mismatch vs reference"
    print("KERNEL_OK")
</pallas_src>

<mosaic_0001>
module attributes {stable_mosaic.version = 11 : i64} {
  func.func @decoder_kernel(%arg0: memref<8x128xf32, #tpu.memory_space<vmem>>, %arg1: memref<16x2xf32, #tpu.memory_space<vmem>>, %arg2: memref<2x128xf32, #tpu.memory_space<vmem>>, %arg3: memref<64x8xf32, #tpu.memory_space<vmem>>, %arg4: memref<64x1xf32, #tpu.memory_space<vmem>>, %arg5: memref<1408x16xf32, #tpu.memory_space<vmem>>, %arg6: memref<1408x1xf32, #tpu.memory_space<vmem>>, %arg7: memref<10x64x64xf32, #tpu.memory_space<vmem>>, %arg8: memref<10x64x1xf32, #tpu.memory_space<vmem>>, %arg9: memref<1x64xf32, #tpu.memory_space<vmem>>, %arg10: memref<1x1xf32, #tpu.memory_space<vmem>>, %arg11: memref<1x128xf32, #tpu.memory_space<vmem>>, %arg12: memref<1408x2xf32, #tpu.memory_space<vmem>>) attributes {dimension_semantics = [], scalar_prefetch = 0 : i64, scratch_operands = 1 : i64, tpu.core_type = #tpu.core_type<tc>} {
    %c0 = arith.constant 0 : index
    %c0_0 = arith.constant 0 : index
    %0 = vector.load %arg5[%c0, %c0_0] : memref<1408x16xf32, #tpu.memory_space<vmem>>, vector<1408x16xf32>
    %c0_1 = arith.constant 0 : index
    %c0_2 = arith.constant 0 : index
    %1 = vector.load %arg1[%c0_1, %c0_2] : memref<16x2xf32, #tpu.memory_space<vmem>>, vector<16x2xf32>
    %cst = arith.constant dense<0.000000e+00> : vector<1408x2xf32>
    %2 = tpu.matmul %0, %1, %cst {dimension_numbers = #tpu.dot_dimension_numbers<[1], [0], [0], [1], [0, 0, 1, 1], [], []>} : vector<1408x16xf32>, vector<16x2xf32>, vector<1408x2xf32> -> vector<1408x2xf32>
    %c0_3 = arith.constant 0 : index
    %c0_4 = arith.constant 0 : index
    %3 = vector.load %arg6[%c0_3, %c0_4] : memref<1408x1xf32, #tpu.memory_space<vmem>>, vector<1408x1xf32>
    %4 = vector.broadcast %3 : vector<1408x1xf32> to vector<1408x2xf32>
    %5 = arith.addf %2, %4 : vector<1408x2xf32>
    %c0_5 = arith.constant 0 : index
    %c0_6 = arith.constant 0 : index
    %6 = vector.load %arg12[%c0_5, %c0_6] : memref<1408x2xf32, #tpu.memory_space<vmem>>, vector<1408x2xf32>
    tpu.vector_store %arg12[%c0_5, %c0_6], %5 {strides = array<i32>} : memref<1408x2xf32, #tpu.memory_space<vmem>>, vector<1408x2xf32>,
    %c0_7 = arith.constant 0 : index
    %c0_8 = arith.constant 0 : index
    %7 = vector.load %arg2[%c0_7, %c0_8] : memref<2x128xf32, #tpu.memory_space<vmem>>, vector<2x128xf32>
    %c0_9 = arith.constant 0 : index
    %c0_10 = arith.constant 0 : index
    %8 = vector.load %arg0[%c0_9, %c0_10] : memref<8x128xf32, #tpu.memory_space<vmem>>, vector<8x128xf32>
    %c0_11 = arith.constant 0 : index
    %c0_12 = arith.constant 0 : index
    %9 = vector.load %arg3[%c0_11, %c0_12] : memref<64x8xf32, #tpu.memory_space<vmem>>, vector<64x8xf32>
    %c0_13 = arith.constant 0 : index
    %c0_14 = arith.constant 0 : index
    %10 = vector.load %arg4[%c0_13, %c0_14] : memref<64x1xf32, #tpu.memory_space<vmem>>, vector<64x1xf32>
    %cst_15 = arith.constant dense<0.000000e+00> : vector<64x128xf32>
    %11 = tpu.matmul %9, %8, %cst_15 {dimension_numbers = #tpu.dot_dimension_numbers<[1], [0], [0], [1], [0, 0, 1, 1], [], []>} : vector<64x8xf32>, vector<8x128xf32>, vector<64x128xf32> -> vector<64x128xf32>
    %12 = vector.broadcast %10 : vector<64x1xf32> to vector<64x128xf32>
    %13 = arith.addf %11, %12 : vector<64x128xf32>
    %14 = arith.mulf %13, %13 : vector<64x128xf32>
    %15 = tpu.concatenate %13, %14 in 0 : vector<64x128xf32>, vector<64x128xf32> -> vector<128x128xf32>
    %cst_16 = arith.constant dense<0.000000e+00> : vector<128xf32>
    %16 = vector.multi_reduction <add>, %15, %cst_16 [1] : vector<128x128xf32> to vector<128xf32>
    %17 = vector.shape_cast %16 : vector<128xf32> to vector<128x1xf32>
    %18 = vector.extract_strided_slice %17 {offsets = [0, 0], sizes = [64, 1], strides = [1, 1]} : vector<128x1xf32> to vector<64x1xf32>
    %cst_17 = arith.constant 7.812500e-03 : f32
    %19 = vector.broadcast %cst_17 : f32 to vector<64x1xf32>
    %20 = arith.mulf %18, %19 : vector<64x1xf32>
    %21 = vector.extract_strided_slice %17 {offsets = [64, 0], sizes = [64, 1], strides = [1, 1]} : vector<128x1xf32> to vector<64x1xf32>
    %cst_18 = arith.constant 7.812500e-03 : f32
    %22 = vector.broadcast %cst_18 : f32 to vector<64x1xf32>
    %23 = arith.mulf %21, %22 : vector<64x1xf32>
    %24 = arith.mulf %20, %20 : vector<64x1xf32>
    %25 = arith.subf %23, %24 : vector<64x1xf32>
    %cst_19 = arith.constant 0.000000e+00 : f32
    %26 = vector.broadcast %cst_19 : f32 to vector<64x1xf32>
    %27 = arith.maximumf %25, %26 : vector<64x1xf32>
    %cst_20 = arith.constant 9.99999974E-6 : f32
    %28 = vector.broadcast %cst_20 : f32 to vector<64x1xf32>
    %29 = arith.addf %27, %28 : vector<64x1xf32>
    %30 = math.rsqrt %29 : vector<64x1xf32>
    %c0_21 = arith.constant 0 : index
    %c0_22 = arith.constant 0 : index
    %31 = vector.load %arg12[%c0_21, %c0_22] : memref<1408x2xf32, #tpu.memory_space<vmem>>, vector<64x2xf32>
    %c704 = arith.constant 704 : index
    %c0_23 = arith.constant 0 : index
    %32 = vector.load %arg12[%c704, %c0_23] : memref<1408x2xf32, #tpu.memory_space<vmem>>, vector<64x2xf32>
    %33 = vector.broadcast %30 : vector<64x1xf32> to vector<64x2xf32>
    %34 = arith.mulf %31, %33 : vector<64x2xf32>
    %35 = vector.broadcast %20 : vector<64x1xf32> to vector<64x2xf32>
    %36 = arith.mulf %35, %34 : vector<64x2xf32>
    %37 = arith.subf %32, %36 : vector<64x2xf32>
    %38 = tpu.concatenate %34, %37 in 0 : vector<64x2xf32>, vector<64x2xf32> -> vector<128x2xf32>
    %cst_24 = arith.constant dense<0.000000e+00> : vector<128x128xf32>
    %39 = tpu.matmul %38, %7, %cst_24 {dimension_numbers = #tpu.dot_dimension_numbers<[1], [0], [0], [1], [0, 0, 1, 1], [], []>} : vector<128x2xf32>, vector<2x128xf32>, vector<128x128xf32> -> vector<128x128xf32>
    %40 = vector.extract_strided_slice %39 {offsets = [0, 0], sizes = [64, 128], strides = [1, 1]} : vector<128x128xf32> to vector<64x128xf32>
    %41 = arith.mulf %13, %40 : vector<64x128xf32>
    %42 = vector.extract_strided_slice %39 {offsets = [64, 0], sizes = [64, 128], strides = [1, 1]} : vector<128x128xf32> to vector<64x128xf32>
    %43 = arith.addf %41, %42 : vector<64x128xf32>
    %cst_25 = arith.constant 0.000000e+00 : f32
    %44 = vector.broadcast %cst_25 : f32 to vector<64x128xf32>
    %45 = arith.maximumf %43, %44 : vector<64x128xf32>
    %c0_26 = arith.constant 0 : index
    %c0_27 = arith.constant 0 : index
    %c0_28 = arith.constant 0 : index
    %46 = vector.load %arg7[%c0_26, %c0_27, %c0_28] : memref<10x64x64xf32, #tpu.memory_space<vmem>>, vector<1x64x64xf32>
    %47 = vector.shape_cast %46 : vector<1x64x64xf32> to vector<64x64xf32>
    %c0_29 = arith.constant 0 : index
    %c0_30 = arith.constant 0 : index
    %c0_31 = arith.constant 0 : index
    %48 = vector.load %arg8[%c0_29, %c0_30, %c0_31] : memref<10x64x1xf32, #tpu.memory_space<vmem>>, vector<1x64x1xf32>
    %49 = vector.shape_cast %48 : vector<1x64x1xf32> to vector<64x1xf32>
    %cst_32 = arith.constant dense<0.000000e+00> : vector<64x128xf32>
    %50 = tpu.matmul %47, %45, %cst_32 {dimension_numbers = #tpu.dot_dimension_numbers<[1], [0], [0], [1], [0, 0, 1, 1], [], []>} : vector<64x64xf32>, vector<64x128xf32>, vector<64x128xf32> -> vector<64x128xf32>
    %51 = vector.broadcast %49 : vector<64x1xf32> to vector<64x128xf32>
    %52 = arith.addf %50, %51 : vector<64x128xf32>
    %53 = arith.mulf %52, %52 : vector<64x128xf32>
    %54 = tpu.concatenate %52, %53 in 0 : vector<64x128xf32>, vector<64x128xf32> -> vector<128x128xf32>
    %cst_33 = arith.constant dense<0.000000e+00> : vector<128xf32>
    %55 = vector.multi_reduction <add>, %54, %cst_33 [1] : vector<128x128xf32> to vector<128xf32>
    %56 = vector.shape_cast %55 : vector<128xf32> to vector<128x1xf32>
    %57 = vector.extract_strided_slice %56 {offsets = [0, 0], sizes = [64, 1], strides = [1, 1]} : vector<128x1xf32> to vector<64x1xf32>
    %cst_34 = arith.constant 7.812500e-03 : f32
    %58 = vector.broadcast %cst_34 : f32 to vector<64x1xf32>
    %59 = arith.mulf %57, %58 : vector<64x1xf32>
    %60 = vector.extract_strided_slice %56 {offsets = [64, 0], sizes = [64, 1], strides = [1, 1]} : vector<128x1xf32> to vector<64x1xf32>
    %cst_35 = arith.constant 7.812500e-03 : f32
    %61 = vector.broadcast %cst_35 : f32 to vector<64x1xf32>
    %62 = arith.mulf %60, %61 : vector<64x1xf32>
    %63 = arith.mulf %59, %59 : vector<64x1xf32>
    %64 = arith.subf %62, %63 : vector<64x1xf32>
    %cst_36 = arith.constant 0.000000e+00 : f32
    %65 = vector.broadcast %cst_36 : f32 to vector<64x1xf32>
    %66 = arith.maximumf %64, %65 : vector<64x1xf32>
    %cst_37 = arith.constant 9.99999974E-6 : f32
    %67 = vector.broadcast %cst_37 : f32 to vector<64x1xf32>
    %68 = arith.addf %66, %67 : vector<64x1xf32>
    %69 = math.rsqrt %68 : vector<64x1xf32>
    %c64 = arith.constant 64 : index
    %c0_38 = arith.constant 0 : index
    %70 = vector.load %arg12[%c64, %c0_38] : memref<1408x2xf32, #tpu.memory_space<vmem>>, vector<64x2xf32>
    %c768 = arith.constant 768 : index
    %c0_39 = arith.constant 0 : index
    %71 = vector.load %arg12[%c768, %c0_39] : memref<1408x2xf32, #tpu.memory_space<vmem>>, vector<64x2xf32>
    %72 = vector.broadcast %69 : vector<64x1xf32> to vector<64x2xf32>
    %73 = arith.mulf %70, %72 : vector<64x2xf32>
    %74 = vector.broadcast %59 : vector<64x1xf32> to vector<64x2xf32>
    %75 = arith.mulf %74, %73 : vector<64x2xf32>
    %76 = arith.subf %71, %75 : vector<64x2xf32>
    %77 = tpu.concatenate %73, %76 in 0 : vector<64x2xf32>, vector<64x2xf32> -> vector<128x2xf32>
    %cst_40 = arith.constant dense<0.000000e+00> : vector<128x128xf32>
    %78 = tpu.matmul %77, %7, %cst_40 {dimension_numbers = #tpu.dot_dimension_numbers<[1], [0], [0], [1], [0, 0, 1, 1], [], []>} : vector<128x2xf32>, vector<2x128xf32>, vector<128x128xf32> -> vector<128x128xf32>
    %79 = vector.extract_strided_slice %78 {offsets = [0, 0], sizes = [64, 128], strides = [1, 1]} : vector<128x128xf32> to vector<64x128xf32>
    %80 = arith.mulf %52, %79 : vector<64x128xf32>
    %81 = vector.extract_strided_slice %78 {offsets = [64, 0], sizes = [64, 128], strides = [1, 1]} : vector<128x128xf32> to vector<64x128xf32>
    %82 = arith.addf %80, %81 : vector<64x128xf32>
    %cst_41 = arith.constant 0.000000e+00 : f32
    %83 = vector.broadcast %cst_41 : f32 to vector<64x128xf32>
    %84 = arith.maximumf %82, %83 : vector<64x128xf32>
    %c1 = arith.constant 1 : index
    %c0_42 = arith.constant 0 : index
    %c0_43 = arith.constant 0 : index
    %85 = vector.load %arg7[%c1, %c0_42, %c0_43] : memref<10x64x64xf32, #tpu.memory_space<vmem>>, vector<1x64x64xf32>
    %86 = vector.shape_cast %85 : vector<1x64x64xf32> to vector<64x64xf32>
    %c1_44 = arith.constant 1 : index
    %c0_45 = arith.constant 0 : index
    %c0_46 = arith.constant 0 : index
    %87 = vector.load %arg8[%c1_44, %c0_45, %c0_46] : memref<10x64x1xf32, #tpu.memory_space<vmem>>, vector<1x64x1xf32>
    %88 = vector.shape_cast %87 : vector<1x64x1xf32> to vector<64x1xf32>
    %cst_47 = arith.constant dense<0.000000e+00> : vector<64x128xf32>
    %89 = tpu.matmul %86, %84, %cst_47 {dimension_numbers = #tpu.dot_dimension_numbers<[1], [0], [0], [1], [0, 0, 1, 1], [], []>} : vector<64x64xf32>, vector<64x128xf32>, vector<64x128xf32> -> vector<64x128xf32>
    %90 = vector.broadcast %88 : vector<64x1xf32> to vector<64x128xf32>
    %91 = arith.addf %89, %90 : vector<64x128xf32>
    %92 = arith.addf %13, %91 : vector<64x128xf32>
    %93 = arith.mulf %92, %92 : vector<64x128xf32>
    %94 = tpu.concatenate %92, %93 in 0 : vector<64x128xf32>, vector<64x128xf32> -> vector<128x128xf32>
    %cst_48 = arith.constant dense<0.000000e+00> : vector<128xf32>
    %95 = vector.multi_reduction <add>, %94, %cst_48 [1] : vector<128x128xf32> to vector<128xf32>
    %96 = vector.shape_cast %95 : vector<128xf32> to vector<128x1xf32>
    %97 = vector.extract_strided_slice %96 {offsets = [0, 0], sizes = [64, 1], strides = [1, 1]} : vector<128x1xf32> to vector<64x1xf32>
    %cst_49 = arith.constant 7.812500e-03 : f32
    %98 = vector.broadcast %cst_49 : f32 to vector<64x1xf32>
    %99 = arith.mulf %97, %98 : vector<64x1xf32>
    %100 = vector.extract_strided_slice %96 {offsets = [64, 0], sizes = [64, 1], strides = [1, 1]} : vector<128x1xf32> to vector<64x1xf32>
    %cst_50 = arith.constant 7.812500e-03 : f32
    %101 = vector.broadcast %cst_50 : f32 to vector<64x1xf32>
    %102 = arith.mulf %100, %101 : vector<64x1xf32>
    %103 = arith.mulf %99, %99 : vector<64x1xf32>
    %104 = arith.subf %102, %103 : vector<64x1xf32>
    %cst_51 = arith.constant 0.000000e+00 : f32
    %105 = vector.broadcast %cst_51 : f32 to vector<64x1xf32>
    %106 = arith.maximumf %104, %105 : vector<64x1xf32>
    %cst_52 = arith.constant 9.99999974E-6 : f32
    %107 = vector.broadcast %cst_52 : f32 to vector<64x1xf32>
    %108 = arith.addf %106, %107 : vector<64x1xf32>
    %109 = math.rsqrt %108 : vector<64x1xf32>
    %c128 = arith.constant 128 : index
    %c0_53 = arith.constant 0 : index
    %110 = vector.load %arg12[%c128, %c0_53] : memref<1408x2xf32, #tpu.memory_space<vmem>>, vector<64x2xf32>
    %c832 = arith.constant 832 : index
    %c0_54 = arith.constant 0 : index
    %111 = vector.load %arg12[%c832, %c0_54] : memref<1408x2xf32, #tpu.memory_space<vmem>>, vector<64x2xf32>
    %112 = vector.broadcast %109 : vector<64x1xf32> to vector<64x2xf32>
    %113 = arith.mulf %110, %112 : vector<64x2xf32>
    %114 = vector.broadcast %99 : vector<64x1xf32> to vector<64x2xf32>
    %115 = arith.mulf %114, %113 : vector<64x2xf32>
    %116 = arith.subf %111, %115 : vector<64x2xf32>
    %117 = tpu.concatenate %113, %116 in 0 : vector<64x2xf32>, vector<64x2xf32> -> vector<128x2xf32>
    %cst_55 = arith.constant dense<0.000000e+00> : vector<128x128xf32>
    %118 = tpu.matmul %117, %7, %cst_55 {dimension_numbers = #tpu.dot_dimension_numbers<[1], [0], [0], [1], [0, 0, 1, 1], [], []>} : vector<128x2xf32>, vector<2x128xf32>, vector<128x128xf32> -> vector<128x128xf32>
    %119 = vector.extract_strided_slice %118 {offsets = [0, 0], sizes = [64, 128], strides = [1, 1]} : vector<128x128xf32> to vector<64x128xf32>
    %120 = arith.mulf %92, %119 : vector<64x128xf32>
    %121 = vector.extract_strided_slice %118 {offsets = [64, 0], sizes = [64, 128], strides = [1, 1]} : vector<128x128xf32> to vector<64x128xf32>
    %122 = arith.addf %120, %121 : vector<64x128xf32>
    %cst_56 = arith.constant 0.000000e+00 : f32
    %123 = vector.broadcast %cst_56 : f32 to vector<64x128xf32>
    %124 = arith.maximumf %122, %123 : vector<64x128xf32>
    %c2 = arith.constant 2 : index
    %c0_57 = arith.constant 0 : index
    %c0_58 = arith.constant 0 : index
    %125 = vector.load %arg7[%c2, %c0_57, %c0_58] : memref<10x64x64xf32, #tpu.memory_space<vmem>>, vector<1x64x64xf32>
    %126 = vector.shape_cast %125 : vector<1x64x64xf32> to vector<64x64xf32>
    %c2_59 = arith.constant 2 : index
    %c0_60 = arith.constant 0 : index
    %c0_61 = arith.constant 0 : index
    %127 = vector.load %arg8[%c2_59, %c0_60, %c0_61] : memref<10x64x1xf32, #tpu.memory_space<vmem>>, vector<1x64x1xf32>
    %128 = vector.shape_cast %127 : vector<1x64x1xf32> to vector<64x1xf32>
    %cst_62 = arith.constant dense<0.000000e+00> : vector<64x128xf32>
    %129 = tpu.matmul %126, %124, %cst_62 {dimension_numbers = #tpu.dot_dimension_numbers<[1], [0], [0], [1], [0, 0, 1, 1], [], []>} : vector<64x64xf32>, vector<64x128xf32>, vector<64x128xf32> -> vector<64x128xf32>
    %130 = vector.broadcast %128 : vector<64x1xf32> to vector<64x128xf32>
    %131 = arith.addf %129, %130 : vector<64x128xf32>
    %132 = arith.mulf %131, %131 : vector<64x128xf32>
    %133 = tpu.concatenate %131, %132 in 0 : vector<64x128xf32>, vector<64x128xf32> -> vector<128x128xf32>
    %cst_63 = arith.constant dense<0.000000e+00> : vector<128xf32>
    %134 = vector.multi_reduction <add>, %133, %cst_63 [1] : vector<128x128xf32> to vector<128xf32>
    %135 = vector.shape_cast %134 : vector<128xf32> to vector<128x1xf32>
    %136 = vector.extract_strided_slice %135 {offsets = [0, 0], sizes = [64, 1], strides = [1, 1]} : vector<128x1xf32> to vector<64x1xf32>
    %cst_64 = arith.constant 7.812500e-03 : f32
    %137 = vector.broadcast %cst_64 : f32 to vector<64x1xf32>
    %138 = arith.mulf %136, %137 : vector<64x1xf32>
    %139 = vector.extract_strided_slice %135 {offsets = [64, 0], sizes = [64, 1], strides = [1, 1]} : vector<128x1xf32> to vector<64x1xf32>
    %cst_65 = arith.constant 7.812500e-03 : f32
    %140 = vector.broadcast %cst_65 : f32 to vector<64x1xf32>
    %141 = arith.mulf %139, %140 : vector<64x1xf32>
    %142 = arith.mulf %138, %138 : vector<64x1xf32>
    %143 = arith.subf %141, %142 : vector<64x1xf32>
    %cst_66 = arith.constant 0.000000e+00 : f32
    %144 = vector.broadcast %cst_66 : f32 to vector<64x1xf32>
    %145 = arith.maximumf %143, %144 : vector<64x1xf32>
    %cst_67 = arith.constant 9.99999974E-6 : f32
    %146 = vector.broadcast %cst_67 : f32 to vector<64x1xf32>
    %147 = arith.addf %145, %146 : vector<64x1xf32>
    %148 = math.rsqrt %147 : vector<64x1xf32>
    %c192 = arith.constant 192 : index
    %c0_68 = arith.constant 0 : index
    %149 = vector.load %arg12[%c192, %c0_68] : memref<1408x2xf32, #tpu.memory_space<vmem>>, vector<64x2xf32>
    %c896 = arith.constant 896 : index
    %c0_69 = arith.constant 0 : index
    %150 = vector.load %arg12[%c896, %c0_69] : memref<1408x2xf32, #tpu.memory_space<vmem>>, vector<64x2xf32>
    %151 = vector.broadcast %148 : vector<64x1xf32> to vector<64x2xf32>
    %152 = arith.mulf %149, %151 : vector<64x2xf32>
    %153 = vector.broadcast %138 : vector<64x1xf32> to vector<64x2xf32>
    %154 = arith.mulf %153, %152 : vector<64x2xf32>
    %155 = arith.subf %150, %154 : vector<64x2xf32>
    %156 = tpu.concatenate %152, %155 in 0 : vector<64x2xf32>, vector<64x2xf32> -> vector<128x2xf32>
    %cst_70 = arith.constant dense<0.000000e+00> : vector<128x128xf32>
    %157 = tpu.matmul %156, %7, %cst_70 {dimension_numbers = #tpu.dot_dimension_numbers<[1], [0], [0], [1], [0, 0, 1, 1], [], []>} : vector<128x2xf32>, vector<2x128xf32>, vector<128x128xf32> -> vector<128x128xf32>
    %158 = vector.extract_strided_slice %157 {offsets = [0, 0], sizes = [64, 128], strides = [1, 1]} : vector<128x128xf32> to vector<64x128xf32>
    %159 = arith.mulf %131, %158 : vector<64x128xf32>
    %160 = vector.extract_strided_slice %157 {offsets = [64, 0], sizes = [64, 128], strides = [1, 1]} : vector<128x128xf32> to vector<64x128xf32>
    %161 = arith.addf %159, %160 : vector<64x128xf32>
    %cst_71 = arith.constant 0.000000e+00 : f32
    %162 = vector.broadcast %cst_71 : f32 to vector<64x128xf32>
    %163 = arith.maximumf %161, %162 : vector<64x128xf32>
    %c3 = arith.constant 3 : index
    %c0_72 = arith.constant 0 : index
    %c0_73 = arith.constant 0 : index
    %164 = vector.load %arg7[%c3, %c0_72, %c0_73] : memref<10x64x64xf32, #tpu.memory_space<vmem>>, vector<1x64x64xf32>
    %165 = vector.shape_cast %164 : vector<1x64x64xf32> to vector<64x64xf32>
    %c3_74 = arith.constant 3 : index
    %c0_75 = arith.constant 0 : index
    %c0_76 = arith.constant 0 : index
    %166 = vector.load %arg8[%c3_74, %c0_75, %c0_76] : memref<10x64x1xf32, #tpu.memory_space<vmem>>, vector<1x64x1xf32>
    %167 = vector.shape_cast %166 : vector<1x64x1xf32> to vector<64x1xf32>
    %cst_77 = arith.constant dense<0.000000e+00> : vector<64x128xf32>
    %168 = tpu.matmul %165, %163, %cst_77 {dimension_numbers = #tpu.dot_dimension_numbers<[1], [0], [0], [1], [0, 0, 1, 1], [], []>} : vector<64x64xf32>, vector<64x128xf32>, vector<64x128xf32> -> vector<64x128xf32>
    %169 = vector.broadcast %167 : vector<64x1xf32> to vector<64x128xf32>
    %170 = arith.addf %168, %169 : vector<64x128xf32>
    %171 = arith.addf %92, %170 : vector<64x128xf32>
    %172 = arith.mulf %171, %171 : vector<64x128xf32>
    %173 = tpu.concatenate %171, %172 in 0 : vector<64x128xf32>, vector<64x128xf32> -> vector<128x128xf32>
    %cst_78 = arith.constant dense<0.000000e+00> : vector<128xf32>
    %174 = vector.multi_reduction <add>, %173, %cst_78 [1] : vector<128x128xf32> to vector<128xf32>
    %175 = vector.shape_cast %174 : vector<128xf32> to vector<128x1xf32>
    %176 = vector.extract_strided_slice %175 {offsets = [0, 0], sizes = [64, 1], strides = [1, 1]} : vector<128x1xf32> to vector<64x1xf32>
    %cst_79 = arith.constant 7.812500e-03 : f32
    %177 = vector.broadcast %cst_79 : f32 to vector<64x1xf32>
    %178 = arith.mulf %176, %177 : vector<64x1xf32>
    %179 = vector.extract_strided_slice %175 {offsets = [64, 0], sizes = [64, 1], strides = [1, 1]} : vector<128x1xf32> to vector<64x1xf32>
    %cst_80 = arith.constant 7.812500e-03 : f32
    %180 = vector.broadcast %cst_80 : f32 to vector<64x1xf32>
    %181 = arith.mulf %179, %180 : vector<64x1xf32>
    %182 = arith.mulf %178, %178 : vector<64x1xf32>
    %183 = arith.subf %181, %182 : vector<64x1xf32>
    %cst_81 = arith.constant 0.000000e+00 : f32
    %184 = vector.broadcast %cst_81 : f32 to vector<64x1xf32>
    %185 = arith.maximumf %183, %184 : vector<64x1xf32>
    %cst_82 = arith.constant 9.99999974E-6 : f32
    %186 = vector.broadcast %cst_82 : f32 to vector<64x1xf32>
    %187 = arith.addf %185, %186 : vector<64x1xf32>
    %188 = math.rsqrt %187 : vector<64x1xf32>
    %c256 = arith.constant 256 : index
    %c0_83 = arith.constant 0 : index
    %189 = vector.load %arg12[%c256, %c0_83] : memref<1408x2xf32, #tpu.memory_space<vmem>>, vector<64x2xf32>
    %c960 = arith.constant 960 : index
    %c0_84 = arith.constant 0 : index
    %190 = vector.load %arg12[%c960, %c0_84] : memref<1408x2xf32, #tpu.memory_space<vmem>>, vector<64x2xf32>
    %191 = vector.broadcast %188 : vector<64x1xf32> to vector<64x2xf32>
    %192 = arith.mulf %189, %191 : vector<64x2xf32>
    %193 = vector.broadcast %178 : vector<64x1xf32> to vector<64x2xf32>
    %194 = arith.mulf %193, %192 : vector<64x2xf32>
    %195 = arith.subf %190, %194 : vector<64x2xf32>
    %196 = tpu.concatenate %192, %195 in 0 : vector<64x2xf32>, vector<64x2xf32> -> vector<128x2xf32>
    %cst_85 = arith.constant dense<0.000000e+00> : vector<128x128xf32>
    %197 = tpu.matmul %196, %7, %cst_85 {dimension_numbers = #tpu.dot_dimension_numbers<[1], [0], [0], [1], [0, 0, 1, 1], [], []>} : vector<128x2xf32>, vector<2x128xf32>, vector<128x128xf32> -> vector<128x128xf32>
    %198 = vector.extract_strided_slice %197 {offsets = [0, 0], sizes = [64, 128], strides = [1, 1]} : vector<128x128xf32> to vector<64x128xf32>
    %199 = arith.mulf %171, %198 : vector<64x128xf32>
    %200 = vector.extract_strided_slice %197 {offsets = [64, 0], sizes = [64, 128], strides = [1, 1]} : vector<128x128xf32> to vector<64x128xf32>
    %201 = arith.addf %199, %200 : vector<64x128xf32>
    %cst_86 = arith.constant 0.000000e+00 : f32
    %202 = vector.broadcast %cst_86 : f32 to vector<64x128xf32>
    %203 = arith.maximumf %201, %202 : vector<64x128xf32>
    %c4 = arith.constant 4 : index
    %c0_87 = arith.constant 0 : index
    %c0_88 = arith.constant 0 : index
    %204 = vector.load %arg7[%c4, %c0_87, %c0_88] : memref<10x64x64xf32, #tpu.memory_space<vmem>>, vector<1x64x64xf32>
    %205 = vector.shape_cast %204 : vector<1x64x64xf32> to vector<64x64xf32>
    %c4_89 = arith.constant 4 : index
    %c0_90 = arith.constant 0 : index
    %c0_91 = arith.constant 0 : index
    %206 = vector.load %arg8[%c4_89, %c0_90, %c0_91] : memref<10x64x1xf32, #tpu.memory_space<vmem>>, vector<1x64x1xf32>
    %207 = vector.shape_cast %206 : vector<1x64x1xf32> to vector<64x1xf32>
    %cst_92 = arith.constant dense<0.000000e+00> : vector<64x128xf32>
    %208 = tpu.matmul %205, %203, %cst_92 {dimension_numbers = #tpu.dot_dimension_numbers<[1], [0], [0], [1], [0, 0, 1, 1], [], []>} : vector<64x64xf32>, vector<64x128xf32>, vector<64x128xf32> -> vector<64x128xf32>
    %209 = vector.broadcast %207 : vector<64x1xf32> to vector<64x128xf32>
    %210 = arith.addf %208, %209 : vector<64x128xf32>
    %211 = arith.mulf %210, %210 : vector<64x128xf32>
    %212 = tpu.concatenate %210, %211 in 0 : vector<64x128xf32>, vector<64x128xf32> -> vector<128x128xf32>
    %cst_93 = arith.constant dense<0.000000e+00> : vector<128xf32>
    %213 = vector.multi_reduction <add>, %212, %cst_93 [1] : vector<128x128xf32> to vector<128xf32>
    %214 = vector.shape_cast %213 : vector<128xf32> to vector<128x1xf32>
    %215 = vector.extract_strided_slice %214 {offsets = [0, 0], sizes = [64, 1], strides = [1, 1]} : vector<128x1xf32> to vector<64x1xf32>
    %cst_94 = arith.constant 7.812500e-03 : f32
    %216 = vector.broadcast %cst_94 : f32 to vector<64x1xf32>
    %217 = arith.mulf %215, %216 : vector<64x1xf32>
    %218 = vector.extract_strided_slice %214 {offsets = [64, 0], sizes = [64, 1], strides = [1, 1]} : vector<128x1xf32> to vector<64x1xf32>
    %cst_95 = arith.constant 7.812500e-03 : f32
    %219 = vector.broadcast %cst_95 : f32 to vector<64x1xf32>
    %220 = arith.mulf %218, %219 : vector<64x1xf32>
    %221 = arith.mulf %217, %217 : vector<64x1xf32>
    %222 = arith.subf %220, %221 : vector<64x1xf32>
    %cst_96 = arith.constant 0.000000e+00 : f32
    %223 = vector.broadcast %cst_96 : f32 to vector<64x1xf32>
    %224 = arith.maximumf %222, %223 : vector<64x1xf32>
    %cst_97 = arith.constant 9.99999974E-6 : f32
    %225 = vector.broadcast %cst_97 : f32 to vector<64x1xf32>
    %226 = arith.addf %224, %225 : vector<64x1xf32>
    %227 = math.rsqrt %226 : vector<64x1xf32>
    %c320 = arith.constant 320 : index
    %c0_98 = arith.constant 0 : index
    %228 = vector.load %arg12[%c320, %c0_98] : memref<1408x2xf32, #tpu.memory_space<vmem>>, vector<64x2xf32>
    %c1024 = arith.constant 1024 : index
    %c0_99 = arith.constant 0 : index
    %229 = vector.load %arg12[%c1024, %c0_99] : memref<1408x2xf32, #tpu.memory_space<vmem>>, vector<64x2xf32>
    %230 = vector.broadcast %227 : vector<64x1xf32> to vector<64x2xf32>
    %231 = arith.mulf %228, %230 : vector<64x2xf32>
    %232 = vector.broadcast %217 : vector<64x1xf32> to vector<64x2xf32>
    %233 = arith.mulf %232, %231 : vector<64x2xf32>
    %234 = arith.subf %229, %233 : vector<64x2xf32>
    %235 = tpu.concatenate %231, %234 in 0 : vector<64x2xf32>, vector<64x2xf32> -> vector<128x2xf32>
    %cst_100 = arith.constant dense<0.000000e+00> : vector<128x128xf32>
    %236 = tpu.matmul %235, %7, %cst_100 {dimension_numbers = #tpu.dot_dimension_numbers<[1], [0], [0], [1], [0, 0, 1, 1], [], []>} : vector<128x2xf32>, vector<2x128xf32>, vector<128x128xf32> -> vector<128x128xf32>
    %237 = vector.extract_strided_slice %236 {offsets = [0, 0], sizes = [64, 128], strides = [1, 1]} : vector<128x128xf32> to vector<64x128xf32>
    %238 = arith.mulf %210, %237 : vector<64x128xf32>
    %239 = vector.extract_strided_slice %236 {offsets = [64, 0], sizes = [64, 128], strides = [1, 1]} : vector<128x128xf32> to vector<64x128xf32>
    %240 = arith.addf %238, %239 : vector<64x128xf32>
    %cst_101 = arith.constant 0.000000e+00 : f32
    %241 = vector.broadcast %cst_101 : f32 to vector<64x128xf32>
    %242 = arith.maximumf %240, %241 : vector<64x128xf32>
    %c5 = arith.constant 5 : index
    %c0_102 = arith.constant 0 : index
    %c0_103 = arith.constant 0 : index
    %243 = vector.load %arg7[%c5, %c0_102, %c0_103] : memref<10x64x64xf32, #tpu.memory_space<vmem>>, vector<1x64x64xf32>
    %244 = vector.shape_cast %243 : vector<1x64x64xf32> to vector<64x64xf32>
    %c5_104 = arith.constant 5 : index
    %c0_105 = arith.constant 0 : index
    %c0_106 = arith.constant 0 : index
    %245 = vector.load %arg8[%c5_104, %c0_105, %c0_106] : memref<10x64x1xf32, #tpu.memory_space<vmem>>, vector<1x64x1xf32>
    %246 = vector.shape_cast %245 : vector<1x64x1xf32> to vector<64x1xf32>
    %cst_107 = arith.constant dense<0.000000e+00> : vector<64x128xf32>
    %247 = tpu.matmul %244, %242, %cst_107 {dimension_numbers = #tpu.dot_dimension_numbers<[1], [0], [0], [1], [0, 0, 1, 1], [], []>} : vector<64x64xf32>, vector<64x128xf32>, vector<64x128xf32> -> vector<64x128xf32>
    %248 = vector.broadcast %246 : vector<64x1xf32> to vector<64x128xf32>
    %249 = arith.addf %247, %248 : vector<64x128xf32>
    %250 = arith.addf %171, %249 : vector<64x128xf32>
    %251 = arith.mulf %250, %250 : vector<64x128xf32>
    %252 = tpu.concatenate %250, %251 in 0 : vector<64x128xf32>, vector<64x128xf32> -> vector<128x128xf32>
    %cst_108 = arith.constant dense<0.000000e+00> : vector<128xf32>
    %253 = vector.multi_reduction <add>, %252, %cst_108 [1] : vector<128x128xf32> to vector<128xf32>
    %254 = vector.shape_cast %253 : vector<128xf32> to vector<128x1xf32>
    %255 = vector.extract_strided_slice %254 {offsets = [0, 0], sizes = [64, 1], strides = [1, 1]} : vector<128x1xf32> to vector<64x1xf32>
    %cst_109 = arith.constant 7.812500e-03 : f32
    %256 = vector.broadcast %cst_109 : f32 to vector<64x1xf32>
    %257 = arith.mulf %255, %256 : vector<64x1xf32>
    %258 = vector.extract_strided_slice %254 {offsets = [64, 0], sizes = [64, 1], strides = [1, 1]} : vector<128x1xf32> to vector<64x1xf32>
    %cst_110 = arith.constant 7.812500e-03 : f32
    %259 = vector.broadcast %cst_110 : f32 to vector<64x1xf32>
    %260 = arith.mulf %258, %259 : vector<64x1xf32>
    %261 = arith.mulf %257, %257 : vector<64x1xf32>
    %262 = arith.subf %260, %261 : vector<64x1xf32>
    %cst_111 = arith.constant 0.000000e+00 : f32
    %263 = vector.broadcast %cst_111 : f32 to vector<64x1xf32>
    %264 = arith.maximumf %262, %263 : vector<64x1xf32>
    %cst_112 = arith.constant 9.99999974E-6 : f32
    %265 = vector.broadcast %cst_112 : f32 to vector<64x1xf32>
    %266 = arith.addf %264, %265 : vector<64x1xf32>
    %267 = math.rsqrt %266 : vector<64x1xf32>
    %c384 = arith.constant 384 : index
    %c0_113 = arith.constant 0 : index
    %268 = vector.load %arg12[%c384, %c0_113] : memref<1408x2xf32, #tpu.memory_space<vmem>>, vector<64x2xf32>
    %c1088 = arith.constant 1088 : index
    %c0_114 = arith.constant 0 : index
    %269 = vector.load %arg12[%c1088, %c0_114] : memref<1408x2xf32, #tpu.memory_space<vmem>>, vector<64x2xf32>
    %270 = vector.broadcast %267 : vector<64x1xf32> to vector<64x2xf32>
    %271 = arith.mulf %268, %270 : vector<64x2xf32>
    %272 = vector.broadcast %257 : vector<64x1xf32> to vector<64x2xf32>
    %273 = arith.mulf %272, %271 : vector<64x2xf32>
    %274 = arith.subf %269, %273 : vector<64x2xf32>
    %275 = tpu.concatenate %271, %274 in 0 : vector<64x2xf32>, vector<64x2xf32> -> vector<128x2xf32>
    %cst_115 = arith.constant dense<0.000000e+00> : vector<128x128xf32>
    %276 = tpu.matmul %275, %7, %cst_115 {dimension_numbers = #tpu.dot_dimension_numbers<[1], [0], [0], [1], [0, 0, 1, 1], [], []>} : vector<128x2xf32>, vector<2x128xf32>, vector<128x128xf32> -> vector<128x128xf32>
    %277 = vector.extract_strided_slice %276 {offsets = [0, 0], sizes = [64, 128], strides = [1, 1]} : vector<128x128xf32> to vector<64x128xf32>
    %278 = arith.mulf %250, %277 : vector<64x128xf32>
    %279 = vector.extract_strided_slice %276 {offsets = [64, 0], sizes = [64, 128], strides = [1, 1]} : vector<128x128xf32> to vector<64x128xf32>
    %280 = arith.addf %278, %279 : vector<64x128xf32>
    %cst_116 = arith.constant 0.000000e+00 : f32
    %281 = vector.broadcast %cst_116 : f32 to vector<64x128xf32>
    %282 = arith.maximumf %280, %281 : vector<64x128xf32>
    %c6 = arith.constant 6 : index
    %c0_117 = arith.constant 0 : index
    %c0_118 = arith.constant 0 : index
    %283 = vector.load %arg7[%c6, %c0_117, %c0_118] : memref<10x64x64xf32, #tpu.memory_space<vmem>>, vector<1x64x64xf32>
    %284 = vector.shape_cast %283 : vector<1x64x64xf32> to vector<64x64xf32>
    %c6_119 = arith.constant 6 : index
    %c0_120 = arith.constant 0 : index
    %c0_121 = arith.constant 0 : index
    %285 = vector.load %arg8[%c6_119, %c0_120, %c0_121] : memref<10x64x1xf32, #tpu.memory_space<vmem>>, vector<1x64x1xf32>
    %286 = vector.shape_cast %285 : vector<1x64x1xf32> to vector<64x1xf32>
    %cst_122 = arith.constant dense<0.000000e+00> : vector<64x128xf32>
    %287 = tpu.matmul %284, %282, %cst_122 {dimension_numbers = #tpu.dot_dimension_numbers<[1], [0], [0], [1], [0, 0, 1, 1], [], []>} : vector<64x64xf32>, vector<64x128xf32>, vector<64x128xf32> -> vector<64x128xf32>
    %288 = vector.broadcast %286 : vector<64x1xf32> to vector<64x128xf32>
    %289 = arith.addf %287, %288 : vector<64x128xf32>
    %290 = arith.mulf %289, %289 : vector<64x128xf32>
    %291 = tpu.concatenate %289, %290 in 0 : vector<64x128xf32>, vector<64x128xf32> -> vector<128x128xf32>
    %cst_123 = arith.constant dense<0.000000e+00> : vector<128xf32>
    %292 = vector.multi_reduction <add>, %291, %cst_123 [1] : vector<128x128xf32> to vector<128xf32>
    %293 = vector.shape_cast %292 : vector<128xf32> to vector<128x1xf32>
    %294 = vector.extract_strided_slice %293 {offsets = [0, 0], sizes = [64, 1], strides = [1, 1]} : vector<128x1xf32> to vector<64x1xf32>
    %cst_124 = arith.constant 7.812500e-03 : f32
    %295 = vector.broadcast %cst_124 : f32 to vector<64x1xf32>
    %296 = arith.mulf %294, %295 : vector<64x1xf32>
    %297 = vector.extract_strided_slice %293 {offsets = [64, 0], sizes = [64, 1], strides = [1, 1]} : vector<128x1xf32> to vector<64x1xf32>
    %cst_125 = arith.constant 7.812500e-03 : f32
    %298 = vector.broadcast %cst_125 : f32 to vector<64x1xf32>
    %299 = arith.mulf %297, %298 : vector<64x1xf32>
    %300 = arith.mulf %296, %296 : vector<64x1xf32>
    %301 = arith.subf %299, %300 : vector<64x1xf32>
    %cst_126 = arith.constant 0.000000e+00 : f32
    %302 = vector.broadcast %cst_126 : f32 to vector<64x1xf32>
    %303 = arith.maximumf %301, %302 : vector<64x1xf32>
    %cst_127 = arith.constant 9.99999974E-6 : f32
    %304 = vector.broadcast %cst_127 : f32 to vector<64x1xf32>
    %305 = arith.addf %303, %304 : vector<64x1xf32>
    %306 = math.rsqrt %305 : vector<64x1xf32>
    %c448 = arith.constant 448 : index
    %c0_128 = arith.constant 0 : index
    %307 = vector.load %arg12[%c448, %c0_128] : memref<1408x2xf32, #tpu.memory_space<vmem>>, vector<64x2xf32>
    %c1152 = arith.constant 1152 : index
    %c0_129 = arith.constant 0 : index
    %308 = vector.load %arg12[%c1152, %c0_129] : memref<1408x2xf32, #tpu.memory_space<vmem>>, vector<64x2xf32>
    %309 = vector.broadcast %306 : vector<64x1xf32> to vector<64x2xf32>
    %310 = arith.mulf %307, %309 : vector<64x2xf32>
    %311 = vector.broadcast %296 : vector<64x1xf32> to vector<64x2xf32>
    %312 = arith.mulf %311, %310 : vector<64x2xf32>
    %313 = arith.subf %308, %312 : vector<64x2xf32>
    %314 = tpu.concatenate %310, %313 in 0 : vector<64x2xf32>, vector<64x2xf32> -> vector<128x2xf32>
    %cst_130 = arith.constant dense<0.000000e+00> : vector<128x128xf32>
    %315 = tpu.matmul %314, %7, %cst_130 {dimension_numbers = #tpu.dot_dimension_numbers<[1], [0], [0], [1], [0, 0, 1, 1], [], []>} : vector<128x2xf32>, vector<2x128xf32>, vector<128x128xf32> -> vector<128x128xf32>
    %316 = vector.extract_strided_slice %315 {offsets = [0, 0], sizes = [64, 128], strides = [1, 1]} : vector<128x128xf32> to vector<64x128xf32>
    %317 = arith.mulf %289, %316 : vector<64x128xf32>
    %318 = vector.extract_strided_slice %315 {offsets = [64, 0], sizes = [64, 128], strides = [1, 1]} : vector<128x128xf32> to vector<64x128xf32>
    %319 = arith.addf %317, %318 : vector<64x128xf32>
    %cst_131 = arith.constant 0.000000e+00 : f32
    %320 = vector.broadcast %cst_131 : f32 to vector<64x128xf32>
    %321 = arith.maximumf %319, %320 : vector<64x128xf32>
    %c7 = arith.constant 7 : index
    %c0_132 = arith.constant 0 : index
    %c0_133 = arith.constant 0 : index
    %322 = vector.load %arg7[%c7, %c0_132, %c0_133] : memref<10x64x64xf32, #tpu.memory_space<vmem>>, vector<1x64x64xf32>
    %323 = vector.shape_cast %322 : vector<1x64x64xf32> to vector<64x64xf32>
    %c7_134 = arith.constant 7 : index
    %c0_135 = arith.constant 0 : index
    %c0_136 = arith.constant 0 : index
    %324 = vector.load %arg8[%c7_134, %c0_135, %c0_136] : memref<10x64x1xf32, #tpu.memory_space<vmem>>, vector<1x64x1xf32>
    %325 = vector.shape_cast %324 : vector<1x64x1xf32> to vector<64x1xf32>
    %cst_137 = arith.constant dense<0.000000e+00> : vector<64x128xf32>
    %326 = tpu.matmul %323, %321, %cst_137 {dimension_numbers = #tpu.dot_dimension_numbers<[1], [0], [0], [1], [0, 0, 1, 1], [], []>} : vector<64x64xf32>, vector<64x128xf32>, vector<64x128xf32> -> vector<64x128xf32>
    %327 = vector.broadcast %325 : vector<64x1xf32> to vector<64x128xf32>
    %328 = arith.addf %326, %327 : vector<64x128xf32>
    %329 = arith.addf %250, %328 : vector<64x128xf32>
    %330 = arith.mulf %329, %329 : vector<64x128xf32>
    %331 = tpu.concatenate %329, %330 in 0 : vector<64x128xf32>, vector<64x128xf32> -> vector<128x128xf32>
    %cst_138 = arith.constant dense<0.000000e+00> : vector<128xf32>
    %332 = vector.multi_reduction <add>, %331, %cst_138 [1] : vector<128x128xf32> to vector<128xf32>
    %333 = vector.shape_cast %332 : vector<128xf32> to vector<128x1xf32>
    %334 = vector.extract_strided_slice %333 {offsets = [0, 0], sizes = [64, 1], strides = [1, 1]} : vector<128x1xf32> to vector<64x1xf32>
    %cst_139 = arith.constant 7.812500e-03 : f32
    %335 = vector.broadcast %cst_139 : f32 to vector<64x1xf32>
    %336 = arith.mulf %334, %335 : vector<64x1xf32>
    %337 = vector.extract_strided_slice %333 {offsets = [64, 0], sizes = [64, 1], strides = [1, 1]} : vector<128x1xf32> to vector<64x1xf32>
    %cst_140 = arith.constant 7.812500e-03 : f32
    %338 = vector.broadcast %cst_140 : f32 to vector<64x1xf32>
    %339 = arith.mulf %337, %338 : vector<64x1xf32>
    %340 = arith.mulf %336, %336 : vector<64x1xf32>
    %341 = arith.subf %339, %340 : vector<64x1xf32>
    %cst_141 = arith.constant 0.000000e+00 : f32
    %342 = vector.broadcast %cst_141 : f32 to vector<64x1xf32>
    %343 = arith.maximumf %341, %342 : vector<64x1xf32>
    %cst_142 = arith.constant 9.99999974E-6 : f32
    %344 = vector.broadcast %cst_142 : f32 to vector<64x1xf32>
    %345 = arith.addf %343, %344 : vector<64x1xf32>
    %346 = math.rsqrt %345 : vector<64x1xf32>
    %c512 = arith.constant 512 : index
    %c0_143 = arith.constant 0 : index
    %347 = vector.load %arg12[%c512, %c0_143] : memref<1408x2xf32, #tpu.memory_space<vmem>>, vector<64x2xf32>
    %c1216 = arith.constant 1216 : index
    %c0_144 = arith.constant 0 : index
    %348 = vector.load %arg12[%c1216, %c0_144] : memref<1408x2xf32, #tpu.memory_space<vmem>>, vector<64x2xf32>
    %349 = vector.broadcast %346 : vector<64x1xf32> to vector<64x2xf32>
    %350 = arith.mulf %347, %349 : vector<64x2xf32>
    %351 = vector.broadcast %336 : vector<64x1xf32> to vector<64x2xf32>
    %352 = arith.mulf %351, %350 : vector<64x2xf32>
    %353 = arith.subf %348, %352 : vector<64x2xf32>
    %354 = tpu.concatenate %350, %353 in 0 : vector<64x2xf32>, vector<64x2xf32> -> vector<128x2xf32>
    %cst_145 = arith.constant dense<0.000000e+00> : vector<128x128xf32>
    %355 = tpu.matmul %354, %7, %cst_145 {dimension_numbers = #tpu.dot_dimension_numbers<[1], [0], [0], [1], [0, 0, 1, 1], [], []>} : vector<128x2xf32>, vector<2x128xf32>, vector<128x128xf32> -> vector<128x128xf32>
    %356 = vector.extract_strided_slice %355 {offsets = [0, 0], sizes = [64, 128], strides = [1, 1]} : vector<128x128xf32> to vector<64x128xf32>
    %357 = arith.mulf %329, %356 : vector<64x128xf32>
    %358 = vector.extract_strided_slice %355 {offsets = [64, 0], sizes = [64, 128], strides = [1, 1]} : vector<128x128xf32> to vector<64x128xf32>
    %359 = arith.addf %357, %358 : vector<64x128xf32>
    %cst_146 = arith.constant 0.000000e+00 : f32
    %360 = vector.broadcast %cst_146 : f32 to vector<64x128xf32>
    %361 = arith.maximumf %359, %360 : vector<64x128xf32>
    %c8 = arith.constant 8 : index
    %c0_147 = arith.constant 0 : index
    %c0_148 = arith.constant 0 : index
    %362 = vector.load %arg7[%c8, %c0_147, %c0_148] : memref<10x64x64xf32, #tpu.memory_space<vmem>>, vector<1x64x64xf32>
    %363 = vector.shape_cast %362 : vector<1x64x64xf32> to vector<64x64xf32>
    %c8_149 = arith.constant 8 : index
    %c0_150 = arith.constant 0 : index
    %c0_151 = arith.constant 0 : index
    %364 = vector.load %arg8[%c8_149, %c0_150, %c0_151] : memref<10x64x1xf32, #tpu.memory_space<vmem>>, vector<1x64x1xf32>
    %365 = vector.shape_cast %364 : vector<1x64x1xf32> to vector<64x1xf32>
    %cst_152 = arith.constant dense<0.000000e+00> : vector<64x128xf32>
    %366 = tpu.matmul %363, %361, %cst_152 {dimension_numbers = #tpu.dot_dimension_numbers<[1], [0], [0], [1], [0, 0, 1, 1], [], []>} : vector<64x64xf32>, vector<64x128xf32>, vector<64x128xf32> -> vector<64x128xf32>
    %367 = vector.broadcast %365 : vector<64x1xf32> to vector<64x128xf32>
    %368 = arith.addf %366, %367 : vector<64x128xf32>
    %369 = arith.mulf %368, %368 : vector<64x128xf32>
    %370 = tpu.concatenate %368, %369 in 0 : vector<64x128xf32>, vector<64x128xf32> -> vector<128x128xf32>
    %cst_153 = arith.constant dense<0.000000e+00> : vector<128xf32>
    %371 = vector.multi_reduction <add>, %370, %cst_153 [1] : vector<128x128xf32> to vector<128xf32>
    %372 = vector.shape_cast %371 : vector<128xf32> to vector<128x1xf32>
    %373 = vector.extract_strided_slice %372 {offsets = [0, 0], sizes = [64, 1], strides = [1, 1]} : vector<128x1xf32> to vector<64x1xf32>
    %cst_154 = arith.constant 7.812500e-03 : f32
    %374 = vector.broadcast %cst_154 : f32 to vector<64x1xf32>
    %375 = arith.mulf %373, %374 : vector<64x1xf32>
    %376 = vector.extract_strided_slice %372 {offsets = [64, 0], sizes = [64, 1], strides = [1, 1]} : vector<128x1xf32> to vector<64x1xf32>
    %cst_155 = arith.constant 7.812500e-03 : f32
    %377 = vector.broadcast %cst_155 : f32 to vector<64x1xf32>
    %378 = arith.mulf %376, %377 : vector<64x1xf32>
    %379 = arith.mulf %375, %375 : vector<64x1xf32>
    %380 = arith.subf %378, %379 : vector<64x1xf32>
    %cst_156 = arith.constant 0.000000e+00 : f32
    %381 = vector.broadcast %cst_156 : f32 to vector<64x1xf32>
    %382 = arith.maximumf %380, %381 : vector<64x1xf32>
    %cst_157 = arith.constant 9.99999974E-6 : f32
    %383 = vector.broadcast %cst_157 : f32 to vector<64x1xf32>
    %384 = arith.addf %382, %383 : vector<64x1xf32>
    %385 = math.rsqrt %384 : vector<64x1xf32>
    %c576 = arith.constant 576 : index
    %c0_158 = arith.constant 0 : index
    %386 = vector.load %arg12[%c576, %c0_158] : memref<1408x2xf32, #tpu.memory_space<vmem>>, vector<64x2xf32>
    %c1280 = arith.constant 1280 : index
    %c0_159 = arith.constant 0 : index
    %387 = vector.load %arg12[%c1280, %c0_159] : memref<1408x2xf32, #tpu.memory_space<vmem>>, vector<64x2xf32>
    %388 = vector.broadcast %385 : vector<64x1xf32> to vector<64x2xf32>
    %389 = arith.mulf %386, %388 : vector<64x2xf32>
    %390 = vector.broadcast %375 : vector<64x1xf32> to vector<64x2xf32>
    %391 = arith.mulf %390, %389 : vector<64x2xf32>
    %392 = arith.subf %387, %391 : vector<64x2xf32>
    %393 = tpu.concatenate %389, %392 in 0 : vector<64x2xf32>, vector<64x2xf32> -> vector<128x2xf32>
    %cst_160 = arith.constant dense<0.000000e+00> : vector<128x128xf32>
    %394 = tpu.matmul %393, %7, %cst_160 {dimension_numbers = #tpu.dot_dimension_numbers<[1], [0], [0], [1], [0, 0, 1, 1], [], []>} : vector<128x2xf32>, vector<2x128xf32>, vector<128x128xf32> -> vector<128x128xf32>
    %395 = vector.extract_strided_slice %394 {offsets = [0, 0], sizes = [64, 128], strides = [1, 1]} : vector<128x128xf32> to vector<64x128xf32>
    %396 = arith.mulf %368, %395 : vector<64x128xf32>
    %397 = vector.extract_strided_slice %394 {offsets = [64, 0], sizes = [64, 128], strides = [1, 1]} : vector<128x128xf32> to vector<64x128xf32>
    %398 = arith.addf %396, %397 : vector<64x128xf32>
    %cst_161 = arith.constant 0.000000e+00 : f32
    %399 = vector.broadcast %cst_161 : f32 to vector<64x128xf32>
    %400 = arith.maximumf %398, %399 : vector<64x128xf32>
    %c9 = arith.constant 9 : index
    %c0_162 = arith.constant 0 : index
    %c0_163 = arith.constant 0 : index
    %401 = vector.load %arg7[%c9, %c0_162, %c0_163] : memref<10x64x64xf32, #tpu.memory_space<vmem>>, vector<1x64x64xf32>
    %402 = vector.shape_cast %401 : vector<1x64x64xf32> to vector<64x64xf32>
    %c9_164 = arith.constant 9 : index
    %c0_165 = arith.constant 0 : index
    %c0_166 = arith.constant 0 : index
    %403 = vector.load %arg8[%c9_164, %c0_165, %c0_166] : memref<10x64x1xf32, #tpu.memory_space<vmem>>, vector<1x64x1xf32>
    %404 = vector.shape_cast %403 : vector<1x64x1xf32> to vector<64x1xf32>
    %cst_167 = arith.constant dense<0.000000e+00> : vector<64x128xf32>
    %405 = tpu.matmul %402, %400, %cst_167 {dimension_numbers = #tpu.dot_dimension_numbers<[1], [0], [0], [1], [0, 0, 1, 1], [], []>} : vector<64x64xf32>, vector<64x128xf32>, vector<64x128xf32> -> vector<64x128xf32>
    %406 = vector.broadcast %404 : vector<64x1xf32> to vector<64x128xf32>
    %407 = arith.addf %405, %406 : vector<64x128xf32>
    %408 = arith.addf %329, %407 : vector<64x128xf32>
    %409 = arith.mulf %408, %408 : vector<64x128xf32>
    %410 = tpu.concatenate %408, %409 in 0 : vector<64x128xf32>, vector<64x128xf32> -> vector<128x128xf32>
    %cst_168 = arith.constant dense<0.000000e+00> : vector<128xf32>
    %411 = vector.multi_reduction <add>, %410, %cst_168 [1] : vector<128x128xf32> to vector<128xf32>
    %412 = vector.shape_cast %411 : vector<128xf32> to vector<128x1xf32>
    %413 = vector.extract_strided_slice %412 {offsets = [0, 0], sizes = [64, 1], strides = [1, 1]} : vector<128x1xf32> to vector<64x1xf32>
    %cst_169 = arith.constant 7.812500e-03 : f32
    %414 = vector.broadcast %cst_169 : f32 to vector<64x1xf32>
    %415 = arith.mulf %413, %414 : vector<64x1xf32>
    %416 = vector.extract_strided_slice %412 {offsets = [64, 0], sizes = [64, 1], strides = [1, 1]} : vector<128x1xf32> to vector<64x1xf32>
    %cst_170 = arith.constant 7.812500e-03 : f32
    %417 = vector.broadcast %cst_170 : f32 to vector<64x1xf32>
    %418 = arith.mulf %416, %417 : vector<64x1xf32>
    %419 = arith.mulf %415, %415 : vector<64x1xf32>
    %420 = arith.subf %418, %419 : vector<64x1xf32>
    %cst_171 = arith.constant 0.000000e+00 : f32
    %421 = vector.broadcast %cst_171 : f32 to vector<64x1xf32>
    %422 = arith.maximumf %420, %421 : vector<64x1xf32>
    %cst_172 = arith.constant 9.99999974E-6 : f32
    %423 = vector.broadcast %cst_172 : f32 to vector<64x1xf32>
    %424 = arith.addf %422, %423 : vector<64x1xf32>
    %425 = math.rsqrt %424 : vector<64x1xf32>
    %c640 = arith.constant 640 : index
    %c0_173 = arith.constant 0 : index
    %426 = vector.load %arg12[%c640, %c0_173] : memref<1408x2xf32, #tpu.memory_space<vmem>>, vector<64x2xf32>
    %c1344 = arith.constant 1344 : index
    %c0_174 = arith.constant 0 : index
    %427 = vector.load %arg12[%c1344, %c0_174] : memref<1408x2xf32, #tpu.memory_space<vmem>>, vector<64x2xf32>
    %428 = vector.broadcast %425 : vector<64x1xf32> to vector<64x2xf32>
    %429 = arith.mulf %426, %428 : vector<64x2xf32>
    %430 = vector.broadcast %415 : vector<64x1xf32> to vector<64x2xf32>
    %431 = arith.mulf %430, %429 : vector<64x2xf32>
    %432 = arith.subf %427, %431 : vector<64x2xf32>
    %433 = tpu.concatenate %429, %432 in 0 : vector<64x2xf32>, vector<64x2xf32> -> vector<128x2xf32>
    %cst_175 = arith.constant dense<0.000000e+00> : vector<128x128xf32>
    %434 = tpu.matmul %433, %7, %cst_175 {dimension_numbers = #tpu.dot_dimension_numbers<[1], [0], [0], [1], [0, 0, 1, 1], [], []>} : vector<128x2xf32>, vector<2x128xf32>, vector<128x128xf32> -> vector<128x128xf32>
    %435 = vector.extract_strided_slice %434 {offsets = [0, 0], sizes = [64, 128], strides = [1, 1]} : vector<128x128xf32> to vector<64x128xf32>
    %436 = arith.mulf %408, %435 : vector<64x128xf32>
    %437 = vector.extract_strided_slice %434 {offsets = [64, 0], sizes = [64, 128], strides = [1, 1]} : vector<128x128xf32> to vector<64x128xf32>
    %438 = arith.addf %436, %437 : vector<64x128xf32>
    %cst_176 = arith.constant 0.000000e+00 : f32
    %439 = vector.broadcast %cst_176 : f32 to vector<64x128xf32>
    %440 = arith.maximumf %438, %439 : vector<64x128xf32>
    %c0_177 = arith.constant 0 : index
    %c0_178 = arith.constant 0 : index
    %441 = vector.load %arg9[%c0_177, %c0_178] : memref<1x64xf32, #tpu.memory_space<vmem>>, vector<1x64xf32>
    %cst_179 = arith.constant dense<0.000000e+00> : vector<1x128xf32>
    %442 = tpu.matmul %441, %440, %cst_179 {dimension_numbers = #tpu.dot_dimension_numbers<[1], [0], [0], [1], [0, 0, 1, 1], [], []>} : vector<1x64xf32>, vector<64x128xf32>, vector<1x128xf32> -> vector<1x128xf32>
    %c0_180 = arith.constant 0 : index
    %c0_181 = arith.constant 0 : index
    %443 = vector.load %arg10[%c0_180, %c0_181] : memref<1x1xf32, #tpu.memory_space<vmem>>, vector<1x1xf32>
    %444 = vector.broadcast %443 : vector<1x1xf32> to vector<1x128xf32>
    %445 = arith.addf %442, %444 : vector<1x128xf32>
    %c0_182 = arith.constant 0 : index
    %c0_183 = arith.constant 0 : index
    %446 = vector.load %arg11[%c0_182, %c0_183] : memref<1x128xf32, #tpu.memory_space<vmem>>, vector<1x128xf32>
    tpu.vector_store %arg11[%c0_182, %c0_183], %445 {strides = array<i32>} : memref<1x128xf32, #tpu.memory_space<vmem>>, vector<1x128xf32>,
    return
  }
}

</mosaic_0001>

<bundles_post_ra>
// kernel: tpu_custom_call.1
= control target key start
LH: loop header
LB: loop body
LE: loop exit
PB: predicated region body
PF: predicated region fallthrough
CT: control target
= control target key end

     0   :  { %s15548_s0 = inlined_call_operand.vmem [shape: f32[8,128], index: 0, kind: input, shape index: {}]   ;;  %s15549_s1 = inlined_call_operand.vmem [shape: f32[16,2], index: 1, kind: input, shape index: {}]   ;;  %s15550_s2 = inlined_call_operand.vmem [shape: f32[2,128], index: 2, kind: input, shape index: {}]   ;;  %s15551_s3 = inlined_call_operand.vmem [shape: f32[64,8], index: 3, kind: input, shape index: {}]   ;;  %s15552_s4 = inlined_call_operand.vmem [shape: f32[64,1], index: 4, kind: input, shape index: {}]   ;;  %s15553_s5 = inlined_call_operand.vmem [shape: f32[1408,16], index: 5, kind: input, shape index: {}]   ;;  %s15554_s6 = inlined_call_operand.vmem [shape: f32[1408,1], index: 6, kind: input, shape index: {}]   ;;  %s15555_s7 = inlined_call_operand.vmem [shape: f32[10,64,64], index: 7, kind: input, shape index: {}]   ;;  %s15556_s8 = inlined_call_operand.vmem [shape: f32[10,64,1], index: 8, kind: input, shape index: {}]   ;;  %s15557_s9 = inlined_call_operand.vmem [shape: f32[1,64], index: 9, kind: input, shape index: {}]   ;;  %s15558_s10 = inlined_call_operand.<no memory space> [shape: f32[1,1], index: 10, kind: input, shape index: {}]   ;;  %s15559_s11 = inlined_call_operand.hbm [shape: f32[1,128], index: 11, kind: output, shape index: {}]  }
   0x1   :  { %v16_v0 = vstv %s15558_s10 }
   0x2   :  { %17 = vst [vmem:[#allocation3] sm:$0x1] %v16_v0 }
   0x3   :  { %v217_v1 = vld [vmem:[%s15549_s1] sm:$0xff]  ;;  %v218_v2 = vld [vmem:[%s15549_s1 + $0x8] sm:$0xff]  ;;  %vm1275_vm0 = vcmask 130048   ;;  %v215_v5 = vld [vmem:[%s15553_s5 + $0x570] sm:$0xff]  ;;  %v11405_v6 = vmov 0   ;;  %vm2984_vm1 = vcmask 64512  }
   0x4   :  { %v41_v3 = vld [vmem:[%s15553_s5] sm:$0xff]  ;;  %v11015_v4 = vpack.c.bf16 %v218_v2, %v217_v1  ;;  %11198 = vset.pattern.permute.xlu0 %v11405_v6  ;;  %10413 = vmatprep.mubr.msk.f32.mxu1 %vm1275_vm0, %v215_v5  ;;  %v42_v8 = vld [vmem:[%s15553_s5 + $0x8] sm:$0xff]  ;;  %v216_v9 = vld [vmem:[%s15553_s5 + $0x578] sm:$0xff] }
   0x5   :  { %10152 = vmatprep.mubr.msk.f32.mxu0 %vm1275_vm0, %v41_v3  ;;  %v2927_v7 = vld [vmem:[%s15548_s0] sm:$0xff]  ;;  %11199 = vset.pattern.permute.xlu1 %v11405_v6  ;;  %v43_v10 = vld [vmem:[%s15553_s5 + $0x10] sm:$0xff]  ;;  %v44_v12 = vld [vmem:[%s15553_s5 + $0x18] sm:$0xff] }
   0x6   :  { %11016 = vmatprep.subr.bf16.mxu0 %v11015_v4  ;;  %11191 = vmatprep.subr.bf16.mxu1 %v11015_v4  ;;  %v2928_v11 = vld [vmem:[%s15551_s3] sm:$0xff]  ;;  %v2929_v13 = vld [vmem:[%s15551_s3 + $0x8] sm:$0xff]  ;;  %v2930_v15 = vld [vmem:[%s15551_s3 + $0x10] sm:$0xff] }
   0x7   :  { %11018 = vmatpush3.bf16.msra.mxu0 %v11015_v4  ;;  %11192 = vmatpush3.bf16.msra.mxu1 %v11015_v4  ;;  %v45_v14 = vld [vmem:[%s15553_s5 + $0x20] sm:$0xff]  ;;  %v46_v16 = vld [vmem:[%s15553_s5 + $0x28] sm:$0xff]  ;;  %v2931_v17 = vld [vmem:[%s15551_s3 + $0x18] sm:$0xff] }
   0x8   :  { %10416 = vmatprep.subr.mxu1 %v2927_v7  ;;  %v47_v18 = vld [vmem:[%s15553_s5 + $0x30] sm:$0xff]  ;;  %v2932_v19 = vld [vmem:[%s15551_s3 + $0x20] sm:$0xff]  ;;  %v2937_v22 = vld [vmem:[%s15552_s4 + $0x8] sm:$0xff] }
   0x9   :  { %v2936_v20 = vld [vmem:[%s15552_s4] sm:$0xff]  ;;  %v2938_v21 = vld [vmem:[%s15552_s4 + $0x10] sm:$0xff]  ;;  %v48_v23 = vld [vmem:[%s15553_s5 + $0x38] sm:$0xff] }
   0xa   :  { %10153 = vmatmul.mubr.msk.f32.vlgmr.msra.gmra.mrb[0].mxu0 %vm1275_vm0, %v42_v8  ;;  %10414 = vmatmul.mubr.msk.f32.vlgmr.msra.gmra.mrb[0].mxu1 %vm1275_vm0, %v216_v9  ;;  %v2933_v24 = vld [vmem:[%s15551_s3 + $0x28] sm:$0xff]  ;;  %v49_v25 = vld [vmem:[%s15553_s5 + $0x40] sm:$0xff]  ;;  %v2934_v26 = vld [vmem:[%s15551_s3 + $0x30] sm:$0xff] }
   0xb   :  { %10155 = vmatprep.mubr.msk.f32.mxu0 %vm1275_vm0, %v43_v10  ;;  %10417 = vmatpush3.msra.mxu1 %v2927_v7  ;;  %v2939_v27 = vld [vmem:[%s15552_s4 + $0x18] sm:$0xff]  ;;  %v2940_v28 = vld [vmem:[%s15552_s4 + $0x20] sm:$0xff]  ;;  %v50_v29 = vld [vmem:[%s15553_s5 + $0x48] sm:$0xff] }
   0xc   :  { %10418 = vmatprep.mubr.msk.f32.mxu1 %vm2984_vm1, %v2928_v11  ;;  %2946 = vperm.xlu0 %11198, %v2936_v20   ;;  %v2935_v30 = vld [vmem:[%s15551_s3 + $0x38] sm:$0xff]  ;;  %v51_v31 = vld [vmem:[%s15553_s5 + $0x50] sm:$0xff]  ;;  %v2941_v32 = vld [vmem:[%s15552_s4 + $0x28] sm:$0xff] }
   0xd   :  { %2956 = vperm.xlu1 %11199, %v2938_v21   ;;  %v2942_v33 = vld [vmem:[%s15552_s4 + $0x30] sm:$0xff]  ;;  %v52_v34 = vld [vmem:[%s15553_s5 + $0x58] sm:$0xff]  ;;  %v53_v35 = vld [vmem:[%s15553_s5 + $0x60] sm:$0xff] }
   0xe   :  { %10156 = vmatmul.mubr.msk.f32.gmra.mrb[2].mxu0 %vm1275_vm0, %v44_v12  ;;  %10419 = vmatmul.mubr.msk.f32.vlgmr.msra.gmra.mrb[2].mxu1 %vm2984_vm1, %v2929_v13  ;;  %v2943_v36 = vld [vmem:[%s15552_s4 + $0x38] sm:$0xff]  ;;  %v220_v37 = vld [vmem:[%s15554_s6 + $0x8] sm:$0xff]  ;;  %v55_v39 = vld [vmem:[%s15553_s5 + $0x70] sm:$0xff] }
   0xf   :  { %10158 = vmatprep.mubr.msk.f32.mxu0 %vm1275_vm0, %v45_v14  ;;  %10421 = vmatprep.mubr.msk.f32.mxu1 %vm2984_vm1, %v2930_v15  ;;  %v54_v38 = vld [vmem:[%s15553_s5 + $0x68] sm:$0xff]  ;;  %v219_v40 = vld [vmem:[%s15554_s6] sm:$0xff]  ;;  %v56_v42 = vld [vmem:[%s15553_s5 + $0x78] sm:$0xff] }
  0x10   :  { %2951 = vperm.xlu0 %11198, %v2937_v22   ;;  %v223_v41 = vld [vmem:[%s15554_s6 + $0x20] sm:$0xff]  ;;  %v221_v44 = vld [vmem:[%s15554_s6 + $0x10] sm:$0xff]  ;;  %v58_v46 = vld [vmem:[%s15553_s5 + $0x88] sm:$0xff] }
  0x11   :  { %2961 = vperm.xlu1 %11199, %v2939_v27   ;;  %v57_v43 = vld [vmem:[%s15553_s5 + $0x80] sm:$0xff]  ;;  %v225_v45 = vld [vmem:[%s15554_s6 + $0x30] sm:$0xff]  ;;  %v222_v48 = vld [vmem:[%s15554_s6 + $0x18] sm:$0xff] }
  0x12   :  { %10159 = vmatmul.mubr.msk.f32.gmra.mrb[4].mxu0 %vm1275_vm0, %v46_v16  ;;  %10422 = vmatmul.mubr.msk.f32.gmra.mrb[4].mxu1 %vm2984_vm1, %v2931_v17  ;;  %v59_v47 = vld [vmem:[%s15553_s5 + $0x90] sm:$0xff]  ;;  %v307_v49 = vld [vmem:[%s15554_s6 + $0x2c0] sm:$0xff] }
  0x13   :  { %10161 = vmatprep.mubr.msk.f32.mxu0 %vm1275_vm0, %v47_v18  ;;  %10424 = vmatprep.mubr.msk.f32.mxu1 %vm2984_vm1, %v2932_v19 }
  0x14   :  { %2966 = vperm.xlu0 %11198, %v2940_v28  }
  0x15   :  { %2971 = vperm.xlu1 %11199, %v2941_v32  }
  0x16   :  { %10162 = vmatmul.mubr.msk.f32.gmra.mrb[6].mxu0 %vm1275_vm0, %v48_v23  ;;  %10425 = vmatmul.mubr.msk.f32.gmra.mrb[6].mxu1 %vm2984_vm1, %v2933_v24 }
  0x17   :  { %10164 = vmatprep.mubr.msk.f32.mxu0 %vm1275_vm0, %v49_v25  ;;  %10427 = vmatprep.mubr.msk.f32.mxu1 %vm2984_vm1, %v2934_v26 }
  0x18   :  { %2976 = vperm.xlu0 %11198, %v2942_v33  }
  0x19   :  { %2981 = vperm.xlu1 %11199, %v2943_v36  }
  0x1a   :  { %10165 = vmatmul.mubr.msk.f32.gmra.mrb[8].mxu0 %vm1275_vm0, %v50_v29  ;;  %10428 = vmatmul.mubr.msk.f32.gmra.mrb[8].mxu1 %vm2984_vm1, %v2935_v30 }
  0x1b   :  { %10167 = vmatprep.mubr.msk.f32.mxu0 %vm1275_vm0, %v51_v31 }
  0x1c   :  { %402 = vperm.xlu0 %11198, %v220_v37  }
  0x1d   :  { %397 = vperm.xlu1 %11199, %v219_v40  }
  0x1e   :  { %10168 = vmatmul.mubr.msk.f32.gmra.mrb[10].mxu0 %vm1275_vm0, %v52_v34 }
  0x1f   :  { %10170 = vmatprep.mubr.msk.f32.mxu0 %vm1275_vm0, %v53_v35 }
  0x20   :  { %417 = vperm.xlu0 %11198, %v223_v41  }
  0x21   :  { %407 = vperm.xlu1 %11199, %v221_v44  }
  0x22   :  { %10171 = vmatmul.mubr.msk.f32.gmra.mrb[12].mxu0 %vm1275_vm0, %v54_v38 }
  0x23   :  { %10173 = vmatprep.mubr.msk.f32.mxu0 %vm1275_vm0, %v55_v39 }
  0x24   :  { %427 = vperm.xlu0 %11198, %v225_v45  }
  0x26   :  { %10174 = vmatmul.mubr.msk.f32.gmra.mrb[14].mxu0 %vm1275_vm0, %v56_v42 }
  0x27   :  { %10176 = vmatprep.mubr.msk.f32.mxu0 %vm1275_vm0, %v57_v43 }
  0x2a   :  { %10177 = vmatmul.mubr.msk.f32.gmra.mrb[16].mxu0 %vm1275_vm0, %v58_v46 }
  0x2b   :  { %18 = vsyncpa [#allocation5], 0  ;;  %10179 = vmatprep.mubr.msk.f32.mxu0 %vm1275_vm0, %v59_v47  ;;  %v60_v50 = vld [vmem:[%s15553_s5 + $0x98] sm:$0xff]  ;;  %v61_v51 = vld [vmem:[%s15553_s5 + $0xa0] sm:$0xff]  ;;  %412 = vperm.xlu1 %11199, %v222_v48   ;;  %vm2749_vm2 = vcmask 15360   ;;  %vm3298_vm3 = vcmask 1041408  }
  0x2c   :  { %837 = vperm.xlu0 %11198, %v307_v49   ;;  %v224_v52 = vld [vmem:[%s15554_s6 + $0x28] sm:$0xff]  ;;  %v309_v53 = vld [vmem:[%s15554_s6 + $0x2d0] sm:$0xff]  ;;  %v226_v56 = vld [vmem:[%s15554_s6 + $0x38] sm:$0xff]  ;;  %vm3527_vm4 = vcmask 523264   ;;  %vm11407_vm5 = vmmov 0   ;;  %s11409_s30 = smov [#allocation4]  }
  0x2d   :  { %v62_v54 = vld [vmem:[%s15553_s5 + $0xa8] sm:$0xff]  ;;  %v63_v55 = vld [vmem:[%s15553_s5 + $0xb0] sm:$0xff]  ;;  %v311_v57 = vld [vmem:[%s15554_s6 + $0x2e0] sm:$0xff]  ;;  %s9001_s12 = sshll.u32 %s11409_s30, 4  ;;  %s9002_s12 = int_to_ptr.vmem [resolvable:$true] %s9001_s12 }
  0x2e   :  { %10180 = vmatmul.mubr.msk.f32.gmra.mrb[18].mxu0 %vm1275_vm0, %v60_v50  ;;  %v64_v58 = vld [vmem:[%s15553_s5 + $0xb8] sm:$0xff]  ;;  %v65_v59 = vld [vmem:[%s15553_s5 + $0xc0] sm:$0xff]  ;;  %v308_v60 = vld [vmem:[%s15554_s6 + $0x2c8] sm:$0xff]  ;;  %s11381_s13 = scalar_lea.vmem %s9002_s12, 16  ;;  %p11386_p1 = scmp.lt.s32.totalorder %s9002_s12, %s9002_s12 }
  0x2f   :  { %10182 = vmatprep.mubr.msk.f32.mxu0 %vm1275_vm0, %v61_v51  ;;  %422 = vperm.xlu1 %11199, %v224_v52   ;;  %v66_v61 = vld [vmem:[%s15553_s5 + $0xc8] sm:$0xff]  ;;  %v67_v62 = vld [vmem:[%s15553_s5 + $0xd0] sm:$0xff]  ;;  %v310_v63 = vld [vmem:[%s15554_s6 + $0x2d8] sm:$0xff]  ;;  %p11382_p0 = scmp.ne.s32.totalorder %s9002_s12, %s11381_s13 }
  0x30   :  { %847 = vperm.xlu0 %11198, %v309_v53   ;;  %v68_v0 = vld [vmem:[%s15553_s5 + $0xd8] sm:$0xff]  ;;  %v69_v1 = vld [vmem:[%s15553_s5 + $0xe0] sm:$0xff]  ;;  %v312_v2 = vld [vmem:[%s15554_s6 + $0x2e8] sm:$0xff] }
  0x31   :  { %v70_v3 = vld [vmem:[%s15553_s5 + $0xe8] sm:$0xff]  ;;  %v71_v4 = vld [vmem:[%s15553_s5 + $0xf0] sm:$0xff]  ;;  %v72_v5 = vld [vmem:[%s15553_s5 + $0xf8] sm:$0xff] }
  0x32   :  { %10183 = vmatmul.mubr.msk.f32.gmra.mrb[20].mxu0 %vm1275_vm0, %v62_v54  ;;  %v73_v6 = vld [vmem:[%s15553_s5 + $0x100] sm:$0xff]  ;;  %v74_v7 = vld [vmem:[%s15553_s5 + $0x108] sm:$0xff]  ;;  %v75_v8 = vld [vmem:[%s15553_s5 + $0x110] sm:$0xff] }
  0x33   :  { %10185 = vmatprep.mubr.msk.f32.mxu0 %vm1275_vm0, %v63_v55  ;;  %432 = vperm.xlu1 %11199, %v226_v56   ;;  %v76_v9 = vld [vmem:[%s15553_s5 + $0x118] sm:$0xff]  ;;  %v77_v10 = vld [vmem:[%s15553_s5 + $0x120] sm:$0xff]  ;;  %v78_v11 = vld [vmem:[%s15553_s5 + $0x128] sm:$0xff] }
  0x34   :  { %857 = vperm.xlu0 %11198, %v311_v57   ;;  %v79_v12 = vld [vmem:[%s15553_s5 + $0x130] sm:$0xff]  ;;  %v80_v13 = vld [vmem:[%s15553_s5 + $0x138] sm:$0xff]  ;;  %v81_v14 = vld [vmem:[%s15553_s5 + $0x140] sm:$0xff] }
  0x35   :  { %v82_v15 = vld [vmem:[%s15553_s5 + $0x148] sm:$0xff]  ;;  %v83_v16 = vld [vmem:[%s15553_s5 + $0x150] sm:$0xff]  ;;  %v84_v17 = vld [vmem:[%s15553_s5 + $0x158] sm:$0xff] }
  0x36   :  { %10186 = vmatmul.mubr.msk.f32.gmra.mrb[22].mxu0 %vm1275_vm0, %v64_v58  ;;  %v85_v18 = vld [vmem:[%s15553_s5 + $0x160] sm:$0xff]  ;;  %v86_v19 = vld [vmem:[%s15553_s5 + $0x168] sm:$0xff]  ;;  %v87_v20 = vld [vmem:[%s15553_s5 + $0x170] sm:$0xff] }
  0x37   :  { %10188 = vmatprep.mubr.msk.f32.mxu0 %vm1275_vm0, %v65_v59  ;;  %842 = vperm.xlu1 %11199, %v308_v60   ;;  %v88_v21 = vld [vmem:[%s15553_s5 + $0x178] sm:$0xff]  ;;  %v89_v22 = vld [vmem:[%s15553_s5 + $0x180] sm:$0xff]  ;;  %v90_v23 = vld [vmem:[%s15553_s5 + $0x188] sm:$0xff] }
  0x38   :  { %v91_v24 = vld [vmem:[%s15553_s5 + $0x190] sm:$0xff]  ;;  %v92_v25 = vld [vmem:[%s15553_s5 + $0x198] sm:$0xff]  ;;  %v93_v26 = vld [vmem:[%s15553_s5 + $0x1a0] sm:$0xff] }
  0x39   :  { %v94_v27 = vld [vmem:[%s15553_s5 + $0x1a8] sm:$0xff]  ;;  %v95_v28 = vld [vmem:[%s15553_s5 + $0x1b0] sm:$0xff]  ;;  %v96_v29 = vld [vmem:[%s15553_s5 + $0x1b8] sm:$0xff] }
  0x3a   :  { %10189 = vmatmul.mubr.msk.f32.gmra.mrb[24].mxu0 %vm1275_vm0, %v66_v61  ;;  %v97_v30 = vld [vmem:[%s15553_s5 + $0x1c0] sm:$0xff]  ;;  %v98_v31 = vld [vmem:[%s15553_s5 + $0x1c8] sm:$0xff]  ;;  %v99_v32 = vld [vmem:[%s15553_s5 + $0x1d0] sm:$0xff] }
  0x3b   :  { %10191 = vmatprep.mubr.msk.f32.mxu0 %vm1275_vm0, %v67_v62  ;;  %852 = vperm.xlu1 %11199, %v310_v63   ;;  %v100_v33 = vld [vmem:[%s15553_s5 + $0x1d8] sm:$0xff]  ;;  %v101_v34 = vld [vmem:[%s15553_s5 + $0x1e0] sm:$0xff]  ;;  %v102_v35 = vld [vmem:[%s15553_s5 + $0x1e8] sm:$0xff] }
  0x3c   :  { %v103_v36 = vld [vmem:[%s15553_s5 + $0x1f0] sm:$0xff]  ;;  %v104_v37 = vld [vmem:[%s15553_s5 + $0x1f8] sm:$0xff]  ;;  %v105_v38 = vld [vmem:[%s15553_s5 + $0x200] sm:$0xff] }
  0x3d   :  { %v106_v39 = vld [vmem:[%s15553_s5 + $0x208] sm:$0xff]  ;;  %v107_v40 = vld [vmem:[%s15553_s5 + $0x210] sm:$0xff]  ;;  %v108_v41 = vld [vmem:[%s15553_s5 + $0x218] sm:$0xff] }
  0x3e   :  { %10192 = vmatmul.mubr.msk.f32.gmra.mrb[26].mxu0 %vm1275_vm0, %v68_v0  ;;  %v109_v42 = vld [vmem:[%s15553_s5 + $0x220] sm:$0xff]  ;;  %v110_v43 = vld [vmem:[%s15553_s5 + $0x228] sm:$0xff]  ;;  %v111_v44 = vld [vmem:[%s15553_s5 + $0x230] sm:$0xff] }
  0x3f   :  { %10194 = vmatprep.mubr.msk.f32.mxu0 %vm1275_vm0, %v69_v1  ;;  %862 = vperm.xlu1 %11199, %v312_v2   ;;  %v112_v45 = vld [vmem:[%s15553_s5 + $0x238] sm:$0xff]  ;;  %v113_v46 = vld [vmem:[%s15553_s5 + $0x240] sm:$0xff]  ;;  %v114_v47 = vld [vmem:[%s15553_s5 + $0x248] sm:$0xff] }
  0x40   :  { %v115_v48 = vld [vmem:[%s15553_s5 + $0x250] sm:$0xff]  ;;  %v116_v49 = vld [vmem:[%s15553_s5 + $0x258] sm:$0xff]  ;;  %v117_v50 = vld [vmem:[%s15553_s5 + $0x260] sm:$0xff] }
  0x41   :  { %v118_v51 = vld [vmem:[%s15553_s5 + $0x268] sm:$0xff]  ;;  %v119_v52 = vld [vmem:[%s15553_s5 + $0x270] sm:$0xff]  ;;  %v120_v53 = vld [vmem:[%s15553_s5 + $0x278] sm:$0xff] }
  0x42   :  { %10195 = vmatmul.mubr.msk.f32.gmra.mrb[28].mxu0 %vm1275_vm0, %v70_v3  ;;  %v121_v54 = vld [vmem:[%s15553_s5 + $0x280] sm:$0xff]  ;;  %v122_v55 = vld [vmem:[%s15553_s5 + $0x288] sm:$0xff]  ;;  %v123_v56 = vld [vmem:[%s15553_s5 + $0x290] sm:$0xff] }
  0x43   :  { %10197 = vmatprep.mubr.msk.f32.mxu0 %vm1275_vm0, %v71_v4  ;;  %v124_v57 = vld [vmem:[%s15553_s5 + $0x298] sm:$0xff]  ;;  %v125_v58 = vld [vmem:[%s15553_s5 + $0x2a0] sm:$0xff]  ;;  %v126_v59 = vld [vmem:[%s15553_s5 + $0x2a8] sm:$0xff] }
  0x44   :  { %v127_v60 = vld [vmem:[%s15553_s5 + $0x2b0] sm:$0xff]  ;;  %v128_v61 = vld [vmem:[%s15553_s5 + $0x2b8] sm:$0xff]  ;;  %v129_v62 = vld [vmem:[%s15553_s5 + $0x2c0] sm:$0xff] }
  0x45   :  { %v130_v0 = vld [vmem:[%s15553_s5 + $0x2c8] sm:$0xff]  ;;  %v131_v1 = vld [vmem:[%s15553_s5 + $0x2d0] sm:$0xff]  ;;  %v132_v2 = vld [vmem:[%s15553_s5 + $0x2d8] sm:$0xff] }
  0x46   :  { %10198 = vmatmul.mubr.msk.f32.gmra.mrb[30].mxu0 %vm1275_vm0, %v72_v5  ;;  %v133_v3 = vld [vmem:[%s15553_s5 + $0x2e0] sm:$0xff]  ;;  %v134_v5 = vld [vmem:[%s15553_s5 + $0x2e8] sm:$0xff] }
  0x47   :  { %10200 = vmatprep.mubr.msk.f32.mxu0 %vm1275_vm0, %v73_v6  ;;  %v135_v6 = vld [vmem:[%s15553_s5 + $0x2f0] sm:$0xff] }
  0x4a   :  { %10201 = vmatmul.mubr.msk.f32.gmra.mrb[32].mxu0 %vm1275_vm0, %v74_v7 }
  0x4b   :  { %10203 = vmatprep.mubr.msk.f32.mxu0 %vm1275_vm0, %v75_v8 }
  0x4e   :  { %10204 = vmatmul.mubr.msk.f32.gmra.mrb[34].mxu0 %vm1275_vm0, %v76_v9  ;;  %v136_v9 = vld [vmem:[%s15553_s5 + $0x2f8] sm:$0xff] }
  0x4f   :  { %10206 = vmatprep.mubr.msk.f32.mxu0 %vm1275_vm0, %v77_v10  ;;  %v137_v10 = vld [vmem:[%s15553_s5 + $0x300] sm:$0xff] }
  0x52   :  { %10207 = vmatmul.mubr.msk.f32.gmra.mrb[36].mxu0 %vm1275_vm0, %v78_v11  ;;  %v138_v11 = vld [vmem:[%s15553_s5 + $0x308] sm:$0xff] }
  0x53   :  { %10209 = vmatprep.mubr.msk.f32.mxu0 %vm1275_vm0, %v79_v12 }
  0x56   :  { %10210 = vmatmul.mubr.msk.f32.gmra.mrb[38].mxu0 %vm1275_vm0, %v80_v13 }
  0x57   :  { %10212 = vmatprep.mubr.msk.f32.mxu0 %vm1275_vm0, %v81_v14  ;;  %v139_v14 = vld [vmem:[%s15553_s5 + $0x310] sm:$0xff] }
  0x5a   :  { %10213 = vmatmul.mubr.msk.f32.gmra.mrb[40].mxu0 %vm1275_vm0, %v82_v15  ;;  %v140_v15 = vld [vmem:[%s15553_s5 + $0x318] sm:$0xff] }
  0x5b   :  { %10215 = vmatprep.mubr.msk.f32.mxu0 %vm1275_vm0, %v83_v16  ;;  %v141_v16 = vld [vmem:[%s15553_s5 + $0x320] sm:$0xff] }
  0x5e   :  { %10216 = vmatmul.mubr.msk.f32.gmra.mrb[42].mxu0 %vm1275_vm0, %v84_v17 }
  0x5f   :  { %10218 = vmatprep.mubr.msk.f32.mxu0 %vm1275_vm0, %v85_v18 }
  0x62   :  { %10219 = vmatmul.mubr.msk.f32.gmra.mrb[44].mxu0 %vm1275_vm0, %v86_v19  ;;  %v142_v19 = vld [vmem:[%s15553_s5 + $0x328] sm:$0xff] }
  0x63   :  { %10221 = vmatprep.mubr.msk.f32.mxu0 %vm1275_vm0, %v87_v20 }
  0x66   :  { %10222 = vmatmul.mubr.msk.f32.gmra.mrb[46].mxu0 %vm1275_vm0, %v88_v21 }
  0x67   :  { %10224 = vmatprep.mubr.msk.f32.mxu0 %vm1275_vm0, %v89_v22 }
  0x6a   :  { %10225 = vmatmul.mubr.msk.f32.gmra.mrb[48].mxu0 %vm1275_vm0, %v90_v23 }
  0x6b   :  { %10227 = vmatprep.mubr.msk.f32.mxu0 %vm1275_vm0, %v91_v24 }
  0x6e   :  { %10228 = vmatmul.mubr.msk.f32.gmra.mrb[50].mxu0 %vm1275_vm0, %v92_v25 }
  0x6f   :  { %10230 = vmatprep.mubr.msk.f32.mxu0 %vm1275_vm0, %v93_v26 }
  0x72   :  { %10231 = vmatmul.mubr.msk.f32.gmra.mrb[52].mxu0 %vm1275_vm0, %v94_v27 }
  0x73   :  { %10233 = vmatprep.mubr.msk.f32.mxu0 %vm1275_vm0, %v95_v28 }
  0x76   :  { %10234 = vmatmul.mubr.msk.f32.gmra.mrb[54].mxu0 %vm1275_vm0, %v96_v29 }
  0x77   :  { %10236 = vmatprep.mubr.msk.f32.mxu0 %vm1275_vm0, %v97_v30 }
  0x7a   :  { %10237 = vmatmul.mubr.msk.f32.gmra.mrb[56].mxu0 %vm1275_vm0, %v98_v31 }
  0x7b   :  { %10239 = vmatprep.mubr.msk.f32.mxu0 %vm1275_vm0, %v99_v32 }
  0x7e   :  { %10240 = vmatmul.mubr.msk.f32.gmra.mrb[58].mxu0 %vm1275_vm0, %v100_v33 }
  0x7f   :  { %10242 = vmatprep.mubr.msk.f32.mxu0 %vm1275_vm0, %v101_v34 }
  0x82   :  { %10243 = vmatmul.mubr.msk.f32.gmra.mrb[60].mxu0 %vm1275_vm0, %v102_v35 }
  0x83   :  { %10245 = vmatprep.mubr.msk.f32.mxu0 %vm1275_vm0, %v103_v36 }
  0x86   :  { %10246 = vmatmul.mubr.msk.f32.gmra.mrb[62].mxu0 %vm1275_vm0, %v104_v37 }
  0x87   :  { %10248 = vmatprep.mubr.msk.f32.mxu0 %vm1275_vm0, %v105_v38 }
  0x8a   :  { %10249 = vmatmul.mubr.msk.f32.gmra.mrb[64].mxu0 %vm1275_vm0, %v106_v39 }
  0x8b   :  { %10251 = vmatprep.mubr.msk.f32.mxu0 %vm1275_vm0, %v107_v40  ;;  %v2947_v7 = vpop.permute.xlu0 %2946 }
  0x8c   :  { %v11943_v63 = vpop.permute.xlu1 %2956 }
  0x8e   :  { %10252 = vmatmul.mubr.msk.f32.gmra.mrb[66].mxu0 %vm1275_vm0, %v108_v41 }
  0x8f   :  { %10254 = vmatprep.mubr.msk.f32.mxu0 %vm1275_vm0, %v109_v42  ;;  %v2952_v12 = vpop.permute.xlu0 %2951 }
  0x90   :  { %v11960_v4 = vpop.permute.xlu1 %2961 }
  0x92   :  { %10255 = vmatmul.mubr.msk.f32.gmra.mrb[68].mxu0 %vm1275_vm0, %v110_v43 }
  0x93   :  { %10257 = vmatprep.mubr.msk.f32.mxu0 %vm1275_vm0, %v111_v44  ;;  %v11998_v17 = vpop.permute.xlu0 %2966 }
  0x94   :  { %v11971_v8 = vpop.permute.xlu1 %2971 }
  0x96   :  { %10258 = vmatmul.mubr.msk.f32.gmra.mrb[70].mxu0 %vm1275_vm0, %v112_v45 }
  0x97   :  { %10260 = vmatprep.mubr.msk.f32.mxu0 %vm1275_vm0, %v113_v46  ;;  %v12006_v20 = vpop.permute.xlu0 %2976 }
  0x98   :  { %v11985_v13 = vpop.permute.xlu1 %2981 }
  0x9a   :  { %10261 = vmatmul.mubr.msk.f32.gmra.mrb[72].mxu0 %vm1275_vm0, %v114_v47 }
  0x9b   :  { %10263 = vmatprep.mubr.msk.f32.mxu0 %vm1275_vm0, %v115_v48  ;;  %v403_v22 = vpop.permute.xlu0 %402 }
  0x9c   :  { %v398_v18 = vpop.permute.xlu1 %397 }
  0x9e   :  { %10264 = vmatmul.mubr.msk.f32.gmra.mrb[74].mxu0 %vm1275_vm0, %v116_v49 }
  0x9f   :  { %10266 = vmatprep.mubr.msk.f32.mxu0 %vm1275_vm0, %v117_v50  ;;  %v418_v30 = vpop.permute.xlu0 %417 }
  0xa0   :  { %v408_v21 = vpop.permute.xlu1 %407 }
  0xa2   :  { %10267 = vmatmul.mubr.msk.f32.gmra.mrb[76].mxu0 %vm1275_vm0, %v118_v51 }
  0xa3   :  { %10269 = vmatprep.mubr.msk.f32.mxu0 %vm1275_vm0, %v119_v52  ;;  %v428_v48 = vpop.permute.xlu0 %427 }
  0xa6   :  { %10270 = vmatmul.mubr.msk.f32.gmra.mrb[78].mxu0 %vm1275_vm0, %v120_v53 }
  0xa7   :  { %10272 = vmatprep.mubr.msk.f32.mxu0 %vm1275_vm0, %v121_v54 }
  0xaa   :  { %10273 = vmatmul.mubr.msk.f32.gmra.mrb[80].mxu0 %vm1275_vm0, %v122_v55  ;;  %v413_v23 = vpop.permute.xlu1 %412 }
  0xab   :  { %10275 = vmatprep.mubr.msk.f32.mxu0 %vm1275_vm0, %v123_v56 }
  0xae   :  { %10276 = vmatmul.mubr.msk.f32.gmra.mrb[82].mxu0 %vm1275_vm0, %v124_v57  ;;  %v423_v31 = vpop.permute.xlu1 %422 }
  0xaf   :  { %10278 = vmatprep.mubr.msk.f32.mxu0 %vm1275_vm0, %v125_v58 }
  0xb2   :  { %10279 = vmatmul.mubr.msk.f32.gmra.mrb[84].mxu0 %vm1275_vm0, %v126_v59  ;;  %v433_v49 = vpop.permute.xlu1 %432 }
  0xb3   :  { %10281 = vmatprep.mubr.msk.f32.mxu0 %vm1275_vm0, %v127_v60 }
  0xb6   :  { %10282 = vmatmul.mubr.msk.f32.gmra.mrb[86].mxu0 %vm1275_vm0, %v128_v61 }
  0xb7   :  { %10284 = vmatprep.mubr.msk.f32.mxu0 %vm1275_vm0, %v129_v62 }
  0xba   :  { %10285 = vmatmul.mubr.msk.f32.gmra.mrb[88].mxu0 %vm1275_vm0, %v130_v0 }
  0xbb   :  { %10287 = vmatprep.mubr.msk.f32.mxu0 %vm1275_vm0, %v131_v1 }
  0xbe   :  { %10288 = vmatmul.mubr.msk.f32.gmra.mrb[90].mxu0 %vm1275_vm0, %v132_v2 }
  0xbf   :  { %10290 = vmatprep.mubr.msk.f32.mxu0 %vm1275_vm0, %v133_v3 }
  0xc2   :  { %10291 = vmatmul.mubr.msk.f32.gmra.mrb[92].mxu0 %vm1275_vm0, %v134_v5 }
  0xc3   :  { %10293 = vmatprep.mubr.msk.f32.mxu0 %vm1275_vm0, %v135_v6 }
  0xc6   :  { %10294 = vmatmul.mubr.msk.f32.gmra.mrb[94].mxu0 %vm1275_vm0, %v136_v9 }
  0xc7   :  { %10296 = vmatprep.mubr.msk.f32.mxu0 %vm1275_vm0, %v137_v10 }
  0xca   :  { %10297 = vmatmul.mubr.msk.f32.gmra.mrb[96].mxu0 %vm1275_vm0, %v138_v11 }
  0xcb   :  { %10299 = vmatprep.mubr.msk.f32.mxu0 %vm1275_vm0, %v139_v14 }
  0xce   :  { %10300 = vmatmul.mubr.msk.f32.gmra.mrb[98].mxu0 %vm1275_vm0, %v140_v15 }
  0xcf   :  { %10302 = vmatprep.mubr.msk.f32.mxu0 %vm1275_vm0, %v141_v16 }
  0xd2   :  { %10303 = vmatmul.mubr.msk.f32.gmra.mrb[100].mxu0 %vm1275_vm0, %v142_v19 }
  0xdd   :  { %v12008_v24 = vpop.f32.mrb[0].mxu1  ;;  %v10154_v25 = vpop.f32.mrb[0].mxu0 }
  0xde   :  { %15560 = vst [vmem:[#allocation7_spill] sm:$0xff] %v12008_v24  ;;  %v12010_v26 = vpop.f32.mrb[1].mxu1  ;;  %v1876_v27 = vadd.f32 %v10154_v25, %v403_v22  ;;  %v1870_v28 = vpop.f32.mrb[1].mxu0 }
  0xdf   :  { %15561 = vst [vmem:[#allocation8_spill] sm:$0xff] %v12010_v26  ;;  %v1871_v29 = vadd.f32 %v1870_v28, %v398_v18  ;;  %v12111_v28 = vld [vmem:[%s15550_s2] sm:$0x3] }
  0xe0   :  { %2751 = vst.msk [vmem:[#allocation2 + $0x8] sm:$0xff] %vm2749_vm2, %v1876_v27  ;;  %v3480_v27 = vld [vmem:[%s15556_s8 + $0x8] sm:$0xff]  ;;  %10430 = vmatprep.subr.msk.mxu1 %vm3298_vm3, %v12111_v28 }
  0xe1   :  { %v10420_v32 = vpop.f32.mrb[2].mxu1  ;;  %2750 = vst.msk [vmem:[#allocation2] sm:$0xff] %vm2749_vm2, %v1871_v29  ;;  %v10157_v33 = vpop.f32.mrb[2].mxu0  ;;  %10431 = vmatpush3.msk.msra.mxu1 %vm3298_vm3, %v12111_v28 }
  0xe2   :  { %v12014_v34 = vadd.f32 %v10420_v32, %v2952_v12  ;;  %v3075_v35 = vpop.f32.mrb[3].mxu1  ;;  %v1886_v36 = vadd.f32 %v10157_v33, %v413_v23  ;;  %v1880_v37 = vpop.f32.mrb[3].mxu0 }
  0xe3   :  { %v12016_v38 = vadd.f32 %v3075_v35, %v2947_v7  ;;  %v1881_v39 = vadd.f32 %v1880_v37, %v408_v21  ;;  %v3484_v35 = vld [vmem:[%s15556_s8 + $0x28] sm:$0xff] }
  0xe4   :  { %2753 = vst.msk [vmem:[#allocation2 + $0x18] sm:$0xff] %vm2749_vm2, %v1886_v36  ;;  %3124 = vadd.xlane.f32.xlu1 %v12014_v34  ;;  %v3115_v47 = vmul.f32 %v12014_v34, %v12014_v34  ;;  %v313_v36 = vld [vmem:[%s15554_s6 + $0x2f0] sm:$0xff] }
  0xe5   :  { %2752 = vst.msk [vmem:[#allocation2 + $0x10] sm:$0xff] %vm2749_vm2, %v1881_v39  ;;  %v10423_v40 = vpop.f32.mrb[4].mxu1  ;;  %3122 = vadd.xlane.f32.xlu0 %v12016_v38  ;;  %v10160_v41 = vpop.f32.mrb[4].mxu0  ;;  %v3114_v57 = vmul.f32 %v12016_v38, %v12016_v38 }
  0xe6   :  { %v1896_v42 = vadd.f32 %v10160_v41, %v423_v31  ;;  %v1890_v43 = vpop.f32.mrb[5].mxu0  ;;  %v3085_v44 = vpop.f32.mrb[5].mxu1  ;;  %v12041_v62 = vadd.f32 %v10423_v40, %v11960_v4  ;;  %v3482_v31 = vld [vmem:[%s15556_s8 + $0x18] sm:$0xff]  ;;  %v3479_v41 = vld [vmem:[%s15556_s8] sm:$0xff] }
  0xe7   :  { %v1891_v45 = vadd.f32 %v1890_v43, %v418_v30  ;;  %v12023_v46 = vadd.f32 %v3085_v44, %v11943_v63  ;;  %v3486_v40 = vld [vmem:[%s15556_s8 + $0x38] sm:$0xff]  ;;  %v227_v44 = vld [vmem:[%s15554_s6 + $0x40] sm:$0xff] }
  0xe8   :  { %2755 = vst.msk [vmem:[#allocation2 + $0x28] sm:$0xff] %vm2749_vm2, %v1896_v42  ;;  %v3117_v3 = vmul.f32 %v12041_v62, %v12041_v62 }
  0xe9   :  { %2754 = vst.msk [vmem:[#allocation2 + $0x20] sm:$0xff] %vm2749_vm2, %v1891_v45  ;;  %v10426_v50 = vpop.f32.mrb[6].mxu1  ;;  %3126 = vadd.xlane.f32.xlu1 %v12023_v46  ;;  %3140 = vadd.xlane.f32.xlu0 %v3115_v47  ;;  %v10163_v51 = vpop.f32.mrb[6].mxu0  ;;  %v3116_v52 = vmul.f32 %v12023_v46, %v12023_v46  ;;  %v3481_v45 = vld [vmem:[%s15556_s8 + $0x10] sm:$0xff] }
  0xea   :  { %v1906_v53 = vadd.f32 %v10163_v51, %v433_v49  ;;  %v1900_v54 = vpop.f32.mrb[7].mxu0  ;;  %v3095_v55 = vpop.f32.mrb[7].mxu1  ;;  %v12061_v6 = vadd.f32 %v10426_v50, %v11971_v8  ;;  %v229_v49 = vld [vmem:[%s15554_s6 + $0x50] sm:$0xff]  ;;  %v3483_v50 = vld [vmem:[%s15556_s8 + $0x20] sm:$0xff] }
  0xeb   :  { %v1901_v56 = vadd.f32 %v1900_v54, %v428_v48  ;;  %v12044_v63 = vadd.f32 %v3095_v55, %v11998_v17  ;;  %v3485_v54 = vld [vmem:[%s15556_s8 + $0x30] sm:$0xff] }
  0xec   :  { %2757 = vst.msk [vmem:[#allocation2 + $0x38] sm:$0xff] %vm2749_vm2, %v1906_v53  ;;  %v3119_v12 = vmul.f32 %v12061_v6, %v12061_v6  ;;  %v230_v53 = vld [vmem:[%s15554_s6 + $0x58] sm:$0xff] }
  0xed   :  { %2756 = vst.msk [vmem:[#allocation2 + $0x30] sm:$0xff] %vm2749_vm2, %v1901_v56  ;;  %v10429_v58 = vpop.f32.mrb[8].mxu1  ;;  %3142 = vadd.xlane.f32.xlu1 %v3116_v52  ;;  %3138 = vadd.xlane.f32.xlu0 %v3114_v57  ;;  %v12036_v59 = vpop.f32.mrb[8].mxu0  ;;  %v3118_v2 = vmul.f32 %v12044_v63, %v12044_v63  ;;  %v232_v57 = vld [vmem:[%s15554_s6 + $0x68] sm:$0xff] }
  0xee   :  { %v3105_v60 = vpop.f32.mrb[9].mxu1  ;;  %v12038_v61 = vpop.f32.mrb[9].mxu0  ;;  %v12081_v15 = vadd.f32 %v10429_v58, %v11985_v13  ;;  %v314_v13 = vld [vmem:[%s15554_s6 + $0x2f8] sm:$0xff]  ;;  %v228_v58 = vld [vmem:[%s15554_s6 + $0x48] sm:$0xff] }
  0xef   :  { %v12064_v7 = vadd.f32 %v3105_v60, %v12006_v20 }
  0xf0   :  { %v3121_v18 = vmul.f32 %v12081_v15, %v12081_v15 }
  0xf1   :  { %3130 = vadd.xlane.f32.xlu1 %v12044_v63  ;;  %3128 = vadd.xlane.f32.xlu0 %v12041_v62  ;;  %v12048_v0 = vpop.f32.mrb[10].mxu0  ;;  %v3120_v11 = vmul.f32 %v12064_v7, %v12064_v7 }
  0xf2   :  { %v12050_v1 = vpop.f32.mrb[11].mxu0 }
  0xf5   :  { %3146 = vadd.xlane.f32.xlu1 %v3118_v2  ;;  %3144 = vadd.xlane.f32.xlu0 %v3117_v3  ;;  %v12056_v4 = vpop.f32.mrb[12].mxu0  ;;  %v234_v3 = vld [vmem:[%s15554_s6 + $0x78] sm:$0xff] }
  0xf6   :  { %v12058_v5 = vpop.f32.mrb[13].mxu0 }
  0xf9   :  { %3134 = vadd.xlane.f32.xlu1 %v12064_v7  ;;  %3132 = vadd.xlane.f32.xlu0 %v12061_v6  ;;  %v12068_v9 = vpop.f32.mrb[14].mxu0 }
  0xfa   :  { %v12070_v10 = vpop.f32.mrb[15].mxu0 }
  0xfd   :  { %3150 = vadd.xlane.f32.xlu1 %v3120_v11  ;;  %3148 = vadd.xlane.f32.xlu0 %v3119_v12  ;;  %v12076_v8 = vpop.f32.mrb[16].mxu0  ;;  %v231_v11 = vld [vmem:[%s15554_s6 + $0x60] sm:$0xff] }
  0xfe   :  { %v12078_v14 = vpop.f32.mrb[17].mxu0 }
 0x101   :  { %3136 = vadd.xlane.f32.xlu0 %v12081_v15  ;;  %v12084_v16 = vpop.f32.mrb[18].mxu0 }
 0x102   :  { %v12086_v17 = vpop.f32.mrb[19].mxu0 }
 0x105   :  { %3152 = vadd.xlane.f32.xlu0 %v3121_v18  ;;  %v12090_v19 = vpop.f32.mrb[20].mxu0 }
 0x106   :  { %v12092_v20 = vpop.f32.mrb[21].mxu0 }
 0x109   :  { %v12094_v21 = vpop.f32.mrb[22].mxu0 }
 0x10a   :  { %v12096_v22 = vpop.f32.mrb[23].mxu0 }
 0x10d   :  { %v12101_v23 = vpop.f32.mrb[24].mxu0 }
 0x10e   :  { %15562 = vst [vmem:[#allocation9_spill] sm:$0xff] %v12101_v23  ;;  %872 = vperm.xlu1 %11199, %v314_v13   ;;  %v12103_v25 = vpop.f32.mrb[25].mxu0  ;;  %v316_v13 = vld [vmem:[%s15554_s6 + $0x308] sm:$0xff] }
 0x10f   :  { %15563 = vst [vmem:[#allocation10_spill] sm:$0xff] %v12103_v25 }
 0x111   :  { %v12115_v29 = vpop.f32.mrb[26].mxu0 }
 0x112   :  { %15564 = vst [vmem:[#allocation11_spill] sm:$0xff] %v12115_v29  ;;  %3494 = vperm.xlu1 %11199, %v3480_v27   ;;  %v12119_v30 = vpop.f32.mrb[27].mxu0  ;;  %v233_v27 = vld [vmem:[%s15554_s6 + $0x70] sm:$0xff] }
 0x113   :  { %15565 = vst [vmem:[#allocation12_spill] sm:$0xff] %v12119_v30 }
 0x115   :  { %v12124_v32 = vpop.f32.mrb[28].mxu0 }
 0x116   :  { %15566 = vst [vmem:[#allocation13_spill] sm:$0xff] %v12124_v32  ;;  %3504 = vperm.xlu1 %11199, %v3482_v31   ;;  %v12126_v33 = vpop.f32.mrb[29].mxu0 }
 0x117   :  { %15567 = vst [vmem:[#allocation14_spill] sm:$0xff] %v12126_v33 }
 0x119   :  { %v12134_v37 = vpop.f32.mrb[30].mxu0 }
 0x11a   :  { %15568 = vst [vmem:[#allocation15_spill] sm:$0xff] %v12134_v37  ;;  %3514 = vperm.xlu1 %11199, %v3484_v35   ;;  %v12136_v39 = vpop.f32.mrb[31].mxu0 }
 0x11b   :  { %15569 = vst [vmem:[#allocation16_spill] sm:$0xff] %v12136_v39  ;;  %867 = vperm.xlu0 %11198, %v313_v36   ;;  %v318_v36 = vld [vmem:[%s15554_s6 + $0x318] sm:$0xff]  ;;  %v3210_v39 = vld [vmem:[#allocation2] sm:$0xff] }
 0x11d   :  { %v12144_v42 = vpop.f32.mrb[32].mxu0 }
 0x11e   :  { %15570 = vst [vmem:[#allocation17_spill] sm:$0xff] %v12144_v42  ;;  %3524 = vperm.xlu1 %11199, %v3486_v40   ;;  %v12146_v43 = vpop.f32.mrb[33].mxu0  ;;  %v315_v40 = vld [vmem:[%s15554_s6 + $0x300] sm:$0xff] }
 0x11f   :  { %15571 = vst [vmem:[#allocation18_spill] sm:$0xff] %v12146_v43  ;;  %3489 = vperm.xlu0 %11198, %v3479_v41  }
 0x121   :  { %v12154_v47 = vpop.f32.mrb[34].mxu0 }
 0x122   :  { %15572 = vst [vmem:[#allocation19_spill] sm:$0xff] %v12154_v47  ;;  %437 = vperm.xlu1 %11199, %v227_v44   ;;  %v12156_v48 = vpop.f32.mrb[35].mxu0 }
 0x123   :  { %15573 = vst [vmem:[#allocation20_spill] sm:$0xff] %v12156_v48  ;;  %3499 = vperm.xlu0 %11198, %v3481_v45   ;;  %v320_v45 = vld [vmem:[%s15554_s6 + $0x328] sm:$0xff] }
 0x125   :  { %v12164_v51 = vpop.f32.mrb[36].mxu0 }
 0x126   :  { %15574 = vst [vmem:[#allocation21_spill] sm:$0xff] %v12164_v51  ;;  %447 = vperm.xlu1 %11199, %v229_v49   ;;  %v12166_v52 = vpop.f32.mrb[37].mxu0  ;;  %v317_v49 = vld [vmem:[%s15554_s6 + $0x310] sm:$0xff] }
 0x127   :  { %15575 = vst [vmem:[#allocation22_spill] sm:$0xff] %v12166_v52  ;;  %3509 = vperm.xlu0 %11198, %v3483_v50  }
 0x129   :  { %v12174_v55 = vpop.f32.mrb[38].mxu0 }
 0x12a   :  { %15576 = vst [vmem:[#allocation23_spill] sm:$0xff] %v12174_v55  ;;  %452 = vperm.xlu1 %11199, %v230_v53   ;;  %v12176_v56 = vpop.f32.mrb[39].mxu0 }
 0x12b   :  { %15577 = vst [vmem:[#allocation24_spill] sm:$0xff] %v12176_v56  ;;  %3519 = vperm.xlu0 %11198, %v3485_v54   ;;  %v319_v54 = vld [vmem:[%s15554_s6 + $0x320] sm:$0xff] }
 0x12d   :  { %v12184_v60 = vpop.f32.mrb[40].mxu0 }
 0x12e   :  { %15578 = vst [vmem:[#allocation25_spill] sm:$0xff] %v12184_v60  ;;  %462 = vperm.xlu1 %11199, %v232_v57   ;;  %v12186_v2 = vpop.f32.mrb[41].mxu0 }
 0x12f   :  { %15579 = vst [vmem:[#allocation26_spill] sm:$0xff] %v12186_v2  ;;  %442 = vperm.xlu0 %11198, %v228_v58  }
 0x131   :  { %v12194_v12 = vpop.f32.mrb[42].mxu0 }
 0x132   :  { %15580 = vst [vmem:[#allocation27_spill] sm:$0xff] %v12194_v12  ;;  %472 = vperm.xlu1 %11199, %v234_v3   ;;  %v12196_v18 = vpop.f32.mrb[43].mxu0 }
 0x133   :  { %15581 = vst [vmem:[#allocation28_spill] sm:$0xff] %v12196_v18  ;;  %457 = vperm.xlu0 %11198, %v231_v11  }
 0x135   :  { %v12204_v31 = vpop.f32.mrb[44].mxu0 }
 0x136   :  { %15582 = vst [vmem:[#allocation29_spill] sm:$0xff] %v12204_v31  ;;  %882 = vperm.xlu1 %11199, %v316_v13   ;;  %v12206_v35 = vpop.f32.mrb[45].mxu0 }
 0x137   :  { %15583 = vst [vmem:[#allocation30_spill] sm:$0xff] %v12206_v35  ;;  %467 = vperm.xlu0 %11198, %v233_v27  }
 0x139   :  { %v12214_v41 = vpop.f32.mrb[46].mxu0 }
 0x13a   :  { %15584 = vst [vmem:[#allocation31_spill] sm:$0xff] %v12214_v41  ;;  %892 = vperm.xlu1 %11199, %v318_v36   ;;  %v12216_v44 = vpop.f32.mrb[47].mxu0 }
 0x13b   :  { %15585 = vst [vmem:[#allocation32_spill] sm:$0xff] %v12216_v44  ;;  %877 = vperm.xlu0 %11198, %v315_v40  }
 0x13d   :  { %v12224_v50 = vpop.f32.mrb[48].mxu0 }
 0x13e   :  { %15586 = vst [vmem:[#allocation33_spill] sm:$0xff] %v12224_v50  ;;  %902 = vperm.xlu1 %11199, %v320_v45   ;;  %v12226_v53 = vpop.f32.mrb[49].mxu0 }
 0x13f   :  { %15587 = vst [vmem:[#allocation34_spill] sm:$0xff] %v12226_v53  ;;  %887 = vperm.xlu0 %11198, %v317_v49  }
 0x141   :  { %v12231_v57 = vpop.f32.mrb[50].mxu0 }
 0x142   :  { %15588 = vst [vmem:[#allocation35_spill] sm:$0xff] %v12231_v57  ;;  %v12233_v58 = vpop.f32.mrb[51].mxu0 }
 0x143   :  { %15589 = vst [vmem:[#allocation36_spill] sm:$0xff] %v12233_v58  ;;  %897 = vperm.xlu0 %11198, %v319_v54  }
 0x145   :  { %v12235_v3 = vpop.f32.mrb[52].mxu0 }
 0x146   :  { %15590 = vst [vmem:[#allocation37_spill] sm:$0xff] %v12235_v3  ;;  %v12237_v11 = vpop.f32.mrb[53].mxu0 }
 0x147   :  { %15591 = vst [vmem:[#allocation38_spill] sm:$0xff] %v12237_v11 }
 0x149   :  { %v12239_v13 = vpop.f32.mrb[54].mxu0 }
 0x14a   :  { %15592 = vst [vmem:[#allocation39_spill] sm:$0xff] %v12239_v13  ;;  %v12241_v27 = vpop.f32.mrb[55].mxu0 }
 0x14b   :  { %15593 = vst [vmem:[#allocation40_spill] sm:$0xff] %v12241_v27  ;;  %v12263_v27 = vpop.permute.xlu1 %842 }
 0x14d   :  { %v12243_v36 = vpop.f32.mrb[56].mxu0 }
 0x14e   :  { %15594 = vst [vmem:[#allocation41_spill] sm:$0xff] %v12243_v36  ;;  %v12245_v40 = vpop.f32.mrb[57].mxu0 }
 0x14f   :  { %15595 = vst [vmem:[#allocation42_spill] sm:$0xff] %v12245_v40  ;;  %v12267_v40 = vpop.permute.xlu0 %837 }
 0x151   :  { %v12247_v45 = vpop.f32.mrb[58].mxu0 }
 0x152   :  { %15596 = vst [vmem:[#allocation43_spill] sm:$0xff] %v12247_v45  ;;  %v12249_v49 = vpop.f32.mrb[59].mxu0 }
 0x153   :  { %15597 = vst [vmem:[#allocation44_spill] sm:$0xff] %v12249_v49 }
 0x155   :  { %v12251_v26 = vpop.f32.mrb[60].mxu0 }
 0x156   :  { %15598 = vst [vmem:[#allocation45_spill] sm:$0xff] %v12251_v26  ;;  %v12253_v24 = vpop.f32.mrb[61].mxu0 }
 0x157   :  { %15599 = vst [vmem:[#allocation46_spill] sm:$0xff] %v12253_v24  ;;  %v12275_v24 = vpop.permute.xlu1 %852 }
 0x159   :  { %v12255_v54 = vpop.f32.mrb[62].mxu0 }
 0x15a   :  { %15600 = vst [vmem:[#allocation47_spill] sm:$0xff] %v12255_v54  ;;  %v12257_v50 = vpop.f32.mrb[63].mxu0  ;;  %v12277_v54 = vpop.permute.xlu0 %847 }
 0x15b   :  { %15601 = vst [vmem:[#allocation48_spill] sm:$0xff] %v12257_v50 }
 0x15d   :  { %v12259_v11 = vpop.f32.mrb[64].mxu0 }
 0x15e   :  { %15602 = vst [vmem:[#allocation49_spill] sm:$0xff] %v12259_v11  ;;  %v12261_v13 = vpop.f32.mrb[65].mxu0 }
 0x15f   :  { %15603 = vst [vmem:[#allocation50_spill] sm:$0xff] %v12261_v13  ;;  %v12283_v13 = vpop.permute.xlu1 %862 }
 0x161   :  { %v12265_v36 = vpop.f32.mrb[66].mxu0 }
 0x162   :  { %15604 = vst [vmem:[#allocation51_spill] sm:$0xff] %v12265_v36  ;;  %v12269_v45 = vpop.f32.mrb[67].mxu0  ;;  %v12287_v36 = vpop.permute.xlu0 %857 }
 0x163   :  { %15605 = vst [vmem:[#allocation52_spill] sm:$0xff] %v12269_v45 }
 0x165   :  { %v12271_v49 = vpop.f32.mrb[68].mxu0 }
 0x166   :  { %15606 = vst [vmem:[#allocation53_spill] sm:$0xff] %v12271_v49  ;;  %v12273_v26 = vpop.f32.mrb[69].mxu0 }
 0x167   :  { %15607 = vst [vmem:[#allocation54_spill] sm:$0xff] %v12273_v26 }
 0x169   :  { %v12279_v50 = vpop.f32.mrb[70].mxu0 }
 0x16a   :  { %15608 = vst [vmem:[#allocation55_spill] sm:$0xff] %v12279_v50  ;;  %v12281_v11 = vpop.f32.mrb[71].mxu0 }
 0x16b   :  { %15609 = vst [vmem:[#allocation56_spill] sm:$0xff] %v12281_v11 }
 0x16d   :  { %v12285_v3 = vpop.f32.mrb[72].mxu0 }
 0x16e   :  { %15610 = vst [vmem:[#allocation57_spill] sm:$0xff] %v12285_v3  ;;  %v12289_v57 = vpop.f32.mrb[73].mxu0 }
 0x16f   :  { %15611 = vst [vmem:[#allocation58_spill] sm:$0xff] %v12289_v57 }
 0x171   :  { %v3125_v45 = vpop.xlane.xlu1 %3124  ;;  %v12291_v49 = vpop.f32.mrb[74].mxu0 }
 0x172   :  { %15612 = vst [vmem:[#allocation59_spill] sm:$0xff] %v12291_v49  ;;  %v3123_v26 = vpop.xlane.xlu0 %3122  ;;  %v12293_v58 = vpop.f32.mrb[75].mxu0  ;;  %v12295_v53 = vmul.f32 0.0078125, %v3125_v45 }
 0x173   :  { %15613 = vst [vmem:[#allocation60_spill] sm:$0xff] %v12293_v58  ;;  %v12301_v3 = vmul.f32 0.0078125, %v3123_v26 }
 0x174   :  { %v3171_v35 = vmul.f32 %v12295_v53, %v12295_v53 }
 0x175   :  { %v12297_v44 = vpop.f32.mrb[76].mxu0  ;;  %v3170_v12 = vmul.f32 %v12301_v3, %v12301_v3 }
 0x176   :  { %15614 = vst [vmem:[#allocation61_spill] sm:$0xff] %v12297_v44  ;;  %v3127_v50 = vpop.xlane.xlu1 %3126  ;;  %v3141_v11 = vpop.xlane.xlu0 %3140 }
 0x177   :  { %v12303_v41 = vmul.f32 0.0078125, %v3127_v50  ;;  %v3163_v57 = vmul.f32 0.0078125, %v3141_v11  ;;  %v12305_v60 = vpop.f32.mrb[77].mxu0 }
 0x178   :  { %15615 = vst [vmem:[#allocation62_spill] sm:$0xff] %v12305_v60 }
 0x179   :  { %v3172_v49 = vmul.f32 %v12303_v41, %v12303_v41  ;;  %v3179_v58 = vsub.f32 %v3163_v57, %v3171_v35  ;;  %v12309_v45 = vpop.f32.mrb[78].mxu0 }
 0x17a   :  { %15616 = vst [vmem:[#allocation63_spill] sm:$0xff] %v12309_v45  ;;  %v3143_v31 = vpop.xlane.xlu1 %3142  ;;  %v3139_v44 = vpop.xlane.xlu0 %3138 }
 0x17b   :  { %v3187_v18 = vmax.f32 %v3179_v58, 0.0  ;;  %v3164_v2 = vmul.f32 0.0078125, %v3143_v31  ;;  %v3162_v26 = vmul.f32 0.0078125, %v3139_v44  ;;  %v12313_v56 = vpop.f32.mrb[79].mxu0 }
 0x17c   :  { %15617 = vst [vmem:[#allocation64_spill] sm:$0xff] %v12313_v56 }
 0x17d   :  { %v3180_v50 = vsub.f32 %v3164_v2, %v3172_v49  ;;  %v3178_v11 = vsub.f32 %v3162_v26, %v3170_v12  ;;  %v12315_v52 = vpop.f32.mrb[80].mxu0  ;;  %v3195_v60 = vadd.f32 1e-05, %v3187_v18 }
 0x17e   :  { %15618 = vst [vmem:[#allocation65_spill] sm:$0xff] %v12315_v52  ;;  %v3131_v55 = vpop.xlane.xlu1 %3130  ;;  %v3129_v42 = vpop.xlane.xlu0 %3128 }
 0x17f   :  { %v3188_v35 = vmax.f32 %v3180_v50, 0.0  ;;  %v3186_v57 = vmax.f32 %v3178_v11, 0.0  ;;  %v12317_v45 = vmul.f32 0.0078125, %v3131_v55  ;;  %v12319_v51 = vpop.f32.mrb[81].mxu0  ;;  %v12321_v47 = vmul.f32 0.0078125, %v3129_v42 }
 0x180   :  { %15619 = vst [vmem:[#allocation66_spill] sm:$0xff] %v12319_v51  ;;  %11200 = vrsqrt.f32 %v3195_v60 }
 0x181   :  { %v3196_v58 = vadd.f32 1e-05, %v3188_v35  ;;  %v3194_v31 = vadd.f32 1e-05, %v3186_v57  ;;  %v12323_v44 = vpop.f32.mrb[82].mxu0  ;;  %v3174_v2 = vmul.f32 %v12317_v45, %v12317_v45  ;;  %v3173_v49 = vmul.f32 %v12321_v47, %v12321_v47 }
 0x182   :  { %15620 = vst [vmem:[#allocation67_spill] sm:$0xff] %v12323_v44  ;;  %v3147_v12 = vpop.xlane.xlu1 %3146  ;;  %v3145_v18 = vpop.xlane.xlu0 %3144 }
 0x183   :  { %11202 = vrsqrt.f32 %v3196_v58  ;;  %v3166_v55 = vmul.f32 0.0078125, %v3147_v12  ;;  %v3165_v26 = vmul.f32 0.0078125, %v3145_v18  ;;  %v12329_v50 = vpop.f32.mrb[83].mxu0 }
 0x184   :  { %15621 = vst [vmem:[#allocation68_spill] sm:$0xff] %v12329_v50  ;;  %11204 = vrsqrt.f32 %v3194_v31 }
 0x185   :  { %v3182_v42 = vsub.f32 %v3166_v55, %v3174_v2  ;;  %v3181_v11 = vsub.f32 %v3165_v26, %v3173_v49  ;;  %v12331_v35 = vpop.f32.mrb[84].mxu0 }
 0x186   :  { %15622 = vst [vmem:[#allocation69_spill] sm:$0xff] %v12331_v35  ;;  %v3135_v57 = vpop.xlane.xlu1 %3134  ;;  %v3133_v60 = vpop.xlane.xlu0 %3132 }
 0x187   :  { %v3190_v52 = vmax.f32 %v3182_v42, 0.0  ;;  %v3189_v44 = vmax.f32 %v3181_v11, 0.0  ;;  %v12333_v51 = vmul.f32 0.0078125, %v3135_v57  ;;  %v12335_v56 = vmul.f32 0.0078125, %v3133_v60  ;;  %v12337_v58 = vpop.f32.mrb[85].mxu0 }
 0x188   :  { %15623 = vst [vmem:[#allocation70_spill] sm:$0xff] %v12337_v58 }
 0x189   :  { %v3198_v48 = vadd.f32 1e-05, %v3190_v52  ;;  %v3197_v12 = vadd.f32 1e-05, %v3189_v44  ;;  %v12339_v18 = vpop.f32.mrb[86].mxu0  ;;  %v3176_v31 = vmul.f32 %v12333_v51, %v12333_v51  ;;  %v3175_v55 = vmul.f32 %v12335_v56, %v12335_v56 }
 0x18a   :  { %15624 = vst [vmem:[#allocation71_spill] sm:$0xff] %v12339_v18  ;;  %v3151_v2 = vpop.xlane.xlu1 %3150  ;;  %v3149_v49 = vpop.xlane.xlu0 %3148 }
 0x18b   :  { %11206 = vrsqrt.f32 %v3198_v48  ;;  %v3168_v26 = vmul.f32 0.0078125, %v3151_v2  ;;  %v3167_v42 = vmul.f32 0.0078125, %v3149_v49  ;;  %v12345_v11 = vpop.f32.mrb[87].mxu0  ;;  %v11201_v57 = vpop.eup %11200  ;;  %v3211_v48 = vld [vmem:[#allocation2 + $0x8] sm:$0xff] }
 0x18c   :  { %15625 = vst [vmem:[#allocation72_spill] sm:$0xff] %v12345_v11  ;;  %11208 = vrsqrt.f32 %v3197_v12  ;;  %v12352_v11 = vmul.f32 %v11201_v57, %v3211_v48 }
 0x18d   :  { %v11203_v60 = vpop.eup %11202  ;;  %v3184_v52 = vsub.f32 %v3168_v26, %v3176_v31  ;;  %v3183_v44 = vsub.f32 %v3167_v42, %v3175_v55  ;;  %v10286_v58 = vpop.f32.mrb[88].mxu0  ;;  %v3212_v31 = vld [vmem:[#allocation2 + $0x10] sm:$0xff] }
 0x18e   :  { %v11205_v18 = vpop.eup %11204  ;;  %v2316_v35 = vadd.f32 %v10286_v58, %v12263_v27  ;;  %v873_v50 = vpop.permute.xlu1 %872  ;;  %v12358_v26 = vmul.f32 %v11203_v60, %v3212_v31  ;;  %v3214_v60 = vld [vmem:[#allocation2 + $0x20] sm:$0xff] }
 0x18f   :  { %v3137_v43 = vpop.xlane.xlu0 %3136  ;;  %v3192_v33 = vmax.f32 %v3184_v52, 0.0  ;;  %v3191_v37 = vmax.f32 %v3183_v44, 0.0  ;;  %v2310_v2 = vpop.f32.mrb[89].mxu0  ;;  %v12350_v49 = vmul.f32 %v11205_v18, %v3210_v39 }
 0x190   :  { %v12348_v23 = vmul.f32 0.0078125, %v3137_v43  ;;  %2839 = vst.msk [vmem:[#allocation2 + $0x2c8] sm:$0xff] %vm2749_vm2, %v2316_v35  ;;  %v2311_v12 = vadd.f32 %v2310_v2, %v12267_v40 }
 0x191   :  { %v3200_v55 = vadd.f32 1e-05, %v3192_v33  ;;  %v3199_v27 = vadd.f32 1e-05, %v3191_v37  ;;  %10432 = vmatprep.mubr.msk.f32.mxu1 %vm2749_vm2, %v12350_v49  ;;  %v10289_v58 = vpop.f32.mrb[90].mxu0 }
 0x192   :  { %2838 = vst.msk [vmem:[#allocation2 + $0x2c0] sm:$0xff] %vm2749_vm2, %v2311_v12  ;;  %v2326_v39 = vadd.f32 %v10289_v58, %v12275_v24  ;;  %10433 = vmatmul.mubr.msk.f32.vlgmr.msra.gmra.mrb[10].mxu1 %vm2749_vm2, %v12352_v11  ;;  %v12364_v43 = vpop.permute.xlu1 %3494  ;;  %v3177_v33 = vmul.f32 %v12348_v23, %v12348_v23  ;;  %v2320_v40 = vpop.f32.mrb[91].mxu0  ;;  %v3213_v12 = vld [vmem:[#allocation2 + $0x18] sm:$0xff] }
 0x193   :  { %v3153_v35 = vpop.xlane.xlu0 %3152  ;;  %11210 = vrsqrt.f32 %v3200_v55  ;;  %10435 = vmatprep.mubr.msk.f32.mxu1 %vm2749_vm2, %v12358_v26  ;;  %v2321_v24 = vadd.f32 %v2320_v40, %v12277_v54 }
 0x194   :  { %v3169_v37 = vmul.f32 0.0078125, %v3153_v35  ;;  %11212 = vrsqrt.f32 %v3199_v27  ;;  %2841 = vst.msk [vmem:[#allocation2 + $0x2d8] sm:$0xff] %vm2749_vm2, %v2326_v39 }
 0x195   :  { %v11207_v18 = vpop.eup %11206  ;;  %v10292_v57 = vpop.f32.mrb[92].mxu0  ;;  %2840 = vst.msk [vmem:[#allocation2 + $0x2d0] sm:$0xff] %vm2749_vm2, %v2321_v24  ;;  %v3216_v24 = vld [vmem:[#allocation2 + $0x30] sm:$0xff] }
 0x196   :  { %v3185_v42 = vsub.f32 %v3169_v37, %v3177_v33  ;;  %v11209_v52 = vpop.eup %11208  ;;  %v2336_v44 = vadd.f32 %v10292_v57, %v12283_v13  ;;  %v12374_v48 = vpop.permute.xlu1 %3504  ;;  %v12376_v31 = vmul.f32 %v11207_v18, %v3214_v60  ;;  %v3215_v60 = vld [vmem:[#allocation2 + $0x28] sm:$0xff] }
 0x197   :  { %v2330_v2 = vpop.f32.mrb[93].mxu0  ;;  %v3229_v58 = vmul.f32 %v11209_v52, %v3213_v12 }
 0x198   :  { %v3193_v55 = vmax.f32 %v3185_v42, 0.0  ;;  %v2331_v27 = vadd.f32 %v2330_v2, %v12287_v36  ;;  %2843 = vst.msk [vmem:[#allocation2 + $0x2e8] sm:$0xff] %vm2749_vm2, %v2336_v44 }
 0x199   :  { %10436 = vmatmul.mubr.msk.f32.gmra.mrb[12].mxu1 %vm2749_vm2, %v3229_v58  ;;  %v10295_v39 = vpop.f32.mrb[94].mxu0 }
 0x19a   :  { %v3201_v54 = vadd.f32 1e-05, %v3193_v55  ;;  %2842 = vst.msk [vmem:[#allocation2 + $0x2e0] sm:$0xff] %vm2749_vm2, %v2331_v27  ;;  %v2346_v35 = vadd.f32 %v10295_v39, %v873_v50  ;;  %10438 = vmatprep.mubr.msk.f32.mxu1 %vm2749_vm2, %v12376_v31  ;;  %v12384_v13 = vpop.permute.xlu1 %3514  ;;  %v868_v33 = vpop.permute.xlu0 %867 }
 0x19b   :  { %v2340_v37 = vpop.f32.mrb[95].mxu0 }
 0x19c   :  { %11214 = vrsqrt.f32 %v3201_v54  ;;  %2845 = vst.msk [vmem:[#allocation2 + $0x2f8] sm:$0xff] %vm2749_vm2, %v2346_v35  ;;  %v2341_v36 = vadd.f32 %v2340_v37, %v868_v33  ;;  %v3218_v35 = vld [vmem:[#allocation2 + $0x2c0] sm:$0xff]  ;;  %v3217_v37 = vld [vmem:[#allocation2 + $0x38] sm:$0xff]  ;;  %v3220_v30 = vld [vmem:[#allocation2 + $0x2d0] sm:$0xff] }
 0x19d   :  { %v11211_v40 = vpop.eup %11210  ;;  %v12387_v18 = vpop.f32.mrb[96].mxu0 }
 0x19e   :  { %v11213_v42 = vpop.eup %11212  ;;  %2844 = vst.msk [vmem:[#allocation2 + $0x2f0] sm:$0xff] %vm2749_vm2, %v2341_v36  ;;  %v12390_v57 = vpop.permute.xlu1 %3524  ;;  %v3232_v52 = vmul.f32 %v11211_v40, %v3216_v24  ;;  %v3234_v36 = vmul.f32 %v12350_v49, %v12301_v3  ;;  %v3236_v3 = vmul.f32 %v12358_v26, %v12303_v41 }
 0x19f   :  { %v12392_v50 = vpop.permute.xlu0 %3489  ;;  %v3231_v44 = vmul.f32 %v11213_v42, %v3215_v60  ;;  %v12394_v2 = vpop.f32.mrb[97].mxu0 }
 0x1a0   :  { %v3242_v29 = vsub.f32 %v3218_v35, %v3234_v36  ;;  %v3221_v36 = vld [vmem:[#allocation2 + $0x2d8] sm:$0xff] }
 0x1a1   :  { %10439 = vmatmul.mubr.msk.f32.gmra.mrb[14].mxu1 %vm2749_vm2, %v3231_v44  ;;  %v12397_v12 = vpop.f32.mrb[98].mxu0 }
 0x1a2   :  { %10441 = vmatprep.mubr.msk.f32.mxu1 %vm2749_vm2, %v3232_v52  ;;  %v438_v55 = vpop.permute.xlu1 %437  ;;  %v12403_v39 = vpop.f32.mrb[99].mxu0 }
 0x1a3   :  { %v12400_v27 = vpop.permute.xlu0 %3499  ;;  %v1911_v54 = vadd.f32 %v12038_v61, %v438_v55  ;;  %v3219_v61 = vld [vmem:[#allocation2 + $0x2c8] sm:$0xff] }
 0x1a5   :  { %2758 = vst.msk [vmem:[#allocation2 + $0x40] sm:$0xff] %vm2749_vm2, %v1911_v54  ;;  %v12408_v40 = vpop.f32.mrb[100].mxu0  ;;  %v3235_v54 = vmul.f32 %v12352_v11, %v12295_v53  ;;  %v3237_v53 = vmul.f32 %v3229_v58, %v12321_v47  ;;  %v3222_v11 = vld [vmem:[#allocation2 + $0x2e0] sm:$0xff]  ;;  %v3224_v47 = vld [vmem:[#allocation2 + $0x2f0] sm:$0xff] }
 0x1a6   :  { %v11215_v33 = vpop.eup %11214  ;;  %v448_v24 = vpop.permute.xlu1 %447 }
 0x1a7   :  { %v12410_v42 = vpop.permute.xlu0 %3509  ;;  %v3233_v60 = vmul.f32 %v11215_v33, %v3217_v37  ;;  %v1921_v32 = vadd.f32 %v12050_v1, %v448_v24  ;;  %v12413_v55 = vpop.f32.mrb[101].mxu0  ;;  %v3243_v1 = vsub.f32 %v3219_v61, %v3235_v54  ;;  %v3244_v37 = vsub.f32 %v3220_v30, %v3236_v3 }
 0x1a8   :  { %v3245_v26 = vsub.f32 %v3221_v36, %v3237_v53  ;;  %v3239_v24 = vmul.f32 %v3231_v44, %v12335_v56 }
 0x1a9   :  { %10442 = vmatmul.mubr.msk.f32.gmra.mrb[16].mxu1 %vm2749_vm2, %v3233_v60  ;;  %2760 = vst.msk [vmem:[#allocation2 + $0x50] sm:$0xff] %vm2749_vm2, %v1921_v32 }
 0x1aa   :  { %10444 = vmatprep.mubr.msk.f32.mxu1 %vm2749_vm2, %v3242_v29  ;;  %v453_v49 = vpop.permute.xlu1 %452  ;;  %v3238_v29 = vmul.f32 %v12376_v31, %v12317_v45  ;;  %v3223_v45 = vld [vmem:[#allocation2 + $0x2e8] sm:$0xff]  ;;  %v3240_v31 = vmul.f32 %v3232_v52, %v12333_v51 }
 0x1ab   :  { %v12422_v33 = vpop.permute.xlu0 %3519  ;;  %v1926_v35 = vadd.f32 %v12048_v0, %v453_v49  ;;  %v3247_v56 = vsub.f32 %v3223_v45, %v3239_v24  ;;  %v3225_v49 = vld [vmem:[#allocation2 + $0x2f8] sm:$0xff] }
 0x1ac   :  { %v3246_v61 = vsub.f32 %v3222_v11, %v3238_v29  ;;  %v3248_v3 = vsub.f32 %v3224_v47, %v3240_v31 }
 0x1ad   :  { %10445 = vmatmul.mubr.msk.f32.gmra.mrb[18].mxu1 %vm2749_vm2, %v3243_v1  ;;  %2761 = vst.msk [vmem:[#allocation2 + $0x58] sm:$0xff] %vm2749_vm2, %v1926_v35 }
 0x1ae   :  { %10447 = vmatprep.mubr.msk.f32.mxu1 %vm2749_vm2, %v3244_v37  ;;  %v463_v32 = vpop.permute.xlu1 %462 }
 0x1af   :  { %v443_v41 = vpop.permute.xlu0 %442  ;;  %v1936_v0 = vadd.f32 %v12056_v4, %v463_v32  ;;  %v3241_v4 = vmul.f32 %v3233_v60, %v12348_v23 }
 0x1b0   :  { %v1916_v30 = vadd.f32 %v12036_v59, %v443_v41 }
 0x1b1   :  { %10448 = vmatmul.mubr.msk.f32.gmra.mrb[20].mxu1 %vm2749_vm2, %v3245_v26  ;;  %2763 = vst.msk [vmem:[#allocation2 + $0x68] sm:$0xff] %vm2749_vm2, %v1936_v0  ;;  %v3249_v1 = vsub.f32 %v3225_v49, %v3241_v4 }
 0x1b2   :  { %2759 = vst.msk [vmem:[#allocation2 + $0x48] sm:$0xff] %vm2749_vm2, %v1916_v30  ;;  %10450 = vmatprep.mubr.msk.f32.mxu1 %vm2749_vm2, %v3246_v61  ;;  %v473_v58 = vpop.permute.xlu1 %472 }
 0x1b3   :  { %v458_v54 = vpop.permute.xlu0 %457  ;;  %v1946_v59 = vadd.f32 %v12068_v9, %v473_v58 }
 0x1b4   :  { %v1931_v44 = vadd.f32 %v12058_v5, %v458_v54 }
 0x1b5   :  { %10451 = vmatmul.mubr.msk.f32.gmra.mrb[22].mxu1 %vm2749_vm2, %v3247_v56  ;;  %2765 = vst.msk [vmem:[#allocation2 + $0x78] sm:$0xff] %vm2749_vm2, %v1946_v59 }
 0x1b6   :  { %2762 = vst.msk [vmem:[#allocation2 + $0x60] sm:$0xff] %vm2749_vm2, %v1931_v44  ;;  %10453 = vmatprep.mubr.msk.f32.mxu1 %vm2749_vm2, %v3248_v3  ;;  %v883_v51 = vpop.permute.xlu1 %882 }
 0x1b7   :  { %v468_v52 = vpop.permute.xlu0 %467  ;;  %v2356_v23 = vadd.f32 %v12387_v18, %v883_v51 }
 0x1b8   :  { %v1941_v35 = vadd.f32 %v12070_v10, %v468_v52 }
 0x1b9   :  { %10454 = vmatmul.mubr.msk.f32.gmra.mrb[24].mxu1 %vm2749_vm2, %v3249_v1  ;;  %2847 = vst.msk [vmem:[#allocation2 + $0x308] sm:$0xff] %vm2749_vm2, %v2356_v23 }
 0x1ba   :  { %2764 = vst.msk [vmem:[#allocation2 + $0x70] sm:$0xff] %vm2749_vm2, %v1941_v35  ;;  %v893_v5 = vpop.permute.xlu1 %892 }
 0x1bb   :  { %v878_v9 = vpop.permute.xlu0 %877  ;;  %v2366_v37 = vadd.f32 %v12397_v12, %v893_v5  ;;  %v143_v12 = vld [vmem:[%s15553_s5 + $0x330] sm:$0xff] }
 0x1bc   :  { %v2351_v60 = vadd.f32 %v12394_v2, %v878_v9  ;;  %v3471_v2 = vld [vmem:[%s15555_s7] sm:$0xff]  ;;  %10305 = vmatprep.mubr.msk.f32.mxu0 %vm1275_vm0, %v143_v12 }
 0x1bd   :  { %2849 = vst.msk [vmem:[#allocation2 + $0x318] sm:$0xff] %vm2749_vm2, %v2366_v37  ;;  %10472 = vmatprep.mubr.msk.f32.mxu1 %vm3527_vm4, %v3471_v2 }
 0x1be   :  { %2846 = vst.msk [vmem:[#allocation2 + $0x300] sm:$0xff] %vm2749_vm2, %v2351_v60  ;;  %v903_v36 = vpop.permute.xlu1 %902 }
 0x1bf   :  { %v888_v10 = vpop.permute.xlu0 %887  ;;  %v2376_v53 = vadd.f32 %v12408_v40, %v903_v36 }
 0x1c0   :  { %v2361_v18 = vadd.f32 %v12403_v39, %v888_v10  ;;  %v144_v39 = vld [vmem:[%s15553_s5 + $0x338] sm:$0xff] }
 0x1c1   :  { %2851 = vst.msk [vmem:[#allocation2 + $0x328] sm:$0xff] %vm2749_vm2, %v2376_v53  ;;  %10306 = vmatmul.mubr.msk.f32.gmra.mrb[102].mxu0 %vm1275_vm0, %v144_v39 }
 0x1c2   :  { %2848 = vst.msk [vmem:[#allocation2 + $0x310] sm:$0xff] %vm2749_vm2, %v2361_v18 }
 0x1c3   :  { %v898_v11 = vpop.permute.xlu0 %897 }
 0x1c4   :  { %v2371_v29 = vadd.f32 %v12413_v55, %v898_v11 }
 0x1c6   :  { %2850 = vst.msk [vmem:[#allocation2 + $0x320] sm:$0xff] %vm2749_vm2, %v2371_v29 }
 0x265   :  { %v10434_v40 = vpop.f32.mrb[10].mxu1 }
 0x266   :  { %v3368_v55 = vpop.f32.mrb[11].mxu1  ;;  %v3448_v61 = vmul.f32 %v10434_v40, %v12014_v34 }
 0x267   :  { %v3447_v47 = vmul.f32 %v3368_v55, %v12016_v38 }
 0x26c   :  { %v10437_v32 = vpop.f32.mrb[12].mxu1 }
 0x26d   :  { %v3378_v41 = vpop.f32.mrb[13].mxu1  ;;  %v3450_v56 = vmul.f32 %v10437_v32, %v12041_v62 }
 0x26e   :  { %v3449_v59 = vmul.f32 %v3378_v41, %v12023_v46 }
 0x274   :  { %v10440_v26 = vpop.f32.mrb[14].mxu1 }
 0x275   :  { %v3388_v24 = vpop.f32.mrb[15].mxu1  ;;  %v3452_v35 = vmul.f32 %v10440_v26, %v12061_v6 }
 0x276   :  { %v3451_v5 = vmul.f32 %v3388_v24, %v12044_v63 }
 0x27c   :  { %v10443_v0 = vpop.f32.mrb[16].mxu1 }
 0x27d   :  { %v3398_v30 = vpop.f32.mrb[17].mxu1  ;;  %v3454_v53 = vmul.f32 %v10443_v0, %v12081_v15  ;;  %v3472_v0 = vld [vmem:[%s15555_s7 + $0x8] sm:$0xff] }
 0x27e   :  { %v3453_v29 = vmul.f32 %v3398_v30, %v12064_v7  ;;  %v3473_v30 = vld [vmem:[%s15555_s7 + $0x10] sm:$0xff] }
 0x280   :  { %v10446_v45 = vpop.f32.mrb[18].mxu1 }
 0x281   :  { %v3456_v31 = vadd.f32 %v10446_v45, %v3448_v61  ;;  %v3408_v58 = vpop.f32.mrb[19].mxu1  ;;  %v3474_v61 = vld [vmem:[%s15555_s7 + $0x18] sm:$0xff]  ;;  %v3476_v45 = vld [vmem:[%s15555_s7 + $0x28] sm:$0xff] }
 0x282   :  { %v3455_v54 = vadd.f32 %v3447_v47, %v3408_v58  ;;  %v3475_v47 = vld [vmem:[%s15555_s7 + $0x20] sm:$0xff] }
 0x283   :  { %v3464_v4 = vmax.f32 %v3456_v31, 0.0  ;;  %v3477_v31 = vld [vmem:[%s15555_s7 + $0x30] sm:$0xff]  ;;  %v145_v58 = vld [vmem:[%s15553_s5 + $0x340] sm:$0xff] }
 0x284   :  { %v3463_v44 = vmax.f32 %v3455_v54, 0.0  ;;  %v10449_v3 = vpop.f32.mrb[20].mxu1  ;;  %10308 = vmatprep.mubr.msk.f32.mxu0 %vm1275_vm0, %v145_v58  ;;  %v146_v54 = vld [vmem:[%s15553_s5 + $0x348] sm:$0xff]  ;;  %v242_v58 = vld [vmem:[%s15554_s6 + $0xb8] sm:$0xff] }
 0x285   :  { %v3458_v49 = vadd.f32 %v10449_v3, %v3450_v56  ;;  %v3418_v51 = vpop.f32.mrb[21].mxu1  ;;  %10309 = vmatmul.mubr.msk.f32.gmra.mrb[104].mxu0 %vm1275_vm0, %v146_v54  ;;  %v147_v56 = vld [vmem:[%s15553_s5 + $0x350] sm:$0xff]  ;;  %v239_v54 = vld [vmem:[%s15554_s6 + $0xa0] sm:$0xff] }
 0x286   :  { %v11019_v52 = vpack.c.bf16 %v3464_v4, %v3463_v44  ;;  %v3457_v1 = vadd.f32 %v3449_v59, %v3418_v51  ;;  %10311 = vmatprep.mubr.msk.f32.mxu0 %vm1275_vm0, %v147_v56  ;;  %v148_v4 = vld [vmem:[%s15553_s5 + $0x358] sm:$0xff]  ;;  %v149_v59 = vld [vmem:[%s15553_s5 + $0x360] sm:$0xff]  ;;  %v150_v44 = vld [vmem:[%s15553_s5 + $0x368] sm:$0xff] }
 0x287   :  { %v3466_v23 = vmax.f32 %v3458_v49, 0.0  ;;  %v324_v56 = vld [vmem:[%s15554_s6 + $0x348] sm:$0xff] }
 0x288   :  { %v3465_v9 = vmax.f32 %v3457_v1, 0.0  ;;  %v10452_v60 = vpop.f32.mrb[22].mxu1  ;;  %11020 = vmatprep.subr.bf16.mxu1 %v11019_v52 }
 0x289   :  { %v3460_v37 = vadd.f32 %v10452_v60, %v3452_v35  ;;  %v3428_v36 = vpop.f32.mrb[23].mxu1  ;;  %11022 = vmatpush3.bf16.msra.mxu1 %v11019_v52  ;;  %10312 = vmatmul.mubr.msk.f32.gmra.mrb[106].mxu0 %vm1275_vm0, %v148_v4  ;;  %v241_v4 = vld [vmem:[%s15554_s6 + $0xb0] sm:$0xff] }
 0x28a   :  { %v11023_v10 = vpack.c.bf16 %v3466_v23, %v3465_v9  ;;  %v3459_v18 = vadd.f32 %v3451_v5, %v3428_v36  ;;  %10314 = vmatprep.mubr.msk.f32.mxu0 %vm1275_vm0, %v149_v59  ;;  %v326_v59 = vld [vmem:[%s15554_s6 + $0x358] sm:$0xff] }
 0x28b   :  { %v3468_v11 = vmax.f32 %v3460_v37, 0.0 }
 0x28c   :  { %v3467_v2 = vmax.f32 %v3459_v18, 0.0  ;;  %v10455_v12 = vpop.f32.mrb[24].mxu1  ;;  %11024 = vmatprep.subr.bf16.mxu1 %v11023_v10 }
 0x28d   :  { %v3462_v39 = vadd.f32 %v10455_v12, %v3454_v53  ;;  %v3438_v40 = vpop.f32.mrb[25].mxu1  ;;  %11026 = vmatpush3.bf16.msra.mxu1 %v11023_v10  ;;  %10315 = vmatmul.mubr.msk.f32.gmra.mrb[108].mxu0 %vm1275_vm0, %v150_v44  ;;  %v9244_v12 = vld [vmem:[%s15556_s8 + $0x48] sm:$0xff] }
 0x28e   :  { %v11027_v55 = vpack.c.bf16 %v3468_v11, %v3467_v2  ;;  %v3461_v32 = vadd.f32 %v3453_v29, %v3438_v40  ;;  %v9248_v40 = vld [vmem:[%s15556_s8 + $0x68] sm:$0xff] }
 0x28f   :  { %v3470_v41 = vmax.f32 %v3462_v39, 0.0 }
 0x290   :  { %v3469_v26 = vmax.f32 %v3461_v32, 0.0  ;;  %11028 = vmatprep.subr.bf16.mxu1 %v11027_v55  ;;  %v9250_v32 = vld [vmem:[%s15556_s8 + $0x78] sm:$0xff] }
 0x291   :  { %11030 = vmatpush3.bf16.msra.mxu1 %v11027_v55  ;;  %v321_v55 = vld [vmem:[%s15554_s6 + $0x330] sm:$0xff] }
 0x292   :  { %v11031_v24 = vpack.c.bf16 %v3470_v41, %v3469_v26  ;;  %v9243_v26 = vld [vmem:[%s15556_s8 + $0x40] sm:$0xff] }
 0x294   :  { %11032 = vmatprep.subr.bf16.mxu1 %v11031_v24  ;;  %v12591_v39 = vpop.f32.mrb[102].mxu0 }
 0x295   :  { %11034 = vmatpush3.bf16.msra.mxu1 %v11031_v24  ;;  %v12605_v41 = vpop.f32.mrb[103].mxu0  ;;  %v235_v24 = vld [vmem:[%s15554_s6 + $0x80] sm:$0xff] }
 0x296   :  { %10484 = vmatprep.subr.msk.mxu1 %vm3298_vm3, %v12111_v28 }
 0x298   :  { %10473 = vmatmul.mubr.msk.f32.vlgmr.msra.gmra.mrb[26].mxu1 %vm3527_vm4, %v3472_v0  ;;  %v9245_v0 = vld [vmem:[%s15556_s8 + $0x50] sm:$0xff] }
 0x299   :  { %10475 = vmatprep.mubr.msk.f32.mxu1 %vm3527_vm4, %v3473_v30  ;;  %10485 = vmatpush3.msk.msra.mxu1 %vm3298_vm3, %v12111_v28  ;;  %v3478_v28 = vld [vmem:[%s15555_s7 + $0x38] sm:$0xff]  ;;  %v237_v30 = vld [vmem:[%s15554_s6 + $0x90] sm:$0xff] }
 0x29c   :  { %10476 = vmatmul.mubr.msk.f32.gmra.mrb[28].mxu1 %vm3527_vm4, %v3474_v61  ;;  %v9247_v61 = vld [vmem:[%s15556_s8 + $0x60] sm:$0xff] }
 0x29d   :  { %10478 = vmatprep.mubr.msk.f32.mxu1 %vm3527_vm4, %v3475_v47  ;;  %v238_v47 = vld [vmem:[%s15554_s6 + $0x98] sm:$0xff] }
 0x2a0   :  { %10479 = vmatmul.mubr.msk.f32.gmra.mrb[30].mxu1 %vm3527_vm4, %v3476_v45  ;;  %v9249_v45 = vld [vmem:[%s15556_s8 + $0x70] sm:$0xff] }
 0x2a1   :  { %10481 = vmatprep.mubr.msk.f32.mxu1 %vm3527_vm4, %v3477_v31  ;;  %v240_v31 = vld [vmem:[%s15554_s6 + $0xa8] sm:$0xff] }
 0x2a4   :  { %10482 = vmatmul.mubr.msk.f32.gmra.mrb[32].mxu1 %vm3527_vm4, %v3478_v28  ;;  %v236_v28 = vld [vmem:[%s15554_s6 + $0x88] sm:$0xff] }
 0x358   :  { %v12649_v44 = vpop.f32.mrb[104].mxu0 }
 0x36b   :  { %v10474_v3 = vpop.f32.mrb[26].mxu1 }
 0x36c   :  { %v12538_v49 = vadd.f32 %v10474_v3, %v12364_v43  ;;  %v3618_v51 = vpop.f32.mrb[27].mxu1  ;;  %v323_v3 = vld [vmem:[%s15554_s6 + $0x340] sm:$0xff] }
 0x36d   :  { %v12541_v52 = vadd.f32 %v3618_v51, %v12392_v50  ;;  %v12654_v51 = vpop.f32.mrb[105].mxu0 }
 0x36e   :  { %3667 = vadd.xlane.f32.xlu1 %v12538_v49  ;;  %v3658_v5 = vmul.f32 %v12538_v49, %v12538_v49 }
 0x36f   :  { %v10477_v1 = vpop.f32.mrb[28].mxu1  ;;  %3665 = vadd.xlane.f32.xlu0 %v12541_v52  ;;  %v3657_v60 = vmul.f32 %v12541_v52, %v12541_v52 }
 0x370   :  { %v3628_v35 = vpop.f32.mrb[29].mxu1 }
 0x371   :  { %v12546_v23 = vadd.f32 %v3628_v35, %v12400_v27  ;;  %v12556_v27 = vadd.f32 %v10477_v1, %v12374_v48  ;;  %v328_v1 = vld [vmem:[%s15554_s6 + $0x368] sm:$0xff]  ;;  %v12659_v35 = vpop.f32.mrb[106].mxu0 }
 0x373   :  { %v10480_v9 = vpop.f32.mrb[30].mxu1  ;;  %3669 = vadd.xlane.f32.xlu1 %v12546_v23  ;;  %3683 = vadd.xlane.f32.xlu0 %v3658_v5  ;;  %v3659_v50 = vmul.f32 %v12546_v23, %v12546_v23  ;;  %v3660_v53 = vmul.f32 %v12556_v27, %v12556_v27  ;;  %v325_v5 = vld [vmem:[%s15554_s6 + $0x350] sm:$0xff] }
 0x374   :  { %v3638_v43 = vpop.f32.mrb[31].mxu1  ;;  %v12568_v11 = vadd.f32 %v10480_v9, %v12384_v13  ;;  %v12664_v9 = vpop.f32.mrb[107].mxu0 }
 0x375   :  { %v12559_v10 = vadd.f32 %v3638_v43, %v12410_v42  ;;  %v12666_v43 = vpop.f32.mrb[108].mxu0 }
 0x376   :  { %v3662_v29 = vmul.f32 %v12568_v11, %v12568_v11 }
 0x377   :  { %v10483_v37 = vpop.f32.mrb[32].mxu1  ;;  %3685 = vadd.xlane.f32.xlu1 %v3659_v50  ;;  %3681 = vadd.xlane.f32.xlu0 %v3657_v60  ;;  %v3661_v18 = vmul.f32 %v12559_v10, %v12559_v10  ;;  %v327_v50 = vld [vmem:[%s15554_s6 + $0x360] sm:$0xff]  ;;  %v12671_v60 = vpop.f32.mrb[109].mxu0 }
 0x378   :  { %v3648_v36 = vpop.f32.mrb[33].mxu1  ;;  %v12580_v2 = vadd.f32 %v10483_v37, %v12390_v57  ;;  %v9246_v57 = vld [vmem:[%s15556_s8 + $0x58] sm:$0xff] }
 0x379   :  { %v12571_v48 = vadd.f32 %v3648_v36, %v12422_v33  ;;  %v322_v33 = vld [vmem:[%s15554_s6 + $0x338] sm:$0xff] }
 0x37a   :  { %v3664_v13 = vmul.f32 %v12580_v2, %v12580_v2 }
 0x37b   :  { %3673 = vadd.xlane.f32.xlu1 %v12559_v10  ;;  %3671 = vadd.xlane.f32.xlu0 %v12556_v27  ;;  %v3663_v42 = vmul.f32 %v12571_v48, %v12571_v48 }
 0x37f   :  { %3689 = vadd.xlane.f32.xlu1 %v3661_v18  ;;  %3687 = vadd.xlane.f32.xlu0 %v3660_v53 }
 0x383   :  { %3677 = vadd.xlane.f32.xlu1 %v12571_v48  ;;  %3675 = vadd.xlane.f32.xlu0 %v12568_v11 }
 0x387   :  { %3693 = vadd.xlane.f32.xlu1 %v3663_v42  ;;  %3691 = vadd.xlane.f32.xlu0 %v3662_v29 }
 0x38b   :  { %3679 = vadd.xlane.f32.xlu0 %v12580_v2 }
 0x38f   :  { %3695 = vadd.xlane.f32.xlu0 %v3664_v13 }
 0x398   :  { %912 = vperm.xlu1 %11199, %v322_v33  }
 0x39c   :  { %4035 = vperm.xlu1 %11199, %v9244_v12  }
 0x3a0   :  { %4045 = vperm.xlu1 %11199, %v9246_v57  }
 0x3a4   :  { %4055 = vperm.xlu1 %11199, %v9248_v40  }
 0x3a5   :  { %907 = vperm.xlu0 %11198, %v321_v55  }
 0x3a8   :  { %4065 = vperm.xlu1 %11199, %v9250_v32  }
 0x3a9   :  { %4030 = vperm.xlu0 %11198, %v9243_v26  }
 0x3ac   :  { %477 = vperm.xlu1 %11199, %v235_v24  }
 0x3ad   :  { %4040 = vperm.xlu0 %11198, %v9245_v0  }
 0x3b0   :  { %487 = vperm.xlu1 %11199, %v237_v30  }
 0x3b1   :  { %4050 = vperm.xlu0 %11198, %v9247_v61  }
 0x3b4   :  { %492 = vperm.xlu1 %11199, %v238_v47  }
 0x3b5   :  { %4060 = vperm.xlu0 %11198, %v9249_v45  }
 0x3b8   :  { %502 = vperm.xlu1 %11199, %v240_v31  }
 0x3b9   :  { %482 = vperm.xlu0 %11198, %v236_v28  }
 0x3bc   :  { %512 = vperm.xlu1 %11199, %v242_v58  }
 0x3bd   :  { %497 = vperm.xlu0 %11198, %v239_v54  }
 0x3c0   :  { %922 = vperm.xlu1 %11199, %v324_v56  }
 0x3c1   :  { %507 = vperm.xlu0 %11198, %v241_v4  }
 0x3c4   :  { %932 = vperm.xlu1 %11199, %v326_v59  }
 0x3c5   :  { %917 = vperm.xlu0 %11198, %v323_v3  }
 0x3c8   :  { %942 = vperm.xlu1 %11199, %v328_v1  }
 0x3c9   :  { %927 = vperm.xlu0 %11198, %v325_v5  }
 0x3cd   :  { %937 = vperm.xlu0 %11198, %v327_v50  }
 0x3fb   :  { %v3668_v37 = vpop.xlane.xlu1 %3667 }
 0x3fc   :  { %v3666_v36 = vpop.xlane.xlu0 %3665  ;;  %v12673_v18 = vmul.f32 0.0078125, %v3668_v37 }
 0x3fd   :  { %v12675_v53 = vmul.f32 0.0078125, %v3666_v36 }
 0x3fe   :  { %v3714_v13 = vmul.f32 %v12673_v18, %v12673_v18 }
 0x3ff   :  { %v3713_v40 = vmul.f32 %v12675_v53, %v12675_v53 }
 0x400   :  { %v3670_v42 = vpop.xlane.xlu1 %3669  ;;  %v3684_v29 = vpop.xlane.xlu0 %3683 }
 0x401   :  { %v12679_v33 = vmul.f32 0.0078125, %v3670_v42  ;;  %v3706_v12 = vmul.f32 0.0078125, %v3684_v29 }
 0x403   :  { %v3722_v57 = vsub.f32 %v3706_v12, %v3714_v13  ;;  %v3715_v26 = vmul.f32 %v12679_v33, %v12679_v33 }
 0x404   :  { %v3686_v55 = vpop.xlane.xlu1 %3685  ;;  %v3682_v32 = vpop.xlane.xlu0 %3681 }
 0x405   :  { %v3730_v24 = vmax.f32 %v3722_v57, 0.0  ;;  %v3707_v0 = vmul.f32 0.0078125, %v3686_v55  ;;  %v3705_v30 = vmul.f32 0.0078125, %v3682_v32 }
 0x407   :  { %v3723_v61 = vsub.f32 %v3707_v0, %v3715_v26  ;;  %v3721_v47 = vsub.f32 %v3705_v30, %v3713_v40  ;;  %v3738_v45 = vadd.f32 1e-05, %v3730_v24 }
 0x408   :  { %v3674_v31 = vpop.xlane.xlu1 %3673  ;;  %v3672_v28 = vpop.xlane.xlu0 %3671 }
 0x409   :  { %v3731_v58 = vmax.f32 %v3723_v61, 0.0  ;;  %v3729_v54 = vmax.f32 %v3721_v47, 0.0  ;;  %v12685_v56 = vmul.f32 0.0078125, %v3674_v31  ;;  %v12687_v4 = vmul.f32 0.0078125, %v3672_v28 }
 0x40a   :  { %11216 = vrsqrt.f32 %v3738_v45 }
 0x40b   :  { %v3739_v59 = vadd.f32 1e-05, %v3731_v58  ;;  %v3737_v3 = vadd.f32 1e-05, %v3729_v54  ;;  %v3717_v50 = vmul.f32 %v12685_v56, %v12685_v56  ;;  %v3716_v37 = vmul.f32 %v12687_v4, %v12687_v4 }
 0x40c   :  { %v3690_v1 = vpop.xlane.xlu1 %3689  ;;  %v3688_v5 = vpop.xlane.xlu0 %3687 }
 0x40d   :  { %v3709_v36 = vmul.f32 0.0078125, %v3690_v1  ;;  %v3708_v42 = vmul.f32 0.0078125, %v3688_v5  ;;  %11218 = vrsqrt.f32 %v3737_v3 }
 0x40e   :  { %11220 = vrsqrt.f32 %v3739_v59 }
 0x40f   :  { %v3725_v29 = vsub.f32 %v3709_v36, %v3717_v50  ;;  %v3724_v13 = vsub.f32 %v3708_v42, %v3716_v37 }
 0x410   :  { %v3678_v12 = vpop.xlane.xlu1 %3677  ;;  %v3676_v57 = vpop.xlane.xlu0 %3675 }
 0x411   :  { %v3733_v40 = vmax.f32 %v3725_v29, 0.0  ;;  %v3732_v55 = vmax.f32 %v3724_v13, 0.0  ;;  %v12693_v32 = vmul.f32 0.0078125, %v3678_v12  ;;  %v12695_v26 = vmul.f32 0.0078125, %v3676_v57  ;;  %v3753_v13 = vld [vmem:[#allocation2 + $0x40] sm:$0xff]  ;;  %v3754_v12 = vld [vmem:[#allocation2 + $0x48] sm:$0xff] }
 0x413   :  { %v3741_v24 = vadd.f32 1e-05, %v3733_v40  ;;  %v3740_v0 = vadd.f32 1e-05, %v3732_v55  ;;  %v3719_v30 = vmul.f32 %v12693_v32, %v12693_v32  ;;  %v3718_v45 = vmul.f32 %v12695_v26, %v12695_v26 }
 0x414   :  { %v3694_v61 = vpop.xlane.xlu1 %3693  ;;  %v3692_v47 = vpop.xlane.xlu0 %3691 }
 0x415   :  { %11222 = vrsqrt.f32 %v3741_v24  ;;  %v3711_v31 = vmul.f32 0.0078125, %v3694_v61  ;;  %v3710_v28 = vmul.f32 0.0078125, %v3692_v47  ;;  %v11217_v58 = vpop.eup %11216 }
 0x416   :  { %11224 = vrsqrt.f32 %v3740_v0  ;;  %v3770_v40 = vmul.f32 %v11217_v58, %v3754_v12  ;;  %v3755_v0 = vld [vmem:[#allocation2 + $0x50] sm:$0xff]  ;;  %v3757_v58 = vld [vmem:[#allocation2 + $0x60] sm:$0xff] }
 0x417   :  { %v3727_v54 = vsub.f32 %v3711_v31, %v3719_v30  ;;  %v3726_v59 = vsub.f32 %v3710_v28, %v3718_v45  ;;  %v11219_v3 = vpop.eup %11218 }
 0x418   :  { %v913_v1 = vpop.permute.xlu1 %912  ;;  %v3680_v5 = vpop.xlane.xlu0 %3679  ;;  %v3769_v57 = vmul.f32 %v11219_v3, %v3753_v13  ;;  %v3756_v3 = vld [vmem:[#allocation2 + $0x58] sm:$0xff] }
 0x419   :  { %v11221_v50 = vpop.eup %11220  ;;  %v3735_v37 = vmax.f32 %v3727_v54, 0.0  ;;  %v3734_v36 = vmax.f32 %v3726_v59, 0.0  ;;  %v2386_v42 = vadd.f32 %v12591_v39, %v913_v1  ;;  %v12702_v29 = vmul.f32 0.0078125, %v3680_v5 }
 0x41a   :  { %10486 = vmatprep.mubr.msk.f32.mxu1 %vm2749_vm2, %v3769_v57  ;;  %v3771_v61 = vmul.f32 %v11221_v50, %v3755_v0 }
 0x41b   :  { %v3743_v55 = vadd.f32 1e-05, %v3735_v37  ;;  %v3742_v24 = vadd.f32 1e-05, %v3734_v36  ;;  %2853 = vst.msk [vmem:[#allocation2 + $0x338] sm:$0xff] %vm2749_vm2, %v2386_v42  ;;  %v3720_v39 = vmul.f32 %v12702_v29, %v12702_v29  ;;  %10487 = vmatmul.mubr.msk.f32.vlgmr.msra.gmra.mrb[34].mxu1 %vm2749_vm2, %v3770_v40 }
 0x41c   :  { %v12706_v30 = vpop.permute.xlu1 %4035  ;;  %v3696_v47 = vpop.xlane.xlu0 %3695  ;;  %10489 = vmatprep.mubr.msk.f32.mxu1 %vm2749_vm2, %v3771_v61  ;;  %v3779_v25 = vmul.f32 %v3771_v61, %v12679_v33  ;;  %v3764_v33 = vld [vmem:[#allocation2 + $0x318] sm:$0xff] }
 0x41d   :  { %11226 = vrsqrt.f32 %v3743_v55  ;;  %v3712_v45 = vmul.f32 0.0078125, %v3696_v47  ;;  %v3759_v55 = vld [vmem:[#allocation2 + $0x70] sm:$0xff] }
 0x41e   :  { %11228 = vrsqrt.f32 %v3742_v24 }
 0x41f   :  { %v11223_v31 = vpop.eup %11222  ;;  %v3728_v28 = vsub.f32 %v3712_v45, %v3720_v39  ;;  %v3758_v39 = vld [vmem:[#allocation2 + $0x68] sm:$0xff] }
 0x420   :  { %v11225_v54 = vpop.eup %11224  ;;  %v12712_v59 = vpop.permute.xlu1 %4045  ;;  %v3773_v1 = vmul.f32 %v11223_v31, %v3757_v58 }
 0x421   :  { %v3736_v5 = vmax.f32 %v3728_v28, 0.0  ;;  %v3772_v50 = vmul.f32 %v11225_v54, %v3756_v3  ;;  %v3777_v54 = vmul.f32 %v3769_v57, %v12675_v53 }
 0x423   :  { %v3744_v37 = vadd.f32 1e-05, %v3736_v5  ;;  %10490 = vmatmul.mubr.msk.f32.gmra.mrb[36].mxu1 %vm2749_vm2, %v3772_v50  ;;  %v3760_v5 = vld [vmem:[#allocation2 + $0x78] sm:$0xff] }
 0x424   :  { %10492 = vmatprep.mubr.msk.f32.mxu1 %vm2749_vm2, %v3773_v1  ;;  %v12716_v36 = vpop.permute.xlu1 %4055  ;;  %v908_v42 = vpop.permute.xlu0 %907 }
 0x425   :  { %11230 = vrsqrt.f32 %v3744_v37  ;;  %v2381_v13 = vadd.f32 %v12605_v41, %v908_v42 }
 0x427   :  { %v11227_v12 = vpop.eup %11226  ;;  %2852 = vst.msk [vmem:[#allocation2 + $0x330] sm:$0xff] %vm2749_vm2, %v2381_v13 }
 0x428   :  { %v11229_v24 = vpop.eup %11228  ;;  %v12720_v0 = vpop.permute.xlu1 %4065  ;;  %v3775_v45 = vmul.f32 %v11227_v12, %v3759_v55  ;;  %v3761_v12 = vld [vmem:[#allocation2 + $0x300] sm:$0xff]  ;;  %v3778_v55 = vmul.f32 %v3770_v40, %v12673_v18  ;;  %v3781_v40 = vmul.f32 %v3773_v1, %v12685_v56  ;;  %v3766_v1 = vld [vmem:[#allocation2 + $0x328] sm:$0xff] }
 0x429   :  { %v12722_v47 = vpop.permute.xlu0 %4030  ;;  %v3774_v31 = vmul.f32 %v11229_v24, %v3758_v39  ;;  %v3785_v39 = vsub.f32 %v3761_v12, %v3777_v54 }
 0x42b   :  { %10493 = vmatmul.mubr.msk.f32.gmra.mrb[38].mxu1 %vm2749_vm2, %v3774_v31  ;;  %v3782_v12 = vmul.f32 %v3774_v31, %v12695_v26 }
 0x42c   :  { %10495 = vmatprep.mubr.msk.f32.mxu1 %vm2749_vm2, %v3775_v45  ;;  %v478_v28 = vpop.permute.xlu1 %477 }
 0x42d   :  { %v12726_v58 = vpop.permute.xlu0 %4040  ;;  %v1951_v41 = vadd.f32 %v12078_v14, %v478_v28  ;;  %v3762_v14 = vld [vmem:[#allocation2 + $0x308] sm:$0xff]  ;;  %v3790_v26 = vsub.f32 %v3766_v1, %v3782_v12 }
 0x42e   :  { %v3786_v28 = vsub.f32 %v3762_v14, %v3778_v55  ;;  %v3767_v56 = vld [vmem:[#allocation2 + $0x330] sm:$0xff]  ;;  %v3768_v14 = vld [vmem:[#allocation2 + $0x338] sm:$0xff] }
 0x42f   :  { %v11231_v3 = vpop.eup %11230  ;;  %2766 = vst.msk [vmem:[#allocation2 + $0x80] sm:$0xff] %vm2749_vm2, %v1951_v41  ;;  %v3763_v41 = vld [vmem:[#allocation2 + $0x310] sm:$0xff] }
 0x430   :  { %v488_v37 = vpop.permute.xlu1 %487  ;;  %v3776_v13 = vmul.f32 %v11231_v3, %v3760_v5  ;;  %v3780_v3 = vmul.f32 %v3772_v50, %v12687_v4  ;;  %v3783_v50 = vmul.f32 %v3775_v45, %v12693_v32 }
 0x431   :  { %v12731_v42 = vpop.permute.xlu0 %4050  ;;  %v1961_v24 = vadd.f32 %v12086_v17, %v488_v37  ;;  %v3787_v17 = vsub.f32 %v3763_v41, %v3779_v25  ;;  %v3765_v37 = vld [vmem:[#allocation2 + $0x320] sm:$0xff] }
 0x432   :  { %10496 = vmatmul.mubr.msk.f32.gmra.mrb[40].mxu1 %vm2749_vm2, %v3776_v13  ;;  %v3788_v5 = vsub.f32 %v3764_v33, %v3780_v3  ;;  %v3789_v25 = vsub.f32 %v3765_v37, %v3781_v40 }
 0x433   :  { %2768 = vst.msk [vmem:[#allocation2 + $0x90] sm:$0xff] %vm2749_vm2, %v1961_v24  ;;  %10498 = vmatprep.mubr.msk.f32.mxu1 %vm2749_vm2, %v3785_v39  ;;  %v3791_v39 = vsub.f32 %v3767_v56, %v3783_v50 }
 0x434   :  { %v493_v53 = vpop.permute.xlu1 %492 }
 0x435   :  { %v12739_v57 = vpop.permute.xlu0 %4060  ;;  %v1966_v18 = vadd.f32 %v12084_v16, %v493_v53 }
 0x436   :  { %10499 = vmatmul.mubr.msk.f32.gmra.mrb[42].mxu1 %vm2749_vm2, %v3786_v28 }
 0x437   :  { %2769 = vst.msk [vmem:[#allocation2 + $0x98] sm:$0xff] %vm2749_vm2, %v1966_v18  ;;  %10501 = vmatprep.mubr.msk.f32.mxu1 %vm2749_vm2, %v3787_v17 }
 0x438   :  { %v503_v61 = vpop.permute.xlu1 %502 }
 0x439   :  { %v483_v54 = vpop.permute.xlu0 %482  ;;  %v1976_v4 = vadd.f32 %v12090_v19, %v503_v61  ;;  %v3784_v19 = vmul.f32 %v3776_v13, %v12702_v29 }
 0x43a   :  { %v1956_v16 = vadd.f32 %v12076_v8, %v483_v54  ;;  %10502 = vmatmul.mubr.msk.f32.gmra.mrb[44].mxu1 %vm2749_vm2, %v3788_v5 }
 0x43b   :  { %2771 = vst.msk [vmem:[#allocation2 + $0xa8] sm:$0xff] %vm2749_vm2, %v1976_v4  ;;  %10504 = vmatprep.mubr.msk.f32.mxu1 %vm2749_vm2, %v3789_v25  ;;  %v3792_v53 = vsub.f32 %v3768_v14, %v3784_v19 }
 0x43c   :  { %2767 = vst.msk [vmem:[#allocation2 + $0x88] sm:$0xff] %vm2749_vm2, %v1956_v16  ;;  %v513_v55 = vpop.permute.xlu1 %512 }
 0x43d   :  { %v498_v24 = vpop.permute.xlu0 %497  ;;  %v1986_v8 = vadd.f32 %v12094_v21, %v513_v55 }
 0x43e   :  { %v1971_v31 = vadd.f32 %v12092_v20, %v498_v24  ;;  %10505 = vmatmul.mubr.msk.f32.gmra.mrb[46].mxu1 %vm2749_vm2, %v3790_v26 }
 0x43f   :  { %2773 = vst.msk [vmem:[#allocation2 + $0xb8] sm:$0xff] %vm2749_vm2, %v1986_v8  ;;  %10507 = vmatprep.mubr.msk.f32.mxu1 %vm2749_vm2, %v3791_v39 }
 0x440   :  { %2770 = vst.msk [vmem:[#allocation2 + $0xa0] sm:$0xff] %vm2749_vm2, %v1971_v31  ;;  %v923_v32 = vpop.permute.xlu1 %922 }
 0x441   :  { %v508_v45 = vpop.permute.xlu0 %507  ;;  %v2396_v28 = vadd.f32 %v12649_v44, %v923_v32 }
 0x442   :  { %v1981_v29 = vadd.f32 %v12096_v22, %v508_v45  ;;  %10508 = vmatmul.mubr.msk.f32.gmra.mrb[48].mxu1 %vm2749_vm2, %v3792_v53 }
 0x443   :  { %2855 = vst.msk [vmem:[#allocation2 + $0x348] sm:$0xff] %vm2749_vm2, %v2396_v28 }
 0x444   :  { %2772 = vst.msk [vmem:[#allocation2 + $0xb0] sm:$0xff] %vm2749_vm2, %v1981_v29  ;;  %v933_v20 = vpop.permute.xlu1 %932 }
 0x445   :  { %v918_v21 = vpop.permute.xlu0 %917  ;;  %v2406_v13 = vadd.f32 %v12659_v35, %v933_v20  ;;  %v151_v35 = vld [vmem:[%s15553_s5 + $0x370] sm:$0xff] }
 0x446   :  { %v2391_v41 = vadd.f32 %v12654_v51, %v918_v21  ;;  %v9235_v51 = vld [vmem:[%s15555_s7 + $0x40] sm:$0xff]  ;;  %10317 = vmatprep.mubr.msk.f32.mxu0 %vm1275_vm0, %v151_v35 }
 0x447   :  { %2857 = vst.msk [vmem:[#allocation2 + $0x358] sm:$0xff] %vm2749_vm2, %v2406_v13  ;;  %10526 = vmatprep.mubr.msk.f32.mxu1 %vm3527_vm4, %v9235_v51  ;;  %v12806_v35 = vld [vmem:[%s15550_s2] sm:$0x3] }
 0x448   :  { %2854 = vst.msk [vmem:[#allocation2 + $0x340] sm:$0xff] %vm2749_vm2, %v2391_v41  ;;  %v943_v3 = vpop.permute.xlu1 %942 }
 0x449   :  { %v928_v44 = vpop.permute.xlu0 %927  ;;  %v2416_v22 = vadd.f32 %v12666_v43, %v943_v3 }
 0x44a   :  { %v2401_v18 = vadd.f32 %v12664_v9, %v928_v44  ;;  %v152_v9 = vld [vmem:[%s15553_s5 + $0x378] sm:$0xff] }
 0x44b   :  { %2859 = vst.msk [vmem:[#allocation2 + $0x368] sm:$0xff] %vm2749_vm2, %v2416_v22  ;;  %10318 = vmatmul.mubr.msk.f32.gmra.mrb[110].mxu0 %vm1275_vm0, %v152_v9  ;;  %v9238_v9 = vld [vmem:[%s15555_s7 + $0x58] sm:$0xff] }
 0x44c   :  { %2856 = vst.msk [vmem:[#allocation2 + $0x350] sm:$0xff] %vm2749_vm2, %v2401_v18 }
 0x44d   :  { %v938_v17 = vpop.permute.xlu0 %937 }
 0x44e   :  { %v2411_v40 = vadd.f32 %v12671_v60, %v938_v17 }
 0x450   :  { %2858 = vst.msk [vmem:[#allocation2 + $0x360] sm:$0xff] %vm2749_vm2, %v2411_v40 }
 0x4ee   :  { %v10488_v43 = vpop.f32.mrb[34].mxu1 }
 0x4ef   :  { %v3907_v60 = vpop.f32.mrb[35].mxu1  ;;  %v3987_v4 = vmul.f32 %v10488_v43, %v12538_v49  ;;  %v9239_v43 = vld [vmem:[%s15555_s7 + $0x60] sm:$0xff] }
 0x4f0   :  { %v3986_v16 = vmul.f32 %v3907_v60, %v12541_v52  ;;  %v9240_v60 = vld [vmem:[%s15555_s7 + $0x68] sm:$0xff] }
 0x4f6   :  { %v10491_v33 = vpop.f32.mrb[36].mxu1 }
 0x4f7   :  { %v3917_v61 = vpop.f32.mrb[37].mxu1  ;;  %v3989_v55 = vmul.f32 %v10491_v33, %v12556_v27  ;;  %v9241_v33 = vld [vmem:[%s15555_s7 + $0x70] sm:$0xff] }
 0x4f8   :  { %v3988_v26 = vmul.f32 %v3917_v61, %v12546_v23  ;;  %v9242_v61 = vld [vmem:[%s15555_s7 + $0x78] sm:$0xff] }
 0x4fe   :  { %v10494_v54 = vpop.f32.mrb[38].mxu1 }
 0x4ff   :  { %v3927_v5 = vpop.f32.mrb[39].mxu1  ;;  %v3991_v45 = vmul.f32 %v10494_v54, %v12568_v11  ;;  %v153_v54 = vld [vmem:[%s15553_s5 + $0x380] sm:$0xff] }
 0x500   :  { %v3990_v52 = vmul.f32 %v3927_v5, %v12559_v10  ;;  %v154_v5 = vld [vmem:[%s15553_s5 + $0x388] sm:$0xff]  ;;  %10320 = vmatprep.mubr.msk.f32.mxu0 %vm1275_vm0, %v153_v54 }
 0x501   :  { %10321 = vmatmul.mubr.msk.f32.gmra.mrb[112].mxu0 %vm1275_vm0, %v154_v5  ;;  %v336_v54 = vld [vmem:[%s15554_s6 + $0x3a8] sm:$0xff]  ;;  %v333_v5 = vld [vmem:[%s15554_s6 + $0x390] sm:$0xff] }
 0x505   :  { %v10497_v37 = vpop.f32.mrb[40].mxu1 }
 0x506   :  { %v3937_v12 = vpop.f32.mrb[41].mxu1  ;;  %v3993_v23 = vmul.f32 %v10497_v37, %v12580_v2  ;;  %v9236_v2 = vld [vmem:[%s15555_s7 + $0x48] sm:$0xff]  ;;  %v155_v37 = vld [vmem:[%s15553_s5 + $0x390] sm:$0xff] }
 0x507   :  { %v3992_v41 = vmul.f32 %v3937_v12, %v12571_v48  ;;  %v9237_v48 = vld [vmem:[%s15555_s7 + $0x50] sm:$0xff]  ;;  %v156_v12 = vld [vmem:[%s15553_s5 + $0x398] sm:$0xff]  ;;  %10323 = vmatprep.mubr.msk.f32.mxu0 %vm1275_vm0, %v155_v37 }
 0x508   :  { %10324 = vmatmul.mubr.msk.f32.gmra.mrb[114].mxu0 %vm1275_vm0, %v156_v12 }
 0x509   :  { %v10500_v25 = vpop.f32.mrb[42].mxu1 }
 0x50a   :  { %v3995_v56 = vadd.f32 %v10500_v25, %v3987_v4  ;;  %v3947_v1 = vpop.f32.mrb[43].mxu1  ;;  %v157_v4 = vld [vmem:[%s15553_s5 + $0x3a0] sm:$0xff] }
 0x50b   :  { %v3994_v50 = vadd.f32 %v3986_v16, %v3947_v1  ;;  %v158_v16 = vld [vmem:[%s15553_s5 + $0x3a8] sm:$0xff]  ;;  %10326 = vmatprep.mubr.msk.f32.mxu0 %vm1275_vm0, %v157_v4  ;;  %v335_v4 = vld [vmem:[%s15554_s6 + $0x3a0] sm:$0xff] }
 0x50c   :  { %v4003_v24 = vmax.f32 %v3995_v56, 0.0  ;;  %10327 = vmatmul.mubr.msk.f32.gmra.mrb[116].mxu0 %vm1275_vm0, %v158_v16 }
 0x50d   :  { %v4002_v19 = vmax.f32 %v3994_v50, 0.0  ;;  %v10503_v8 = vpop.f32.mrb[44].mxu1 }
 0x50e   :  { %v3997_v31 = vadd.f32 %v10503_v8, %v3989_v55  ;;  %v3957_v39 = vpop.f32.mrb[45].mxu1 }
 0x50f   :  { %v11035_v14 = vpack.c.bf16 %v4003_v24, %v4002_v19  ;;  %v3996_v32 = vadd.f32 %v3988_v26, %v3957_v39 }
 0x510   :  { %v4005_v49 = vmax.f32 %v3997_v31, 0.0 }
 0x511   :  { %v4004_v53 = vmax.f32 %v3996_v32, 0.0  ;;  %v10506_v28 = vpop.f32.mrb[46].mxu1  ;;  %11036 = vmatprep.subr.bf16.mxu1 %v11035_v14 }
 0x512   :  { %v3999_v29 = vadd.f32 %v10506_v28, %v3991_v45  ;;  %v3967_v20 = vpop.f32.mrb[47].mxu1  ;;  %11038 = vmatpush3.bf16.msra.mxu1 %v11035_v14 }
 0x513   :  { %v11039_v27 = vpack.c.bf16 %v4005_v49, %v4004_v53  ;;  %v3998_v21 = vadd.f32 %v3990_v52, %v3967_v20 }
 0x514   :  { %v4007_v13 = vmax.f32 %v3999_v29, 0.0  ;;  %v9285_v29 = vld [vmem:[%s15556_s8 + $0x88] sm:$0xff] }
 0x515   :  { %v4006_v3 = vmax.f32 %v3998_v21, 0.0  ;;  %v10509_v44 = vpop.f32.mrb[48].mxu1  ;;  %11040 = vmatprep.subr.bf16.mxu1 %v11039_v27  ;;  %v329_v21 = vld [vmem:[%s15554_s6 + $0x370] sm:$0xff] }
 0x516   :  { %v4001_v11 = vadd.f32 %v10509_v44, %v3993_v23  ;;  %v3977_v22 = vpop.f32.mrb[49].mxu1  ;;  %11042 = vmatpush3.bf16.msra.mxu1 %v11039_v27  ;;  %v9289_v27 = vld [vmem:[%s15556_s8 + $0xa8] sm:$0xff]  ;;  %v9291_v23 = vld [vmem:[%s15556_s8 + $0xb8] sm:$0xff]  ;;  %v9286_v44 = vld [vmem:[%s15556_s8 + $0x90] sm:$0xff] }
 0x517   :  { %v11043_v10 = vpack.c.bf16 %v4007_v13, %v4006_v3  ;;  %v4000_v18 = vadd.f32 %v3992_v41, %v3977_v22  ;;  %v9284_v41 = vld [vmem:[%s15556_s8 + $0x80] sm:$0xff] }
 0x518   :  { %v4009_v17 = vmax.f32 %v4001_v11, 0.0  ;;  %v243_v3 = vld [vmem:[%s15554_s6 + $0xc0] sm:$0xff]  ;;  %v245_v11 = vld [vmem:[%s15554_s6 + $0xd0] sm:$0xff] }
 0x519   :  { %v4008_v40 = vmax.f32 %v4000_v18, 0.0  ;;  %11044 = vmatprep.subr.bf16.mxu1 %v11043_v10  ;;  %v9288_v22 = vld [vmem:[%s15556_s8 + $0xa0] sm:$0xff]  ;;  %v9290_v18 = vld [vmem:[%s15556_s8 + $0xb0] sm:$0xff] }
 0x51a   :  { %11046 = vmatpush3.bf16.msra.mxu1 %v11043_v10  ;;  %v246_v10 = vld [vmem:[%s15554_s6 + $0xd8] sm:$0xff] }
 0x51b   :  { %v11047_v51 = vpack.c.bf16 %v4009_v17, %v4008_v40  ;;  %v248_v17 = vld [vmem:[%s15554_s6 + $0xe8] sm:$0xff] }
 0x51c   :  { %v244_v40 = vld [vmem:[%s15554_s6 + $0xc8] sm:$0xff] }
 0x51d   :  { %11048 = vmatprep.subr.bf16.mxu1 %v11047_v51 }
 0x51e   :  { %11050 = vmatpush3.bf16.msra.mxu1 %v11047_v51  ;;  %v12920_v20 = vpop.f32.mrb[110].mxu0  ;;  %v250_v51 = vld [vmem:[%s15554_s6 + $0xf8] sm:$0xff] }
 0x51f   :  { %10538 = vmatprep.subr.msk.mxu1 %vm3298_vm3, %v12806_v35  ;;  %v12934_v13 = vpop.f32.mrb[111].mxu0 }
 0x521   :  { %10527 = vmatmul.mubr.msk.f32.vlgmr.msra.gmra.mrb[50].mxu1 %vm3527_vm4, %v9236_v2  ;;  %v247_v2 = vld [vmem:[%s15554_s6 + $0xe0] sm:$0xff] }
 0x522   :  { %10529 = vmatprep.mubr.msk.f32.mxu1 %vm3527_vm4, %v9237_v48  ;;  %10539 = vmatpush3.msk.msra.mxu1 %vm3298_vm3, %v12806_v35  ;;  %v332_v48 = vld [vmem:[%s15554_s6 + $0x388] sm:$0xff] }
 0x525   :  { %10530 = vmatmul.mubr.msk.f32.gmra.mrb[52].mxu1 %vm3527_vm4, %v9238_v9  ;;  %v249_v9 = vld [vmem:[%s15554_s6 + $0xf0] sm:$0xff] }
 0x526   :  { %10532 = vmatprep.mubr.msk.f32.mxu1 %vm3527_vm4, %v9239_v43  ;;  %v334_v43 = vld [vmem:[%s15554_s6 + $0x398] sm:$0xff] }
 0x529   :  { %10533 = vmatmul.mubr.msk.f32.gmra.mrb[54].mxu1 %vm3527_vm4, %v9240_v60  ;;  %v331_v60 = vld [vmem:[%s15554_s6 + $0x380] sm:$0xff] }
 0x52a   :  { %10535 = vmatprep.mubr.msk.f32.mxu1 %vm3527_vm4, %v9241_v33 }
 0x52d   :  { %10536 = vmatmul.mubr.msk.f32.gmra.mrb[56].mxu1 %vm3527_vm4, %v9242_v61 }
 0x5d4   :  { %v12981_v33 = vpop.f32.mrb[112].mxu0 }
 0x5d5   :  { %v12983_v61 = vpop.f32.mrb[113].mxu0 }
 0x5db   :  { %v12991_v37 = vpop.f32.mrb[114].mxu0 }
 0x5dc   :  { %v12993_v12 = vpop.f32.mrb[115].mxu0 }
 0x5df   :  { %v12998_v16 = vpop.f32.mrb[116].mxu0 }
 0x5f4   :  { %v10528_v25 = vpop.f32.mrb[50].mxu1 }
 0x5f5   :  { %v4164_v56 = vadd.f32 %v10528_v25, %v12706_v30  ;;  %v4158_v1 = vpop.f32.mrb[51].mxu1  ;;  %v13000_v25 = vpop.f32.mrb[117].mxu0 }
 0x5f6   :  { %v4159_v50 = vadd.f32 %v4158_v1, %v12722_v47 }
 0x5f7   :  { %v12861_v55 = vadd.f32 %v4164_v56, %v12014_v34 }
 0x5f8   :  { %v12864_v24 = vadd.f32 %v4159_v50, %v12016_v38  ;;  %v10531_v26 = vpop.f32.mrb[52].mxu1 }
 0x5f9   :  { %4215 = vadd.xlane.f32.xlu1 %v12861_v55  ;;  %v4168_v19 = vpop.f32.mrb[53].mxu1  ;;  %v4206_v47 = vmul.f32 %v12861_v55, %v12861_v55  ;;  %v4174_v38 = vadd.f32 %v10531_v26, %v12712_v59 }
 0x5fa   :  { %v4169_v8 = vadd.f32 %v4168_v19, %v12726_v58  ;;  %4213 = vadd.xlane.f32.xlu0 %v12864_v24  ;;  %v4205_v58 = vmul.f32 %v12864_v24, %v12864_v24 }
 0x5fb   :  { %v12882_v45 = vadd.f32 %v4174_v38, %v12041_v62 }
 0x5fc   :  { %v12870_v31 = vadd.f32 %v4169_v8, %v12023_v46  ;;  %v10534_v30 = vpop.f32.mrb[54].mxu1 }
 0x5fd   :  { %v4178_v34 = vpop.f32.mrb[55].mxu1  ;;  %v4184_v59 = vadd.f32 %v10534_v30, %v12716_v36  ;;  %v4208_v52 = vmul.f32 %v12882_v45, %v12882_v45 }
 0x5fe   :  { %4231 = vadd.xlane.f32.xlu0 %v4206_v47  ;;  %4217 = vadd.xlane.f32.xlu1 %v12870_v31  ;;  %v4179_v39 = vadd.f32 %v4178_v34, %v12731_v42  ;;  %v4207_v46 = vmul.f32 %v12870_v31, %v12870_v31 }
 0x5ff   :  { %v12896_v62 = vadd.f32 %v4184_v59, %v12061_v6 }
 0x600   :  { %v10537_v14 = vpop.f32.mrb[56].mxu1  ;;  %v12885_v49 = vadd.f32 %v4179_v39, %v12044_v63 }
 0x601   :  { %v4188_v32 = vpop.f32.mrb[57].mxu1  ;;  %v4194_v36 = vadd.f32 %v10537_v14, %v12720_v0  ;;  %v330_v0 = vld [vmem:[%s15554_s6 + $0x378] sm:$0xff] }
 0x602   :  { %4229 = vadd.xlane.f32.xlu0 %v4205_v58  ;;  %4233 = vadd.xlane.f32.xlu1 %v4207_v46  ;;  %v4189_v42 = vadd.f32 %v4188_v32, %v12739_v57  ;;  %v4209_v53 = vmul.f32 %v12885_v49, %v12885_v49  ;;  %v4210_v57 = vmul.f32 %v12896_v62, %v12896_v62 }
 0x603   :  { %v12909_v6 = vadd.f32 %v4194_v36, %v12081_v15  ;;  %v9287_v15 = vld [vmem:[%s15556_s8 + $0x98] sm:$0xff] }
 0x604   :  { %v12899_v63 = vadd.f32 %v4189_v42, %v12064_v7 }
 0x605   :  { %v4212_v7 = vmul.f32 %v12909_v6, %v12909_v6 }
 0x606   :  { %4219 = vadd.xlane.f32.xlu0 %v12882_v45  ;;  %4221 = vadd.xlane.f32.xlu1 %v12885_v49  ;;  %v4211_v28 = vmul.f32 %v12899_v63, %v12899_v63 }
 0x60a   :  { %4235 = vadd.xlane.f32.xlu0 %v4208_v52  ;;  %4237 = vadd.xlane.f32.xlu1 %v4209_v53 }
 0x60e   :  { %4223 = vadd.xlane.f32.xlu0 %v12896_v62  ;;  %4225 = vadd.xlane.f32.xlu1 %v12899_v63 }
 0x612   :  { %4239 = vadd.xlane.f32.xlu0 %v4210_v57  ;;  %4241 = vadd.xlane.f32.xlu1 %v4211_v28 }
 0x616   :  { %4227 = vadd.xlane.f32.xlu0 %v12909_v6 }
 0x61a   :  { %4243 = vadd.xlane.f32.xlu0 %v4212_v7 }
 0x623   :  { %952 = vperm.xlu1 %11199, %v330_v0  }
 0x627   :  { %4583 = vperm.xlu1 %11199, %v9285_v29  }
 0x62b   :  { %4593 = vperm.xlu1 %11199, %v9287_v15  }
 0x62f   :  { %4603 = vperm.xlu1 %11199, %v9289_v27  }
 0x630   :  { %947 = vperm.xlu0 %11198, %v329_v21  }
 0x633   :  { %4613 = vperm.xlu1 %11199, %v9291_v23  }
 0x634   :  { %4578 = vperm.xlu0 %11198, %v9284_v41  }
 0x637   :  { %517 = vperm.xlu1 %11199, %v243_v3  }
 0x638   :  { %4588 = vperm.xlu0 %11198, %v9286_v44  }
 0x63b   :  { %527 = vperm.xlu1 %11199, %v245_v11  }
 0x63c   :  { %4598 = vperm.xlu0 %11198, %v9288_v22  }
 0x63f   :  { %532 = vperm.xlu1 %11199, %v246_v10  }
 0x640   :  { %4608 = vperm.xlu0 %11198, %v9290_v18  }
 0x643   :  { %542 = vperm.xlu1 %11199, %v248_v17  }
 0x644   :  { %522 = vperm.xlu0 %11198, %v244_v40  }
 0x647   :  { %552 = vperm.xlu1 %11199, %v250_v51  }
 0x648   :  { %537 = vperm.xlu0 %11198, %v247_v2  }
 0x64b   :  { %962 = vperm.xlu1 %11199, %v332_v48  }
 0x64c   :  { %547 = vperm.xlu0 %11198, %v249_v9  }
 0x64f   :  { %972 = vperm.xlu1 %11199, %v334_v43  }
 0x650   :  { %957 = vperm.xlu0 %11198, %v331_v60  }
 0x653   :  { %982 = vperm.xlu1 %11199, %v336_v54  }
 0x654   :  { %967 = vperm.xlu0 %11198, %v333_v5  }
 0x658   :  { %977 = vperm.xlu0 %11198, %v335_v4  }
 0x686   :  { %v4216_v56 = vpop.xlane.xlu1 %4215 }
 0x687   :  { %v4214_v1 = vpop.xlane.xlu0 %4213  ;;  %v13002_v50 = vmul.f32 0.0078125, %v4216_v56 }
 0x688   :  { %v13004_v26 = vmul.f32 0.0078125, %v4214_v1 }
 0x689   :  { %v4262_v30 = vmul.f32 %v13002_v50, %v13002_v50 }
 0x68a   :  { %v4261_v39 = vmul.f32 %v13004_v26, %v13004_v26 }
 0x68b   :  { %v4218_v19 = vpop.xlane.xlu1 %4217  ;;  %v4232_v8 = vpop.xlane.xlu0 %4231 }
 0x68c   :  { %v13008_v47 = vmul.f32 0.0078125, %v4218_v19  ;;  %v4254_v34 = vmul.f32 0.0078125, %v4232_v8 }
 0x68e   :  { %v4270_v38 = vsub.f32 %v4254_v34, %v4262_v30  ;;  %v4263_v46 = vmul.f32 %v13008_v47, %v13008_v47 }
 0x68f   :  { %v4234_v14 = vpop.xlane.xlu1 %4233  ;;  %v4230_v58 = vpop.xlane.xlu0 %4229 }
 0x690   :  { %v4278_v32 = vmax.f32 %v4270_v38, 0.0  ;;  %v4255_v59 = vmul.f32 0.0078125, %v4234_v14  ;;  %v4253_v42 = vmul.f32 0.0078125, %v4230_v58 }
 0x692   :  { %v4271_v52 = vsub.f32 %v4255_v59, %v4263_v46  ;;  %v4269_v53 = vsub.f32 %v4253_v42, %v4261_v39  ;;  %v4286_v36 = vadd.f32 1e-05, %v4278_v32 }
 0x693   :  { %v4222_v57 = vpop.xlane.xlu1 %4221  ;;  %v4220_v28 = vpop.xlane.xlu0 %4219 }
 0x694   :  { %v4279_v7 = vmax.f32 %v4271_v52, 0.0  ;;  %v4277_v0 = vmax.f32 %v4269_v53, 0.0  ;;  %v13014_v29 = vmul.f32 0.0078125, %v4222_v57  ;;  %v13016_v15 = vmul.f32 0.0078125, %v4220_v28  ;;  %v4301_v52 = vld [vmem:[#allocation2 + $0x80] sm:$0xff]  ;;  %v4302_v53 = vld [vmem:[#allocation2 + $0x88] sm:$0xff] }
 0x695   :  { %11232 = vrsqrt.f32 %v4286_v36 }
 0x696   :  { %v4287_v27 = vadd.f32 1e-05, %v4279_v7  ;;  %v4285_v21 = vadd.f32 1e-05, %v4277_v0  ;;  %v4265_v3 = vmul.f32 %v13014_v29, %v13014_v29  ;;  %v4264_v44 = vmul.f32 %v13016_v15, %v13016_v15  ;;  %v4303_v0 = vld [vmem:[#allocation2 + $0x90] sm:$0xff] }
 0x697   :  { %v4238_v23 = vpop.xlane.xlu1 %4237  ;;  %v4236_v41 = vpop.xlane.xlu0 %4235 }
 0x698   :  { %v4257_v11 = vmul.f32 0.0078125, %v4238_v23  ;;  %v4256_v22 = vmul.f32 0.0078125, %v4236_v41  ;;  %11234 = vrsqrt.f32 %v4285_v21 }
 0x699   :  { %11236 = vrsqrt.f32 %v4287_v27 }
 0x69a   :  { %v4273_v10 = vsub.f32 %v4257_v11, %v4265_v3  ;;  %v4272_v18 = vsub.f32 %v4256_v22, %v4264_v44  ;;  %v4305_v11 = vld [vmem:[#allocation2 + $0xa0] sm:$0xff] }
 0x69b   :  { %v4226_v17 = vpop.xlane.xlu1 %4225  ;;  %v4224_v40 = vpop.xlane.xlu0 %4223 }
 0x69c   :  { %v4281_v51 = vmax.f32 %v4273_v10, 0.0  ;;  %v4280_v2 = vmax.f32 %v4272_v18, 0.0  ;;  %v13022_v48 = vmul.f32 0.0078125, %v4226_v17  ;;  %v13024_v9 = vmul.f32 0.0078125, %v4224_v40  ;;  %v4304_v18 = vld [vmem:[#allocation2 + $0x98] sm:$0xff] }
 0x69e   :  { %v4289_v43 = vadd.f32 1e-05, %v4281_v51  ;;  %v4288_v60 = vadd.f32 1e-05, %v4280_v2  ;;  %v4267_v54 = vmul.f32 %v13022_v48, %v13022_v48  ;;  %v4266_v56 = vmul.f32 %v13024_v9, %v13024_v9 }
 0x69f   :  { %v4242_v5 = vpop.xlane.xlu1 %4241  ;;  %v4240_v4 = vpop.xlane.xlu0 %4239 }
 0x6a0   :  { %11238 = vrsqrt.f32 %v4289_v43  ;;  %v4259_v1 = vmul.f32 0.0078125, %v4242_v5  ;;  %v4258_v19 = vmul.f32 0.0078125, %v4240_v4  ;;  %v11233_v8 = vpop.eup %11232  ;;  %v4307_v4 = vld [vmem:[#allocation2 + $0xb0] sm:$0xff] }
 0x6a1   :  { %11240 = vrsqrt.f32 %v4288_v60  ;;  %v4318_v57 = vmul.f32 %v11233_v8, %v4302_v53  ;;  %v4306_v8 = vld [vmem:[#allocation2 + $0xa8] sm:$0xff] }
 0x6a2   :  { %v4275_v30 = vsub.f32 %v4259_v1, %v4267_v54  ;;  %v4274_v34 = vsub.f32 %v4258_v19, %v4266_v56  ;;  %v11235_v38 = vpop.eup %11234 }
 0x6a3   :  { %v953_v39 = vpop.permute.xlu1 %952  ;;  %v4228_v14 = vpop.xlane.xlu0 %4227  ;;  %v4317_v36 = vmul.f32 %v11235_v38, %v4301_v52 }
 0x6a4   :  { %v11237_v58 = vpop.eup %11236  ;;  %v4283_v46 = vmax.f32 %v4275_v30, 0.0  ;;  %v4282_v32 = vmax.f32 %v4274_v34, 0.0  ;;  %v2426_v59 = vadd.f32 %v12920_v20, %v953_v39  ;;  %v13031_v42 = vmul.f32 0.0078125, %v4228_v14 }
 0x6a5   :  { %10540 = vmatprep.mubr.msk.f32.mxu1 %vm2749_vm2, %v4317_v36  ;;  %v4319_v21 = vmul.f32 %v11237_v58, %v4303_v0  ;;  %v4325_v58 = vmul.f32 %v4317_v36, %v13004_v26  ;;  %v15627_v0 = vld [vmem:[#allocation12_spill] sm:$0xff] }
 0x6a6   :  { %v4291_v28 = vadd.f32 1e-05, %v4283_v46  ;;  %v4290_v7 = vadd.f32 1e-05, %v4282_v32  ;;  %2861 = vst.msk [vmem:[#allocation2 + $0x378] sm:$0xff] %vm2749_vm2, %v2426_v59  ;;  %v4268_v20 = vmul.f32 %v13031_v42, %v13031_v42  ;;  %10541 = vmatmul.mubr.msk.f32.vlgmr.msra.gmra.mrb[58].mxu1 %vm2749_vm2, %v4318_v57  ;;  %v4308_v32 = vld [vmem:[#allocation2 + $0xb8] sm:$0xff] }
 0x6a7   :  { %v13035_v27 = vpop.permute.xlu1 %4583  ;;  %v4244_v23 = vpop.xlane.xlu0 %4243  ;;  %10543 = vmatprep.mubr.msk.f32.mxu1 %vm2749_vm2, %v4319_v21  ;;  %v4310_v26 = vld [vmem:[#allocation2 + $0x348] sm:$0xff] }
 0x6a8   :  { %11242 = vrsqrt.f32 %v4291_v28  ;;  %v4260_v41 = vmul.f32 0.0078125, %v4244_v23  ;;  %v4309_v28 = vld [vmem:[#allocation2 + $0x340] sm:$0xff] }
 0x6a9   :  { %11244 = vrsqrt.f32 %v4290_v7  ;;  %v4326_v7 = vmul.f32 %v4318_v57, %v13002_v50  ;;  %v15628_v50 = vld [vmem:[#allocation11_spill] sm:$0xff] }
 0x6aa   :  { %v11239_v3 = vpop.eup %11238  ;;  %v4276_v44 = vsub.f32 %v4260_v41, %v4268_v20  ;;  %v4333_v20 = vsub.f32 %v4309_v28, %v4325_v58  ;;  %v4327_v41 = vmul.f32 %v4319_v21, %v13008_v47  ;;  %v4312_v47 = vld [vmem:[#allocation2 + $0x358] sm:$0xff]  ;;  %v15631_v58 = vld [vmem:[#allocation15_spill] sm:$0xff] }
 0x6ab   :  { %v11241_v22 = vpop.eup %11240  ;;  %v13041_v10 = vpop.permute.xlu1 %4593  ;;  %v4321_v17 = vmul.f32 %v11239_v3, %v4305_v11  ;;  %v4311_v11 = vld [vmem:[#allocation2 + $0x350] sm:$0xff] }
 0x6ac   :  { %v4284_v40 = vmax.f32 %v4276_v44, 0.0  ;;  %v4320_v51 = vmul.f32 %v11241_v22, %v4304_v18  ;;  %v4334_v44 = vsub.f32 %v4310_v26, %v4326_v7  ;;  %v4335_v18 = vsub.f32 %v4311_v11, %v4327_v41 }
 0x6ad   :  { %v4316_v7 = vld [vmem:[#allocation2 + $0x378] sm:$0xff] }
 0x6ae   :  { %v4292_v2 = vadd.f32 1e-05, %v4284_v40  ;;  %10544 = vmatmul.mubr.msk.f32.gmra.mrb[60].mxu1 %vm2749_vm2, %v4320_v51  ;;  %v4328_v22 = vmul.f32 %v4320_v51, %v13016_v15  ;;  %v4329_v40 = vmul.f32 %v4321_v17, %v13014_v29  ;;  %v15630_v51 = vld [vmem:[#allocation9_spill] sm:$0xff] }
 0x6af   :  { %10546 = vmatprep.mubr.msk.f32.mxu1 %vm2749_vm2, %v4321_v17  ;;  %v13045_v43 = vpop.permute.xlu1 %4603  ;;  %v948_v60 = vpop.permute.xlu0 %947  ;;  %v4314_v17 = vld [vmem:[#allocation2 + $0x368] sm:$0xff] }
 0x6b0   :  { %11246 = vrsqrt.f32 %v4292_v2  ;;  %v2421_v54 = vadd.f32 %v12934_v13, %v948_v60  ;;  %v15626_v13 = vld [vmem:[#allocation10_spill] sm:$0xff]  ;;  %v4336_v60 = vsub.f32 %v4312_v47, %v4328_v22 }
 0x6b2   :  { %v11243_v5 = vpop.eup %11242  ;;  %2860 = vst.msk [vmem:[#allocation2 + $0x370] sm:$0xff] %vm2749_vm2, %v2421_v54  ;;  %v4313_v54 = vld [vmem:[#allocation2 + $0x360] sm:$0xff] }
 0x6b3   :  { %v11245_v56 = vpop.eup %11244  ;;  %v13049_v1 = vpop.permute.xlu1 %4613  ;;  %v4323_v30 = vmul.f32 %v11243_v5, %v4307_v4  ;;  %v15629_v4 = vld [vmem:[#allocation13_spill] sm:$0xff] }
 0x6b4   :  { %v13051_v19 = vpop.permute.xlu0 %4578  ;;  %v4322_v34 = vmul.f32 %v11245_v56, %v4306_v8  ;;  %v4337_v8 = vsub.f32 %v4313_v54, %v4329_v40 }
 0x6b6   :  { %10547 = vmatmul.mubr.msk.f32.gmra.mrb[62].mxu1 %vm2749_vm2, %v4322_v34  ;;  %v4330_v5 = vmul.f32 %v4322_v34, %v13024_v9 }
 0x6b7   :  { %10549 = vmatprep.mubr.msk.f32.mxu1 %vm2749_vm2, %v4323_v30  ;;  %v518_v38 = vpop.permute.xlu1 %517 }
 0x6b8   :  { %v13055_v39 = vpop.permute.xlu0 %4588  ;;  %v1991_v14 = vadd.f32 %v15626_v13, %v518_v38  ;;  %v4331_v38 = vmul.f32 %v4323_v30, %v13022_v48  ;;  %v4338_v9 = vsub.f32 %v4314_v17, %v4330_v5 }
 0x6b9   :  { %v4315_v29 = vld [vmem:[#allocation2 + $0x370] sm:$0xff] }
 0x6ba   :  { %v11247_v46 = vpop.eup %11246  ;;  %2774 = vst.msk [vmem:[#allocation2 + $0xc0] sm:$0xff] %vm2749_vm2, %v1991_v14  ;;  %v4339_v28 = vsub.f32 %v4315_v29, %v4331_v38 }
 0x6bb   :  { %v528_v59 = vpop.permute.xlu1 %527  ;;  %v4324_v53 = vmul.f32 %v11247_v46, %v4308_v32  ;;  %v15632_v32 = vld [vmem:[#allocation14_spill] sm:$0xff] }
 0x6bc   :  { %v13060_v52 = vpop.permute.xlu0 %4598  ;;  %v2001_v23 = vadd.f32 %v15627_v0, %v528_v59 }
 0x6bd   :  { %10550 = vmatmul.mubr.msk.f32.gmra.mrb[64].mxu1 %vm2749_vm2, %v4324_v53  ;;  %v4332_v34 = vmul.f32 %v4324_v53, %v13031_v42  ;;  %v15633_v42 = vld [vmem:[#allocation16_spill] sm:$0xff] }
 0x6be   :  { %2776 = vst.msk [vmem:[#allocation2 + $0xd0] sm:$0xff] %vm2749_vm2, %v2001_v23  ;;  %10552 = vmatprep.mubr.msk.f32.mxu1 %vm2749_vm2, %v4333_v20 }
 0x6bf   :  { %v533_v36 = vpop.permute.xlu1 %532  ;;  %v4340_v0 = vsub.f32 %v4316_v7, %v4332_v34 }
 0x6c0   :  { %v13068_v3 = vpop.permute.xlu0 %4608  ;;  %v2006_v57 = vadd.f32 %v15628_v50, %v533_v36 }
 0x6c1   :  { %10553 = vmatmul.mubr.msk.f32.gmra.mrb[66].mxu1 %vm2749_vm2, %v4334_v44 }
 0x6c2   :  { %2777 = vst.msk [vmem:[#allocation2 + $0xd8] sm:$0xff] %vm2749_vm2, %v2006_v57  ;;  %10555 = vmatprep.mubr.msk.f32.mxu1 %vm2749_vm2, %v4335_v18 }
 0x6c3   :  { %v543_v21 = vpop.permute.xlu1 %542 }
 0x6c4   :  { %v523_v2 = vpop.permute.xlu0 %522  ;;  %v2016_v15 = vadd.f32 %v15629_v4, %v543_v21 }
 0x6c5   :  { %v1996_v56 = vadd.f32 %v15630_v51, %v523_v2  ;;  %10556 = vmatmul.mubr.msk.f32.gmra.mrb[68].mxu1 %vm2749_vm2, %v4336_v60 }
 0x6c6   :  { %2779 = vst.msk [vmem:[#allocation2 + $0xe8] sm:$0xff] %vm2749_vm2, %v2016_v15  ;;  %10558 = vmatprep.mubr.msk.f32.mxu1 %vm2749_vm2, %v4337_v8 }
 0x6c7   :  { %2775 = vst.msk [vmem:[#allocation2 + $0xc8] sm:$0xff] %vm2749_vm2, %v1996_v56  ;;  %v553_v13 = vpop.permute.xlu1 %552 }
 0x6c8   :  { %v538_v14 = vpop.permute.xlu0 %537  ;;  %v2026_v46 = vadd.f32 %v15631_v58, %v553_v13 }
 0x6c9   :  { %v2011_v59 = vadd.f32 %v15632_v32, %v538_v14  ;;  %10559 = vmatmul.mubr.msk.f32.gmra.mrb[70].mxu1 %vm2749_vm2, %v4338_v9 }
 0x6ca   :  { %2781 = vst.msk [vmem:[#allocation2 + $0xf8] sm:$0xff] %vm2749_vm2, %v2026_v46  ;;  %10561 = vmatprep.mubr.msk.f32.mxu1 %vm2749_vm2, %v4339_v28 }
 0x6cb   :  { %2778 = vst.msk [vmem:[#allocation2 + $0xe0] sm:$0xff] %vm2749_vm2, %v2011_v59  ;;  %v963_v48 = vpop.permute.xlu1 %962 }
 0x6cc   :  { %v548_v30 = vpop.permute.xlu0 %547  ;;  %v2436_v23 = vadd.f32 %v12981_v33, %v963_v48 }
 0x6cd   :  { %v2021_v53 = vadd.f32 %v15633_v42, %v548_v30  ;;  %10562 = vmatmul.mubr.msk.f32.gmra.mrb[72].mxu1 %vm2749_vm2, %v4340_v0 }
 0x6ce   :  { %2863 = vst.msk [vmem:[#allocation2 + $0x388] sm:$0xff] %vm2749_vm2, %v2436_v23 }
 0x6cf   :  { %2780 = vst.msk [vmem:[#allocation2 + $0xf0] sm:$0xff] %vm2749_vm2, %v2021_v53  ;;  %v973_v20 = vpop.permute.xlu1 %972 }
 0x6d0   :  { %v958_v41 = vpop.permute.xlu0 %957  ;;  %v2446_v26 = vadd.f32 %v12991_v37, %v973_v20  ;;  %v159_v37 = vld [vmem:[%s15553_s5 + $0x3b0] sm:$0xff] }
 0x6d1   :  { %v2431_v36 = vadd.f32 %v12983_v61, %v958_v41  ;;  %v9276_v61 = vld [vmem:[%s15555_s7 + $0x80] sm:$0xff]  ;;  %10329 = vmatprep.mubr.msk.f32.mxu0 %vm1275_vm0, %v159_v37  ;;  %v9278_v37 = vld [vmem:[%s15555_s7 + $0x90] sm:$0xff] }
 0x6d2   :  { %2865 = vst.msk [vmem:[#allocation2 + $0x398] sm:$0xff] %vm2749_vm2, %v2446_v26  ;;  %10580 = vmatprep.mubr.msk.f32.mxu1 %vm3527_vm4, %v9276_v61  ;;  %v9277_v61 = vld [vmem:[%s15555_s7 + $0x88] sm:$0xff] }
 0x6d3   :  { %2862 = vst.msk [vmem:[#allocation2 + $0x380] sm:$0xff] %vm2749_vm2, %v2431_v36  ;;  %v983_v44 = vpop.permute.xlu1 %982 }
 0x6d4   :  { %v968_v33 = vpop.permute.xlu0 %967  ;;  %v2456_v11 = vadd.f32 %v12998_v16, %v983_v44 }
 0x6d5   :  { %v2441_v22 = vadd.f32 %v12993_v12, %v968_v33  ;;  %v160_v12 = vld [vmem:[%s15553_s5 + $0x3b8] sm:$0xff] }
 0x6d6   :  { %2867 = vst.msk [vmem:[#allocation2 + $0x3a8] sm:$0xff] %vm2749_vm2, %v2456_v11  ;;  %10330 = vmatmul.mubr.msk.f32.gmra.mrb[118].mxu0 %vm1275_vm0, %v160_v12  ;;  %v9279_v12 = vld [vmem:[%s15555_s7 + $0x98] sm:$0xff] }
 0x6d7   :  { %2864 = vst.msk [vmem:[#allocation2 + $0x390] sm:$0xff] %vm2749_vm2, %v2441_v22 }
 0x6d8   :  { %v978_v50 = vpop.permute.xlu0 %977 }
 0x6d9   :  { %v2451_v57 = vadd.f32 %v13000_v25, %v978_v50 }
 0x6db   :  { %2866 = vst.msk [vmem:[#allocation2 + $0x3a0] sm:$0xff] %vm2749_vm2, %v2451_v57 }
 0x779   :  { %v10542_v16 = vpop.f32.mrb[58].mxu1 }
 0x77a   :  { %v4455_v25 = vpop.f32.mrb[59].mxu1  ;;  %v4535_v54 = vmul.f32 %v10542_v16, %v12861_v55  ;;  %v9280_v16 = vld [vmem:[%s15555_s7 + $0xa0] sm:$0xff] }
 0x77b   :  { %v4534_v5 = vmul.f32 %v4455_v25, %v12864_v24  ;;  %v9281_v25 = vld [vmem:[%s15555_s7 + $0xa8] sm:$0xff] }
 0x781   :  { %v10545_v18 = vpop.f32.mrb[60].mxu1 }
 0x782   :  { %v4465_v40 = vpop.f32.mrb[61].mxu1  ;;  %v4537_v8 = vmul.f32 %v10545_v18, %v12882_v45  ;;  %v9282_v18 = vld [vmem:[%s15555_s7 + $0xb0] sm:$0xff] }
 0x783   :  { %v4536_v17 = vmul.f32 %v4465_v40, %v12870_v31  ;;  %v161_v40 = vld [vmem:[%s15553_s5 + $0x3c0] sm:$0xff] }
 0x784   :  { %10332 = vmatprep.mubr.msk.f32.mxu0 %vm1275_vm0, %v161_v40 }
 0x789   :  { %v10548_v47 = vpop.f32.mrb[62].mxu1 }
 0x78a   :  { %v4475_v21 = vpop.f32.mrb[63].mxu1  ;;  %v4539_v46 = vmul.f32 %v10548_v47, %v12896_v62  ;;  %v162_v47 = vld [vmem:[%s15553_s5 + $0x3c8] sm:$0xff] }
 0x78b   :  { %v4538_v59 = vmul.f32 %v4475_v21, %v12885_v49  ;;  %10333 = vmatmul.mubr.msk.f32.gmra.mrb[120].mxu0 %vm1275_vm0, %v162_v47  ;;  %v163_v21 = vld [vmem:[%s15553_s5 + $0x3d0] sm:$0xff] }
 0x78c   :  { %10335 = vmatprep.mubr.msk.f32.mxu0 %vm1275_vm0, %v163_v21  ;;  %v341_v47 = vld [vmem:[%s15554_s6 + $0x3d0] sm:$0xff] }
 0x790   :  { %v10551_v2 = vpop.f32.mrb[64].mxu1 }
 0x791   :  { %v4485_v60 = vpop.f32.mrb[65].mxu1  ;;  %v4541_v42 = vmul.f32 %v10551_v2, %v12909_v6  ;;  %v164_v2 = vld [vmem:[%s15553_s5 + $0x3d8] sm:$0xff] }
 0x792   :  { %v4540_v20 = vmul.f32 %v4485_v60, %v12899_v63  ;;  %10336 = vmatmul.mubr.msk.f32.gmra.mrb[122].mxu0 %vm1275_vm0, %v164_v2  ;;  %v165_v60 = vld [vmem:[%s15553_s5 + $0x3e0] sm:$0xff] }
 0x793   :  { %10338 = vmatprep.mubr.msk.f32.mxu0 %vm1275_vm0, %v165_v60  ;;  %v343_v60 = vld [vmem:[%s15554_s6 + $0x3e0] sm:$0xff] }
 0x794   :  { %v10554_v4 = vpop.f32.mrb[66].mxu1 }
 0x795   :  { %v4543_v15 = vadd.f32 %v10554_v4, %v4535_v54  ;;  %v4495_v51 = vpop.f32.mrb[67].mxu1  ;;  %v166_v54 = vld [vmem:[%s15553_s5 + $0x3e8] sm:$0xff] }
 0x796   :  { %v4542_v56 = vadd.f32 %v4534_v5, %v4495_v51  ;;  %10339 = vmatmul.mubr.msk.f32.gmra.mrb[124].mxu0 %vm1275_vm0, %v166_v54 }
 0x797   :  { %v4551_v29 = vmax.f32 %v4543_v15, 0.0 }
 0x798   :  { %v4550_v38 = vmax.f32 %v4542_v56, 0.0  ;;  %v10557_v13 = vpop.f32.mrb[68].mxu1 }
 0x799   :  { %v4545_v14 = vadd.f32 %v10557_v13, %v4537_v8  ;;  %v4505_v9 = vpop.f32.mrb[69].mxu1 }
 0x79a   :  { %v11051_v34 = vpack.c.bf16 %v4551_v29, %v4550_v38  ;;  %v4544_v58 = vadd.f32 %v4536_v17, %v4505_v9 }
 0x79b   :  { %v4553_v32 = vmax.f32 %v4545_v14, 0.0 }
 0x79c   :  { %v4552_v28 = vmax.f32 %v4544_v58, 0.0  ;;  %v10560_v7 = vpop.f32.mrb[70].mxu1  ;;  %11052 = vmatprep.subr.bf16.mxu1 %v11051_v34 }
 0x79d   :  { %v4547_v48 = vadd.f32 %v10560_v7, %v4539_v46  ;;  %v4515_v30 = vpop.f32.mrb[71].mxu1  ;;  %11054 = vmatpush3.bf16.msra.mxu1 %v11051_v34  ;;  %v9326_v7 = vld [vmem:[%s15556_s8 + $0xc8] sm:$0xff] }
 0x79e   :  { %v11055_v0 = vpack.c.bf16 %v4553_v32, %v4552_v28  ;;  %v4546_v23 = vadd.f32 %v4538_v59, %v4515_v30  ;;  %v9330_v30 = vld [vmem:[%s15556_s8 + $0xe8] sm:$0xff] }
 0x79f   :  { %v4555_v53 = vmax.f32 %v4547_v48, 0.0 }
 0x7a0   :  { %v4554_v41 = vmax.f32 %v4546_v23, 0.0  ;;  %v10563_v26 = vpop.f32.mrb[72].mxu1  ;;  %11056 = vmatprep.subr.bf16.mxu1 %v11055_v0  ;;  %v9332_v23 = vld [vmem:[%s15556_s8 + $0xf8] sm:$0xff] }
 0x7a1   :  { %v4549_v36 = vadd.f32 %v10563_v26, %v4541_v42  ;;  %v4525_v44 = vpop.f32.mrb[73].mxu1  ;;  %11058 = vmatpush3.bf16.msra.mxu1 %v11055_v0  ;;  %v337_v0 = vld [vmem:[%s15554_s6 + $0x3b0] sm:$0xff] }
 0x7a2   :  { %v11059_v33 = vpack.c.bf16 %v4555_v53, %v4554_v41  ;;  %v4548_v11 = vadd.f32 %v4540_v20, %v4525_v44  ;;  %v9325_v53 = vld [vmem:[%s15556_s8 + $0xc0] sm:$0xff]  ;;  %v9327_v41 = vld [vmem:[%s15556_s8 + $0xd0] sm:$0xff]  ;;  %v254_v44 = vld [vmem:[%s15554_s6 + $0x118] sm:$0xff] }
 0x7a3   :  { %v4557_v22 = vmax.f32 %v4549_v36, 0.0  ;;  %v251_v20 = vld [vmem:[%s15554_s6 + $0x100] sm:$0xff]  ;;  %v253_v26 = vld [vmem:[%s15554_s6 + $0x110] sm:$0xff] }
 0x7a4   :  { %v4556_v50 = vmax.f32 %v4548_v11, 0.0  ;;  %11060 = vmatprep.subr.bf16.mxu1 %v11059_v33  ;;  %v9329_v36 = vld [vmem:[%s15556_s8 + $0xe0] sm:$0xff]  ;;  %v256_v11 = vld [vmem:[%s15554_s6 + $0x128] sm:$0xff] }
 0x7a5   :  { %11062 = vmatpush3.bf16.msra.mxu1 %v11059_v33  ;;  %v9331_v33 = vld [vmem:[%s15556_s8 + $0xf0] sm:$0xff] }
 0x7a6   :  { %v11063_v57 = vpack.c.bf16 %v4557_v22, %v4556_v50  ;;  %v252_v22 = vld [vmem:[%s15554_s6 + $0x108] sm:$0xff]  ;;  %v258_v50 = vld [vmem:[%s15554_s6 + $0x138] sm:$0xff] }
 0x7a8   :  { %11064 = vmatprep.subr.bf16.mxu1 %v11063_v57 }
 0x7a9   :  { %11066 = vmatpush3.bf16.msra.mxu1 %v11063_v57  ;;  %v13236_v48 = vpop.f32.mrb[118].mxu0  ;;  %v255_v57 = vld [vmem:[%s15554_s6 + $0x120] sm:$0xff] }
 0x7aa   :  { %10592 = vmatprep.subr.msk.mxu1 %vm3298_vm3, %v12806_v35  ;;  %v13250_v42 = vpop.f32.mrb[119].mxu0 }
 0x7ac   :  { %10581 = vmatmul.mubr.msk.f32.vlgmr.msra.gmra.mrb[74].mxu1 %vm3527_vm4, %v9277_v61  ;;  %v340_v61 = vld [vmem:[%s15554_s6 + $0x3c8] sm:$0xff] }
 0x7ad   :  { %10583 = vmatprep.mubr.msk.f32.mxu1 %vm3527_vm4, %v9278_v37  ;;  %10593 = vmatpush3.msk.msra.mxu1 %vm3298_vm3, %v12806_v35  ;;  %v9283_v35 = vld [vmem:[%s15555_s7 + $0xb8] sm:$0xff]  ;;  %v257_v37 = vld [vmem:[%s15554_s6 + $0x130] sm:$0xff] }
 0x7b0   :  { %10584 = vmatmul.mubr.msk.f32.gmra.mrb[76].mxu1 %vm3527_vm4, %v9279_v12  ;;  %v342_v12 = vld [vmem:[%s15554_s6 + $0x3d8] sm:$0xff] }
 0x7b1   :  { %10586 = vmatprep.mubr.msk.f32.mxu1 %vm3527_vm4, %v9280_v16 }
 0x7b4   :  { %10587 = vmatmul.mubr.msk.f32.gmra.mrb[78].mxu1 %vm3527_vm4, %v9281_v25  ;;  %v339_v25 = vld [vmem:[%s15554_s6 + $0x3c0] sm:$0xff] }
 0x7b5   :  { %10589 = vmatprep.mubr.msk.f32.mxu1 %vm3527_vm4, %v9282_v18 }
 0x7b8   :  { %10590 = vmatmul.mubr.msk.f32.gmra.mrb[80].mxu1 %vm3527_vm4, %v9283_v35  ;;  %v344_v35 = vld [vmem:[%s15554_s6 + $0x3e8] sm:$0xff] }
 0x85e   :  { %v13294_v16 = vpop.f32.mrb[120].mxu0 }
 0x85f   :  { %v13299_v18 = vpop.f32.mrb[121].mxu0 }
 0x865   :  { %v13304_v40 = vpop.f32.mrb[122].mxu0 }
 0x866   :  { %v13309_v21 = vpop.f32.mrb[123].mxu0 }
 0x869   :  { %v13311_v2 = vpop.f32.mrb[124].mxu0 }
 0x86a   :  { %v13316_v54 = vpop.f32.mrb[125].mxu0 }
 0x87f   :  { %v10582_v5 = vpop.f32.mrb[74].mxu1 }
 0x880   :  { %v13183_v4 = vadd.f32 %v10582_v5, %v13035_v27  ;;  %v4706_v15 = vpop.f32.mrb[75].mxu1 }
 0x881   :  { %v13186_v51 = vadd.f32 %v4706_v15, %v13051_v19 }
 0x882   :  { %4755 = vadd.xlane.f32.xlu1 %v13183_v4  ;;  %v4746_v17 = vmul.f32 %v13183_v4, %v13183_v4 }
 0x883   :  { %v10585_v56 = vpop.f32.mrb[76].mxu1  ;;  %4753 = vadd.xlane.f32.xlu0 %v13186_v51  ;;  %v4745_v19 = vmul.f32 %v13186_v51, %v13186_v51 }
 0x884   :  { %v4716_v8 = vpop.f32.mrb[77].mxu1 }
 0x885   :  { %v13191_v29 = vadd.f32 %v4716_v8, %v13055_v39  ;;  %v13201_v39 = vadd.f32 %v10585_v56, %v13041_v10 }
 0x887   :  { %v10588_v38 = vpop.f32.mrb[78].mxu1  ;;  %4771 = vadd.xlane.f32.xlu0 %v4746_v17  ;;  %4757 = vadd.xlane.f32.xlu1 %v13191_v29  ;;  %v4747_v13 = vmul.f32 %v13191_v29, %v13191_v29  ;;  %v4748_v58 = vmul.f32 %v13201_v39, %v13201_v39 }
 0x888   :  { %v4726_v27 = vpop.f32.mrb[79].mxu1  ;;  %v13213_v32 = vadd.f32 %v10588_v38, %v13045_v43 }
 0x889   :  { %v13204_v34 = vadd.f32 %v4726_v27, %v13060_v52 }
 0x88a   :  { %v4750_v52 = vmul.f32 %v13213_v32, %v13213_v32 }
 0x88b   :  { %v10591_v14 = vpop.f32.mrb[80].mxu1  ;;  %4769 = vadd.xlane.f32.xlu0 %v4745_v19  ;;  %4773 = vadd.xlane.f32.xlu1 %v4747_v13  ;;  %v4749_v46 = vmul.f32 %v13204_v34, %v13204_v34 }
 0x88c   :  { %v4736_v9 = vpop.f32.mrb[81].mxu1  ;;  %v13225_v28 = vadd.f32 %v10591_v14, %v13049_v1  ;;  %v9328_v1 = vld [vmem:[%s15556_s8 + $0xd8] sm:$0xff] }
 0x88d   :  { %v13216_v10 = vadd.f32 %v4736_v9, %v13068_v3  ;;  %v338_v3 = vld [vmem:[%s15554_s6 + $0x3b8] sm:$0xff] }
 0x88e   :  { %v4752_v43 = vmul.f32 %v13225_v28, %v13225_v28 }
 0x88f   :  { %4759 = vadd.xlane.f32.xlu0 %v13201_v39  ;;  %4761 = vadd.xlane.f32.xlu1 %v13204_v34  ;;  %v4751_v59 = vmul.f32 %v13216_v10, %v13216_v10 }
 0x893   :  { %4775 = vadd.xlane.f32.xlu0 %v4748_v58  ;;  %4777 = vadd.xlane.f32.xlu1 %v4749_v46 }
 0x897   :  { %4763 = vadd.xlane.f32.xlu0 %v13213_v32  ;;  %4765 = vadd.xlane.f32.xlu1 %v13216_v10 }
 0x89b   :  { %4779 = vadd.xlane.f32.xlu0 %v4750_v52  ;;  %4781 = vadd.xlane.f32.xlu1 %v4751_v59 }
 0x89f   :  { %4767 = vadd.xlane.f32.xlu0 %v13225_v28 }
 0x8a3   :  { %4783 = vadd.xlane.f32.xlu0 %v4752_v43 }
 0x8ac   :  { %992 = vperm.xlu1 %11199, %v338_v3  }
 0x8b0   :  { %5123 = vperm.xlu1 %11199, %v9326_v7  }
 0x8b4   :  { %5133 = vperm.xlu1 %11199, %v9328_v1  }
 0x8b8   :  { %5143 = vperm.xlu1 %11199, %v9330_v30  }
 0x8b9   :  { %987 = vperm.xlu0 %11198, %v337_v0  }
 0x8bc   :  { %5153 = vperm.xlu1 %11199, %v9332_v23  }
 0x8bd   :  { %5118 = vperm.xlu0 %11198, %v9325_v53  }
 0x8c0   :  { %557 = vperm.xlu1 %11199, %v251_v20  }
 0x8c1   :  { %5128 = vperm.xlu0 %11198, %v9327_v41  }
 0x8c4   :  { %567 = vperm.xlu1 %11199, %v253_v26  }
 0x8c5   :  { %5138 = vperm.xlu0 %11198, %v9329_v36  }
 0x8c8   :  { %572 = vperm.xlu1 %11199, %v254_v44  }
 0x8c9   :  { %5148 = vperm.xlu0 %11198, %v9331_v33  }
 0x8cc   :  { %582 = vperm.xlu1 %11199, %v256_v11  }
 0x8cd   :  { %562 = vperm.xlu0 %11198, %v252_v22  }
 0x8d0   :  { %592 = vperm.xlu1 %11199, %v258_v50  }
 0x8d1   :  { %577 = vperm.xlu0 %11198, %v255_v57  }
 0x8d4   :  { %1002 = vperm.xlu1 %11199, %v340_v61  }
 0x8d5   :  { %587 = vperm.xlu0 %11198, %v257_v37  }
 0x8d8   :  { %1012 = vperm.xlu1 %11199, %v342_v12  }
 0x8d9   :  { %997 = vperm.xlu0 %11198, %v339_v25  }
 0x8dc   :  { %1022 = vperm.xlu1 %11199, %v344_v35  }
 0x8dd   :  { %1007 = vperm.xlu0 %11198, %v341_v47  }
 0x8e1   :  { %1017 = vperm.xlu0 %11198, %v343_v60  }
 0x90f   :  { %v4756_v5 = vpop.xlane.xlu1 %4755 }
 0x910   :  { %v4754_v15 = vpop.xlane.xlu0 %4753  ;;  %v13318_v56 = vmul.f32 0.0078125, %v4756_v5 }
 0x911   :  { %v13320_v8 = vmul.f32 0.0078125, %v4754_v15 }
 0x912   :  { %v4802_v27 = vmul.f32 %v13318_v56, %v13318_v56 }
 0x913   :  { %v4801_v9 = vmul.f32 %v13320_v8, %v13320_v8 }
 0x914   :  { %v4758_v17 = vpop.xlane.xlu1 %4757  ;;  %v4772_v38 = vpop.xlane.xlu0 %4771 }
 0x915   :  { %v13324_v19 = vmul.f32 0.0078125, %v4758_v17  ;;  %v4794_v13 = vmul.f32 0.0078125, %v4772_v38 }
 0x917   :  { %v4810_v14 = vsub.f32 %v4794_v13, %v4802_v27  ;;  %v4803_v52 = vmul.f32 %v13324_v19, %v13324_v19 }
 0x918   :  { %v4774_v58 = vpop.xlane.xlu1 %4773  ;;  %v4770_v46 = vpop.xlane.xlu0 %4769 }
 0x919   :  { %v4818_v59 = vmax.f32 %v4810_v14, 0.0  ;;  %v4795_v43 = vmul.f32 0.0078125, %v4774_v58  ;;  %v4793_v3 = vmul.f32 0.0078125, %v4770_v46 }
 0x91b   :  { %v4811_v7 = vsub.f32 %v4795_v43, %v4803_v52  ;;  %v4809_v1 = vsub.f32 %v4793_v3, %v4801_v9  ;;  %v4826_v30 = vadd.f32 1e-05, %v4818_v59 }
 0x91c   :  { %v4762_v0 = vpop.xlane.xlu1 %4761  ;;  %v4760_v23 = vpop.xlane.xlu0 %4759 }
 0x91d   :  { %v4819_v53 = vmax.f32 %v4811_v7, 0.0  ;;  %v4817_v20 = vmax.f32 %v4809_v1, 0.0  ;;  %v13330_v41 = vmul.f32 0.0078125, %v4762_v0  ;;  %v13332_v26 = vmul.f32 0.0078125, %v4760_v23 }
 0x91e   :  { %11248 = vrsqrt.f32 %v4826_v30 }
 0x91f   :  { %v4827_v36 = vadd.f32 1e-05, %v4819_v53  ;;  %v4825_v44 = vadd.f32 1e-05, %v4817_v20  ;;  %v4805_v22 = vmul.f32 %v13330_v41, %v13330_v41  ;;  %v4804_v50 = vmul.f32 %v13332_v26, %v13332_v26 }
 0x920   :  { %v4778_v33 = vpop.xlane.xlu1 %4777  ;;  %v4776_v11 = vpop.xlane.xlu0 %4775 }
 0x921   :  { %v4797_v57 = vmul.f32 0.0078125, %v4778_v33  ;;  %v4796_v61 = vmul.f32 0.0078125, %v4776_v11  ;;  %11250 = vrsqrt.f32 %v4825_v44  ;;  %v4842_v44 = vld [vmem:[#allocation2 + $0xc8] sm:$0xff] }
 0x922   :  { %11252 = vrsqrt.f32 %v4827_v36  ;;  %v4841_v36 = vld [vmem:[#allocation2 + $0xc0] sm:$0xff] }
 0x923   :  { %v4813_v37 = vsub.f32 %v4797_v57, %v4805_v22  ;;  %v4812_v12 = vsub.f32 %v4796_v61, %v4804_v50  ;;  %v4843_v57 = vld [vmem:[#allocation2 + $0xd0] sm:$0xff] }
 0x924   :  { %v4766_v25 = vpop.xlane.xlu1 %4765  ;;  %v4764_v35 = vpop.xlane.xlu0 %4763 }
 0x925   :  { %v4821_v47 = vmax.f32 %v4813_v37, 0.0  ;;  %v4820_v60 = vmax.f32 %v4812_v12, 0.0  ;;  %v13338_v5 = vmul.f32 0.0078125, %v4766_v25  ;;  %v13340_v15 = vmul.f32 0.0078125, %v4764_v35 }
 0x927   :  { %v4829_v17 = vadd.f32 1e-05, %v4821_v47  ;;  %v4828_v38 = vadd.f32 1e-05, %v4820_v60  ;;  %v4807_v27 = vmul.f32 %v13338_v5, %v13338_v5  ;;  %v4806_v9 = vmul.f32 %v13340_v15, %v13340_v15  ;;  %v4845_v60 = vld [vmem:[#allocation2 + $0xe0] sm:$0xff] }
 0x928   :  { %v4782_v13 = vpop.xlane.xlu1 %4781  ;;  %v4780_v14 = vpop.xlane.xlu0 %4779 }
 0x929   :  { %11254 = vrsqrt.f32 %v4829_v17  ;;  %v4799_v58 = vmul.f32 0.0078125, %v4782_v13  ;;  %v4798_v46 = vmul.f32 0.0078125, %v4780_v14  ;;  %v11249_v52 = vpop.eup %11248 }
 0x92a   :  { %11256 = vrsqrt.f32 %v4828_v38  ;;  %v4858_v11 = vmul.f32 %v11249_v52, %v4842_v44 }
 0x92b   :  { %v4815_v59 = vsub.f32 %v4799_v58, %v4807_v27  ;;  %v4814_v43 = vsub.f32 %v4798_v46, %v4806_v9  ;;  %v11251_v3 = vpop.eup %11250  ;;  %v4844_v27 = vld [vmem:[#allocation2 + $0xd8] sm:$0xff] }
 0x92c   :  { %v993_v7 = vpop.permute.xlu1 %992  ;;  %v4768_v1 = vpop.xlane.xlu0 %4767  ;;  %v4857_v33 = vmul.f32 %v11251_v3, %v4841_v36  ;;  %v4847_v3 = vld [vmem:[#allocation2 + $0xf0] sm:$0xff] }
 0x92d   :  { %v11253_v30 = vpop.eup %11252  ;;  %v4823_v0 = vmax.f32 %v4815_v59, 0.0  ;;  %v4822_v23 = vmax.f32 %v4814_v43, 0.0  ;;  %v2466_v53 = vadd.f32 %v13236_v48, %v993_v7  ;;  %v13347_v20 = vmul.f32 0.0078125, %v4768_v1 }
 0x92e   :  { %10594 = vmatprep.mubr.msk.f32.mxu1 %vm2749_vm2, %v4857_v33  ;;  %v4859_v37 = vmul.f32 %v11253_v30, %v4843_v57 }
 0x92f   :  { %v4831_v22 = vadd.f32 1e-05, %v4823_v0  ;;  %v4830_v50 = vadd.f32 1e-05, %v4822_v23  ;;  %2869 = vst.msk [vmem:[#allocation2 + $0x3b8] sm:$0xff] %vm2749_vm2, %v2466_v53  ;;  %v4808_v48 = vmul.f32 %v13347_v20, %v13347_v20  ;;  %10595 = vmatmul.mubr.msk.f32.vlgmr.msra.gmra.mrb[82].mxu1 %vm2749_vm2, %v4858_v11  ;;  %v4846_v0 = vld [vmem:[#allocation2 + $0xe8] sm:$0xff] }
 0x930   :  { %v13351_v61 = vpop.permute.xlu1 %5123  ;;  %v4784_v12 = vpop.xlane.xlu0 %4783  ;;  %10597 = vmatprep.mubr.msk.f32.mxu1 %vm2749_vm2, %v4859_v37 }
 0x931   :  { %11258 = vrsqrt.f32 %v4831_v22  ;;  %v4800_v25 = vmul.f32 0.0078125, %v4784_v12  ;;  %v4848_v12 = vld [vmem:[#allocation2 + $0xf8] sm:$0xff] }
 0x932   :  { %11260 = vrsqrt.f32 %v4830_v50  ;;  %v4865_v50 = vmul.f32 %v4857_v33, %v13320_v8  ;;  %v4850_v8 = vld [vmem:[#allocation2 + $0x388] sm:$0xff] }
 0x933   :  { %v11255_v35 = vpop.eup %11254  ;;  %v4816_v47 = vsub.f32 %v4800_v25, %v4808_v48 }
 0x934   :  { %v11257_v17 = vpop.eup %11256  ;;  %v13357_v38 = vpop.permute.xlu1 %5133  ;;  %v4861_v13 = vmul.f32 %v11255_v35, %v4845_v60  ;;  %v4866_v60 = vmul.f32 %v4858_v11, %v13318_v56  ;;  %v15636_v56 = vld [vmem:[#allocation19_spill] sm:$0xff] }
 0x935   :  { %v4824_v14 = vmax.f32 %v4816_v47, 0.0  ;;  %v4860_v9 = vmul.f32 %v11257_v17, %v4844_v27  ;;  %v4849_v47 = vld [vmem:[#allocation2 + $0x380] sm:$0xff]  ;;  %v15635_v17 = vld [vmem:[#allocation20_spill] sm:$0xff] }
 0x937   :  { %v4832_v58 = vadd.f32 1e-05, %v4824_v14  ;;  %10598 = vmatmul.mubr.msk.f32.gmra.mrb[84].mxu1 %vm2749_vm2, %v4860_v9  ;;  %v4873_v14 = vsub.f32 %v4849_v47, %v4865_v50 }
 0x938   :  { %10600 = vmatprep.mubr.msk.f32.mxu1 %vm2749_vm2, %v4861_v13  ;;  %v13361_v46 = vpop.permute.xlu1 %5143  ;;  %v988_v52 = vpop.permute.xlu0 %987 }
 0x939   :  { %11262 = vrsqrt.f32 %v4832_v58  ;;  %v2461_v59 = vadd.f32 %v13250_v42, %v988_v52  ;;  %v15634_v42 = vld [vmem:[#allocation18_spill] sm:$0xff]  ;;  %v4867_v58 = vmul.f32 %v4859_v37, %v13324_v19 }
 0x93a   :  { %v4852_v19 = vld [vmem:[#allocation2 + $0x398] sm:$0xff] }
 0x93b   :  { %v11259_v43 = vpop.eup %11258  ;;  %2868 = vst.msk [vmem:[#allocation2 + $0x3b0] sm:$0xff] %vm2749_vm2, %v2461_v59  ;;  %v4874_v59 = vsub.f32 %v4850_v8, %v4866_v60 }
 0x93c   :  { %v11261_v7 = vpop.eup %11260  ;;  %v13365_v1 = vpop.permute.xlu1 %5153  ;;  %v4863_v23 = vmul.f32 %v11259_v43, %v4847_v3  ;;  %v4851_v43 = vld [vmem:[#allocation2 + $0x390] sm:$0xff]  ;;  %v4868_v3 = vmul.f32 %v4860_v9, %v13332_v26 }
 0x93d   :  { %v13367_v30 = vpop.permute.xlu0 %5118  ;;  %v4862_v53 = vmul.f32 %v11261_v7, %v4846_v0  ;;  %v4875_v7 = vsub.f32 %v4851_v43, %v4867_v58  ;;  %v4869_v0 = vmul.f32 %v4861_v13, %v13330_v41  ;;  %v15638_v9 = vld [vmem:[#allocation17_spill] sm:$0xff]  ;;  %v4854_v13 = vld [vmem:[#allocation2 + $0x3a8] sm:$0xff]  ;;  %v15640_v58 = vld [vmem:[#allocation22_spill] sm:$0xff] }
 0x93e   :  { %v4871_v47 = vmul.f32 %v4863_v23, %v13338_v5 }
 0x93f   :  { %10601 = vmatmul.mubr.msk.f32.gmra.mrb[86].mxu1 %vm2749_vm2, %v4862_v53  ;;  %v4870_v50 = vmul.f32 %v4862_v53, %v13340_v15 }
 0x940   :  { %10603 = vmatprep.mubr.msk.f32.mxu1 %vm2749_vm2, %v4863_v23  ;;  %v558_v36 = vpop.permute.xlu1 %557 }
 0x941   :  { %v13371_v44 = vpop.permute.xlu0 %5128  ;;  %v2031_v22 = vadd.f32 %v15634_v42, %v558_v36  ;;  %v4876_v42 = vsub.f32 %v4852_v19, %v4868_v3  ;;  %v4878_v15 = vsub.f32 %v4854_v13, %v4870_v50 }
 0x942   :  { %v4855_v41 = vld [vmem:[#allocation2 + $0x3b0] sm:$0xff] }
 0x943   :  { %v11263_v57 = vpop.eup %11262  ;;  %2782 = vst.msk [vmem:[#allocation2 + $0x100] sm:$0xff] %vm2749_vm2, %v2031_v22  ;;  %v4853_v22 = vld [vmem:[#allocation2 + $0x3a0] sm:$0xff] }
 0x944   :  { %v568_v48 = vpop.permute.xlu1 %567  ;;  %v4864_v35 = vmul.f32 %v11263_v57, %v4848_v12  ;;  %v15637_v57 = vld [vmem:[#allocation21_spill] sm:$0xff] }
 0x945   :  { %v13376_v25 = vpop.permute.xlu0 %5138  ;;  %v2041_v27 = vadd.f32 %v15635_v17, %v568_v48  ;;  %v4877_v48 = vsub.f32 %v4853_v22, %v4869_v0 }
 0x946   :  { %10604 = vmatmul.mubr.msk.f32.gmra.mrb[88].mxu1 %vm2749_vm2, %v4864_v35  ;;  %v4872_v53 = vmul.f32 %v4864_v35, %v13347_v20  ;;  %v15641_v20 = vld [vmem:[#allocation24_spill] sm:$0xff] }
 0x947   :  { %2784 = vst.msk [vmem:[#allocation2 + $0x110] sm:$0xff] %vm2749_vm2, %v2041_v27  ;;  %10606 = vmatprep.mubr.msk.f32.mxu1 %vm2749_vm2, %v4873_v14  ;;  %v15639_v27 = vld [vmem:[#allocation23_spill] sm:$0xff] }
 0x948   :  { %v573_v33 = vpop.permute.xlu1 %572 }
 0x949   :  { %v13384_v52 = vpop.permute.xlu0 %5148  ;;  %v2046_v11 = vadd.f32 %v15636_v56, %v573_v33  ;;  %v4879_v33 = vsub.f32 %v4855_v41, %v4871_v47 }
 0x94a   :  { %10607 = vmatmul.mubr.msk.f32.gmra.mrb[90].mxu1 %vm2749_vm2, %v4874_v59  ;;  %v4856_v59 = vld [vmem:[#allocation2 + $0x3b8] sm:$0xff] }
 0x94b   :  { %2785 = vst.msk [vmem:[#allocation2 + $0x118] sm:$0xff] %vm2749_vm2, %v2046_v11  ;;  %10609 = vmatprep.mubr.msk.f32.mxu1 %vm2749_vm2, %v4875_v7  ;;  %v4880_v43 = vsub.f32 %v4856_v59, %v4872_v53 }
 0x94c   :  { %v583_v37 = vpop.permute.xlu1 %582 }
 0x94d   :  { %v563_v36 = vpop.permute.xlu0 %562  ;;  %v2056_v26 = vadd.f32 %v15637_v57, %v583_v37 }
 0x94e   :  { %v2036_v12 = vadd.f32 %v15638_v9, %v563_v36  ;;  %10610 = vmatmul.mubr.msk.f32.gmra.mrb[92].mxu1 %vm2749_vm2, %v4876_v42 }
 0x94f   :  { %2787 = vst.msk [vmem:[#allocation2 + $0x128] sm:$0xff] %vm2749_vm2, %v2056_v26  ;;  %10612 = vmatprep.mubr.msk.f32.mxu1 %vm2749_vm2, %v4877_v48 }
 0x950   :  { %2783 = vst.msk [vmem:[#allocation2 + $0x108] sm:$0xff] %vm2749_vm2, %v2036_v12  ;;  %v593_v60 = vpop.permute.xlu1 %592 }
 0x951   :  { %v578_v17 = vpop.permute.xlu0 %577  ;;  %v2066_v14 = vadd.f32 %v15639_v27, %v593_v60 }
 0x952   :  { %v2051_v8 = vadd.f32 %v15640_v58, %v578_v17  ;;  %10613 = vmatmul.mubr.msk.f32.gmra.mrb[94].mxu1 %vm2749_vm2, %v4878_v15 }
 0x953   :  { %2789 = vst.msk [vmem:[#allocation2 + $0x138] sm:$0xff] %vm2749_vm2, %v2066_v14  ;;  %10615 = vmatprep.mubr.msk.f32.mxu1 %vm2749_vm2, %v4879_v33 }
 0x954   :  { %2786 = vst.msk [vmem:[#allocation2 + $0x120] sm:$0xff] %vm2749_vm2, %v2051_v8  ;;  %v1003_v5 = vpop.permute.xlu1 %1002 }
 0x955   :  { %v588_v23 = vpop.permute.xlu0 %587  ;;  %v2476_v3 = vadd.f32 %v13294_v16, %v1003_v5 }
 0x956   :  { %v2061_v35 = vadd.f32 %v15641_v20, %v588_v23  ;;  %10616 = vmatmul.mubr.msk.f32.gmra.mrb[96].mxu1 %vm2749_vm2, %v4880_v43 }
 0x957   :  { %2871 = vst.msk [vmem:[#allocation2 + $0x3c8] sm:$0xff] %vm2749_vm2, %v2476_v3 }
 0x958   :  { %2788 = vst.msk [vmem:[#allocation2 + $0x130] sm:$0xff] %vm2749_vm2, %v2061_v35  ;;  %v1013_v56 = vpop.permute.xlu1 %1012 }
 0x959   :  { %v998_v11 = vpop.permute.xlu0 %997  ;;  %v2486_v7 = vadd.f32 %v13304_v40, %v1013_v56  ;;  %v167_v40 = vld [vmem:[%s15553_s5 + $0x3f0] sm:$0xff] }
 0x95a   :  { %v2471_v0 = vadd.f32 %v13299_v18, %v998_v11  ;;  %v9317_v18 = vld [vmem:[%s15555_s7 + $0xc0] sm:$0xff]  ;;  %10341 = vmatprep.mubr.msk.f32.mxu0 %vm1275_vm0, %v167_v40 }
 0x95b   :  { %2873 = vst.msk [vmem:[#allocation2 + $0x3d8] sm:$0xff] %vm2749_vm2, %v2486_v7  ;;  %10634 = vmatprep.mubr.msk.f32.mxu1 %vm3527_vm4, %v9317_v18  ;;  %v13451_v40 = vld [vmem:[%s15550_s2] sm:$0x3] }
 0x95c   :  { %2870 = vst.msk [vmem:[#allocation2 + $0x3c0] sm:$0xff] %vm2749_vm2, %v2471_v0  ;;  %v1023_v19 = vpop.permute.xlu1 %1022 }
 0x95d   :  { %v1008_v16 = vpop.permute.xlu0 %1007  ;;  %v2496_v37 = vadd.f32 %v13311_v2, %v1023_v19 }
 0x95e   :  { %v2481_v36 = vadd.f32 %v13309_v21, %v1008_v16  ;;  %v168_v21 = vld [vmem:[%s15553_s5 + $0x3f8] sm:$0xff] }
 0x95f   :  { %2875 = vst.msk [vmem:[#allocation2 + $0x3e8] sm:$0xff] %vm2749_vm2, %v2496_v37  ;;  %10342 = vmatmul.mubr.msk.f32.gmra.mrb[126].mxu0 %vm1275_vm0, %v168_v21  ;;  %v9320_v21 = vld [vmem:[%s15555_s7 + $0xd8] sm:$0xff] }
 0x960   :  { %2872 = vst.msk [vmem:[#allocation2 + $0x3d0] sm:$0xff] %vm2749_vm2, %v2481_v36 }
 0x961   :  { %v1018_v42 = vpop.permute.xlu0 %1017 }
 0x962   :  { %v2491_v22 = vadd.f32 %v13316_v54, %v1018_v42 }
 0x964   :  { %2874 = vst.msk [vmem:[#allocation2 + $0x3e0] sm:$0xff] %vm2749_vm2, %v2491_v22 }
 0xa02   :  { %v10596_v2 = vpop.f32.mrb[82].mxu1 }
 0xa03   :  { %v4995_v54 = vpop.f32.mrb[83].mxu1  ;;  %v5075_v41 = vmul.f32 %v10596_v2, %v13183_v4  ;;  %v9321_v2 = vld [vmem:[%s15555_s7 + $0xe0] sm:$0xff] }
 0xa04   :  { %v5074_v13 = vmul.f32 %v4995_v54, %v13186_v51  ;;  %v9322_v54 = vld [vmem:[%s15555_s7 + $0xe8] sm:$0xff] }
 0xa0a   :  { %v10599_v50 = vpop.f32.mrb[84].mxu1 }
 0xa0b   :  { %v5005_v57 = vpop.f32.mrb[85].mxu1  ;;  %v5077_v53 = vmul.f32 %v10599_v50, %v13201_v39  ;;  %v9323_v50 = vld [vmem:[%s15555_s7 + $0xf0] sm:$0xff] }
 0xa0c   :  { %v5076_v14 = vmul.f32 %v5005_v57, %v13191_v29  ;;  %v9324_v57 = vld [vmem:[%s15555_s7 + $0xf8] sm:$0xff] }
 0xa12   :  { %v10602_v26 = vpop.f32.mrb[86].mxu1 }
 0xa13   :  { %v5015_v9 = vpop.f32.mrb[87].mxu1  ;;  %v5079_v43 = vmul.f32 %v10602_v26, %v13213_v32  ;;  %v169_v26 = vld [vmem:[%s15553_s5 + $0x400] sm:$0xff] }
 0xa14   :  { %v5078_v51 = vmul.f32 %v5015_v9, %v13204_v34  ;;  %v170_v9 = vld [vmem:[%s15553_s5 + $0x408] sm:$0xff]  ;;  %10344 = vmatprep.mubr.msk.f32.mxu0 %vm1275_vm0, %v169_v26 }
 0xa15   :  { %10345 = vmatmul.mubr.msk.f32.gmra.mrb[128].mxu0 %vm1275_vm0, %v170_v9  ;;  %v352_v26 = vld [vmem:[%s15554_s6 + $0x428] sm:$0xff]  ;;  %v349_v9 = vld [vmem:[%s15554_s6 + $0x410] sm:$0xff] }
 0xa19   :  { %v10605_v12 = vpop.f32.mrb[88].mxu1 }
 0xa1a   :  { %v5025_v48 = vpop.f32.mrb[89].mxu1  ;;  %v5081_v29 = vmul.f32 %v10605_v12, %v13225_v28  ;;  %v9318_v28 = vld [vmem:[%s15555_s7 + $0xc8] sm:$0xff]  ;;  %v171_v12 = vld [vmem:[%s15553_s5 + $0x410] sm:$0xff] }
 0xa1b   :  { %v5080_v0 = vmul.f32 %v5025_v48, %v13216_v10  ;;  %v9319_v10 = vld [vmem:[%s15555_s7 + $0xd0] sm:$0xff]  ;;  %v172_v48 = vld [vmem:[%s15553_s5 + $0x418] sm:$0xff]  ;;  %10347 = vmatprep.mubr.msk.f32.mxu0 %vm1275_vm0, %v171_v12 }
 0xa1c   :  { %10348 = vmatmul.mubr.msk.f32.gmra.mrb[130].mxu0 %vm1275_vm0, %v172_v48 }
 0xa1d   :  { %v10608_v47 = vpop.f32.mrb[90].mxu1 }
 0xa1e   :  { %v5083_v60 = vadd.f32 %v10608_v47, %v5075_v41  ;;  %v5035_v17 = vpop.f32.mrb[91].mxu1  ;;  %v173_v41 = vld [vmem:[%s15553_s5 + $0x420] sm:$0xff] }
 0xa1f   :  { %v5082_v15 = vadd.f32 %v5074_v13, %v5035_v17  ;;  %v174_v13 = vld [vmem:[%s15553_s5 + $0x428] sm:$0xff]  ;;  %10350 = vmatprep.mubr.msk.f32.mxu0 %vm1275_vm0, %v173_v41  ;;  %v351_v41 = vld [vmem:[%s15554_s6 + $0x420] sm:$0xff] }
 0xa20   :  { %v5091_v27 = vmax.f32 %v5083_v60, 0.0  ;;  %10351 = vmatmul.mubr.msk.f32.gmra.mrb[132].mxu0 %vm1275_vm0, %v174_v13 }
 0xa21   :  { %v5090_v58 = vmax.f32 %v5082_v15, 0.0  ;;  %v10611_v8 = vpop.f32.mrb[92].mxu1 }
 0xa22   :  { %v5085_v33 = vadd.f32 %v10611_v8, %v5077_v53  ;;  %v5045_v59 = vpop.f32.mrb[93].mxu1 }
 0xa23   :  { %v11067_v5 = vpack.c.bf16 %v5091_v27, %v5090_v58  ;;  %v5084_v23 = vadd.f32 %v5076_v14, %v5045_v59 }
 0xa24   :  { %v5093_v4 = vmax.f32 %v5085_v33, 0.0 }
 0xa25   :  { %v5092_v3 = vmax.f32 %v5084_v23, 0.0  ;;  %v10614_v20 = vpop.f32.mrb[94].mxu1  ;;  %11068 = vmatprep.subr.bf16.mxu1 %v11067_v5 }
 0xa26   :  { %v5087_v35 = vadd.f32 %v10614_v20, %v5079_v43  ;;  %v5055_v56 = vpop.f32.mrb[95].mxu1  ;;  %11070 = vmatpush3.bf16.msra.mxu1 %v11067_v5 }
 0xa27   :  { %v11071_v39 = vpack.c.bf16 %v5093_v4, %v5092_v3  ;;  %v5086_v11 = vadd.f32 %v5078_v51, %v5055_v56 }
 0xa28   :  { %v5095_v7 = vmax.f32 %v5087_v35, 0.0  ;;  %v9367_v35 = vld [vmem:[%s15556_s8 + $0x108] sm:$0xff] }
 0xa29   :  { %v5094_v19 = vmax.f32 %v5086_v11, 0.0  ;;  %v10617_v16 = vpop.f32.mrb[96].mxu1  ;;  %11072 = vmatprep.subr.bf16.mxu1 %v11071_v39  ;;  %v345_v11 = vld [vmem:[%s15554_s6 + $0x3f0] sm:$0xff] }
 0xa2a   :  { %v5089_v32 = vadd.f32 %v10617_v16, %v5081_v29  ;;  %v5065_v37 = vpop.f32.mrb[97].mxu1  ;;  %11074 = vmatpush3.bf16.msra.mxu1 %v11071_v39  ;;  %v9371_v39 = vld [vmem:[%s15556_s8 + $0x128] sm:$0xff]  ;;  %v9373_v29 = vld [vmem:[%s15556_s8 + $0x138] sm:$0xff]  ;;  %v9368_v16 = vld [vmem:[%s15556_s8 + $0x110] sm:$0xff] }
 0xa2b   :  { %v11075_v34 = vpack.c.bf16 %v5095_v7, %v5094_v19  ;;  %v5088_v36 = vadd.f32 %v5080_v0, %v5065_v37  ;;  %v9366_v0 = vld [vmem:[%s15556_s8 + $0x100] sm:$0xff] }
 0xa2c   :  { %v5097_v42 = vmax.f32 %v5089_v32, 0.0  ;;  %v259_v19 = vld [vmem:[%s15554_s6 + $0x140] sm:$0xff]  ;;  %v261_v32 = vld [vmem:[%s15554_s6 + $0x150] sm:$0xff] }
 0xa2d   :  { %v5096_v22 = vmax.f32 %v5088_v36, 0.0  ;;  %11076 = vmatprep.subr.bf16.mxu1 %v11075_v34  ;;  %v9370_v37 = vld [vmem:[%s15556_s8 + $0x120] sm:$0xff]  ;;  %v9372_v36 = vld [vmem:[%s15556_s8 + $0x130] sm:$0xff] }
 0xa2e   :  { %11078 = vmatpush3.bf16.msra.mxu1 %v11075_v34  ;;  %v262_v34 = vld [vmem:[%s15554_s6 + $0x158] sm:$0xff] }
 0xa2f   :  { %v11079_v18 = vpack.c.bf16 %v5097_v42, %v5096_v22  ;;  %v264_v42 = vld [vmem:[%s15554_s6 + $0x168] sm:$0xff] }
 0xa30   :  { %v260_v22 = vld [vmem:[%s15554_s6 + $0x148] sm:$0xff] }
 0xa31   :  { %11080 = vmatprep.subr.bf16.mxu1 %v11079_v18 }
 0xa32   :  { %11082 = vmatpush3.bf16.msra.mxu1 %v11079_v18  ;;  %v13565_v56 = vpop.f32.mrb[126].mxu0  ;;  %v266_v18 = vld [vmem:[%s15554_s6 + $0x178] sm:$0xff] }
 0xa33   :  { %10646 = vmatprep.subr.msk.mxu1 %vm3298_vm3, %v13451_v40  ;;  %v13579_v7 = vpop.f32.mrb[127].mxu0 }
 0xa35   :  { %10635 = vmatmul.mubr.msk.f32.vlgmr.msra.gmra.mrb[98].mxu1 %vm3527_vm4, %v9318_v28  ;;  %v263_v28 = vld [vmem:[%s15554_s6 + $0x160] sm:$0xff] }
 0xa36   :  { %10637 = vmatprep.mubr.msk.f32.mxu1 %vm3527_vm4, %v9319_v10  ;;  %10647 = vmatpush3.msk.msra.mxu1 %vm3298_vm3, %v13451_v40  ;;  %v348_v10 = vld [vmem:[%s15554_s6 + $0x408] sm:$0xff] }
 0xa39   :  { %10638 = vmatmul.mubr.msk.f32.gmra.mrb[100].mxu1 %vm3527_vm4, %v9320_v21  ;;  %v265_v21 = vld [vmem:[%s15554_s6 + $0x170] sm:$0xff] }
 0xa3a   :  { %10640 = vmatprep.mubr.msk.f32.mxu1 %vm3527_vm4, %v9321_v2  ;;  %v350_v2 = vld [vmem:[%s15554_s6 + $0x418] sm:$0xff] }
 0xa3d   :  { %10641 = vmatmul.mubr.msk.f32.gmra.mrb[102].mxu1 %vm3527_vm4, %v9322_v54  ;;  %v347_v54 = vld [vmem:[%s15554_s6 + $0x400] sm:$0xff] }
 0xa3e   :  { %10643 = vmatprep.mubr.msk.f32.mxu1 %vm3527_vm4, %v9323_v50 }
 0xa41   :  { %10644 = vmatmul.mubr.msk.f32.gmra.mrb[104].mxu1 %vm3527_vm4, %v9324_v57 }
 0xae8   :  { %v13626_v50 = vpop.f32.mrb[128].mxu0 }
 0xae9   :  { %v13628_v57 = vpop.f32.mrb[129].mxu0 }
 0xaef   :  { %v13636_v12 = vpop.f32.mrb[130].mxu0 }
 0xaf0   :  { %v13638_v48 = vpop.f32.mrb[131].mxu0 }
 0xaf3   :  { %v13643_v13 = vpop.f32.mrb[132].mxu0 }
 0xb08   :  { %v10636_v47 = vpop.f32.mrb[98].mxu1 }
 0xb09   :  { %v5252_v60 = vadd.f32 %v10636_v47, %v13351_v61  ;;  %v5246_v17 = vpop.f32.mrb[99].mxu1  ;;  %v13645_v47 = vpop.f32.mrb[133].mxu0 }
 0xb0a   :  { %v5247_v15 = vadd.f32 %v5246_v17, %v13367_v30 }
 0xb0b   :  { %v13506_v53 = vadd.f32 %v5252_v60, %v12861_v55 }
 0xb0c   :  { %v13509_v27 = vadd.f32 %v5247_v15, %v12864_v24  ;;  %v10639_v14 = vpop.f32.mrb[100].mxu1 }
 0xb0d   :  { %5303 = vadd.xlane.f32.xlu1 %v13506_v53  ;;  %v5256_v58 = vpop.f32.mrb[101].mxu1  ;;  %v5294_v30 = vmul.f32 %v13506_v53, %v13506_v53  ;;  %v5262_v24 = vadd.f32 %v10639_v14, %v13357_v38 }
 0xb0e   :  { %v5257_v8 = vadd.f32 %v5256_v58, %v13371_v44  ;;  %5301 = vadd.xlane.f32.xlu0 %v13509_v27  ;;  %v5293_v44 = vmul.f32 %v13509_v27, %v13509_v27 }
 0xb0f   :  { %v13527_v43 = vadd.f32 %v5262_v24, %v12882_v45 }
 0xb10   :  { %v13515_v33 = vadd.f32 %v5257_v8, %v12870_v31  ;;  %v10642_v61 = vpop.f32.mrb[102].mxu1 }
 0xb11   :  { %v5266_v55 = vpop.f32.mrb[103].mxu1  ;;  %v5272_v38 = vadd.f32 %v10642_v61, %v13361_v46  ;;  %v5296_v51 = vmul.f32 %v13527_v43, %v13527_v43 }
 0xb12   :  { %5319 = vadd.xlane.f32.xlu0 %v5294_v30  ;;  %5305 = vadd.xlane.f32.xlu1 %v13515_v33  ;;  %v5267_v59 = vadd.f32 %v5266_v55, %v13376_v25  ;;  %v5295_v31 = vmul.f32 %v13515_v33, %v13515_v33 }
 0xb13   :  { %v13541_v45 = vadd.f32 %v5272_v38, %v12896_v62 }
 0xb14   :  { %v10645_v5 = vpop.f32.mrb[104].mxu1  ;;  %v13530_v4 = vadd.f32 %v5267_v59, %v12885_v49 }
 0xb15   :  { %v5276_v23 = vpop.f32.mrb[105].mxu1  ;;  %v5282_v46 = vadd.f32 %v10645_v5, %v13365_v1  ;;  %v346_v1 = vld [vmem:[%s15554_s6 + $0x3f8] sm:$0xff] }
 0xb16   :  { %5317 = vadd.xlane.f32.xlu0 %v5293_v44  ;;  %5321 = vadd.xlane.f32.xlu1 %v5295_v31  ;;  %v5277_v25 = vadd.f32 %v5276_v23, %v13384_v52  ;;  %v5297_v3 = vmul.f32 %v13530_v4, %v13530_v4  ;;  %v5298_v52 = vmul.f32 %v13541_v45, %v13541_v45 }
 0xb17   :  { %v13554_v62 = vadd.f32 %v5282_v46, %v12909_v6  ;;  %v9369_v6 = vld [vmem:[%s15556_s8 + $0x118] sm:$0xff] }
 0xb18   :  { %v13544_v49 = vadd.f32 %v5277_v25, %v12899_v63 }
 0xb19   :  { %v5300_v63 = vmul.f32 %v13554_v62, %v13554_v62 }
 0xb1a   :  { %5307 = vadd.xlane.f32.xlu0 %v13527_v43  ;;  %5309 = vadd.xlane.f32.xlu1 %v13530_v4  ;;  %v5299_v20 = vmul.f32 %v13544_v49, %v13544_v49 }
 0xb1e   :  { %5323 = vadd.xlane.f32.xlu0 %v5296_v51  ;;  %5325 = vadd.xlane.f32.xlu1 %v5297_v3 }
 0xb22   :  { %5311 = vadd.xlane.f32.xlu0 %v13541_v45  ;;  %5313 = vadd.xlane.f32.xlu1 %v13544_v49 }
 0xb26   :  { %5327 = vadd.xlane.f32.xlu0 %v5298_v52  ;;  %5329 = vadd.xlane.f32.xlu1 %v5299_v20 }
 0xb2a   :  { %5315 = vadd.xlane.f32.xlu0 %v13554_v62 }
 0xb2e   :  { %5331 = vadd.xlane.f32.xlu0 %v5300_v63 }
 0xb37   :  { %1032 = vperm.xlu1 %11199, %v346_v1  }
 0xb3b   :  { %5671 = vperm.xlu1 %11199, %v9367_v35  }
 0xb3f   :  { %5681 = vperm.xlu1 %11199, %v9369_v6  }
 0xb43   :  { %5691 = vperm.xlu1 %11199, %v9371_v39  }
 0xb44   :  { %1027 = vperm.xlu0 %11198, %v345_v11  }
 0xb47   :  { %5701 = vperm.xlu1 %11199, %v9373_v29  }
 0xb48   :  { %5666 = vperm.xlu0 %11198, %v9366_v0  }
 0xb4b   :  { %597 = vperm.xlu1 %11199, %v259_v19  }
 0xb4c   :  { %5676 = vperm.xlu0 %11198, %v9368_v16  }
 0xb4f   :  { %607 = vperm.xlu1 %11199, %v261_v32  }
 0xb50   :  { %5686 = vperm.xlu0 %11198, %v9370_v37  }
 0xb53   :  { %612 = vperm.xlu1 %11199, %v262_v34  }
 0xb54   :  { %5696 = vperm.xlu0 %11198, %v9372_v36  }
 0xb57   :  { %622 = vperm.xlu1 %11199, %v264_v42  }
 0xb58   :  { %602 = vperm.xlu0 %11198, %v260_v22  }
 0xb5b   :  { %632 = vperm.xlu1 %11199, %v266_v18  }
 0xb5c   :  { %617 = vperm.xlu0 %11198, %v263_v28  }
 0xb5f   :  { %1042 = vperm.xlu1 %11199, %v348_v10  }
 0xb60   :  { %627 = vperm.xlu0 %11198, %v265_v21  }
 0xb63   :  { %1052 = vperm.xlu1 %11199, %v350_v2  }
 0xb64   :  { %1037 = vperm.xlu0 %11198, %v347_v54  }
 0xb67   :  { %1062 = vperm.xlu1 %11199, %v352_v26  }
 0xb68   :  { %1047 = vperm.xlu0 %11198, %v349_v9  }
 0xb6c   :  { %1057 = vperm.xlu0 %11198, %v351_v41  }
 0xb9a   :  { %v5304_v60 = vpop.xlane.xlu1 %5303 }
 0xb9b   :  { %v5302_v17 = vpop.xlane.xlu0 %5301  ;;  %v13647_v15 = vmul.f32 0.0078125, %v5304_v60 }
 0xb9c   :  { %v13649_v14 = vmul.f32 0.0078125, %v5302_v17 }
 0xb9d   :  { %v5350_v61 = vmul.f32 %v13647_v15, %v13647_v15 }
 0xb9e   :  { %v5349_v59 = vmul.f32 %v13649_v14, %v13649_v14 }
 0xb9f   :  { %v5306_v58 = vpop.xlane.xlu1 %5305  ;;  %v5320_v8 = vpop.xlane.xlu0 %5319 }
 0xba0   :  { %v13653_v30 = vmul.f32 0.0078125, %v5306_v58  ;;  %v5342_v55 = vmul.f32 0.0078125, %v5320_v8 }
 0xba2   :  { %v5358_v24 = vsub.f32 %v5342_v55, %v5350_v61  ;;  %v5351_v31 = vmul.f32 %v13653_v30, %v13653_v30 }
 0xba3   :  { %v5322_v5 = vpop.xlane.xlu1 %5321  ;;  %v5318_v44 = vpop.xlane.xlu0 %5317 }
 0xba4   :  { %v5366_v23 = vmax.f32 %v5358_v24, 0.0  ;;  %v5343_v38 = vmul.f32 0.0078125, %v5322_v5  ;;  %v5341_v25 = vmul.f32 0.0078125, %v5318_v44 }
 0xba6   :  { %v5359_v51 = vsub.f32 %v5343_v38, %v5351_v31  ;;  %v5357_v3 = vsub.f32 %v5341_v25, %v5349_v59  ;;  %v5374_v46 = vadd.f32 1e-05, %v5366_v23 }
 0xba7   :  { %v5310_v52 = vpop.xlane.xlu1 %5309  ;;  %v5308_v20 = vpop.xlane.xlu0 %5307 }
 0xba8   :  { %v5367_v63 = vmax.f32 %v5359_v51, 0.0  ;;  %v5365_v1 = vmax.f32 %v5357_v3, 0.0  ;;  %v13659_v35 = vmul.f32 0.0078125, %v5310_v52  ;;  %v13661_v6 = vmul.f32 0.0078125, %v5308_v20  ;;  %v5389_v51 = vld [vmem:[#allocation2 + $0x100] sm:$0xff]  ;;  %v5390_v3 = vld [vmem:[#allocation2 + $0x108] sm:$0xff] }
 0xba9   :  { %11264 = vrsqrt.f32 %v5374_v46 }
 0xbaa   :  { %v5375_v39 = vadd.f32 1e-05, %v5367_v63  ;;  %v5373_v11 = vadd.f32 1e-05, %v5365_v1  ;;  %v5353_v19 = vmul.f32 %v13659_v35, %v13659_v35  ;;  %v5352_v16 = vmul.f32 %v13661_v6, %v13661_v6  ;;  %v5391_v1 = vld [vmem:[#allocation2 + $0x110] sm:$0xff] }
 0xbab   :  { %v5326_v29 = vpop.xlane.xlu1 %5325  ;;  %v5324_v0 = vpop.xlane.xlu0 %5323 }
 0xbac   :  { %v5345_v32 = vmul.f32 0.0078125, %v5326_v29  ;;  %v5344_v37 = vmul.f32 0.0078125, %v5324_v0  ;;  %11266 = vrsqrt.f32 %v5373_v11 }
 0xbad   :  { %11268 = vrsqrt.f32 %v5375_v39 }
 0xbae   :  { %v5361_v34 = vsub.f32 %v5345_v32, %v5353_v19  ;;  %v5360_v36 = vsub.f32 %v5344_v37, %v5352_v16  ;;  %v5393_v32 = vld [vmem:[#allocation2 + $0x120] sm:$0xff] }
 0xbaf   :  { %v5314_v42 = vpop.xlane.xlu1 %5313  ;;  %v5312_v22 = vpop.xlane.xlu0 %5311 }
 0xbb0   :  { %v5369_v18 = vmax.f32 %v5361_v34, 0.0  ;;  %v5368_v28 = vmax.f32 %v5360_v36, 0.0  ;;  %v13667_v10 = vmul.f32 0.0078125, %v5314_v42  ;;  %v13669_v21 = vmul.f32 0.0078125, %v5312_v22  ;;  %v5392_v36 = vld [vmem:[#allocation2 + $0x118] sm:$0xff] }
 0xbb2   :  { %v5377_v2 = vadd.f32 1e-05, %v5369_v18  ;;  %v5376_v54 = vadd.f32 1e-05, %v5368_v28  ;;  %v5355_v26 = vmul.f32 %v13667_v10, %v13667_v10  ;;  %v5354_v60 = vmul.f32 %v13669_v21, %v13669_v21 }
 0xbb3   :  { %v5330_v9 = vpop.xlane.xlu1 %5329  ;;  %v5328_v41 = vpop.xlane.xlu0 %5327 }
 0xbb4   :  { %11270 = vrsqrt.f32 %v5377_v2  ;;  %v5347_v17 = vmul.f32 0.0078125, %v5330_v9  ;;  %v5346_v58 = vmul.f32 0.0078125, %v5328_v41  ;;  %v11265_v8 = vpop.eup %11264  ;;  %v5395_v41 = vld [vmem:[#allocation2 + $0x130] sm:$0xff] }
 0xbb5   :  { %11272 = vrsqrt.f32 %v5376_v54  ;;  %v5406_v52 = vmul.f32 %v11265_v8, %v5390_v3  ;;  %v5394_v8 = vld [vmem:[#allocation2 + $0x128] sm:$0xff] }
 0xbb6   :  { %v5363_v61 = vsub.f32 %v5347_v17, %v5355_v26  ;;  %v5362_v55 = vsub.f32 %v5346_v58, %v5354_v60  ;;  %v11267_v24 = vpop.eup %11266 }
 0xbb7   :  { %v1033_v59 = vpop.permute.xlu1 %1032  ;;  %v5316_v5 = vpop.xlane.xlu0 %5315  ;;  %v5405_v46 = vmul.f32 %v11267_v24, %v5389_v51 }
 0xbb8   :  { %v11269_v44 = vpop.eup %11268  ;;  %v5371_v31 = vmax.f32 %v5363_v61, 0.0  ;;  %v5370_v23 = vmax.f32 %v5362_v55, 0.0  ;;  %v2506_v38 = vadd.f32 %v13565_v56, %v1033_v59  ;;  %v13676_v25 = vmul.f32 0.0078125, %v5316_v5 }
 0xbb9   :  { %10648 = vmatprep.mubr.msk.f32.mxu1 %vm2749_vm2, %v5405_v46  ;;  %v5407_v11 = vmul.f32 %v11269_v44, %v5391_v1  ;;  %v5413_v44 = vmul.f32 %v5405_v46, %v13649_v14  ;;  %v15643_v1 = vld [vmem:[#allocation28_spill] sm:$0xff] }
 0xbba   :  { %v5379_v20 = vadd.f32 1e-05, %v5371_v31  ;;  %v5378_v63 = vadd.f32 1e-05, %v5370_v23  ;;  %2877 = vst.msk [vmem:[#allocation2 + $0x3f8] sm:$0xff] %vm2749_vm2, %v2506_v38  ;;  %v5356_v56 = vmul.f32 %v13676_v25, %v13676_v25  ;;  %10649 = vmatmul.mubr.msk.f32.vlgmr.msra.gmra.mrb[106].mxu1 %vm2749_vm2, %v5406_v52  ;;  %v5396_v23 = vld [vmem:[#allocation2 + $0x138] sm:$0xff] }
 0xbbb   :  { %v13680_v39 = vpop.permute.xlu1 %5671  ;;  %v5332_v29 = vpop.xlane.xlu0 %5331  ;;  %10651 = vmatprep.mubr.msk.f32.mxu1 %vm2749_vm2, %v5407_v11  ;;  %v5398_v14 = vld [vmem:[#allocation2 + $0x3c8] sm:$0xff] }
 0xbbc   :  { %11274 = vrsqrt.f32 %v5379_v20  ;;  %v5348_v0 = vmul.f32 0.0078125, %v5332_v29  ;;  %v5397_v20 = vld [vmem:[#allocation2 + $0x3c0] sm:$0xff] }
 0xbbd   :  { %11276 = vrsqrt.f32 %v5378_v63  ;;  %v5414_v63 = vmul.f32 %v5406_v52, %v13647_v15  ;;  %v15644_v15 = vld [vmem:[#allocation27_spill] sm:$0xff] }
 0xbbe   :  { %v11271_v19 = vpop.eup %11270  ;;  %v5364_v16 = vsub.f32 %v5348_v0, %v5356_v56  ;;  %v5421_v56 = vsub.f32 %v5397_v20, %v5413_v44  ;;  %v5415_v0 = vmul.f32 %v5407_v11, %v13653_v30  ;;  %v5400_v30 = vld [vmem:[#allocation2 + $0x3d8] sm:$0xff]  ;;  %v15647_v44 = vld [vmem:[#allocation31_spill] sm:$0xff] }
 0xbbf   :  { %v11273_v37 = vpop.eup %11272  ;;  %v13686_v34 = vpop.permute.xlu1 %5681  ;;  %v5409_v42 = vmul.f32 %v11271_v19, %v5393_v32  ;;  %v5399_v32 = vld [vmem:[#allocation2 + $0x3d0] sm:$0xff] }
 0xbc0   :  { %v5372_v22 = vmax.f32 %v5364_v16, 0.0  ;;  %v5408_v18 = vmul.f32 %v11273_v37, %v5392_v36  ;;  %v5422_v16 = vsub.f32 %v5398_v14, %v5414_v63  ;;  %v5423_v36 = vsub.f32 %v5399_v32, %v5415_v0 }
 0xbc1   :  { %v5404_v63 = vld [vmem:[#allocation2 + $0x3f8] sm:$0xff] }
 0xbc2   :  { %v5380_v28 = vadd.f32 1e-05, %v5372_v22  ;;  %10652 = vmatmul.mubr.msk.f32.gmra.mrb[108].mxu1 %vm2749_vm2, %v5408_v18  ;;  %v5416_v37 = vmul.f32 %v5408_v18, %v13661_v6  ;;  %v5417_v22 = vmul.f32 %v5409_v42, %v13659_v35  ;;  %v15646_v18 = vld [vmem:[#allocation25_spill] sm:$0xff] }
 0xbc3   :  { %10654 = vmatprep.mubr.msk.f32.mxu1 %vm2749_vm2, %v5409_v42  ;;  %v13690_v2 = vpop.permute.xlu1 %5691  ;;  %v1028_v54 = vpop.permute.xlu0 %1027  ;;  %v5402_v42 = vld [vmem:[#allocation2 + $0x3e8] sm:$0xff] }
 0xbc4   :  { %11278 = vrsqrt.f32 %v5380_v28  ;;  %v2501_v26 = vadd.f32 %v13579_v7, %v1028_v54  ;;  %v15642_v7 = vld [vmem:[#allocation26_spill] sm:$0xff]  ;;  %v5424_v54 = vsub.f32 %v5400_v30, %v5416_v37 }
 0xbc6   :  { %v11275_v9 = vpop.eup %11274  ;;  %2876 = vst.msk [vmem:[#allocation2 + $0x3f0] sm:$0xff] %vm2749_vm2, %v2501_v26  ;;  %v5401_v26 = vld [vmem:[#allocation2 + $0x3e0] sm:$0xff] }
 0xbc7   :  { %v11277_v60 = vpop.eup %11276  ;;  %v13694_v17 = vpop.permute.xlu1 %5701  ;;  %v5411_v61 = vmul.f32 %v11275_v9, %v5395_v41  ;;  %v15645_v41 = vld [vmem:[#allocation29_spill] sm:$0xff] }
 0xbc8   :  { %v13696_v58 = vpop.permute.xlu0 %5666  ;;  %v5410_v55 = vmul.f32 %v11277_v60, %v5394_v8  ;;  %v5425_v8 = vsub.f32 %v5401_v26, %v5417_v22 }
 0xbca   :  { %10655 = vmatmul.mubr.msk.f32.gmra.mrb[110].mxu1 %vm2749_vm2, %v5410_v55  ;;  %v5418_v9 = vmul.f32 %v5410_v55, %v13669_v21 }
 0xbcb   :  { %10657 = vmatprep.mubr.msk.f32.mxu1 %vm2749_vm2, %v5411_v61  ;;  %v598_v24 = vpop.permute.xlu1 %597 }
 0xbcc   :  { %v13700_v59 = vpop.permute.xlu0 %5676  ;;  %v2071_v5 = vadd.f32 %v15642_v7, %v598_v24  ;;  %v5419_v24 = vmul.f32 %v5411_v61, %v13667_v10  ;;  %v5426_v21 = vsub.f32 %v5402_v42, %v5418_v9 }
 0xbcd   :  { %v5403_v35 = vld [vmem:[#allocation2 + $0x3f0] sm:$0xff] }
 0xbce   :  { %v11279_v31 = vpop.eup %11278  ;;  %2790 = vst.msk [vmem:[#allocation2 + $0x140] sm:$0xff] %vm2749_vm2, %v2071_v5  ;;  %v5427_v20 = vsub.f32 %v5403_v35, %v5419_v24 }
 0xbcf   :  { %v608_v38 = vpop.permute.xlu1 %607  ;;  %v5412_v3 = vmul.f32 %v11279_v31, %v5396_v23  ;;  %v15648_v23 = vld [vmem:[#allocation30_spill] sm:$0xff] }
 0xbd0   :  { %v13705_v51 = vpop.permute.xlu0 %5686  ;;  %v2081_v29 = vadd.f32 %v15643_v1, %v608_v38 }
 0xbd1   :  { %10658 = vmatmul.mubr.msk.f32.gmra.mrb[112].mxu1 %vm2749_vm2, %v5412_v3  ;;  %v5420_v55 = vmul.f32 %v5412_v3, %v13676_v25  ;;  %v15649_v25 = vld [vmem:[#allocation32_spill] sm:$0xff] }
 0xbd2   :  { %2792 = vst.msk [vmem:[#allocation2 + $0x150] sm:$0xff] %vm2749_vm2, %v2081_v29  ;;  %10660 = vmatprep.mubr.msk.f32.mxu1 %vm2749_vm2, %v5421_v56 }
 0xbd3   :  { %v613_v46 = vpop.permute.xlu1 %612  ;;  %v5428_v1 = vsub.f32 %v5404_v63, %v5420_v55 }
 0xbd4   :  { %v13713_v19 = vpop.permute.xlu0 %5696  ;;  %v2086_v52 = vadd.f32 %v15644_v15, %v613_v46 }
 0xbd5   :  { %10661 = vmatmul.mubr.msk.f32.gmra.mrb[114].mxu1 %vm2749_vm2, %v5422_v16 }
 0xbd6   :  { %2793 = vst.msk [vmem:[#allocation2 + $0x158] sm:$0xff] %vm2749_vm2, %v2086_v52  ;;  %10663 = vmatprep.mubr.msk.f32.mxu1 %vm2749_vm2, %v5423_v36 }
 0xbd7   :  { %v623_v11 = vpop.permute.xlu1 %622 }
 0xbd8   :  { %v603_v28 = vpop.permute.xlu0 %602  ;;  %v2096_v6 = vadd.f32 %v15645_v41, %v623_v11 }
 0xbd9   :  { %v2076_v60 = vadd.f32 %v15646_v18, %v603_v28  ;;  %10664 = vmatmul.mubr.msk.f32.gmra.mrb[116].mxu1 %vm2749_vm2, %v5424_v54 }
 0xbda   :  { %2795 = vst.msk [vmem:[#allocation2 + $0x168] sm:$0xff] %vm2749_vm2, %v2096_v6  ;;  %10666 = vmatprep.mubr.msk.f32.mxu1 %vm2749_vm2, %v5425_v8 }
 0xbdb   :  { %2791 = vst.msk [vmem:[#allocation2 + $0x148] sm:$0xff] %vm2749_vm2, %v2076_v60  ;;  %v633_v7 = vpop.permute.xlu1 %632 }
 0xbdc   :  { %v618_v5 = vpop.permute.xlu0 %617  ;;  %v2106_v31 = vadd.f32 %v15647_v44, %v633_v7 }
 0xbdd   :  { %v2091_v38 = vadd.f32 %v15648_v23, %v618_v5  ;;  %10667 = vmatmul.mubr.msk.f32.gmra.mrb[118].mxu1 %vm2749_vm2, %v5426_v21 }
 0xbde   :  { %2797 = vst.msk [vmem:[#allocation2 + $0x178] sm:$0xff] %vm2749_vm2, %v2106_v31  ;;  %10669 = vmatprep.mubr.msk.f32.mxu1 %vm2749_vm2, %v5427_v20 }
 0xbdf   :  { %2794 = vst.msk [vmem:[#allocation2 + $0x160] sm:$0xff] %vm2749_vm2, %v2091_v38  ;;  %v1043_v10 = vpop.permute.xlu1 %1042 }
 0xbe0   :  { %v628_v61 = vpop.permute.xlu0 %627  ;;  %v2516_v29 = vadd.f32 %v13626_v50, %v1043_v10 }
 0xbe1   :  { %v2101_v3 = vadd.f32 %v15649_v25, %v628_v61  ;;  %10670 = vmatmul.mubr.msk.f32.gmra.mrb[120].mxu1 %vm2749_vm2, %v5428_v1 }
 0xbe2   :  { %2879 = vst.msk [vmem:[#allocation2 + $0x408] sm:$0xff] %vm2749_vm2, %v2516_v29 }
 0xbe3   :  { %2796 = vst.msk [vmem:[#allocation2 + $0x170] sm:$0xff] %vm2749_vm2, %v2101_v3  ;;  %v1053_v56 = vpop.permute.xlu1 %1052 }
 0xbe4   :  { %v1038_v0 = vpop.permute.xlu0 %1037  ;;  %v2526_v14 = vadd.f32 %v13636_v12, %v1053_v56  ;;  %v175_v12 = vld [vmem:[%s15553_s5 + $0x430] sm:$0xff] }
 0xbe5   :  { %v2511_v46 = vadd.f32 %v13628_v57, %v1038_v0  ;;  %v9358_v57 = vld [vmem:[%s15555_s7 + $0x100] sm:$0xff]  ;;  %10353 = vmatprep.mubr.msk.f32.mxu0 %vm1275_vm0, %v175_v12  ;;  %v9360_v12 = vld [vmem:[%s15555_s7 + $0x110] sm:$0xff] }
 0xbe6   :  { %2881 = vst.msk [vmem:[#allocation2 + $0x418] sm:$0xff] %vm2749_vm2, %v2526_v14  ;;  %10688 = vmatprep.mubr.msk.f32.mxu1 %vm3527_vm4, %v9358_v57  ;;  %v9359_v57 = vld [vmem:[%s15555_s7 + $0x108] sm:$0xff] }
 0xbe7   :  { %2878 = vst.msk [vmem:[#allocation2 + $0x400] sm:$0xff] %vm2749_vm2, %v2511_v46  ;;  %v1063_v16 = vpop.permute.xlu1 %1062 }
 0xbe8   :  { %v1048_v50 = vpop.permute.xlu0 %1047  ;;  %v2536_v32 = vadd.f32 %v13643_v13, %v1063_v16 }
 0xbe9   :  { %v2521_v37 = vadd.f32 %v13638_v48, %v1048_v50  ;;  %v176_v48 = vld [vmem:[%s15553_s5 + $0x438] sm:$0xff] }
 0xbea   :  { %2883 = vst.msk [vmem:[#allocation2 + $0x428] sm:$0xff] %vm2749_vm2, %v2536_v32  ;;  %10354 = vmatmul.mubr.msk.f32.gmra.mrb[134].mxu0 %vm1275_vm0, %v176_v48  ;;  %v9361_v48 = vld [vmem:[%s15555_s7 + $0x118] sm:$0xff] }
 0xbeb   :  { %2880 = vst.msk [vmem:[#allocation2 + $0x410] sm:$0xff] %vm2749_vm2, %v2521_v37 }
 0xbec   :  { %v1058_v15 = vpop.permute.xlu0 %1057 }
 0xbed   :  { %v2531_v52 = vadd.f32 %v13645_v47, %v1058_v15 }
 0xbef   :  { %2882 = vst.msk [vmem:[#allocation2 + $0x420] sm:$0xff] %vm2749_vm2, %v2531_v52 }
 0xc8d   :  { %v10650_v13 = vpop.f32.mrb[106].mxu1 }
 0xc8e   :  { %v5543_v47 = vpop.f32.mrb[107].mxu1  ;;  %v5623_v26 = vmul.f32 %v10650_v13, %v13506_v53  ;;  %v9362_v13 = vld [vmem:[%s15555_s7 + $0x120] sm:$0xff] }
 0xc8f   :  { %v5622_v9 = vmul.f32 %v5543_v47, %v13509_v27  ;;  %v9363_v47 = vld [vmem:[%s15555_s7 + $0x128] sm:$0xff] }
 0xc95   :  { %v10653_v36 = vpop.f32.mrb[108].mxu1 }
 0xc96   :  { %v5553_v22 = vpop.f32.mrb[109].mxu1  ;;  %v5625_v8 = vmul.f32 %v10653_v36, %v13527_v43  ;;  %v9364_v36 = vld [vmem:[%s15555_s7 + $0x130] sm:$0xff] }
 0xc97   :  { %v5624_v42 = vmul.f32 %v5553_v22, %v13515_v33  ;;  %v177_v22 = vld [vmem:[%s15553_s5 + $0x440] sm:$0xff] }
 0xc98   :  { %10356 = vmatprep.mubr.msk.f32.mxu0 %vm1275_vm0, %v177_v22 }
 0xc9d   :  { %v10656_v30 = vpop.f32.mrb[110].mxu1 }
 0xc9e   :  { %v5563_v11 = vpop.f32.mrb[111].mxu1  ;;  %v5627_v31 = vmul.f32 %v10656_v30, %v13541_v45  ;;  %v178_v30 = vld [vmem:[%s15553_s5 + $0x448] sm:$0xff] }
 0xc9f   :  { %v5626_v38 = vmul.f32 %v5563_v11, %v13530_v4  ;;  %10357 = vmatmul.mubr.msk.f32.gmra.mrb[136].mxu0 %vm1275_vm0, %v178_v30  ;;  %v179_v11 = vld [vmem:[%s15553_s5 + $0x450] sm:$0xff] }
 0xca0   :  { %10359 = vmatprep.mubr.msk.f32.mxu0 %vm1275_vm0, %v179_v11  ;;  %v357_v30 = vld [vmem:[%s15554_s6 + $0x450] sm:$0xff] }
 0xca4   :  { %v10659_v28 = vpop.f32.mrb[112].mxu1 }
 0xca5   :  { %v5573_v54 = vpop.f32.mrb[113].mxu1  ;;  %v5629_v25 = vmul.f32 %v10659_v28, %v13554_v62  ;;  %v180_v28 = vld [vmem:[%s15553_s5 + $0x458] sm:$0xff] }
 0xca6   :  { %v5628_v56 = vmul.f32 %v5573_v54, %v13544_v49  ;;  %10360 = vmatmul.mubr.msk.f32.gmra.mrb[138].mxu0 %vm1275_vm0, %v180_v28  ;;  %v181_v54 = vld [vmem:[%s15553_s5 + $0x460] sm:$0xff] }
 0xca7   :  { %10362 = vmatprep.mubr.msk.f32.mxu0 %vm1275_vm0, %v181_v54  ;;  %v359_v54 = vld [vmem:[%s15554_s6 + $0x460] sm:$0xff] }
 0xca8   :  { %v10662_v41 = vpop.f32.mrb[114].mxu1 }
 0xca9   :  { %v5631_v6 = vadd.f32 %v10662_v41, %v5623_v26  ;;  %v5583_v18 = vpop.f32.mrb[115].mxu1  ;;  %v182_v26 = vld [vmem:[%s15553_s5 + $0x468] sm:$0xff] }
 0xcaa   :  { %v5630_v60 = vadd.f32 %v5622_v9, %v5583_v18  ;;  %10363 = vmatmul.mubr.msk.f32.gmra.mrb[140].mxu0 %vm1275_vm0, %v182_v26 }
 0xcab   :  { %v5639_v35 = vmax.f32 %v5631_v6, 0.0 }
 0xcac   :  { %v5638_v24 = vmax.f32 %v5630_v60, 0.0  ;;  %v10665_v7 = vpop.f32.mrb[116].mxu1 }
 0xcad   :  { %v5633_v5 = vadd.f32 %v10665_v7, %v5625_v8  ;;  %v5593_v21 = vpop.f32.mrb[117].mxu1 }
 0xcae   :  { %v11083_v55 = vpack.c.bf16 %v5639_v35, %v5638_v24  ;;  %v5632_v44 = vadd.f32 %v5624_v42, %v5593_v21 }
 0xcaf   :  { %v5641_v23 = vmax.f32 %v5633_v5, 0.0 }
 0xcb0   :  { %v5640_v20 = vmax.f32 %v5632_v44, 0.0  ;;  %v10668_v63 = vpop.f32.mrb[118].mxu1  ;;  %11084 = vmatprep.subr.bf16.mxu1 %v11083_v55 }
 0xcb1   :  { %v5635_v10 = vadd.f32 %v10668_v63, %v5627_v31  ;;  %v5603_v61 = vpop.f32.mrb[119].mxu1  ;;  %11086 = vmatpush3.bf16.msra.mxu1 %v11083_v55  ;;  %v9408_v63 = vld [vmem:[%s15556_s8 + $0x148] sm:$0xff] }
 0xcb2   :  { %v11087_v1 = vpack.c.bf16 %v5641_v23, %v5640_v20  ;;  %v5634_v29 = vadd.f32 %v5626_v38, %v5603_v61  ;;  %v9412_v61 = vld [vmem:[%s15556_s8 + $0x168] sm:$0xff] }
 0xcb3   :  { %v5643_v3 = vmax.f32 %v5635_v10, 0.0 }
 0xcb4   :  { %v5642_v0 = vmax.f32 %v5634_v29, 0.0  ;;  %v10671_v14 = vpop.f32.mrb[120].mxu1  ;;  %11088 = vmatprep.subr.bf16.mxu1 %v11087_v1  ;;  %v9414_v29 = vld [vmem:[%s15556_s8 + $0x178] sm:$0xff] }
 0xcb5   :  { %v5637_v46 = vadd.f32 %v10671_v14, %v5629_v25  ;;  %v5613_v16 = vpop.f32.mrb[121].mxu1  ;;  %11090 = vmatpush3.bf16.msra.mxu1 %v11087_v1  ;;  %v353_v1 = vld [vmem:[%s15554_s6 + $0x430] sm:$0xff] }
 0xcb6   :  { %v11091_v50 = vpack.c.bf16 %v5643_v3, %v5642_v0  ;;  %v5636_v32 = vadd.f32 %v5628_v56, %v5613_v16  ;;  %v9407_v3 = vld [vmem:[%s15556_s8 + $0x140] sm:$0xff]  ;;  %v9409_v0 = vld [vmem:[%s15556_s8 + $0x150] sm:$0xff]  ;;  %v270_v16 = vld [vmem:[%s15554_s6 + $0x198] sm:$0xff] }
 0xcb7   :  { %v5645_v37 = vmax.f32 %v5637_v46, 0.0  ;;  %v267_v56 = vld [vmem:[%s15554_s6 + $0x180] sm:$0xff]  ;;  %v269_v14 = vld [vmem:[%s15554_s6 + $0x190] sm:$0xff] }
 0xcb8   :  { %v5644_v15 = vmax.f32 %v5636_v32, 0.0  ;;  %11092 = vmatprep.subr.bf16.mxu1 %v11091_v50  ;;  %v9411_v46 = vld [vmem:[%s15556_s8 + $0x160] sm:$0xff]  ;;  %v272_v32 = vld [vmem:[%s15554_s6 + $0x1a8] sm:$0xff] }
 0xcb9   :  { %11094 = vmatpush3.bf16.msra.mxu1 %v11091_v50  ;;  %v9413_v50 = vld [vmem:[%s15556_s8 + $0x170] sm:$0xff] }
 0xcba   :  { %v11095_v52 = vpack.c.bf16 %v5645_v37, %v5644_v15  ;;  %v268_v37 = vld [vmem:[%s15554_s6 + $0x188] sm:$0xff]  ;;  %v274_v15 = vld [vmem:[%s15554_s6 + $0x1b8] sm:$0xff] }
 0xcbc   :  { %11096 = vmatprep.subr.bf16.mxu1 %v11095_v52 }
 0xcbd   :  { %11098 = vmatpush3.bf16.msra.mxu1 %v11095_v52  ;;  %v13881_v10 = vpop.f32.mrb[134].mxu0  ;;  %v271_v52 = vld [vmem:[%s15554_s6 + $0x1a0] sm:$0xff] }
 0xcbe   :  { %10700 = vmatprep.subr.msk.mxu1 %vm3298_vm3, %v13451_v40  ;;  %v13895_v25 = vpop.f32.mrb[135].mxu0 }
 0xcc0   :  { %10689 = vmatmul.mubr.msk.f32.vlgmr.msra.gmra.mrb[122].mxu1 %vm3527_vm4, %v9359_v57  ;;  %v356_v57 = vld [vmem:[%s15554_s6 + $0x448] sm:$0xff] }
 0xcc1   :  { %10691 = vmatprep.mubr.msk.f32.mxu1 %vm3527_vm4, %v9360_v12  ;;  %10701 = vmatpush3.msk.msra.mxu1 %vm3298_vm3, %v13451_v40  ;;  %v9365_v40 = vld [vmem:[%s15555_s7 + $0x138] sm:$0xff]  ;;  %v273_v12 = vld [vmem:[%s15554_s6 + $0x1b0] sm:$0xff] }
 0xcc4   :  { %10692 = vmatmul.mubr.msk.f32.gmra.mrb[124].mxu1 %vm3527_vm4, %v9361_v48  ;;  %v358_v48 = vld [vmem:[%s15554_s6 + $0x458] sm:$0xff] }
 0xcc5   :  { %10694 = vmatprep.mubr.msk.f32.mxu1 %vm3527_vm4, %v9362_v13 }
 0xcc8   :  { %10695 = vmatmul.mubr.msk.f32.gmra.mrb[126].mxu1 %vm3527_vm4, %v9363_v47  ;;  %v355_v47 = vld [vmem:[%s15554_s6 + $0x440] sm:$0xff] }
 0xcc9   :  { %10697 = vmatprep.mubr.msk.f32.mxu1 %vm3527_vm4, %v9364_v36 }
 0xccc   :  { %10698 = vmatmul.mubr.msk.f32.gmra.mrb[128].mxu1 %vm3527_vm4, %v9365_v40  ;;  %v360_v40 = vld [vmem:[%s15554_s6 + $0x468] sm:$0xff] }
 0xd72   :  { %v13939_v13 = vpop.f32.mrb[136].mxu0 }
 0xd73   :  { %v13944_v36 = vpop.f32.mrb[137].mxu0 }
 0xd79   :  { %v13949_v22 = vpop.f32.mrb[138].mxu0 }
 0xd7a   :  { %v13954_v11 = vpop.f32.mrb[139].mxu0 }
 0xd7d   :  { %v13956_v28 = vpop.f32.mrb[140].mxu0 }
 0xd7e   :  { %v13961_v26 = vpop.f32.mrb[141].mxu0 }
 0xd93   :  { %v10690_v9 = vpop.f32.mrb[122].mxu1 }
 0xd94   :  { %v13828_v41 = vadd.f32 %v10690_v9, %v13680_v39  ;;  %v5794_v6 = vpop.f32.mrb[123].mxu1 }
 0xd95   :  { %v13831_v18 = vadd.f32 %v5794_v6, %v13696_v58 }
 0xd96   :  { %5843 = vadd.xlane.f32.xlu1 %v13828_v41  ;;  %v5834_v42 = vmul.f32 %v13828_v41, %v13828_v41 }
 0xd97   :  { %v10693_v60 = vpop.f32.mrb[124].mxu1  ;;  %5841 = vadd.xlane.f32.xlu0 %v13831_v18  ;;  %v5833_v58 = vmul.f32 %v13831_v18, %v13831_v18 }
 0xd98   :  { %v5804_v8 = vpop.f32.mrb[125].mxu1 }
 0xd99   :  { %v13836_v35 = vadd.f32 %v5804_v8, %v13700_v59  ;;  %v13846_v59 = vadd.f32 %v10693_v60, %v13686_v34 }
 0xd9b   :  { %v10696_v24 = vpop.f32.mrb[126].mxu1  ;;  %5859 = vadd.xlane.f32.xlu0 %v5834_v42  ;;  %5845 = vadd.xlane.f32.xlu1 %v13836_v35  ;;  %v5835_v7 = vmul.f32 %v13836_v35, %v13836_v35  ;;  %v5836_v44 = vmul.f32 %v13846_v59, %v13846_v59 }
 0xd9c   :  { %v5814_v39 = vpop.f32.mrb[127].mxu1  ;;  %v13858_v23 = vadd.f32 %v10696_v24, %v13690_v2 }
 0xd9d   :  { %v13849_v55 = vadd.f32 %v5814_v39, %v13705_v51 }
 0xd9e   :  { %v5838_v51 = vmul.f32 %v13858_v23, %v13858_v23 }
 0xd9f   :  { %v10699_v5 = vpop.f32.mrb[128].mxu1  ;;  %5857 = vadd.xlane.f32.xlu0 %v5833_v58  ;;  %5861 = vadd.xlane.f32.xlu1 %v5835_v7  ;;  %v5837_v31 = vmul.f32 %v13849_v55, %v13849_v55 }
 0xda0   :  { %v5824_v21 = vpop.f32.mrb[129].mxu1  ;;  %v13870_v20 = vadd.f32 %v10699_v5, %v13694_v17  ;;  %v9410_v17 = vld [vmem:[%s15556_s8 + $0x158] sm:$0xff] }
 0xda1   :  { %v13861_v34 = vadd.f32 %v5824_v21, %v13713_v19  ;;  %v354_v19 = vld [vmem:[%s15554_s6 + $0x438] sm:$0xff] }
 0xda2   :  { %v5840_v2 = vmul.f32 %v13870_v20, %v13870_v20 }
 0xda3   :  { %5847 = vadd.xlane.f32.xlu0 %v13846_v59  ;;  %5849 = vadd.xlane.f32.xlu1 %v13849_v55  ;;  %v5839_v38 = vmul.f32 %v13861_v34, %v13861_v34 }
 0xda7   :  { %5863 = vadd.xlane.f32.xlu0 %v5836_v44  ;;  %5865 = vadd.xlane.f32.xlu1 %v5837_v31 }
 0xdab   :  { %5851 = vadd.xlane.f32.xlu0 %v13858_v23  ;;  %5853 = vadd.xlane.f32.xlu1 %v13861_v34 }
 0xdaf   :  { %5867 = vadd.xlane.f32.xlu0 %v5838_v51  ;;  %5869 = vadd.xlane.f32.xlu1 %v5839_v38 }
 0xdb3   :  { %5855 = vadd.xlane.f32.xlu0 %v13870_v20 }
 0xdb7   :  { %5871 = vadd.xlane.f32.xlu0 %v5840_v2 }
 0xdc0   :  { %1072 = vperm.xlu1 %11199, %v354_v19  }
 0xdc4   :  { %6211 = vperm.xlu1 %11199, %v9408_v63  }
 0xdc8   :  { %6221 = vperm.xlu1 %11199, %v9410_v17  }
 0xdcc   :  { %6231 = vperm.xlu1 %11199, %v9412_v61  }
 0xdcd   :  { %1067 = vperm.xlu0 %11198, %v353_v1  }
 0xdd0   :  { %6241 = vperm.xlu1 %11199, %v9414_v29  }
 0xdd1   :  { %6206 = vperm.xlu0 %11198, %v9407_v3  }
 0xdd4   :  { %637 = vperm.xlu1 %11199, %v267_v56  }
 0xdd5   :  { %6216 = vperm.xlu0 %11198, %v9409_v0  }
 0xdd8   :  { %647 = vperm.xlu1 %11199, %v269_v14  }
 0xdd9   :  { %6226 = vperm.xlu0 %11198, %v9411_v46  }
 0xddc   :  { %652 = vperm.xlu1 %11199, %v270_v16  }
 0xddd   :  { %6236 = vperm.xlu0 %11198, %v9413_v50  }
 0xde0   :  { %662 = vperm.xlu1 %11199, %v272_v32  }
 0xde1   :  { %642 = vperm.xlu0 %11198, %v268_v37  }
 0xde4   :  { %672 = vperm.xlu1 %11199, %v274_v15  }
 0xde5   :  { %657 = vperm.xlu0 %11198, %v271_v52  }
 0xde8   :  { %1082 = vperm.xlu1 %11199, %v356_v57  }
 0xde9   :  { %667 = vperm.xlu0 %11198, %v273_v12  }
 0xdec   :  { %1092 = vperm.xlu1 %11199, %v358_v48  }
 0xded   :  { %1077 = vperm.xlu0 %11198, %v355_v47  }
 0xdf0   :  { %1102 = vperm.xlu1 %11199, %v360_v40  }
 0xdf1   :  { %1087 = vperm.xlu0 %11198, %v357_v30  }
 0xdf5   :  { %1097 = vperm.xlu0 %11198, %v359_v54  }
 0xe23   :  { %v5844_v9 = vpop.xlane.xlu1 %5843 }
 0xe24   :  { %v5842_v6 = vpop.xlane.xlu0 %5841  ;;  %v13963_v60 = vmul.f32 0.0078125, %v5844_v9 }
 0xe25   :  { %v13965_v8 = vmul.f32 0.0078125, %v5842_v6 }
 0xe26   :  { %v5890_v39 = vmul.f32 %v13963_v60, %v13963_v60 }
 0xe27   :  { %v5889_v21 = vmul.f32 %v13965_v8, %v13965_v8 }
 0xe28   :  { %v5846_v42 = vpop.xlane.xlu1 %5845  ;;  %v5860_v24 = vpop.xlane.xlu0 %5859 }
 0xe29   :  { %v13969_v58 = vmul.f32 0.0078125, %v5846_v42  ;;  %v5882_v7 = vmul.f32 0.0078125, %v5860_v24 }
 0xe2b   :  { %v5898_v5 = vsub.f32 %v5882_v7, %v5890_v39  ;;  %v5891_v51 = vmul.f32 %v13969_v58, %v13969_v58 }
 0xe2c   :  { %v5862_v44 = vpop.xlane.xlu1 %5861  ;;  %v5858_v31 = vpop.xlane.xlu0 %5857 }
 0xe2d   :  { %v5906_v38 = vmax.f32 %v5898_v5, 0.0  ;;  %v5883_v2 = vmul.f32 0.0078125, %v5862_v44  ;;  %v5881_v19 = vmul.f32 0.0078125, %v5858_v31 }
 0xe2f   :  { %v5899_v63 = vsub.f32 %v5883_v2, %v5891_v51  ;;  %v5897_v17 = vsub.f32 %v5881_v19, %v5889_v21  ;;  %v5914_v61 = vadd.f32 1e-05, %v5906_v38 }
 0xe30   :  { %v5850_v1 = vpop.xlane.xlu1 %5849  ;;  %v5848_v29 = vpop.xlane.xlu0 %5847 }
 0xe31   :  { %v5907_v3 = vmax.f32 %v5899_v63, 0.0  ;;  %v5905_v56 = vmax.f32 %v5897_v17, 0.0  ;;  %v13975_v0 = vmul.f32 0.0078125, %v5850_v1  ;;  %v13977_v14 = vmul.f32 0.0078125, %v5848_v29 }
 0xe32   :  { %11280 = vrsqrt.f32 %v5914_v61 }
 0xe33   :  { %v5915_v46 = vadd.f32 1e-05, %v5907_v3  ;;  %v5913_v16 = vadd.f32 1e-05, %v5905_v56  ;;  %v5893_v37 = vmul.f32 %v13975_v0, %v13975_v0  ;;  %v5892_v15 = vmul.f32 %v13977_v14, %v13977_v14 }
 0xe34   :  { %v5866_v50 = vpop.xlane.xlu1 %5865  ;;  %v5864_v32 = vpop.xlane.xlu0 %5863 }
 0xe35   :  { %v5885_v52 = vmul.f32 0.0078125, %v5866_v50  ;;  %v5884_v57 = vmul.f32 0.0078125, %v5864_v32  ;;  %11282 = vrsqrt.f32 %v5913_v16  ;;  %v5930_v16 = vld [vmem:[#allocation2 + $0x148] sm:$0xff] }
 0xe36   :  { %11284 = vrsqrt.f32 %v5915_v46  ;;  %v5929_v46 = vld [vmem:[#allocation2 + $0x140] sm:$0xff] }
 0xe37   :  { %v5901_v12 = vsub.f32 %v5885_v52, %v5893_v37  ;;  %v5900_v48 = vsub.f32 %v5884_v57, %v5892_v15  ;;  %v5931_v52 = vld [vmem:[#allocation2 + $0x150] sm:$0xff] }
 0xe38   :  { %v5854_v47 = vpop.xlane.xlu1 %5853  ;;  %v5852_v40 = vpop.xlane.xlu0 %5851 }
 0xe39   :  { %v5909_v30 = vmax.f32 %v5901_v12, 0.0  ;;  %v5908_v54 = vmax.f32 %v5900_v48, 0.0  ;;  %v13983_v9 = vmul.f32 0.0078125, %v5854_v47  ;;  %v13985_v6 = vmul.f32 0.0078125, %v5852_v40 }
 0xe3b   :  { %v5917_v42 = vadd.f32 1e-05, %v5909_v30  ;;  %v5916_v24 = vadd.f32 1e-05, %v5908_v54  ;;  %v5895_v39 = vmul.f32 %v13983_v9, %v13983_v9  ;;  %v5894_v21 = vmul.f32 %v13985_v6, %v13985_v6  ;;  %v5933_v54 = vld [vmem:[#allocation2 + $0x160] sm:$0xff] }
 0xe3c   :  { %v5870_v7 = vpop.xlane.xlu1 %5869  ;;  %v5868_v5 = vpop.xlane.xlu0 %5867 }
 0xe3d   :  { %11286 = vrsqrt.f32 %v5917_v42  ;;  %v5887_v44 = vmul.f32 0.0078125, %v5870_v7  ;;  %v5886_v31 = vmul.f32 0.0078125, %v5868_v5  ;;  %v11281_v51 = vpop.eup %11280 }
 0xe3e   :  { %11288 = vrsqrt.f32 %v5916_v24  ;;  %v5946_v32 = vmul.f32 %v11281_v51, %v5930_v16 }
 0xe3f   :  { %v5903_v38 = vsub.f32 %v5887_v44, %v5895_v39  ;;  %v5902_v2 = vsub.f32 %v5886_v31, %v5894_v21  ;;  %v11283_v19 = vpop.eup %11282  ;;  %v5932_v39 = vld [vmem:[#allocation2 + $0x158] sm:$0xff] }
 0xe40   :  { %v1073_v63 = vpop.permute.xlu1 %1072  ;;  %v5856_v17 = vpop.xlane.xlu0 %5855  ;;  %v5945_v50 = vmul.f32 %v11283_v19, %v5929_v46  ;;  %v5935_v19 = vld [vmem:[#allocation2 + $0x170] sm:$0xff] }
 0xe41   :  { %v11285_v61 = vpop.eup %11284  ;;  %v5911_v1 = vmax.f32 %v5903_v38, 0.0  ;;  %v5910_v29 = vmax.f32 %v5902_v2, 0.0  ;;  %v2546_v3 = vadd.f32 %v13881_v10, %v1073_v63  ;;  %v13992_v56 = vmul.f32 0.0078125, %v5856_v17 }
 0xe42   :  { %10702 = vmatprep.mubr.msk.f32.mxu1 %vm2749_vm2, %v5945_v50  ;;  %v5947_v12 = vmul.f32 %v11285_v61, %v5931_v52 }
 0xe43   :  { %v5919_v37 = vadd.f32 1e-05, %v5911_v1  ;;  %v5918_v15 = vadd.f32 1e-05, %v5910_v29  ;;  %2885 = vst.msk [vmem:[#allocation2 + $0x438] sm:$0xff] %vm2749_vm2, %v2546_v3  ;;  %v5896_v10 = vmul.f32 %v13992_v56, %v13992_v56  ;;  %10703 = vmatmul.mubr.msk.f32.vlgmr.msra.gmra.mrb[130].mxu1 %vm2749_vm2, %v5946_v32  ;;  %v5934_v1 = vld [vmem:[#allocation2 + $0x168] sm:$0xff] }
 0xe44   :  { %v13996_v57 = vpop.permute.xlu1 %6211  ;;  %v5872_v48 = vpop.xlane.xlu0 %5871  ;;  %10705 = vmatprep.mubr.msk.f32.mxu1 %vm2749_vm2, %v5947_v12 }
 0xe45   :  { %11290 = vrsqrt.f32 %v5919_v37  ;;  %v5888_v47 = vmul.f32 0.0078125, %v5872_v48  ;;  %v5936_v48 = vld [vmem:[#allocation2 + $0x178] sm:$0xff] }
 0xe46   :  { %11292 = vrsqrt.f32 %v5918_v15  ;;  %v5953_v15 = vmul.f32 %v5945_v50, %v13965_v8  ;;  %v5938_v8 = vld [vmem:[#allocation2 + $0x408] sm:$0xff] }
 0xe47   :  { %v11287_v40 = vpop.eup %11286  ;;  %v5904_v30 = vsub.f32 %v5888_v47, %v5896_v10 }
 0xe48   :  { %v11289_v42 = vpop.eup %11288  ;;  %v14002_v24 = vpop.permute.xlu1 %6221  ;;  %v5949_v7 = vmul.f32 %v11287_v40, %v5933_v54  ;;  %v5954_v54 = vmul.f32 %v5946_v32, %v13963_v60  ;;  %v15652_v60 = vld [vmem:[#allocation35_spill] sm:$0xff] }
 0xe49   :  { %v5912_v5 = vmax.f32 %v5904_v30, 0.0  ;;  %v5948_v21 = vmul.f32 %v11289_v42, %v5932_v39  ;;  %v5937_v30 = vld [vmem:[#allocation2 + $0x400] sm:$0xff]  ;;  %v15651_v42 = vld [vmem:[#allocation36_spill] sm:$0xff] }
 0xe4b   :  { %v5920_v44 = vadd.f32 1e-05, %v5912_v5  ;;  %10706 = vmatmul.mubr.msk.f32.gmra.mrb[132].mxu1 %vm2749_vm2, %v5948_v21  ;;  %v5961_v5 = vsub.f32 %v5937_v30, %v5953_v15 }
 0xe4c   :  { %10708 = vmatprep.mubr.msk.f32.mxu1 %vm2749_vm2, %v5949_v7  ;;  %v14006_v31 = vpop.permute.xlu1 %6231  ;;  %v1068_v51 = vpop.permute.xlu0 %1067 }
 0xe4d   :  { %11294 = vrsqrt.f32 %v5920_v44  ;;  %v2541_v38 = vadd.f32 %v13895_v25, %v1068_v51  ;;  %v15650_v25 = vld [vmem:[#allocation34_spill] sm:$0xff]  ;;  %v5955_v44 = vmul.f32 %v5947_v12, %v13969_v58 }
 0xe4e   :  { %v5940_v58 = vld [vmem:[#allocation2 + $0x418] sm:$0xff] }
 0xe4f   :  { %v11291_v2 = vpop.eup %11290  ;;  %2884 = vst.msk [vmem:[#allocation2 + $0x430] sm:$0xff] %vm2749_vm2, %v2541_v38  ;;  %v5962_v38 = vsub.f32 %v5938_v8, %v5954_v54 }
 0xe50   :  { %v11293_v63 = vpop.eup %11292  ;;  %v14010_v17 = vpop.permute.xlu1 %6241  ;;  %v5951_v29 = vmul.f32 %v11291_v2, %v5935_v19  ;;  %v5939_v2 = vld [vmem:[#allocation2 + $0x410] sm:$0xff]  ;;  %v5956_v19 = vmul.f32 %v5948_v21, %v13977_v14 }
 0xe51   :  { %v14012_v61 = vpop.permute.xlu0 %6206  ;;  %v5950_v3 = vmul.f32 %v11293_v63, %v5934_v1  ;;  %v5963_v63 = vsub.f32 %v5939_v2, %v5955_v44  ;;  %v5957_v1 = vmul.f32 %v5949_v7, %v13975_v0  ;;  %v15654_v21 = vld [vmem:[#allocation33_spill] sm:$0xff]  ;;  %v5942_v7 = vld [vmem:[#allocation2 + $0x428] sm:$0xff]  ;;  %v15656_v44 = vld [vmem:[#allocation38_spill] sm:$0xff] }
 0xe52   :  { %v5959_v30 = vmul.f32 %v5951_v29, %v13983_v9 }
 0xe53   :  { %10709 = vmatmul.mubr.msk.f32.gmra.mrb[134].mxu1 %vm2749_vm2, %v5950_v3  ;;  %v5958_v15 = vmul.f32 %v5950_v3, %v13985_v6 }
 0xe54   :  { %10711 = vmatprep.mubr.msk.f32.mxu1 %vm2749_vm2, %v5951_v29  ;;  %v638_v46 = vpop.permute.xlu1 %637 }
 0xe55   :  { %v14016_v16 = vpop.permute.xlu0 %6216  ;;  %v2111_v37 = vadd.f32 %v15650_v25, %v638_v46  ;;  %v5964_v25 = vsub.f32 %v5940_v58, %v5956_v19  ;;  %v5966_v6 = vsub.f32 %v5942_v7, %v5958_v15 }
 0xe56   :  { %v5943_v0 = vld [vmem:[#allocation2 + $0x430] sm:$0xff] }
 0xe57   :  { %v11295_v52 = vpop.eup %11294  ;;  %2798 = vst.msk [vmem:[#allocation2 + $0x180] sm:$0xff] %vm2749_vm2, %v2111_v37  ;;  %v5941_v37 = vld [vmem:[#allocation2 + $0x420] sm:$0xff] }
 0xe58   :  { %v648_v10 = vpop.permute.xlu1 %647  ;;  %v5952_v40 = vmul.f32 %v11295_v52, %v5936_v48  ;;  %v15653_v52 = vld [vmem:[#allocation37_spill] sm:$0xff] }
 0xe59   :  { %v14021_v47 = vpop.permute.xlu0 %6226  ;;  %v2121_v39 = vadd.f32 %v15651_v42, %v648_v10  ;;  %v5965_v10 = vsub.f32 %v5941_v37, %v5957_v1 }
 0xe5a   :  { %10712 = vmatmul.mubr.msk.f32.gmra.mrb[136].mxu1 %vm2749_vm2, %v5952_v40  ;;  %v5960_v3 = vmul.f32 %v5952_v40, %v13992_v56  ;;  %v15657_v56 = vld [vmem:[#allocation40_spill] sm:$0xff] }
 0xe5b   :  { %2800 = vst.msk [vmem:[#allocation2 + $0x190] sm:$0xff] %vm2749_vm2, %v2121_v39  ;;  %10714 = vmatprep.mubr.msk.f32.mxu1 %vm2749_vm2, %v5961_v5  ;;  %v15655_v39 = vld [vmem:[#allocation39_spill] sm:$0xff] }
 0xe5c   :  { %v653_v50 = vpop.permute.xlu1 %652 }
 0xe5d   :  { %v14029_v51 = vpop.permute.xlu0 %6236  ;;  %v2126_v32 = vadd.f32 %v15652_v60, %v653_v50  ;;  %v5967_v50 = vsub.f32 %v5943_v0, %v5959_v30 }
 0xe5e   :  { %10715 = vmatmul.mubr.msk.f32.gmra.mrb[138].mxu1 %vm2749_vm2, %v5962_v38  ;;  %v5944_v38 = vld [vmem:[#allocation2 + $0x438] sm:$0xff] }
 0xe5f   :  { %2801 = vst.msk [vmem:[#allocation2 + $0x198] sm:$0xff] %vm2749_vm2, %v2126_v32  ;;  %10717 = vmatprep.mubr.msk.f32.mxu1 %vm2749_vm2, %v5963_v63  ;;  %v5968_v2 = vsub.f32 %v5944_v38, %v5960_v3 }
 0xe60   :  { %v663_v12 = vpop.permute.xlu1 %662 }
 0xe61   :  { %v643_v46 = vpop.permute.xlu0 %642  ;;  %v2136_v14 = vadd.f32 %v15653_v52, %v663_v12 }
 0xe62   :  { %v2116_v48 = vadd.f32 %v15654_v21, %v643_v46  ;;  %10718 = vmatmul.mubr.msk.f32.gmra.mrb[140].mxu1 %vm2749_vm2, %v5964_v25 }
 0xe63   :  { %2803 = vst.msk [vmem:[#allocation2 + $0x1a8] sm:$0xff] %vm2749_vm2, %v2136_v14  ;;  %10720 = vmatprep.mubr.msk.f32.mxu1 %vm2749_vm2, %v5965_v10 }
 0xe64   :  { %2799 = vst.msk [vmem:[#allocation2 + $0x188] sm:$0xff] %vm2749_vm2, %v2116_v48  ;;  %v673_v54 = vpop.permute.xlu1 %672 }
 0xe65   :  { %v658_v42 = vpop.permute.xlu0 %657  ;;  %v2146_v5 = vadd.f32 %v15655_v39, %v673_v54 }
 0xe66   :  { %v2131_v8 = vadd.f32 %v15656_v44, %v658_v42  ;;  %10721 = vmatmul.mubr.msk.f32.gmra.mrb[142].mxu1 %vm2749_vm2, %v5966_v6 }
 0xe67   :  { %2805 = vst.msk [vmem:[#allocation2 + $0x1b8] sm:$0xff] %vm2749_vm2, %v2146_v5  ;;  %10723 = vmatprep.mubr.msk.f32.mxu1 %vm2749_vm2, %v5967_v50 }
 0xe68   :  { %2802 = vst.msk [vmem:[#allocation2 + $0x1a0] sm:$0xff] %vm2749_vm2, %v2131_v8  ;;  %v1083_v9 = vpop.permute.xlu1 %1082 }
 0xe69   :  { %v668_v29 = vpop.permute.xlu0 %667  ;;  %v2556_v19 = vadd.f32 %v13939_v13, %v1083_v9 }
 0xe6a   :  { %v2141_v40 = vadd.f32 %v15657_v56, %v668_v29  ;;  %10724 = vmatmul.mubr.msk.f32.gmra.mrb[144].mxu1 %vm2749_vm2, %v5968_v2 }
 0xe6b   :  { %2887 = vst.msk [vmem:[#allocation2 + $0x448] sm:$0xff] %vm2749_vm2, %v2556_v19 }
 0xe6c   :  { %2804 = vst.msk [vmem:[#allocation2 + $0x1b0] sm:$0xff] %vm2749_vm2, %v2141_v40  ;;  %v1093_v60 = vpop.permute.xlu1 %1092 }
 0xe6d   :  { %v1078_v32 = vpop.permute.xlu0 %1077  ;;  %v2566_v63 = vadd.f32 %v13949_v22, %v1093_v60  ;;  %v183_v22 = vld [vmem:[%s15553_s5 + $0x470] sm:$0xff] }
 0xe6e   :  { %v2551_v1 = vadd.f32 %v13944_v36, %v1078_v32  ;;  %v9399_v36 = vld [vmem:[%s15555_s7 + $0x140] sm:$0xff]  ;;  %10365 = vmatprep.mubr.msk.f32.mxu0 %vm1275_vm0, %v183_v22 }
 0xe6f   :  { %2889 = vst.msk [vmem:[#allocation2 + $0x458] sm:$0xff] %vm2749_vm2, %v2566_v63  ;;  %10742 = vmatprep.mubr.msk.f32.mxu1 %vm3527_vm4, %v9399_v36  ;;  %v14096_v22 = vld [vmem:[%s15550_s2] sm:$0x3] }
 0xe70   :  { %2886 = vst.msk [vmem:[#allocation2 + $0x440] sm:$0xff] %vm2749_vm2, %v2551_v1  ;;  %v1103_v58 = vpop.permute.xlu1 %1102 }
 0xe71   :  { %v1088_v13 = vpop.permute.xlu0 %1087  ;;  %v2576_v12 = vadd.f32 %v13956_v28, %v1103_v58 }
 0xe72   :  { %v2561_v46 = vadd.f32 %v13954_v11, %v1088_v13  ;;  %v184_v11 = vld [vmem:[%s15553_s5 + $0x478] sm:$0xff] }
 0xe73   :  { %2891 = vst.msk [vmem:[#allocation2 + $0x468] sm:$0xff] %vm2749_vm2, %v2576_v12  ;;  %10366 = vmatmul.mubr.msk.f32.gmra.mrb[142].mxu0 %vm1275_vm0, %v184_v11  ;;  %v9402_v11 = vld [vmem:[%s15555_s7 + $0x158] sm:$0xff] }
 0xe74   :  { %2888 = vst.msk [vmem:[#allocation2 + $0x450] sm:$0xff] %vm2749_vm2, %v2561_v46 }
 0xe75   :  { %v1098_v25 = vpop.permute.xlu0 %1097 }
 0xe76   :  { %v2571_v37 = vadd.f32 %v13961_v26, %v1098_v25 }
 0xe78   :  { %2890 = vst.msk [vmem:[#allocation2 + $0x460] sm:$0xff] %vm2749_vm2, %v2571_v37 }
 0xf16   :  { %v10704_v28 = vpop.f32.mrb[130].mxu1 }
 0xf17   :  { %v6083_v26 = vpop.f32.mrb[131].mxu1  ;;  %v6163_v0 = vmul.f32 %v10704_v28, %v13828_v41  ;;  %v9403_v28 = vld [vmem:[%s15555_s7 + $0x160] sm:$0xff] }
 0xf18   :  { %v6162_v7 = vmul.f32 %v6083_v26, %v13831_v18  ;;  %v9404_v26 = vld [vmem:[%s15555_s7 + $0x168] sm:$0xff] }
 0xf1e   :  { %v10707_v15 = vpop.f32.mrb[132].mxu1 }
 0xf1f   :  { %v6093_v52 = vpop.f32.mrb[133].mxu1  ;;  %v6165_v3 = vmul.f32 %v10707_v15, %v13846_v59  ;;  %v9405_v15 = vld [vmem:[%s15555_s7 + $0x170] sm:$0xff] }
 0xf20   :  { %v6164_v5 = vmul.f32 %v6093_v52, %v13836_v35  ;;  %v9406_v52 = vld [vmem:[%s15555_s7 + $0x178] sm:$0xff] }
 0xf26   :  { %v10710_v14 = vpop.f32.mrb[134].mxu1 }
 0xf27   :  { %v6103_v21 = vpop.f32.mrb[135].mxu1  ;;  %v6167_v2 = vmul.f32 %v10710_v14, %v13858_v23  ;;  %v185_v14 = vld [vmem:[%s15553_s5 + $0x480] sm:$0xff] }
 0xf28   :  { %v6166_v18 = vmul.f32 %v6103_v21, %v13849_v55  ;;  %v186_v21 = vld [vmem:[%s15553_s5 + $0x488] sm:$0xff]  ;;  %10368 = vmatprep.mubr.msk.f32.mxu0 %vm1275_vm0, %v185_v14 }
 0xf29   :  { %10369 = vmatmul.mubr.msk.f32.gmra.mrb[144].mxu0 %vm1275_vm0, %v186_v21  ;;  %v368_v14 = vld [vmem:[%s15554_s6 + $0x4a8] sm:$0xff]  ;;  %v365_v21 = vld [vmem:[%s15554_s6 + $0x490] sm:$0xff] }
 0xf2d   :  { %v10713_v48 = vpop.f32.mrb[136].mxu1 }
 0xf2e   :  { %v6113_v10 = vpop.f32.mrb[137].mxu1  ;;  %v6169_v35 = vmul.f32 %v10713_v48, %v13870_v20  ;;  %v9400_v20 = vld [vmem:[%s15555_s7 + $0x148] sm:$0xff]  ;;  %v187_v48 = vld [vmem:[%s15553_s5 + $0x490] sm:$0xff] }
 0xf2f   :  { %v6168_v1 = vmul.f32 %v6113_v10, %v13861_v34  ;;  %v9401_v34 = vld [vmem:[%s15555_s7 + $0x150] sm:$0xff]  ;;  %v188_v10 = vld [vmem:[%s15553_s5 + $0x498] sm:$0xff]  ;;  %10371 = vmatprep.mubr.msk.f32.mxu0 %vm1275_vm0, %v187_v48 }
 0xf30   :  { %10372 = vmatmul.mubr.msk.f32.gmra.mrb[146].mxu0 %vm1275_vm0, %v188_v10 }
 0xf31   :  { %v10716_v30 = vpop.f32.mrb[138].mxu1 }
 0xf32   :  { %v6171_v54 = vadd.f32 %v10716_v30, %v6163_v0  ;;  %v6123_v42 = vpop.f32.mrb[139].mxu1  ;;  %v189_v0 = vld [vmem:[%s15553_s5 + $0x4a0] sm:$0xff] }
 0xf33   :  { %v6170_v6 = vadd.f32 %v6162_v7, %v6123_v42  ;;  %v190_v7 = vld [vmem:[%s15553_s5 + $0x4a8] sm:$0xff]  ;;  %10374 = vmatprep.mubr.msk.f32.mxu0 %vm1275_vm0, %v189_v0  ;;  %v367_v0 = vld [vmem:[%s15554_s6 + $0x4a0] sm:$0xff] }
 0xf34   :  { %v6179_v39 = vmax.f32 %v6171_v54, 0.0  ;;  %10375 = vmatmul.mubr.msk.f32.gmra.mrb[148].mxu0 %vm1275_vm0, %v190_v7 }
 0xf35   :  { %v6178_v44 = vmax.f32 %v6170_v6, 0.0  ;;  %v10719_v8 = vpop.f32.mrb[140].mxu1 }
 0xf36   :  { %v6173_v50 = vadd.f32 %v10719_v8, %v6165_v3  ;;  %v6133_v38 = vpop.f32.mrb[141].mxu1 }
 0xf37   :  { %v11099_v9 = vpack.c.bf16 %v6179_v39, %v6178_v44  ;;  %v6172_v29 = vadd.f32 %v6164_v5, %v6133_v38 }
 0xf38   :  { %v6181_v41 = vmax.f32 %v6173_v50, 0.0 }
 0xf39   :  { %v6180_v19 = vmax.f32 %v6172_v29, 0.0  ;;  %v10722_v56 = vpop.f32.mrb[142].mxu1  ;;  %11100 = vmatprep.subr.bf16.mxu1 %v11099_v9 }
 0xf3a   :  { %v6175_v40 = vadd.f32 %v10722_v56, %v6167_v2  ;;  %v6143_v60 = vpop.f32.mrb[143].mxu1  ;;  %11102 = vmatpush3.bf16.msra.mxu1 %v11099_v9 }
 0xf3b   :  { %v11103_v59 = vpack.c.bf16 %v6181_v41, %v6180_v19  ;;  %v6174_v32 = vadd.f32 %v6166_v18, %v6143_v60 }
 0xf3c   :  { %v6183_v63 = vmax.f32 %v6175_v40, 0.0  ;;  %v9449_v40 = vld [vmem:[%s15556_s8 + $0x188] sm:$0xff] }
 0xf3d   :  { %v6182_v58 = vmax.f32 %v6174_v32, 0.0  ;;  %v10725_v13 = vpop.f32.mrb[144].mxu1  ;;  %11104 = vmatprep.subr.bf16.mxu1 %v11103_v59  ;;  %v361_v32 = vld [vmem:[%s15554_s6 + $0x470] sm:$0xff] }
 0xf3e   :  { %v6177_v23 = vadd.f32 %v10725_v13, %v6169_v35  ;;  %v6153_v12 = vpop.f32.mrb[145].mxu1  ;;  %11106 = vmatpush3.bf16.msra.mxu1 %v11103_v59  ;;  %v9453_v59 = vld [vmem:[%s15556_s8 + $0x1a8] sm:$0xff]  ;;  %v9455_v35 = vld [vmem:[%s15556_s8 + $0x1b8] sm:$0xff]  ;;  %v9450_v13 = vld [vmem:[%s15556_s8 + $0x190] sm:$0xff] }
 0xf3f   :  { %v11107_v55 = vpack.c.bf16 %v6183_v63, %v6182_v58  ;;  %v6176_v46 = vadd.f32 %v6168_v1, %v6153_v12  ;;  %v9448_v1 = vld [vmem:[%s15556_s8 + $0x180] sm:$0xff] }
 0xf40   :  { %v6185_v25 = vmax.f32 %v6177_v23, 0.0  ;;  %v275_v58 = vld [vmem:[%s15554_s6 + $0x1c0] sm:$0xff]  ;;  %v277_v23 = vld [vmem:[%s15554_s6 + $0x1d0] sm:$0xff] }
 0xf41   :  { %v6184_v37 = vmax.f32 %v6176_v46, 0.0  ;;  %11108 = vmatprep.subr.bf16.mxu1 %v11107_v55  ;;  %v9452_v12 = vld [vmem:[%s15556_s8 + $0x1a0] sm:$0xff]  ;;  %v9454_v46 = vld [vmem:[%s15556_s8 + $0x1b0] sm:$0xff] }
 0xf42   :  { %11110 = vmatpush3.bf16.msra.mxu1 %v11107_v55  ;;  %v278_v55 = vld [vmem:[%s15554_s6 + $0x1d8] sm:$0xff] }
 0xf43   :  { %v11111_v36 = vpack.c.bf16 %v6185_v25, %v6184_v37  ;;  %v280_v25 = vld [vmem:[%s15554_s6 + $0x1e8] sm:$0xff] }
 0xf44   :  { %v276_v37 = vld [vmem:[%s15554_s6 + $0x1c8] sm:$0xff] }
 0xf45   :  { %11112 = vmatprep.subr.bf16.mxu1 %v11111_v36 }
 0xf46   :  { %11114 = vmatpush3.bf16.msra.mxu1 %v11111_v36  ;;  %v14210_v60 = vpop.f32.mrb[142].mxu0  ;;  %v282_v36 = vld [vmem:[%s15554_s6 + $0x1f8] sm:$0xff] }
 0xf47   :  { %10754 = vmatprep.subr.msk.mxu1 %vm3298_vm3, %v14096_v22  ;;  %v14224_v63 = vpop.f32.mrb[143].mxu0 }
 0xf49   :  { %10743 = vmatmul.mubr.msk.f32.vlgmr.msra.gmra.mrb[146].mxu1 %vm3527_vm4, %v9400_v20  ;;  %v279_v20 = vld [vmem:[%s15554_s6 + $0x1e0] sm:$0xff] }
 0xf4a   :  { %10745 = vmatprep.mubr.msk.f32.mxu1 %vm3527_vm4, %v9401_v34  ;;  %10755 = vmatpush3.msk.msra.mxu1 %vm3298_vm3, %v14096_v22  ;;  %v364_v34 = vld [vmem:[%s15554_s6 + $0x488] sm:$0xff] }
 0xf4d   :  { %10746 = vmatmul.mubr.msk.f32.gmra.mrb[148].mxu1 %vm3527_vm4, %v9402_v11  ;;  %v281_v11 = vld [vmem:[%s15554_s6 + $0x1f0] sm:$0xff] }
 0xf4e   :  { %10748 = vmatprep.mubr.msk.f32.mxu1 %vm3527_vm4, %v9403_v28  ;;  %v366_v28 = vld [vmem:[%s15554_s6 + $0x498] sm:$0xff] }
 0xf51   :  { %10749 = vmatmul.mubr.msk.f32.gmra.mrb[150].mxu1 %vm3527_vm4, %v9404_v26  ;;  %v363_v26 = vld [vmem:[%s15554_s6 + $0x480] sm:$0xff] }
 0xf52   :  { %10751 = vmatprep.mubr.msk.f32.mxu1 %vm3527_vm4, %v9405_v15 }
 0xf55   :  { %10752 = vmatmul.mubr.msk.f32.gmra.mrb[152].mxu1 %vm3527_vm4, %v9406_v52 }
 0xffc   :  { %v14271_v15 = vpop.f32.mrb[144].mxu0 }
 0xffd   :  { %v14273_v52 = vpop.f32.mrb[145].mxu0 }
0x1003   :  { %v14281_v48 = vpop.f32.mrb[146].mxu0 }
0x1004   :  { %v14283_v10 = vpop.f32.mrb[147].mxu0 }
0x1007   :  { %v14288_v7 = vpop.f32.mrb[148].mxu0 }
0x101c   :  { %v10744_v30 = vpop.f32.mrb[146].mxu1 }
0x101d   :  { %v6340_v54 = vadd.f32 %v10744_v30, %v13996_v57  ;;  %v6334_v42 = vpop.f32.mrb[147].mxu1  ;;  %v14290_v30 = vpop.f32.mrb[149].mxu0 }
0x101e   :  { %v6335_v6 = vadd.f32 %v6334_v42, %v14012_v61 }
0x101f   :  { %v14151_v3 = vadd.f32 %v6340_v54, %v13506_v53 }
0x1020   :  { %v14154_v39 = vadd.f32 %v6335_v6, %v13509_v27  ;;  %v10747_v5 = vpop.f32.mrb[148].mxu1 }
0x1021   :  { %6391 = vadd.xlane.f32.xlu1 %v14151_v3  ;;  %v6344_v44 = vpop.f32.mrb[149].mxu1  ;;  %v6382_v61 = vmul.f32 %v14151_v3, %v14151_v3  ;;  %v6350_v27 = vadd.f32 %v10747_v5, %v14002_v24 }
0x1022   :  { %v6345_v8 = vadd.f32 %v6344_v44, %v14016_v16  ;;  %6389 = vadd.xlane.f32.xlu0 %v14154_v39  ;;  %v6381_v16 = vmul.f32 %v14154_v39, %v14154_v39 }
0x1023   :  { %v14172_v2 = vadd.f32 %v6350_v27, %v13527_v43 }
0x1024   :  { %v14160_v50 = vadd.f32 %v6345_v8, %v13515_v33  ;;  %v10750_v57 = vpop.f32.mrb[150].mxu1 }
0x1025   :  { %v6354_v53 = vpop.f32.mrb[151].mxu1  ;;  %v6360_v24 = vadd.f32 %v10750_v57, %v14006_v31  ;;  %v6384_v18 = vmul.f32 %v14172_v2, %v14172_v2 }
0x1026   :  { %6407 = vadd.xlane.f32.xlu0 %v6382_v61  ;;  %6393 = vadd.xlane.f32.xlu1 %v14160_v50  ;;  %v6355_v38 = vadd.f32 %v6354_v53, %v14021_v47  ;;  %v6383_v33 = vmul.f32 %v14160_v50, %v14160_v50 }
0x1027   :  { %v14186_v43 = vadd.f32 %v6360_v24, %v13541_v45 }
0x1028   :  { %v10753_v9 = vpop.f32.mrb[152].mxu1  ;;  %v14175_v41 = vadd.f32 %v6355_v38, %v13530_v4 }
0x1029   :  { %v6364_v29 = vpop.f32.mrb[153].mxu1  ;;  %v6370_v31 = vadd.f32 %v10753_v9, %v14010_v17  ;;  %v362_v17 = vld [vmem:[%s15554_s6 + $0x478] sm:$0xff] }
0x102a   :  { %6405 = vadd.xlane.f32.xlu0 %v6381_v16  ;;  %6409 = vadd.xlane.f32.xlu1 %v6383_v33  ;;  %v6365_v47 = vadd.f32 %v6364_v29, %v14029_v51  ;;  %v6385_v19 = vmul.f32 %v14175_v41, %v14175_v41  ;;  %v6386_v51 = vmul.f32 %v14186_v43, %v14186_v43 }
0x102b   :  { %v14199_v45 = vadd.f32 %v6370_v31, %v13554_v62  ;;  %v9451_v62 = vld [vmem:[%s15556_s8 + $0x198] sm:$0xff] }
0x102c   :  { %v14189_v4 = vadd.f32 %v6365_v47, %v13544_v49 }
0x102d   :  { %v6388_v49 = vmul.f32 %v14199_v45, %v14199_v45 }
0x102e   :  { %6395 = vadd.xlane.f32.xlu0 %v14172_v2  ;;  %6397 = vadd.xlane.f32.xlu1 %v14175_v41  ;;  %v6387_v56 = vmul.f32 %v14189_v4, %v14189_v4 }
0x1032   :  { %6411 = vadd.xlane.f32.xlu0 %v6384_v18  ;;  %6413 = vadd.xlane.f32.xlu1 %v6385_v19 }
0x1036   :  { %6399 = vadd.xlane.f32.xlu0 %v14186_v43  ;;  %6401 = vadd.xlane.f32.xlu1 %v14189_v4 }
0x103a   :  { %6415 = vadd.xlane.f32.xlu0 %v6386_v51  ;;  %6417 = vadd.xlane.f32.xlu1 %v6387_v56 }
0x103e   :  { %6403 = vadd.xlane.f32.xlu0 %v14199_v45 }
0x1042   :  { %6419 = vadd.xlane.f32.xlu0 %v6388_v49 }
0x104b   :  { %1112 = vperm.xlu1 %11199, %v362_v17  }
0x104f   :  { %6759 = vperm.xlu1 %11199, %v9449_v40  }
0x1053   :  { %6769 = vperm.xlu1 %11199, %v9451_v62  }
0x1057   :  { %6779 = vperm.xlu1 %11199, %v9453_v59  }
0x1058   :  { %1107 = vperm.xlu0 %11198, %v361_v32  }
0x105b   :  { %6789 = vperm.xlu1 %11199, %v9455_v35  }
0x105c   :  { %6754 = vperm.xlu0 %11198, %v9448_v1  }
0x105f   :  { %677 = vperm.xlu1 %11199, %v275_v58  }
0x1060   :  { %6764 = vperm.xlu0 %11198, %v9450_v13  }
0x1063   :  { %687 = vperm.xlu1 %11199, %v277_v23  }
0x1064   :  { %6774 = vperm.xlu0 %11198, %v9452_v12  }
0x1067   :  { %692 = vperm.xlu1 %11199, %v278_v55  }
0x1068   :  { %6784 = vperm.xlu0 %11198, %v9454_v46  }
0x106b   :  { %702 = vperm.xlu1 %11199, %v280_v25  }
0x106c   :  { %682 = vperm.xlu0 %11198, %v276_v37  }
0x106f   :  { %712 = vperm.xlu1 %11199, %v282_v36  }
0x1070   :  { %697 = vperm.xlu0 %11198, %v279_v20  }
0x1073   :  { %1122 = vperm.xlu1 %11199, %v364_v34  }
0x1074   :  { %707 = vperm.xlu0 %11198, %v281_v11  }
0x1077   :  { %1132 = vperm.xlu1 %11199, %v366_v28  }
0x1078   :  { %1117 = vperm.xlu0 %11198, %v363_v26  }
0x107b   :  { %1142 = vperm.xlu1 %11199, %v368_v14  }
0x107c   :  { %1127 = vperm.xlu0 %11198, %v365_v21  }
0x1080   :  { %1137 = vperm.xlu0 %11198, %v367_v0  }
0x10ae   :  { %v6392_v54 = vpop.xlane.xlu1 %6391 }
0x10af   :  { %v6390_v42 = vpop.xlane.xlu0 %6389  ;;  %v14292_v6 = vmul.f32 0.0078125, %v6392_v54 }
0x10b0   :  { %v14294_v5 = vmul.f32 0.0078125, %v6390_v42 }
0x10b1   :  { %v6438_v57 = vmul.f32 %v14292_v6, %v14292_v6 }
0x10b2   :  { %v6437_v38 = vmul.f32 %v14294_v5, %v14294_v5 }
0x10b3   :  { %v6394_v44 = vpop.xlane.xlu1 %6393  ;;  %v6408_v8 = vpop.xlane.xlu0 %6407 }
0x10b4   :  { %v14298_v61 = vmul.f32 0.0078125, %v6394_v44  ;;  %v6430_v53 = vmul.f32 0.0078125, %v6408_v8 }
0x10b6   :  { %v6446_v27 = vsub.f32 %v6430_v53, %v6438_v57  ;;  %v6439_v33 = vmul.f32 %v14298_v61, %v14298_v61 }
0x10b7   :  { %v6410_v9 = vpop.xlane.xlu1 %6409  ;;  %v6406_v16 = vpop.xlane.xlu0 %6405 }
0x10b8   :  { %v6454_v29 = vmax.f32 %v6446_v27, 0.0  ;;  %v6431_v24 = vmul.f32 0.0078125, %v6410_v9  ;;  %v6429_v47 = vmul.f32 0.0078125, %v6406_v16 }
0x10ba   :  { %v6447_v18 = vsub.f32 %v6431_v24, %v6439_v33  ;;  %v6445_v19 = vsub.f32 %v6429_v47, %v6437_v38  ;;  %v6462_v31 = vadd.f32 1e-05, %v6454_v29 }
0x10bb   :  { %v6398_v51 = vpop.xlane.xlu1 %6397  ;;  %v6396_v56 = vpop.xlane.xlu0 %6395 }
0x10bc   :  { %v6455_v49 = vmax.f32 %v6447_v18, 0.0  ;;  %v6453_v17 = vmax.f32 %v6445_v19, 0.0  ;;  %v14304_v40 = vmul.f32 0.0078125, %v6398_v51  ;;  %v14306_v62 = vmul.f32 0.0078125, %v6396_v56  ;;  %v6477_v18 = vld [vmem:[#allocation2 + $0x180] sm:$0xff]  ;;  %v6478_v19 = vld [vmem:[#allocation2 + $0x188] sm:$0xff] }
0x10bd   :  { %11296 = vrsqrt.f32 %v6462_v31 }
0x10be   :  { %v6463_v59 = vadd.f32 1e-05, %v6455_v49  ;;  %v6461_v32 = vadd.f32 1e-05, %v6453_v17  ;;  %v6441_v58 = vmul.f32 %v14304_v40, %v14304_v40  ;;  %v6440_v13 = vmul.f32 %v14306_v62, %v14306_v62  ;;  %v6479_v17 = vld [vmem:[#allocation2 + $0x190] sm:$0xff] }
0x10bf   :  { %v6414_v35 = vpop.xlane.xlu1 %6413  ;;  %v6412_v1 = vpop.xlane.xlu0 %6411 }
0x10c0   :  { %v6433_v23 = vmul.f32 0.0078125, %v6414_v35  ;;  %v6432_v12 = vmul.f32 0.0078125, %v6412_v1  ;;  %11298 = vrsqrt.f32 %v6461_v32 }
0x10c1   :  { %11300 = vrsqrt.f32 %v6463_v59 }
0x10c2   :  { %v6449_v55 = vsub.f32 %v6433_v23, %v6441_v58  ;;  %v6448_v46 = vsub.f32 %v6432_v12, %v6440_v13  ;;  %v6481_v23 = vld [vmem:[#allocation2 + $0x1a0] sm:$0xff] }
0x10c3   :  { %v6402_v25 = vpop.xlane.xlu1 %6401  ;;  %v6400_v37 = vpop.xlane.xlu0 %6399 }
0x10c4   :  { %v6457_v36 = vmax.f32 %v6449_v55, 0.0  ;;  %v6456_v20 = vmax.f32 %v6448_v46, 0.0  ;;  %v14312_v34 = vmul.f32 0.0078125, %v6402_v25  ;;  %v14314_v11 = vmul.f32 0.0078125, %v6400_v37  ;;  %v6480_v46 = vld [vmem:[#allocation2 + $0x198] sm:$0xff] }
0x10c6   :  { %v6465_v28 = vadd.f32 1e-05, %v6457_v36  ;;  %v6464_v26 = vadd.f32 1e-05, %v6456_v20  ;;  %v6443_v14 = vmul.f32 %v14312_v34, %v14312_v34  ;;  %v6442_v54 = vmul.f32 %v14314_v11, %v14314_v11 }
0x10c7   :  { %v6418_v21 = vpop.xlane.xlu1 %6417  ;;  %v6416_v0 = vpop.xlane.xlu0 %6415 }
0x10c8   :  { %11302 = vrsqrt.f32 %v6465_v28  ;;  %v6435_v42 = vmul.f32 0.0078125, %v6418_v21  ;;  %v6434_v44 = vmul.f32 0.0078125, %v6416_v0  ;;  %v11297_v8 = vpop.eup %11296  ;;  %v6483_v0 = vld [vmem:[#allocation2 + $0x1b0] sm:$0xff] }
0x10c9   :  { %11304 = vrsqrt.f32 %v6464_v26  ;;  %v6494_v51 = vmul.f32 %v11297_v8, %v6478_v19  ;;  %v6482_v8 = vld [vmem:[#allocation2 + $0x1a8] sm:$0xff] }
0x10ca   :  { %v6451_v57 = vsub.f32 %v6435_v42, %v6443_v14  ;;  %v6450_v53 = vsub.f32 %v6434_v44, %v6442_v54  ;;  %v11299_v27 = vpop.eup %11298 }
0x10cb   :  { %v1113_v38 = vpop.permute.xlu1 %1112  ;;  %v6404_v9 = vpop.xlane.xlu0 %6403  ;;  %v6493_v31 = vmul.f32 %v11299_v27, %v6477_v18 }
0x10cc   :  { %v11301_v16 = vpop.eup %11300  ;;  %v6459_v33 = vmax.f32 %v6451_v57, 0.0  ;;  %v6458_v29 = vmax.f32 %v6450_v53, 0.0  ;;  %v2586_v24 = vadd.f32 %v14210_v60, %v1113_v38  ;;  %v14321_v47 = vmul.f32 0.0078125, %v6404_v9 }
0x10cd   :  { %10756 = vmatprep.mubr.msk.f32.mxu1 %vm2749_vm2, %v6493_v31  ;;  %v6495_v32 = vmul.f32 %v11301_v16, %v6479_v17  ;;  %v6501_v16 = vmul.f32 %v6493_v31, %v14294_v5  ;;  %v15659_v17 = vld [vmem:[#allocation44_spill] sm:$0xff] }
0x10ce   :  { %v6467_v56 = vadd.f32 1e-05, %v6459_v33  ;;  %v6466_v49 = vadd.f32 1e-05, %v6458_v29  ;;  %2893 = vst.msk [vmem:[#allocation2 + $0x478] sm:$0xff] %vm2749_vm2, %v2586_v24  ;;  %v6444_v60 = vmul.f32 %v14321_v47, %v14321_v47  ;;  %10757 = vmatmul.mubr.msk.f32.vlgmr.msra.gmra.mrb[154].mxu1 %vm2749_vm2, %v6494_v51  ;;  %v6484_v29 = vld [vmem:[#allocation2 + $0x1b8] sm:$0xff] }
0x10cf   :  { %v14325_v59 = vpop.permute.xlu1 %6759  ;;  %v6420_v35 = vpop.xlane.xlu0 %6419  ;;  %10759 = vmatprep.mubr.msk.f32.mxu1 %vm2749_vm2, %v6495_v32  ;;  %v6486_v5 = vld [vmem:[#allocation2 + $0x448] sm:$0xff] }
0x10d0   :  { %11306 = vrsqrt.f32 %v6467_v56  ;;  %v6436_v1 = vmul.f32 0.0078125, %v6420_v35  ;;  %v6485_v56 = vld [vmem:[#allocation2 + $0x440] sm:$0xff] }
0x10d1   :  { %11308 = vrsqrt.f32 %v6466_v49  ;;  %v6502_v49 = vmul.f32 %v6494_v51, %v14292_v6  ;;  %v15660_v6 = vld [vmem:[#allocation43_spill] sm:$0xff] }
0x10d2   :  { %v11303_v58 = vpop.eup %11302  ;;  %v6452_v13 = vsub.f32 %v6436_v1, %v6444_v60  ;;  %v6509_v60 = vsub.f32 %v6485_v56, %v6501_v16  ;;  %v6503_v1 = vmul.f32 %v6495_v32, %v14298_v61  ;;  %v6488_v61 = vld [vmem:[#allocation2 + $0x458] sm:$0xff]  ;;  %v15663_v16 = vld [vmem:[#allocation47_spill] sm:$0xff] }
0x10d3   :  { %v11305_v12 = vpop.eup %11304  ;;  %v14331_v55 = vpop.permute.xlu1 %6769  ;;  %v6497_v25 = vmul.f32 %v11303_v58, %v6481_v23  ;;  %v6487_v23 = vld [vmem:[#allocation2 + $0x450] sm:$0xff] }
0x10d4   :  { %v6460_v37 = vmax.f32 %v6452_v13, 0.0  ;;  %v6496_v36 = vmul.f32 %v11305_v12, %v6480_v46  ;;  %v6510_v13 = vsub.f32 %v6486_v5, %v6502_v49  ;;  %v6511_v46 = vsub.f32 %v6487_v23, %v6503_v1 }
0x10d5   :  { %v6492_v49 = vld [vmem:[#allocation2 + $0x478] sm:$0xff] }
0x10d6   :  { %v6468_v20 = vadd.f32 1e-05, %v6460_v37  ;;  %10760 = vmatmul.mubr.msk.f32.gmra.mrb[156].mxu1 %vm2749_vm2, %v6496_v36  ;;  %v6504_v12 = vmul.f32 %v6496_v36, %v14306_v62  ;;  %v6505_v37 = vmul.f32 %v6497_v25, %v14304_v40  ;;  %v15662_v36 = vld [vmem:[#allocation41_spill] sm:$0xff] }
0x10d7   :  { %10762 = vmatprep.mubr.msk.f32.mxu1 %vm2749_vm2, %v6497_v25  ;;  %v14335_v28 = vpop.permute.xlu1 %6779  ;;  %v1108_v26 = vpop.permute.xlu0 %1107  ;;  %v6490_v25 = vld [vmem:[#allocation2 + $0x468] sm:$0xff] }
0x10d8   :  { %11310 = vrsqrt.f32 %v6468_v20  ;;  %v2581_v14 = vadd.f32 %v14224_v63, %v1108_v26  ;;  %v15658_v63 = vld [vmem:[#allocation42_spill] sm:$0xff]  ;;  %v6512_v26 = vsub.f32 %v6488_v61, %v6504_v12 }
0x10da   :  { %v11307_v21 = vpop.eup %11306  ;;  %2892 = vst.msk [vmem:[#allocation2 + $0x470] sm:$0xff] %vm2749_vm2, %v2581_v14  ;;  %v6489_v14 = vld [vmem:[#allocation2 + $0x460] sm:$0xff] }
0x10db   :  { %v11309_v54 = vpop.eup %11308  ;;  %v14339_v42 = vpop.permute.xlu1 %6789  ;;  %v6499_v57 = vmul.f32 %v11307_v21, %v6483_v0  ;;  %v15661_v0 = vld [vmem:[#allocation45_spill] sm:$0xff] }
0x10dc   :  { %v14341_v44 = vpop.permute.xlu0 %6754  ;;  %v6498_v53 = vmul.f32 %v11309_v54, %v6482_v8  ;;  %v6513_v8 = vsub.f32 %v6489_v14, %v6505_v37 }
0x10de   :  { %10763 = vmatmul.mubr.msk.f32.gmra.mrb[158].mxu1 %vm2749_vm2, %v6498_v53  ;;  %v6506_v21 = vmul.f32 %v6498_v53, %v14314_v11 }
0x10df   :  { %10765 = vmatprep.mubr.msk.f32.mxu1 %vm2749_vm2, %v6499_v57  ;;  %v678_v27 = vpop.permute.xlu1 %677 }
0x10e0   :  { %v14345_v38 = vpop.permute.xlu0 %6764  ;;  %v2151_v9 = vadd.f32 %v15658_v63, %v678_v27  ;;  %v6507_v27 = vmul.f32 %v6499_v57, %v14312_v34  ;;  %v6514_v11 = vsub.f32 %v6490_v25, %v6506_v21 }
0x10e1   :  { %v6491_v40 = vld [vmem:[#allocation2 + $0x470] sm:$0xff] }
0x10e2   :  { %v11311_v33 = vpop.eup %11310  ;;  %2806 = vst.msk [vmem:[#allocation2 + $0x1c0] sm:$0xff] %vm2749_vm2, %v2151_v9  ;;  %v6515_v56 = vsub.f32 %v6491_v40, %v6507_v27 }
0x10e3   :  { %v688_v24 = vpop.permute.xlu1 %687  ;;  %v6500_v19 = vmul.f32 %v11311_v33, %v6484_v29  ;;  %v15664_v29 = vld [vmem:[#allocation46_spill] sm:$0xff] }
0x10e4   :  { %v14350_v18 = vpop.permute.xlu0 %6774  ;;  %v2161_v35 = vadd.f32 %v15659_v17, %v688_v24 }
0x10e5   :  { %10766 = vmatmul.mubr.msk.f32.gmra.mrb[160].mxu1 %vm2749_vm2, %v6500_v19  ;;  %v6508_v53 = vmul.f32 %v6500_v19, %v14321_v47  ;;  %v15665_v47 = vld [vmem:[#allocation48_spill] sm:$0xff] }
0x10e6   :  { %2808 = vst.msk [vmem:[#allocation2 + $0x1d0] sm:$0xff] %vm2749_vm2, %v2161_v35  ;;  %10768 = vmatprep.mubr.msk.f32.mxu1 %vm2749_vm2, %v6509_v60 }
0x10e7   :  { %v693_v31 = vpop.permute.xlu1 %692  ;;  %v6516_v17 = vsub.f32 %v6492_v49, %v6508_v53 }
0x10e8   :  { %v14358_v58 = vpop.permute.xlu0 %6784  ;;  %v2166_v51 = vadd.f32 %v15660_v6, %v693_v31 }
0x10e9   :  { %10769 = vmatmul.mubr.msk.f32.gmra.mrb[162].mxu1 %vm2749_vm2, %v6510_v13 }
0x10ea   :  { %2809 = vst.msk [vmem:[#allocation2 + $0x1d8] sm:$0xff] %vm2749_vm2, %v2166_v51  ;;  %10771 = vmatprep.mubr.msk.f32.mxu1 %vm2749_vm2, %v6511_v46 }
0x10eb   :  { %v703_v32 = vpop.permute.xlu1 %702 }
0x10ec   :  { %v683_v20 = vpop.permute.xlu0 %682  ;;  %v2176_v62 = vadd.f32 %v15661_v0, %v703_v32 }
0x10ed   :  { %v2156_v54 = vadd.f32 %v15662_v36, %v683_v20  ;;  %10772 = vmatmul.mubr.msk.f32.gmra.mrb[164].mxu1 %vm2749_vm2, %v6512_v26 }
0x10ee   :  { %2811 = vst.msk [vmem:[#allocation2 + $0x1e8] sm:$0xff] %vm2749_vm2, %v2176_v62  ;;  %10774 = vmatprep.mubr.msk.f32.mxu1 %vm2749_vm2, %v6513_v8 }
0x10ef   :  { %2807 = vst.msk [vmem:[#allocation2 + $0x1c8] sm:$0xff] %vm2749_vm2, %v2156_v54  ;;  %v713_v63 = vpop.permute.xlu1 %712 }
0x10f0   :  { %v698_v9 = vpop.permute.xlu0 %697  ;;  %v2186_v33 = vadd.f32 %v15663_v16, %v713_v63 }
0x10f1   :  { %v2171_v24 = vadd.f32 %v15664_v29, %v698_v9  ;;  %10775 = vmatmul.mubr.msk.f32.gmra.mrb[166].mxu1 %vm2749_vm2, %v6514_v11 }
0x10f2   :  { %2813 = vst.msk [vmem:[#allocation2 + $0x1f8] sm:$0xff] %vm2749_vm2, %v2186_v33  ;;  %10777 = vmatprep.mubr.msk.f32.mxu1 %vm2749_vm2, %v6515_v56 }
0x10f3   :  { %2810 = vst.msk [vmem:[#allocation2 + $0x1e0] sm:$0xff] %vm2749_vm2, %v2171_v24  ;;  %v1123_v34 = vpop.permute.xlu1 %1122 }
0x10f4   :  { %v708_v57 = vpop.permute.xlu0 %707  ;;  %v2596_v35 = vadd.f32 %v14271_v15, %v1123_v34 }
0x10f5   :  { %v2181_v19 = vadd.f32 %v15665_v47, %v708_v57  ;;  %10778 = vmatmul.mubr.msk.f32.gmra.mrb[168].mxu1 %vm2749_vm2, %v6516_v17 }
0x10f6   :  { %2895 = vst.msk [vmem:[#allocation2 + $0x488] sm:$0xff] %vm2749_vm2, %v2596_v35 }
0x10f7   :  { %2812 = vst.msk [vmem:[#allocation2 + $0x1f0] sm:$0xff] %vm2749_vm2, %v2181_v19  ;;  %v1133_v60 = vpop.permute.xlu1 %1132 }
0x10f8   :  { %v1118_v1 = vpop.permute.xlu0 %1117  ;;  %v2606_v5 = vadd.f32 %v14281_v48, %v1133_v60  ;;  %v191_v48 = vld [vmem:[%s15553_s5 + $0x4b0] sm:$0xff] }
0x10f9   :  { %v2591_v31 = vadd.f32 %v14273_v52, %v1118_v1  ;;  %v9440_v52 = vld [vmem:[%s15555_s7 + $0x180] sm:$0xff]  ;;  %10377 = vmatprep.mubr.msk.f32.mxu0 %vm1275_vm0, %v191_v48  ;;  %v9442_v48 = vld [vmem:[%s15555_s7 + $0x190] sm:$0xff] }
0x10fa   :  { %2897 = vst.msk [vmem:[#allocation2 + $0x498] sm:$0xff] %vm2749_vm2, %v2606_v5  ;;  %10796 = vmatprep.mubr.msk.f32.mxu1 %vm3527_vm4, %v9440_v52  ;;  %v9441_v52 = vld [vmem:[%s15555_s7 + $0x188] sm:$0xff] }
0x10fb   :  { %2894 = vst.msk [vmem:[#allocation2 + $0x480] sm:$0xff] %vm2749_vm2, %v2591_v31  ;;  %v1143_v13 = vpop.permute.xlu1 %1142 }
0x10fc   :  { %v1128_v15 = vpop.permute.xlu0 %1127  ;;  %v2616_v23 = vadd.f32 %v14288_v7, %v1143_v13 }
0x10fd   :  { %v2601_v12 = vadd.f32 %v14283_v10, %v1128_v15  ;;  %v192_v10 = vld [vmem:[%s15553_s5 + $0x4b8] sm:$0xff] }
0x10fe   :  { %2899 = vst.msk [vmem:[#allocation2 + $0x4a8] sm:$0xff] %vm2749_vm2, %v2616_v23  ;;  %10378 = vmatmul.mubr.msk.f32.gmra.mrb[150].mxu0 %vm1275_vm0, %v192_v10  ;;  %v9443_v10 = vld [vmem:[%s15555_s7 + $0x198] sm:$0xff] }
0x10ff   :  { %2896 = vst.msk [vmem:[#allocation2 + $0x490] sm:$0xff] %vm2749_vm2, %v2601_v12 }
0x1100   :  { %v1138_v6 = vpop.permute.xlu0 %1137 }
0x1101   :  { %v2611_v51 = vadd.f32 %v14290_v30, %v1138_v6 }
0x1103   :  { %2898 = vst.msk [vmem:[#allocation2 + $0x4a0] sm:$0xff] %vm2749_vm2, %v2611_v51 }
0x11a1   :  { %v10758_v7 = vpop.f32.mrb[154].mxu1 }
0x11a2   :  { %v6631_v30 = vpop.f32.mrb[155].mxu1  ;;  %v6711_v14 = vmul.f32 %v10758_v7, %v14151_v3  ;;  %v9444_v7 = vld [vmem:[%s15555_s7 + $0x1a0] sm:$0xff] }
0x11a3   :  { %v6710_v21 = vmul.f32 %v6631_v30, %v14154_v39  ;;  %v9445_v30 = vld [vmem:[%s15555_s7 + $0x1a8] sm:$0xff] }
0x11a9   :  { %v10761_v46 = vpop.f32.mrb[156].mxu1 }
0x11aa   :  { %v6641_v37 = vpop.f32.mrb[157].mxu1  ;;  %v6713_v8 = vmul.f32 %v10761_v46, %v14172_v2  ;;  %v9446_v46 = vld [vmem:[%s15555_s7 + $0x1b0] sm:$0xff] }
0x11ab   :  { %v6712_v25 = vmul.f32 %v6641_v37, %v14160_v50  ;;  %v193_v37 = vld [vmem:[%s15553_s5 + $0x4c0] sm:$0xff] }
0x11ac   :  { %10380 = vmatprep.mubr.msk.f32.mxu0 %vm1275_vm0, %v193_v37 }
0x11b1   :  { %v10764_v61 = vpop.f32.mrb[158].mxu1 }
0x11b2   :  { %v6651_v32 = vpop.f32.mrb[159].mxu1  ;;  %v6715_v33 = vmul.f32 %v10764_v61, %v14186_v43  ;;  %v194_v61 = vld [vmem:[%s15553_s5 + $0x4c8] sm:$0xff] }
0x11b3   :  { %v6714_v24 = vmul.f32 %v6651_v32, %v14175_v41  ;;  %10381 = vmatmul.mubr.msk.f32.gmra.mrb[152].mxu0 %vm1275_vm0, %v194_v61  ;;  %v195_v32 = vld [vmem:[%s15553_s5 + $0x4d0] sm:$0xff] }
0x11b4   :  { %10383 = vmatprep.mubr.msk.f32.mxu0 %vm1275_vm0, %v195_v32  ;;  %v373_v61 = vld [vmem:[%s15554_s6 + $0x4d0] sm:$0xff] }
0x11b8   :  { %v10767_v20 = vpop.f32.mrb[160].mxu1 }
0x11b9   :  { %v6661_v26 = vpop.f32.mrb[161].mxu1  ;;  %v6717_v47 = vmul.f32 %v10767_v20, %v14199_v45  ;;  %v196_v20 = vld [vmem:[%s15553_s5 + $0x4d8] sm:$0xff] }
0x11ba   :  { %v6716_v60 = vmul.f32 %v6661_v26, %v14189_v4  ;;  %10384 = vmatmul.mubr.msk.f32.gmra.mrb[154].mxu0 %vm1275_vm0, %v196_v20  ;;  %v197_v26 = vld [vmem:[%s15553_s5 + $0x4e0] sm:$0xff] }
0x11bb   :  { %10386 = vmatprep.mubr.msk.f32.mxu0 %vm1275_vm0, %v197_v26  ;;  %v375_v26 = vld [vmem:[%s15554_s6 + $0x4e0] sm:$0xff] }
0x11bc   :  { %v10770_v0 = vpop.f32.mrb[162].mxu1 }
0x11bd   :  { %v6719_v62 = vadd.f32 %v10770_v0, %v6711_v14  ;;  %v6671_v36 = vpop.f32.mrb[163].mxu1  ;;  %v198_v14 = vld [vmem:[%s15553_s5 + $0x4e8] sm:$0xff] }
0x11be   :  { %v6718_v54 = vadd.f32 %v6710_v21, %v6671_v36  ;;  %10387 = vmatmul.mubr.msk.f32.gmra.mrb[156].mxu0 %vm1275_vm0, %v198_v14 }
0x11bf   :  { %v6727_v40 = vmax.f32 %v6719_v62, 0.0 }
0x11c0   :  { %v6726_v27 = vmax.f32 %v6718_v54, 0.0  ;;  %v10773_v63 = vpop.f32.mrb[164].mxu1 }
0x11c1   :  { %v6721_v9 = vadd.f32 %v10773_v63, %v6713_v8  ;;  %v6681_v11 = vpop.f32.mrb[165].mxu1 }
0x11c2   :  { %v11115_v53 = vpack.c.bf16 %v6727_v40, %v6726_v27  ;;  %v6720_v16 = vadd.f32 %v6712_v25, %v6681_v11 }
0x11c3   :  { %v6729_v29 = vmax.f32 %v6721_v9, 0.0 }
0x11c4   :  { %v6728_v56 = vmax.f32 %v6720_v16, 0.0  ;;  %v10776_v49 = vpop.f32.mrb[166].mxu1  ;;  %11116 = vmatprep.subr.bf16.mxu1 %v11115_v53 }
0x11c5   :  { %v6723_v34 = vadd.f32 %v10776_v49, %v6715_v33  ;;  %v6691_v57 = vpop.f32.mrb[167].mxu1  ;;  %11118 = vmatpush3.bf16.msra.mxu1 %v11115_v53  ;;  %v9490_v49 = vld [vmem:[%s15556_s8 + $0x1c8] sm:$0xff] }
0x11c6   :  { %v11119_v17 = vpack.c.bf16 %v6729_v29, %v6728_v56  ;;  %v6722_v35 = vadd.f32 %v6714_v24, %v6691_v57  ;;  %v9494_v57 = vld [vmem:[%s15556_s8 + $0x1e8] sm:$0xff] }
0x11c7   :  { %v6731_v19 = vmax.f32 %v6723_v34, 0.0 }
0x11c8   :  { %v6730_v1 = vmax.f32 %v6722_v35, 0.0  ;;  %v10779_v5 = vpop.f32.mrb[168].mxu1  ;;  %11120 = vmatprep.subr.bf16.mxu1 %v11119_v17  ;;  %v9496_v35 = vld [vmem:[%s15556_s8 + $0x1f8] sm:$0xff] }
0x11c9   :  { %v6725_v31 = vadd.f32 %v10779_v5, %v6717_v47  ;;  %v6701_v13 = vpop.f32.mrb[169].mxu1  ;;  %11122 = vmatpush3.bf16.msra.mxu1 %v11119_v17  ;;  %v369_v17 = vld [vmem:[%s15554_s6 + $0x4b0] sm:$0xff] }
0x11ca   :  { %v11123_v15 = vpack.c.bf16 %v6731_v19, %v6730_v1  ;;  %v6724_v23 = vadd.f32 %v6716_v60, %v6701_v13  ;;  %v9489_v19 = vld [vmem:[%s15556_s8 + $0x1c0] sm:$0xff]  ;;  %v9491_v1 = vld [vmem:[%s15556_s8 + $0x1d0] sm:$0xff]  ;;  %v286_v13 = vld [vmem:[%s15554_s6 + $0x218] sm:$0xff] }
0x11cb   :  { %v6733_v12 = vmax.f32 %v6725_v31, 0.0  ;;  %v283_v60 = vld [vmem:[%s15554_s6 + $0x200] sm:$0xff]  ;;  %v285_v5 = vld [vmem:[%s15554_s6 + $0x210] sm:$0xff] }
0x11cc   :  { %v6732_v6 = vmax.f32 %v6724_v23, 0.0  ;;  %11124 = vmatprep.subr.bf16.mxu1 %v11123_v15  ;;  %v9493_v31 = vld [vmem:[%s15556_s8 + $0x1e0] sm:$0xff]  ;;  %v288_v23 = vld [vmem:[%s15554_s6 + $0x228] sm:$0xff] }
0x11cd   :  { %11126 = vmatpush3.bf16.msra.mxu1 %v11123_v15  ;;  %v9495_v15 = vld [vmem:[%s15556_s8 + $0x1f0] sm:$0xff] }
0x11ce   :  { %v11127_v51 = vpack.c.bf16 %v6733_v12, %v6732_v6  ;;  %v284_v12 = vld [vmem:[%s15554_s6 + $0x208] sm:$0xff]  ;;  %v290_v6 = vld [vmem:[%s15554_s6 + $0x238] sm:$0xff] }
0x11d0   :  { %11128 = vmatprep.subr.bf16.mxu1 %v11127_v51 }
0x11d1   :  { %11130 = vmatpush3.bf16.msra.mxu1 %v11127_v51  ;;  %v14526_v34 = vpop.f32.mrb[150].mxu0  ;;  %v287_v51 = vld [vmem:[%s15554_s6 + $0x220] sm:$0xff] }
0x11d2   :  { %10808 = vmatprep.subr.msk.mxu1 %vm3298_vm3, %v14096_v22  ;;  %v14540_v47 = vpop.f32.mrb[151].mxu0 }
0x11d4   :  { %10797 = vmatmul.mubr.msk.f32.vlgmr.msra.gmra.mrb[170].mxu1 %vm3527_vm4, %v9441_v52  ;;  %v372_v52 = vld [vmem:[%s15554_s6 + $0x4c8] sm:$0xff] }
0x11d5   :  { %10799 = vmatprep.mubr.msk.f32.mxu1 %vm3527_vm4, %v9442_v48  ;;  %10809 = vmatpush3.msk.msra.mxu1 %vm3298_vm3, %v14096_v22  ;;  %v9447_v22 = vld [vmem:[%s15555_s7 + $0x1b8] sm:$0xff]  ;;  %v289_v48 = vld [vmem:[%s15554_s6 + $0x230] sm:$0xff] }
0x11d8   :  { %10800 = vmatmul.mubr.msk.f32.gmra.mrb[172].mxu1 %vm3527_vm4, %v9443_v10  ;;  %v374_v10 = vld [vmem:[%s15554_s6 + $0x4d8] sm:$0xff] }
0x11d9   :  { %10802 = vmatprep.mubr.msk.f32.mxu1 %vm3527_vm4, %v9444_v7 }
0x11dc   :  { %10803 = vmatmul.mubr.msk.f32.gmra.mrb[174].mxu1 %vm3527_vm4, %v9445_v30  ;;  %v371_v30 = vld [vmem:[%s15554_s6 + $0x4c0] sm:$0xff] }
0x11dd   :  { %10805 = vmatprep.mubr.msk.f32.mxu1 %vm3527_vm4, %v9446_v46 }
0x11e0   :  { %10806 = vmatmul.mubr.msk.f32.gmra.mrb[176].mxu1 %vm3527_vm4, %v9447_v22  ;;  %v376_v22 = vld [vmem:[%s15554_s6 + $0x4e8] sm:$0xff] }
0x1286   :  { %v14584_v7 = vpop.f32.mrb[152].mxu0 }
0x1287   :  { %v14589_v46 = vpop.f32.mrb[153].mxu0 }
0x128d   :  { %v14594_v37 = vpop.f32.mrb[154].mxu0 }
0x128e   :  { %v14599_v32 = vpop.f32.mrb[155].mxu0 }
0x1291   :  { %v14601_v20 = vpop.f32.mrb[156].mxu0 }
0x1292   :  { %v14606_v14 = vpop.f32.mrb[157].mxu0 }
0x12a7   :  { %v10798_v21 = vpop.f32.mrb[170].mxu1 }
0x12a8   :  { %v14473_v0 = vadd.f32 %v10798_v21, %v14325_v59  ;;  %v6882_v62 = vpop.f32.mrb[171].mxu1 }
0x12a9   :  { %v14476_v36 = vadd.f32 %v6882_v62, %v14341_v44 }
0x12aa   :  { %6931 = vadd.xlane.f32.xlu1 %v14473_v0  ;;  %v6922_v25 = vmul.f32 %v14473_v0, %v14473_v0 }
0x12ab   :  { %v10801_v54 = vpop.f32.mrb[172].mxu1  ;;  %6929 = vadd.xlane.f32.xlu0 %v14476_v36  ;;  %v6921_v44 = vmul.f32 %v14476_v36, %v14476_v36 }
0x12ac   :  { %v6892_v8 = vpop.f32.mrb[173].mxu1 }
0x12ad   :  { %v14481_v40 = vadd.f32 %v6892_v8, %v14345_v38  ;;  %v14491_v38 = vadd.f32 %v10801_v54, %v14331_v55 }
0x12af   :  { %v10804_v27 = vpop.f32.mrb[174].mxu1  ;;  %6947 = vadd.xlane.f32.xlu0 %v6922_v25  ;;  %6933 = vadd.xlane.f32.xlu1 %v14481_v40  ;;  %v6923_v63 = vmul.f32 %v14481_v40, %v14481_v40  ;;  %v6924_v16 = vmul.f32 %v14491_v38, %v14491_v38 }
0x12b0   :  { %v6902_v59 = vpop.f32.mrb[175].mxu1  ;;  %v14503_v29 = vadd.f32 %v10804_v27, %v14335_v28 }
0x12b1   :  { %v14494_v53 = vadd.f32 %v6902_v59, %v14350_v18 }
0x12b2   :  { %v6926_v18 = vmul.f32 %v14503_v29, %v14503_v29 }
0x12b3   :  { %v10807_v9 = vpop.f32.mrb[176].mxu1  ;;  %6945 = vadd.xlane.f32.xlu0 %v6921_v44  ;;  %6949 = vadd.xlane.f32.xlu1 %v6923_v63  ;;  %v6925_v33 = vmul.f32 %v14494_v53, %v14494_v53 }
0x12b4   :  { %v6912_v11 = vpop.f32.mrb[177].mxu1  ;;  %v14515_v56 = vadd.f32 %v10807_v9, %v14339_v42  ;;  %v9492_v42 = vld [vmem:[%s15556_s8 + $0x1d8] sm:$0xff] }
0x12b5   :  { %v14506_v55 = vadd.f32 %v6912_v11, %v14358_v58  ;;  %v370_v58 = vld [vmem:[%s15554_s6 + $0x4b8] sm:$0xff] }
0x12b6   :  { %v6928_v28 = vmul.f32 %v14515_v56, %v14515_v56 }
0x12b7   :  { %6935 = vadd.xlane.f32.xlu0 %v14491_v38  ;;  %6937 = vadd.xlane.f32.xlu1 %v14494_v53  ;;  %v6927_v24 = vmul.f32 %v14506_v55, %v14506_v55 }
0x12bb   :  { %6951 = vadd.xlane.f32.xlu0 %v6924_v16  ;;  %6953 = vadd.xlane.f32.xlu1 %v6925_v33 }
0x12bf   :  { %6939 = vadd.xlane.f32.xlu0 %v14503_v29  ;;  %6941 = vadd.xlane.f32.xlu1 %v14506_v55 }
0x12c3   :  { %6955 = vadd.xlane.f32.xlu0 %v6926_v18  ;;  %6957 = vadd.xlane.f32.xlu1 %v6927_v24 }
0x12c7   :  { %6943 = vadd.xlane.f32.xlu0 %v14515_v56 }
0x12cb   :  { %6959 = vadd.xlane.f32.xlu0 %v6928_v28 }
0x12d4   :  { %1152 = vperm.xlu1 %11199, %v370_v58  }
0x12d8   :  { %7299 = vperm.xlu1 %11199, %v9490_v49  }
0x12dc   :  { %7309 = vperm.xlu1 %11199, %v9492_v42  }
0x12e0   :  { %7319 = vperm.xlu1 %11199, %v9494_v57  }
0x12e1   :  { %1147 = vperm.xlu0 %11198, %v369_v17  }
0x12e4   :  { %7329 = vperm.xlu1 %11199, %v9496_v35  }
0x12e5   :  { %7294 = vperm.xlu0 %11198, %v9489_v19  }
0x12e8   :  { %717 = vperm.xlu1 %11199, %v283_v60  }
0x12e9   :  { %7304 = vperm.xlu0 %11198, %v9491_v1  }
0x12ec   :  { %727 = vperm.xlu1 %11199, %v285_v5  }
0x12ed   :  { %7314 = vperm.xlu0 %11198, %v9493_v31  }
0x12f0   :  { %732 = vperm.xlu1 %11199, %v286_v13  }
0x12f1   :  { %7324 = vperm.xlu0 %11198, %v9495_v15  }
0x12f4   :  { %742 = vperm.xlu1 %11199, %v288_v23  }
0x12f5   :  { %722 = vperm.xlu0 %11198, %v284_v12  }
0x12f8   :  { %752 = vperm.xlu1 %11199, %v290_v6  }
0x12f9   :  { %737 = vperm.xlu0 %11198, %v287_v51  }
0x12fc   :  { %1162 = vperm.xlu1 %11199, %v372_v52  }
0x12fd   :  { %747 = vperm.xlu0 %11198, %v289_v48  }
0x1300   :  { %1172 = vperm.xlu1 %11199, %v374_v10  }
0x1301   :  { %1157 = vperm.xlu0 %11198, %v371_v30  }
0x1304   :  { %1182 = vperm.xlu1 %11199, %v376_v22  }
0x1305   :  { %1167 = vperm.xlu0 %11198, %v373_v61  }
0x1309   :  { %1177 = vperm.xlu0 %11198, %v375_v26  }
0x1337   :  { %v6932_v21 = vpop.xlane.xlu1 %6931 }
0x1338   :  { %v6930_v62 = vpop.xlane.xlu0 %6929  ;;  %v14608_v54 = vmul.f32 0.0078125, %v6932_v21 }
0x1339   :  { %v14610_v8 = vmul.f32 0.0078125, %v6930_v62 }
0x133a   :  { %v6978_v59 = vmul.f32 %v14608_v54, %v14608_v54 }
0x133b   :  { %v6977_v11 = vmul.f32 %v14610_v8, %v14610_v8 }
0x133c   :  { %v6934_v25 = vpop.xlane.xlu1 %6933  ;;  %v6948_v27 = vpop.xlane.xlu0 %6947 }
0x133d   :  { %v14614_v44 = vmul.f32 0.0078125, %v6934_v25  ;;  %v6970_v63 = vmul.f32 0.0078125, %v6948_v27 }
0x133f   :  { %v6986_v9 = vsub.f32 %v6970_v63, %v6978_v59  ;;  %v6979_v18 = vmul.f32 %v14614_v44, %v14614_v44 }
0x1340   :  { %v6950_v16 = vpop.xlane.xlu1 %6949  ;;  %v6946_v33 = vpop.xlane.xlu0 %6945 }
0x1341   :  { %v6994_v24 = vmax.f32 %v6986_v9, 0.0  ;;  %v6971_v28 = vmul.f32 0.0078125, %v6950_v16  ;;  %v6969_v58 = vmul.f32 0.0078125, %v6946_v33 }
0x1343   :  { %v6987_v49 = vsub.f32 %v6971_v28, %v6979_v18  ;;  %v6985_v42 = vsub.f32 %v6969_v58, %v6977_v11  ;;  %v7002_v57 = vadd.f32 1e-05, %v6994_v24 }
0x1344   :  { %v6938_v17 = vpop.xlane.xlu1 %6937  ;;  %v6936_v35 = vpop.xlane.xlu0 %6935 }
0x1345   :  { %v6995_v19 = vmax.f32 %v6987_v49, 0.0  ;;  %v6993_v60 = vmax.f32 %v6985_v42, 0.0  ;;  %v14620_v1 = vmul.f32 0.0078125, %v6938_v17  ;;  %v14622_v5 = vmul.f32 0.0078125, %v6936_v35 }
0x1346   :  { %11312 = vrsqrt.f32 %v7002_v57 }
0x1347   :  { %v7003_v31 = vadd.f32 1e-05, %v6995_v19  ;;  %v7001_v13 = vadd.f32 1e-05, %v6993_v60  ;;  %v6981_v12 = vmul.f32 %v14620_v1, %v14620_v1  ;;  %v6980_v6 = vmul.f32 %v14622_v5, %v14622_v5 }
0x1348   :  { %v6954_v15 = vpop.xlane.xlu1 %6953  ;;  %v6952_v23 = vpop.xlane.xlu0 %6951 }
0x1349   :  { %v6973_v51 = vmul.f32 0.0078125, %v6954_v15  ;;  %v6972_v52 = vmul.f32 0.0078125, %v6952_v23  ;;  %11314 = vrsqrt.f32 %v7001_v13  ;;  %v7018_v13 = vld [vmem:[#allocation2 + $0x1c8] sm:$0xff] }
0x134a   :  { %11316 = vrsqrt.f32 %v7003_v31  ;;  %v7017_v31 = vld [vmem:[#allocation2 + $0x1c0] sm:$0xff] }
0x134b   :  { %v6989_v48 = vsub.f32 %v6973_v51, %v6981_v12  ;;  %v6988_v10 = vsub.f32 %v6972_v52, %v6980_v6  ;;  %v7019_v51 = vld [vmem:[#allocation2 + $0x1d0] sm:$0xff] }
0x134c   :  { %v6942_v30 = vpop.xlane.xlu1 %6941  ;;  %v6940_v22 = vpop.xlane.xlu0 %6939 }
0x134d   :  { %v6997_v61 = vmax.f32 %v6989_v48, 0.0  ;;  %v6996_v26 = vmax.f32 %v6988_v10, 0.0  ;;  %v14628_v21 = vmul.f32 0.0078125, %v6942_v30  ;;  %v14630_v62 = vmul.f32 0.0078125, %v6940_v22 }
0x134f   :  { %v7005_v25 = vadd.f32 1e-05, %v6997_v61  ;;  %v7004_v27 = vadd.f32 1e-05, %v6996_v26  ;;  %v6983_v59 = vmul.f32 %v14628_v21, %v14628_v21  ;;  %v6982_v11 = vmul.f32 %v14630_v62, %v14630_v62  ;;  %v7021_v26 = vld [vmem:[#allocation2 + $0x1e0] sm:$0xff] }
0x1350   :  { %v6958_v63 = vpop.xlane.xlu1 %6957  ;;  %v6956_v9 = vpop.xlane.xlu0 %6955 }
0x1351   :  { %11318 = vrsqrt.f32 %v7005_v25  ;;  %v6975_v16 = vmul.f32 0.0078125, %v6958_v63  ;;  %v6974_v33 = vmul.f32 0.0078125, %v6956_v9  ;;  %v11313_v18 = vpop.eup %11312 }
0x1352   :  { %11320 = vrsqrt.f32 %v7004_v27  ;;  %v7034_v23 = vmul.f32 %v11313_v18, %v7018_v13 }
0x1353   :  { %v6991_v24 = vsub.f32 %v6975_v16, %v6983_v59  ;;  %v6990_v28 = vsub.f32 %v6974_v33, %v6982_v11  ;;  %v11315_v58 = vpop.eup %11314  ;;  %v7020_v59 = vld [vmem:[#allocation2 + $0x1d8] sm:$0xff] }
0x1354   :  { %v1153_v49 = vpop.permute.xlu1 %1152  ;;  %v6944_v42 = vpop.xlane.xlu0 %6943  ;;  %v7033_v15 = vmul.f32 %v11315_v58, %v7017_v31  ;;  %v7023_v58 = vld [vmem:[#allocation2 + $0x1f0] sm:$0xff] }
0x1355   :  { %v11317_v57 = vpop.eup %11316  ;;  %v6999_v17 = vmax.f32 %v6991_v24, 0.0  ;;  %v6998_v35 = vmax.f32 %v6990_v28, 0.0  ;;  %v2626_v19 = vadd.f32 %v14526_v34, %v1153_v49  ;;  %v14637_v60 = vmul.f32 0.0078125, %v6944_v42 }
0x1356   :  { %10810 = vmatprep.mubr.msk.f32.mxu1 %vm2749_vm2, %v7033_v15  ;;  %v7035_v48 = vmul.f32 %v11317_v57, %v7019_v51 }
0x1357   :  { %v7007_v12 = vadd.f32 1e-05, %v6999_v17  ;;  %v7006_v6 = vadd.f32 1e-05, %v6998_v35  ;;  %2901 = vst.msk [vmem:[#allocation2 + $0x4b8] sm:$0xff] %vm2749_vm2, %v2626_v19  ;;  %v6984_v34 = vmul.f32 %v14637_v60, %v14637_v60  ;;  %10811 = vmatmul.mubr.msk.f32.vlgmr.msra.gmra.mrb[178].mxu1 %vm2749_vm2, %v7034_v23  ;;  %v7022_v17 = vld [vmem:[#allocation2 + $0x1e8] sm:$0xff] }
0x1358   :  { %v14641_v52 = vpop.permute.xlu1 %7299  ;;  %v6960_v10 = vpop.xlane.xlu0 %6959  ;;  %10813 = vmatprep.mubr.msk.f32.mxu1 %vm2749_vm2, %v7035_v48 }
0x1359   :  { %11322 = vrsqrt.f32 %v7007_v12  ;;  %v6976_v30 = vmul.f32 0.0078125, %v6960_v10  ;;  %v7024_v10 = vld [vmem:[#allocation2 + $0x1f8] sm:$0xff] }
0x135a   :  { %11324 = vrsqrt.f32 %v7006_v6  ;;  %v7041_v6 = vmul.f32 %v7033_v15, %v14610_v8  ;;  %v7026_v8 = vld [vmem:[#allocation2 + $0x488] sm:$0xff] }
0x135b   :  { %v11319_v22 = vpop.eup %11318  ;;  %v6992_v61 = vsub.f32 %v6976_v30, %v6984_v34 }
0x135c   :  { %v11321_v25 = vpop.eup %11320  ;;  %v14647_v27 = vpop.permute.xlu1 %7309  ;;  %v7037_v63 = vmul.f32 %v11319_v22, %v7021_v26  ;;  %v7042_v26 = vmul.f32 %v7034_v23, %v14608_v54  ;;  %v15668_v54 = vld [vmem:[#allocation51_spill] sm:$0xff] }
0x135d   :  { %v7000_v9 = vmax.f32 %v6992_v61, 0.0  ;;  %v7036_v11 = vmul.f32 %v11321_v25, %v7020_v59  ;;  %v7025_v61 = vld [vmem:[#allocation2 + $0x480] sm:$0xff]  ;;  %v15667_v25 = vld [vmem:[#allocation52_spill] sm:$0xff] }
0x135f   :  { %v7008_v16 = vadd.f32 1e-05, %v7000_v9  ;;  %10814 = vmatmul.mubr.msk.f32.gmra.mrb[180].mxu1 %vm2749_vm2, %v7036_v11  ;;  %v7049_v9 = vsub.f32 %v7025_v61, %v7041_v6 }
0x1360   :  { %10816 = vmatprep.mubr.msk.f32.mxu1 %vm2749_vm2, %v7037_v63  ;;  %v14651_v33 = vpop.permute.xlu1 %7319  ;;  %v1148_v18 = vpop.permute.xlu0 %1147 }
0x1361   :  { %11326 = vrsqrt.f32 %v7008_v16  ;;  %v2621_v24 = vadd.f32 %v14540_v47, %v1148_v18  ;;  %v15666_v47 = vld [vmem:[#allocation50_spill] sm:$0xff]  ;;  %v7043_v16 = vmul.f32 %v7035_v48, %v14614_v44 }
0x1362   :  { %v7028_v44 = vld [vmem:[#allocation2 + $0x498] sm:$0xff] }
0x1363   :  { %v11323_v28 = vpop.eup %11322  ;;  %2900 = vst.msk [vmem:[#allocation2 + $0x4b0] sm:$0xff] %vm2749_vm2, %v2621_v24  ;;  %v7050_v24 = vsub.f32 %v7026_v8, %v7042_v26 }
0x1364   :  { %v11325_v49 = vpop.eup %11324  ;;  %v14655_v42 = vpop.permute.xlu1 %7329  ;;  %v7039_v35 = vmul.f32 %v11323_v28, %v7023_v58  ;;  %v7027_v28 = vld [vmem:[#allocation2 + $0x490] sm:$0xff]  ;;  %v7044_v58 = vmul.f32 %v7036_v11, %v14622_v5 }
0x1365   :  { %v14657_v57 = vpop.permute.xlu0 %7294  ;;  %v7038_v19 = vmul.f32 %v11325_v49, %v7022_v17  ;;  %v7051_v49 = vsub.f32 %v7027_v28, %v7043_v16  ;;  %v7045_v17 = vmul.f32 %v7037_v63, %v14620_v1  ;;  %v15670_v11 = vld [vmem:[#allocation49_spill] sm:$0xff]  ;;  %v7030_v63 = vld [vmem:[#allocation2 + $0x4a8] sm:$0xff]  ;;  %v15672_v16 = vld [vmem:[#allocation54_spill] sm:$0xff] }
0x1366   :  { %v7047_v61 = vmul.f32 %v7039_v35, %v14628_v21 }
0x1367   :  { %10817 = vmatmul.mubr.msk.f32.gmra.mrb[182].mxu1 %vm2749_vm2, %v7038_v19  ;;  %v7046_v6 = vmul.f32 %v7038_v19, %v14630_v62 }
0x1368   :  { %10819 = vmatprep.mubr.msk.f32.mxu1 %vm2749_vm2, %v7039_v35  ;;  %v718_v31 = vpop.permute.xlu1 %717 }
0x1369   :  { %v14661_v13 = vpop.permute.xlu0 %7304  ;;  %v2191_v12 = vadd.f32 %v15666_v47, %v718_v31  ;;  %v7052_v47 = vsub.f32 %v7028_v44, %v7044_v58  ;;  %v7054_v62 = vsub.f32 %v7030_v63, %v7046_v6  ;;  %v204_v6 = vld [vmem:[%s15553_s5 + $0x518] sm:$0xff]  ;;  %v211_v63 = vld [vmem:[%s15553_s5 + $0x550] sm:$0xff] }
0x136a   :  { %v7031_v1 = vld [vmem:[#allocation2 + $0x4b0] sm:$0xff] }
0x136b   :  { %v11327_v51 = vpop.eup %11326  ;;  %2814 = vst.msk [vmem:[#allocation2 + $0x200] sm:$0xff] %vm2749_vm2, %v2191_v12  ;;  %v7029_v12 = vld [vmem:[#allocation2 + $0x4a0] sm:$0xff] }
0x136c   :  { %v728_v34 = vpop.permute.xlu1 %727  ;;  %v7040_v22 = vmul.f32 %v11327_v51, %v7024_v10  ;;  %v15669_v51 = vld [vmem:[#allocation53_spill] sm:$0xff] }
0x136d   :  { %v14666_v30 = vpop.permute.xlu0 %7314  ;;  %v2201_v59 = vadd.f32 %v15667_v25, %v728_v34  ;;  %v7053_v34 = vsub.f32 %v7029_v12, %v7045_v17 }
0x136e   :  { %10820 = vmatmul.mubr.msk.f32.gmra.mrb[184].mxu1 %vm2749_vm2, %v7040_v22  ;;  %v7048_v19 = vmul.f32 %v7040_v22, %v14637_v60  ;;  %v15673_v60 = vld [vmem:[#allocation56_spill] sm:$0xff] }
0x136f   :  { %2816 = vst.msk [vmem:[#allocation2 + $0x210] sm:$0xff] %vm2749_vm2, %v2201_v59  ;;  %10822 = vmatprep.mubr.msk.f32.mxu1 %vm2749_vm2, %v7049_v9  ;;  %v15671_v59 = vld [vmem:[#allocation55_spill] sm:$0xff] }
0x1370   :  { %v733_v15 = vpop.permute.xlu1 %732 }
0x1371   :  { %v14674_v18 = vpop.permute.xlu0 %7324  ;;  %v2206_v23 = vadd.f32 %v15668_v54, %v733_v15  ;;  %v7055_v15 = vsub.f32 %v7031_v1, %v7047_v61  ;;  %v210_v1 = vld [vmem:[%s15553_s5 + $0x548] sm:$0xff]  ;;  %v212_v61 = vld [vmem:[%s15553_s5 + $0x558] sm:$0xff] }
0x1372   :  { %10823 = vmatmul.mubr.msk.f32.gmra.mrb[186].mxu1 %vm2749_vm2, %v7050_v24  ;;  %v7032_v24 = vld [vmem:[#allocation2 + $0x4b8] sm:$0xff] }
0x1373   :  { %2817 = vst.msk [vmem:[#allocation2 + $0x218] sm:$0xff] %vm2749_vm2, %v2206_v23  ;;  %10825 = vmatprep.mubr.msk.f32.mxu1 %vm2749_vm2, %v7051_v49  ;;  %v7056_v28 = vsub.f32 %v7032_v24, %v7048_v19 }
0x1374   :  { %v743_v48 = vpop.permute.xlu1 %742 }
0x1375   :  { %v723_v31 = vpop.permute.xlu0 %722  ;;  %v2216_v5 = vadd.f32 %v15669_v51, %v743_v48  ;;  %v205_v51 = vld [vmem:[%s15553_s5 + $0x520] sm:$0xff] }
0x1376   :  { %v2196_v10 = vadd.f32 %v15670_v11, %v723_v31  ;;  %10826 = vmatmul.mubr.msk.f32.gmra.mrb[188].mxu1 %vm2749_vm2, %v7052_v47  ;;  %v207_v11 = vld [vmem:[%s15553_s5 + $0x530] sm:$0xff] }
0x1377   :  { %2819 = vst.msk [vmem:[#allocation2 + $0x228] sm:$0xff] %vm2749_vm2, %v2216_v5  ;;  %10828 = vmatprep.mubr.msk.f32.mxu1 %vm2749_vm2, %v7053_v34  ;;  %v206_v5 = vld [vmem:[%s15553_s5 + $0x528] sm:$0xff]  ;;  %v209_v34 = vld [vmem:[%s15553_s5 + $0x540] sm:$0xff] }
0x1378   :  { %2815 = vst.msk [vmem:[#allocation2 + $0x208] sm:$0xff] %vm2749_vm2, %v2196_v10  ;;  %v753_v26 = vpop.permute.xlu1 %752  ;;  %v208_v10 = vld [vmem:[%s15553_s5 + $0x538] sm:$0xff] }
0x1379   :  { %v738_v25 = vpop.permute.xlu0 %737  ;;  %v2226_v9 = vadd.f32 %v15671_v59, %v753_v26  ;;  %v213_v26 = vld [vmem:[%s15553_s5 + $0x560] sm:$0xff] }
0x137a   :  { %v2211_v8 = vadd.f32 %v15672_v16, %v738_v25  ;;  %10829 = vmatmul.mubr.msk.f32.gmra.mrb[190].mxu1 %vm2749_vm2, %v7054_v62  ;;  %v214_v25 = vld [vmem:[%s15553_s5 + $0x568] sm:$0xff]  ;;  %v9481_v62 = vld [vmem:[%s15555_s7 + $0x1c0] sm:$0xff] }
0x137b   :  { %2821 = vst.msk [vmem:[#allocation2 + $0x238] sm:$0xff] %vm2749_vm2, %v2226_v9  ;;  %10831 = vmatprep.mubr.msk.f32.mxu1 %vm2749_vm2, %v7055_v15 }
0x137c   :  { %2818 = vst.msk [vmem:[#allocation2 + $0x220] sm:$0xff] %vm2749_vm2, %v2211_v8  ;;  %v1163_v21 = vpop.permute.xlu1 %1162 }
0x137d   :  { %v748_v35 = vpop.permute.xlu0 %747  ;;  %v2636_v58 = vadd.f32 %v14584_v7, %v1163_v21 }
0x137e   :  { %v2221_v22 = vadd.f32 %v15673_v60, %v748_v35  ;;  %10832 = vmatmul.mubr.msk.f32.gmra.mrb[192].mxu1 %vm2749_vm2, %v7056_v28 }
0x137f   :  { %2903 = vst.msk [vmem:[#allocation2 + $0x4c8] sm:$0xff] %vm2749_vm2, %v2636_v58 }
0x1380   :  { %2820 = vst.msk [vmem:[#allocation2 + $0x230] sm:$0xff] %vm2749_vm2, %v2221_v22  ;;  %v1173_v54 = vpop.permute.xlu1 %1172 }
0x1381   :  { %v1158_v23 = vpop.permute.xlu0 %1157  ;;  %v2646_v49 = vadd.f32 %v14594_v37, %v1173_v54  ;;  %v200_v37 = vld [vmem:[%s15553_s5 + $0x4f8] sm:$0xff] }
0x1382   :  { %v2631_v17 = vadd.f32 %v14589_v46, %v1158_v23  ;;  %v199_v46 = vld [vmem:[%s15553_s5 + $0x4f0] sm:$0xff] }
0x1383   :  { %2905 = vst.msk [vmem:[#allocation2 + $0x4d8] sm:$0xff] %vm2749_vm2, %v2646_v49  ;;  %10389 = vmatprep.mubr.msk.f32.mxu0 %vm1275_vm0, %v199_v46 }
0x1384   :  { %2902 = vst.msk [vmem:[#allocation2 + $0x4c0] sm:$0xff] %vm2749_vm2, %v2631_v17  ;;  %v1183_v44 = vpop.permute.xlu1 %1182  ;;  %10390 = vmatmul.mubr.msk.f32.gmra.mrb[158].mxu0 %vm1275_vm0, %v200_v37 }
0x1385   :  { %v1168_v7 = vpop.permute.xlu0 %1167  ;;  %v2656_v48 = vadd.f32 %v14601_v20, %v1183_v44  ;;  %v202_v20 = vld [vmem:[%s15553_s5 + $0x508] sm:$0xff] }
0x1386   :  { %v2641_v31 = vadd.f32 %v14599_v32, %v1168_v7  ;;  %v201_v32 = vld [vmem:[%s15553_s5 + $0x500] sm:$0xff] }
0x1387   :  { %2907 = vst.msk [vmem:[#allocation2 + $0x4e8] sm:$0xff] %vm2749_vm2, %v2656_v48  ;;  %10392 = vmatprep.mubr.msk.f32.mxu0 %vm1275_vm0, %v201_v32 }
0x1388   :  { %2904 = vst.msk [vmem:[#allocation2 + $0x4d0] sm:$0xff] %vm2749_vm2, %v2641_v31  ;;  %10393 = vmatmul.mubr.msk.f32.gmra.mrb[160].mxu0 %vm1275_vm0, %v202_v20 }
0x1389   :  { %v1178_v47 = vpop.permute.xlu0 %1177 }
0x138a   :  { %v2651_v12 = vadd.f32 %v14606_v14, %v1178_v47  ;;  %v203_v14 = vld [vmem:[%s15553_s5 + $0x510] sm:$0xff]  ;;  %s11385_s5 = scalar_lea.vmem %s9002_s12, 32 }
0x138b   :  { %10395 = vmatprep.mubr.msk.f32.mxu0 %vm1275_vm0, %v203_v14  ;;  %p11387_p2 = scmp.lt.s32.totalorder %s11385_s5, %s11381_s13 }
0x138c   :  { %2906 = vst.msk [vmem:[#allocation2 + $0x4e0] sm:$0xff] %vm2749_vm2, %v2651_v12  ;;  %10396 = vmatmul.mubr.msk.f32.gmra.mrb[162].mxu0 %vm1275_vm0, %v204_v6 }
0x138d   :  { %10398 = vmatprep.mubr.msk.f32.mxu0 %vm1275_vm0, %v205_v51  ;;  %p11388_p3 = por %p11387_p2, %p11386_p1 }
0x138f   :  { %p11389_p4 = pnand %p11388_p3, %p11382_p0 }
0x1390   :  { %10399 = vmatmul.mubr.msk.f32.gmra.mrb[164].mxu0 %vm1275_vm0, %v206_v5 }
0x1391   :  { %10401 = vmatprep.mubr.msk.f32.mxu0 %vm1275_vm0, %v207_v11 }
0x1394   :  { %10402 = vmatmul.mubr.msk.f32.gmra.mrb[166].mxu0 %vm1275_vm0, %v208_v10 }
0x1395   :  { %10404 = vmatprep.mubr.msk.f32.mxu0 %vm1275_vm0, %v209_v34 }
0x1398   :  { %10405 = vmatmul.mubr.msk.f32.gmra.mrb[168].mxu0 %vm1275_vm0, %v210_v1 }
0x1399   :  { %10407 = vmatprep.mubr.msk.f32.mxu0 %vm1275_vm0, %v211_v63 }
0x139c   :  { %10408 = vmatmul.mubr.msk.f32.gmra.mrb[170].mxu0 %vm1275_vm0, %v212_v61 }
0x139d   :  { %10410 = vmatprep.mubr.msk.f32.mxu0 %vm1275_vm0, %v213_v26 }
0x13a0   :  { %10411 = vmatmul.mubr.msk.f32.gmra.mrb[172].mxu0 %vm1275_vm0, %v214_v25  ;;  %v14797_v25 = vld [vmem:[%s15550_s2] sm:$0x3] }
0x13a1   :  { %10850 = vmatprep.mubr.msk.f32.mxu0 %vm3527_vm4, %v9481_v62  ;;  %v9484_v62 = vld [vmem:[%s15555_s7 + $0x1d8] sm:$0xff] }
0x142a   :  { %v10812_v19 = vpop.f32.mrb[178].mxu1 }
0x142b   :  { %v7171_v59 = vpop.f32.mrb[179].mxu1  ;;  %v7251_v35 = vmul.f32 %v10812_v19, %v14473_v0  ;;  %v9485_v19 = vld [vmem:[%s15555_s7 + $0x1e0] sm:$0xff] }
0x142c   :  { %v7250_v28 = vmul.f32 %v7171_v59, %v14476_v36  ;;  %v9486_v59 = vld [vmem:[%s15555_s7 + $0x1e8] sm:$0xff] }
0x1432   :  { %v10815_v9 = vpop.f32.mrb[180].mxu1 }
0x1433   :  { %v7181_v16 = vpop.f32.mrb[181].mxu1  ;;  %v7253_v23 = vmul.f32 %v10815_v9, %v14491_v38  ;;  %v9487_v9 = vld [vmem:[%s15555_s7 + $0x1f0] sm:$0xff] }
0x1434   :  { %v7252_v17 = vmul.f32 %v7181_v16, %v14481_v40  ;;  %v9488_v16 = vld [vmem:[%s15555_s7 + $0x1f8] sm:$0xff] }
0x143a   :  { %v10818_v8 = vpop.f32.mrb[182].mxu1 }
0x143b   :  { %v7191_v15 = vpop.f32.mrb[183].mxu1  ;;  %v7255_v46 = vmul.f32 %v10818_v8, %v14503_v29 }
0x143c   :  { %v7254_v36 = vmul.f32 %v7191_v15, %v14494_v53 }
0x1441   :  { %v10821_v24 = vpop.f32.mrb[184].mxu1 }
0x1442   :  { %v7201_v21 = vpop.f32.mrb[185].mxu1  ;;  %v7257_v40 = vmul.f32 %v10821_v24, %v14515_v56  ;;  %v9482_v56 = vld [vmem:[%s15555_s7 + $0x1c8] sm:$0xff] }
0x1443   :  { %v7256_v5 = vmul.f32 %v7201_v21, %v14506_v55  ;;  %v9483_v55 = vld [vmem:[%s15555_s7 + $0x1d0] sm:$0xff] }
0x1445   :  { %v10824_v58 = vpop.f32.mrb[186].mxu1 }
0x1446   :  { %v7259_v60 = vadd.f32 %v10824_v58, %v7251_v35  ;;  %v7211_v22 = vpop.f32.mrb[187].mxu1 }
0x1447   :  { %v7258_v54 = vadd.f32 %v7250_v28, %v7211_v22 }
0x1448   :  { %v7267_v49 = vmax.f32 %v7259_v60, 0.0 }
0x1449   :  { %v7266_v44 = vmax.f32 %v7258_v54, 0.0  ;;  %v10827_v7 = vpop.f32.mrb[188].mxu1 }
0x144a   :  { %v7261_v48 = vadd.f32 %v10827_v7, %v7253_v23  ;;  %v7221_v31 = vpop.f32.mrb[189].mxu1 }
0x144b   :  { %v11131_v47 = vpack.c.bf16 %v7267_v49, %v7266_v44  ;;  %v7260_v12 = vadd.f32 %v7252_v17, %v7221_v31 }
0x144c   :  { %v7269_v0 = vmax.f32 %v7261_v48, 0.0 }
0x144d   :  { %v7268_v37 = vmax.f32 %v7260_v12, 0.0  ;;  %v10830_v32 = vpop.f32.mrb[190].mxu1  ;;  %11132 = vmatprep.subr.bf16.mxu0 %v11131_v47 }
0x144e   :  { %v7263_v20 = vadd.f32 %v10830_v32, %v7255_v46  ;;  %v7231_v14 = vpop.f32.mrb[191].mxu1  ;;  %11134 = vmatpush3.bf16.msra.mxu0 %v11131_v47 }
0x144f   :  { %v11135_v38 = vpack.c.bf16 %v7269_v0, %v7268_v37  ;;  %v7262_v6 = vadd.f32 %v7254_v36, %v7231_v14 }
0x1450   :  { %v7271_v51 = vmax.f32 %v7263_v20, 0.0 }
0x1451   :  { %v7270_v11 = vmax.f32 %v7262_v6, 0.0  ;;  %v10833_v10 = vpop.f32.mrb[192].mxu1  ;;  %11136 = vmatprep.subr.bf16.mxu0 %v11135_v38 }
0x1452   :  { %v7265_v29 = vadd.f32 %v10833_v10, %v7257_v40  ;;  %v7241_v34 = vpop.f32.mrb[193].mxu1  ;;  %11138 = vmatpush3.bf16.msra.mxu0 %v11135_v38 }
0x1453   :  { %v11139_v53 = vpack.c.bf16 %v7271_v51, %v7270_v11  ;;  %v7264_v1 = vadd.f32 %v7256_v5, %v7241_v34  ;;  %v9531_v34 = vld [vmem:[%s15556_s8 + $0x208] sm:$0xff] }
0x1454   :  { %v7273_v63 = vmax.f32 %v7265_v29, 0.0 }
0x1455   :  { %v7272_v61 = vmax.f32 %v7264_v1, 0.0  ;;  %11140 = vmatprep.subr.bf16.mxu0 %v11139_v53  ;;  %v377_v1 = vld [vmem:[%s15554_s6 + $0x4f0] sm:$0xff] }
0x1456   :  { %11142 = vmatpush3.bf16.msra.mxu0 %v11139_v53  ;;  %v9535_v53 = vld [vmem:[%s15556_s8 + $0x228] sm:$0xff] }
0x1457   :  { %v11143_v26 = vpack.c.bf16 %v7273_v63, %v7272_v61  ;;  %v14825_v8 = vpop.f32.mrb[158].mxu0  ;;  %v9537_v63 = vld [vmem:[%s15556_s8 + $0x238] sm:$0xff]  ;;  %v9530_v61 = vld [vmem:[%s15556_s8 + $0x200] sm:$0xff] }
0x1458   :  { %v14827_v15 = vpop.f32.mrb[159].mxu0 }
0x1459   :  { %11144 = vmatprep.subr.bf16.mxu0 %v11143_v26 }
0x145a   :  { %11146 = vmatpush3.bf16.msra.mxu0 %v11143_v26  ;;  %v291_v26 = vld [vmem:[%s15554_s6 + $0x240] sm:$0xff] }
0x145b   :  { %10862 = vmatprep.subr.msk.mxu0 %vm3298_vm3, %v14797_v25  ;;  %v14829_v24 = vpop.f32.mrb[160].mxu0 }
0x145c   :  { %v14831_v21 = vpop.f32.mrb[161].mxu0 }
0x145d   :  { %10851 = vmatmul.mubr.msk.f32.vlgmr.msra.gmra.mrb[174].mxu0 %vm3527_vm4, %v9482_v56  ;;  %v9532_v56 = vld [vmem:[%s15556_s8 + $0x210] sm:$0xff] }
0x145e   :  { %10853 = vmatprep.mubr.msk.f32.mxu0 %vm3527_vm4, %v9483_v55  ;;  %10863 = vmatpush3.msk.msra.mxu0 %vm3298_vm3, %v14797_v25  ;;  %v293_v55 = vld [vmem:[%s15554_s6 + $0x250] sm:$0xff] }
0x145f   :  { %v14833_v35 = vpop.f32.mrb[162].mxu0 }
0x1460   :  { %v14835_v28 = vpop.f32.mrb[163].mxu0 }
0x1461   :  { %10854 = vmatmul.mubr.msk.f32.gmra.mrb[176].mxu0 %vm3527_vm4, %v9484_v62  ;;  %v9534_v62 = vld [vmem:[%s15556_s8 + $0x220] sm:$0xff] }
0x1462   :  { %10856 = vmatprep.mubr.msk.f32.mxu0 %vm3527_vm4, %v9485_v19  ;;  %v294_v19 = vld [vmem:[%s15554_s6 + $0x258] sm:$0xff] }
0x1463   :  { %v14837_v58 = vpop.f32.mrb[164].mxu0 }
0x1464   :  { %v14839_v60 = vpop.f32.mrb[165].mxu0 }
0x1465   :  { %10857 = vmatmul.mubr.msk.f32.gmra.mrb[178].mxu0 %vm3527_vm4, %v9486_v59  ;;  %v9536_v59 = vld [vmem:[%s15556_s8 + $0x230] sm:$0xff] }
0x1466   :  { %10859 = vmatprep.mubr.msk.f32.mxu0 %vm3527_vm4, %v9487_v9  ;;  %v296_v9 = vld [vmem:[%s15554_s6 + $0x268] sm:$0xff] }
0x1467   :  { %v14841_v22 = vpop.f32.mrb[166].mxu0 }
0x1468   :  { %v14843_v54 = vpop.f32.mrb[167].mxu0 }
0x1469   :  { %10860 = vmatmul.mubr.msk.f32.gmra.mrb[180].mxu0 %vm3527_vm4, %v9488_v16  ;;  %v292_v16 = vld [vmem:[%s15554_s6 + $0x248] sm:$0xff] }
0x146b   :  { %v14845_v23 = vpop.f32.mrb[168].mxu0 }
0x146c   :  { %v14847_v49 = vpop.f32.mrb[169].mxu0 }
0x146f   :  { %v14849_v17 = vpop.f32.mrb[170].mxu0 }
0x1470   :  { %v14851_v44 = vpop.f32.mrb[171].mxu0 }
0x1473   :  { %v14853_v7 = vpop.f32.mrb[172].mxu0 }
0x1474   :  { %v14855_v48 = vpop.f32.mrb[173].mxu0 }
0x1530   :  { %v10852_v31 = vpop.f32.mrb[174].mxu0 }
0x1531   :  { %v7428_v47 = vadd.f32 %v10852_v31, %v14641_v52  ;;  %v7422_v12 = vpop.f32.mrb[175].mxu0  ;;  %v298_v31 = vld [vmem:[%s15554_s6 + $0x278] sm:$0xff] }
0x1532   :  { %v7423_v46 = vadd.f32 %v7422_v12, %v14657_v57  ;;  %v380_v12 = vld [vmem:[%s15554_s6 + $0x508] sm:$0xff] }
0x1533   :  { %v14860_v0 = vadd.f32 %v7428_v47, %v14151_v3  ;;  %v295_v47 = vld [vmem:[%s15554_s6 + $0x260] sm:$0xff] }
0x1534   :  { %v14863_v36 = vadd.f32 %v7423_v46, %v14154_v39  ;;  %v10855_v37 = vpop.f32.mrb[176].mxu0  ;;  %v297_v46 = vld [vmem:[%s15554_s6 + $0x270] sm:$0xff] }
0x1535   :  { %7479 = vadd.xlane.f32.xlu1 %v14860_v0  ;;  %v7432_v32 = vpop.f32.mrb[177].mxu0  ;;  %v7470_v57 = vmul.f32 %v14860_v0, %v14860_v0  ;;  %v7438_v39 = vadd.f32 %v10855_v37, %v14647_v27  ;;  %v382_v37 = vld [vmem:[%s15554_s6 + $0x518] sm:$0xff] }
0x1536   :  { %v7433_v20 = vadd.f32 %v7432_v32, %v14661_v13  ;;  %7477 = vadd.xlane.f32.xlu0 %v14863_v36  ;;  %v7469_v13 = vmul.f32 %v14863_v36, %v14863_v36  ;;  %v379_v32 = vld [vmem:[%s15554_s6 + $0x500] sm:$0xff] }
0x1537   :  { %v14881_v51 = vadd.f32 %v7438_v39, %v14172_v2 }
0x1538   :  { %v14869_v14 = vadd.f32 %v7433_v20, %v14160_v50  ;;  %v10858_v52 = vpop.f32.mrb[178].mxu0  ;;  %v384_v20 = vld [vmem:[%s15554_s6 + $0x528] sm:$0xff] }
0x1539   :  { %v7442_v3 = vpop.f32.mrb[179].mxu0  ;;  %v7448_v27 = vadd.f32 %v10858_v52, %v14651_v33  ;;  %v7472_v11 = vmul.f32 %v14881_v51, %v14881_v51  ;;  %v381_v52 = vld [vmem:[%s15554_s6 + $0x510] sm:$0xff] }
0x153a   :  { %7495 = vadd.xlane.f32.xlu0 %v7470_v57  ;;  %7481 = vadd.xlane.f32.xlu1 %v14869_v14  ;;  %v7443_v38 = vadd.f32 %v7442_v3, %v14666_v30  ;;  %v7471_v50 = vmul.f32 %v14869_v14, %v14869_v14  ;;  %v383_v57 = vld [vmem:[%s15554_s6 + $0x520] sm:$0xff] }
0x153b   :  { %v14895_v2 = vadd.f32 %v7448_v27, %v14186_v43 }
0x153c   :  { %v10861_v6 = vpop.f32.mrb[180].mxu0  ;;  %v14884_v5 = vadd.f32 %v7443_v38, %v14175_v41 }
0x153d   :  { %v7452_v40 = vpop.f32.mrb[181].mxu0  ;;  %v7458_v33 = vadd.f32 %v10861_v6, %v14655_v42  ;;  %v378_v42 = vld [vmem:[%s15554_s6 + $0x4f8] sm:$0xff] }
0x153e   :  { %7493 = vadd.xlane.f32.xlu0 %v7469_v13  ;;  %7497 = vadd.xlane.f32.xlu1 %v7471_v50  ;;  %v7453_v30 = vadd.f32 %v7452_v40, %v14674_v18  ;;  %v7473_v10 = vmul.f32 %v14884_v5, %v14884_v5  ;;  %v7474_v18 = vmul.f32 %v14895_v2, %v14895_v2 }
0x153f   :  { %v14908_v43 = vadd.f32 %v7458_v33, %v14199_v45  ;;  %v9533_v45 = vld [vmem:[%s15556_s8 + $0x218] sm:$0xff] }
0x1540   :  { %v14898_v41 = vadd.f32 %v7453_v30, %v14189_v4 }
0x1541   :  { %v7476_v4 = vmul.f32 %v14908_v43, %v14908_v43 }
0x1542   :  { %7483 = vadd.xlane.f32.xlu0 %v14881_v51  ;;  %7485 = vadd.xlane.f32.xlu1 %v14884_v5  ;;  %v7475_v29 = vmul.f32 %v14898_v41, %v14898_v41 }
0x1546   :  { %7499 = vadd.xlane.f32.xlu0 %v7472_v11  ;;  %7501 = vadd.xlane.f32.xlu1 %v7473_v10 }
0x154a   :  { %7487 = vadd.xlane.f32.xlu0 %v14895_v2  ;;  %7489 = vadd.xlane.f32.xlu1 %v14898_v41 }
0x154e   :  { %7503 = vadd.xlane.f32.xlu0 %v7474_v18  ;;  %7505 = vadd.xlane.f32.xlu1 %v7475_v29 }
0x1552   :  { %7491 = vadd.xlane.f32.xlu0 %v14908_v43 }
0x1556   :  { %7507 = vadd.xlane.f32.xlu0 %v7476_v4 }
0x155f   :  { %1192 = vperm.xlu1 %11199, %v378_v42  }
0x1563   :  { %7847 = vperm.xlu1 %11199, %v9531_v34  }
0x1567   :  { %7857 = vperm.xlu1 %11199, %v9533_v45  }
0x156b   :  { %7867 = vperm.xlu1 %11199, %v9535_v53  }
0x156c   :  { %1187 = vperm.xlu0 %11198, %v377_v1  }
0x156f   :  { %7877 = vperm.xlu1 %11199, %v9537_v63  }
0x1570   :  { %7842 = vperm.xlu0 %11198, %v9530_v61  }
0x1573   :  { %757 = vperm.xlu1 %11199, %v291_v26  }
0x1574   :  { %7852 = vperm.xlu0 %11198, %v9532_v56  }
0x1577   :  { %767 = vperm.xlu1 %11199, %v293_v55  }
0x1578   :  { %7862 = vperm.xlu0 %11198, %v9534_v62  }
0x157b   :  { %772 = vperm.xlu1 %11199, %v294_v19  }
0x157c   :  { %7872 = vperm.xlu0 %11198, %v9536_v59  }
0x157f   :  { %782 = vperm.xlu1 %11199, %v296_v9  }
0x1580   :  { %762 = vperm.xlu0 %11198, %v292_v16  }
0x1583   :  { %792 = vperm.xlu1 %11199, %v298_v31  }
0x1584   :  { %777 = vperm.xlu0 %11198, %v295_v47  }
0x1587   :  { %1202 = vperm.xlu1 %11199, %v380_v12  }
0x1588   :  { %787 = vperm.xlu0 %11198, %v297_v46  }
0x158b   :  { %1212 = vperm.xlu1 %11199, %v382_v37  }
0x158c   :  { %1197 = vperm.xlu0 %11198, %v379_v32  }
0x158f   :  { %1222 = vperm.xlu1 %11199, %v384_v20  }
0x1590   :  { %1207 = vperm.xlu0 %11198, %v381_v52  }
0x1594   :  { %1217 = vperm.xlu0 %11198, %v383_v57  }
0x15c2   :  { %v7480_v3 = vpop.xlane.xlu1 %7479 }
0x15c3   :  { %v7478_v39 = vpop.xlane.xlu0 %7477  ;;  %v14985_v38 = vmul.f32 0.0078125, %v7480_v3 }
0x15c4   :  { %v14987_v6 = vmul.f32 0.0078125, %v7478_v39 }
0x15c5   :  { %v7526_v40 = vmul.f32 %v14985_v38, %v14985_v38 }
0x15c6   :  { %v7525_v10 = vmul.f32 %v14987_v6, %v14987_v6 }
0x15c7   :  { %v7482_v13 = vpop.xlane.xlu1 %7481  ;;  %v7496_v50 = vpop.xlane.xlu0 %7495 }
0x15c8   :  { %v14991_v27 = vmul.f32 0.0078125, %v7482_v13  ;;  %v7518_v30 = vmul.f32 0.0078125, %v7496_v50 }
0x15ca   :  { %v7534_v11 = vsub.f32 %v7518_v30, %v7526_v40  ;;  %v7527_v29 = vmul.f32 %v14991_v27, %v14991_v27 }
0x15cb   :  { %v7498_v33 = vpop.xlane.xlu1 %7497  ;;  %v7494_v18 = vpop.xlane.xlu0 %7493 }
0x15cc   :  { %v7542_v4 = vmax.f32 %v7534_v11, 0.0  ;;  %v7519_v42 = vmul.f32 0.0078125, %v7498_v33  ;;  %v7517_v34 = vmul.f32 0.0078125, %v7494_v18 }
0x15ce   :  { %v7535_v45 = vsub.f32 %v7519_v42, %v7527_v29  ;;  %v7533_v53 = vsub.f32 %v7517_v34, %v7525_v10  ;;  %v7550_v1 = vadd.f32 1e-05, %v7542_v4 }
0x15cf   :  { %v7486_v63 = vpop.xlane.xlu1 %7485  ;;  %v7484_v61 = vpop.xlane.xlu0 %7483 }
0x15d0   :  { %v7543_v26 = vmax.f32 %v7535_v45, 0.0  ;;  %v7541_v56 = vmax.f32 %v7533_v53, 0.0  ;;  %v14997_v55 = vmul.f32 0.0078125, %v7486_v63  ;;  %v14999_v62 = vmul.f32 0.0078125, %v7484_v61 }
0x15d1   :  { %11328 = vrsqrt.f32 %v7550_v1 }
0x15d2   :  { %v7551_v19 = vadd.f32 1e-05, %v7543_v26  ;;  %v7549_v59 = vadd.f32 1e-05, %v7541_v56  ;;  %v7529_v31 = vmul.f32 %v14997_v55, %v14997_v55  ;;  %v7528_v47 = vmul.f32 %v14999_v62, %v14999_v62 }
0x15d3   :  { %v7502_v9 = vpop.xlane.xlu1 %7501  ;;  %v7500_v16 = vpop.xlane.xlu0 %7499 }
0x15d4   :  { %v7521_v12 = vmul.f32 0.0078125, %v7502_v9  ;;  %v7520_v46 = vmul.f32 0.0078125, %v7500_v16  ;;  %11330 = vrsqrt.f32 %v7549_v59  ;;  %v7565_v59 = vld [vmem:[#allocation2 + $0x200] sm:$0xff]  ;;  %v7566_v9 = vld [vmem:[#allocation2 + $0x208] sm:$0xff] }
0x15d5   :  { %11332 = vrsqrt.f32 %v7551_v19 }
0x15d6   :  { %v7537_v37 = vsub.f32 %v7521_v12, %v7529_v31  ;;  %v7536_v32 = vsub.f32 %v7520_v46, %v7528_v47  ;;  %v7567_v46 = vld [vmem:[#allocation2 + $0x210] sm:$0xff] }
0x15d7   :  { %v7490_v20 = vpop.xlane.xlu1 %7489  ;;  %v7488_v52 = vpop.xlane.xlu0 %7487 }
0x15d8   :  { %v7545_v57 = vmax.f32 %v7537_v37, 0.0  ;;  %v7544_v3 = vmax.f32 %v7536_v32, 0.0  ;;  %v15005_v39 = vmul.f32 0.0078125, %v7490_v20  ;;  %v15007_v13 = vmul.f32 0.0078125, %v7488_v52 }
0x15da   :  { %v7553_v50 = vadd.f32 1e-05, %v7545_v57  ;;  %v7552_v40 = vadd.f32 1e-05, %v7544_v3  ;;  %v7531_v30 = vmul.f32 %v15005_v39, %v15005_v39  ;;  %v7530_v33 = vmul.f32 %v15007_v13, %v15007_v13 }
0x15db   :  { %v7506_v11 = vpop.xlane.xlu1 %7505  ;;  %v7504_v10 = vpop.xlane.xlu0 %7503 }
0x15dc   :  { %11334 = vrsqrt.f32 %v7553_v50  ;;  %v7523_v18 = vmul.f32 0.0078125, %v7506_v11  ;;  %v7522_v29 = vmul.f32 0.0078125, %v7504_v10  ;;  %v11329_v4 = vpop.eup %11328  ;;  %v7569_v50 = vld [vmem:[#allocation2 + $0x220] sm:$0xff]  ;;  %v7568_v11 = vld [vmem:[#allocation2 + $0x218] sm:$0xff] }
0x15dd   :  { %11336 = vrsqrt.f32 %v7552_v40  ;;  %v7582_v31 = vmul.f32 %v11329_v4, %v7566_v9 }
0x15de   :  { %v7539_v42 = vsub.f32 %v7523_v18, %v7531_v30  ;;  %v7538_v34 = vsub.f32 %v7522_v29, %v7530_v33  ;;  %v11331_v45 = vpop.eup %11330 }
0x15df   :  { %v1193_v53 = vpop.permute.xlu1 %1192  ;;  %v7492_v1 = vpop.xlane.xlu0 %7491  ;;  %v7581_v16 = vmul.f32 %v11331_v45, %v7565_v59 }
0x15e0   :  { %v11333_v63 = vpop.eup %11332  ;;  %v7547_v61 = vmax.f32 %v7539_v42, 0.0  ;;  %v7546_v26 = vmax.f32 %v7538_v34, 0.0  ;;  %v2666_v56 = vadd.f32 %v14825_v8, %v1193_v53  ;;  %v15014_v19 = vmul.f32 0.0078125, %v7492_v1  ;;  %v7571_v53 = vld [vmem:[#allocation2 + $0x230] sm:$0xff] }
0x15e1   :  { %10864 = vmatprep.mubr.msk.f32.mxu0 %vm2749_vm2, %v7581_v16  ;;  %v7583_v32 = vmul.f32 %v11333_v63, %v7567_v46  ;;  %v7589_v46 = vmul.f32 %v7581_v16, %v14987_v6  ;;  %v7574_v6 = vld [vmem:[#allocation2 + $0x4c8] sm:$0xff] }
0x15e2   :  { %v7555_v47 = vadd.f32 1e-05, %v7547_v61  ;;  %v7554_v12 = vadd.f32 1e-05, %v7546_v26  ;;  %2909 = vst.msk [vmem:[#allocation2 + $0x4f8] sm:$0xff] %vm2749_vm2, %v2666_v56  ;;  %v7532_v8 = vmul.f32 %v15014_v19, %v15014_v19  ;;  %10865 = vmatmul.mubr.msk.f32.vlgmr.msra.gmra.mrb[182].mxu0 %vm2749_vm2, %v7582_v31  ;;  %v7570_v26 = vld [vmem:[#allocation2 + $0x228] sm:$0xff] }
0x15e3   :  { %v15018_v37 = vpop.permute.xlu1 %7847  ;;  %v7508_v20 = vpop.xlane.xlu0 %7507  ;;  %10867 = vmatprep.mubr.msk.f32.mxu0 %vm2749_vm2, %v7583_v32 }
0x15e4   :  { %11338 = vrsqrt.f32 %v7555_v47  ;;  %v7524_v52 = vmul.f32 0.0078125, %v7508_v20 }
0x15e5   :  { %11340 = vrsqrt.f32 %v7554_v12 }
0x15e6   :  { %v11335_v57 = vpop.eup %11334  ;;  %v7540_v3 = vsub.f32 %v7524_v52, %v7532_v8  ;;  %v7572_v8 = vld [vmem:[#allocation2 + $0x238] sm:$0xff] }
0x15e7   :  { %v11337_v40 = vpop.eup %11336  ;;  %v15024_v30 = vpop.permute.xlu1 %7857  ;;  %v7585_v10 = vmul.f32 %v11335_v57, %v7569_v50  ;;  %v7573_v50 = vld [vmem:[#allocation2 + $0x4c0] sm:$0xff] }
0x15e8   :  { %v7548_v33 = vmax.f32 %v7540_v3, 0.0  ;;  %v7584_v18 = vmul.f32 %v11337_v40, %v7568_v11  ;;  %v7590_v40 = vmul.f32 %v7582_v31, %v14985_v38  ;;  %v15675_v11 = vld [vmem:[#allocation60_spill] sm:$0xff]  ;;  %v15676_v38 = vld [vmem:[#allocation59_spill] sm:$0xff] }
0x15ea   :  { %v7556_v29 = vadd.f32 1e-05, %v7548_v33  ;;  %10868 = vmatmul.mubr.msk.f32.gmra.mrb[184].mxu0 %vm2749_vm2, %v7584_v18 }
0x15eb   :  { %10870 = vmatprep.mubr.msk.f32.mxu0 %vm2749_vm2, %v7585_v10  ;;  %v15028_v4 = vpop.permute.xlu1 %7867  ;;  %v1188_v42 = vpop.permute.xlu0 %1187 }
0x15ec   :  { %11342 = vrsqrt.f32 %v7556_v29  ;;  %v2661_v34 = vadd.f32 %v14827_v15, %v1188_v42  ;;  %v15674_v15 = vld [vmem:[#allocation58_spill] sm:$0xff]  ;;  %v7597_v29 = vsub.f32 %v7573_v50, %v7589_v46  ;;  %v7591_v42 = vmul.f32 %v7583_v32, %v14991_v27 }
0x15ed   :  { %v7576_v27 = vld [vmem:[#allocation2 + $0x4d8] sm:$0xff]  ;;  %v7577_v46 = vld [vmem:[#allocation2 + $0x4e0] sm:$0xff] }
0x15ee   :  { %v11339_v45 = vpop.eup %11338  ;;  %2908 = vst.msk [vmem:[#allocation2 + $0x4f0] sm:$0xff] %vm2749_vm2, %v2661_v34 }
0x15ef   :  { %v11341_v1 = vpop.eup %11340  ;;  %v15032_v63 = vpop.permute.xlu1 %7877  ;;  %v7587_v56 = vmul.f32 %v11339_v45, %v7571_v53  ;;  %v7598_v45 = vsub.f32 %v7574_v6, %v7590_v40  ;;  %v7575_v53 = vld [vmem:[#allocation2 + $0x4d0] sm:$0xff]  ;;  %v15680_v6 = vld [vmem:[#allocation62_spill] sm:$0xff] }
0x15f0   :  { %v15034_v61 = vpop.permute.xlu0 %7842  ;;  %v7586_v59 = vmul.f32 %v11341_v1, %v7570_v26  ;;  %v7592_v1 = vmul.f32 %v7584_v18, %v14999_v62  ;;  %v7599_v26 = vsub.f32 %v7575_v53, %v7591_v42  ;;  %v15678_v18 = vld [vmem:[#allocation57_spill] sm:$0xff] }
0x15f1   :  { %v7595_v40 = vmul.f32 %v7587_v56, %v15005_v39  ;;  %v7580_v53 = vld [vmem:[#allocation2 + $0x4f8] sm:$0xff] }
0x15f2   :  { %10871 = vmatmul.mubr.msk.f32.gmra.mrb[186].mxu0 %vm2749_vm2, %v7586_v59 }
0x15f3   :  { %10873 = vmatprep.mubr.msk.f32.mxu0 %vm2749_vm2, %v7587_v56  ;;  %v758_v9 = vpop.permute.xlu1 %757 }
0x15f4   :  { %v15038_v47 = vpop.permute.xlu0 %7852  ;;  %v2231_v12 = vadd.f32 %v15674_v15, %v758_v9  ;;  %v7593_v9 = vmul.f32 %v7585_v10, %v14997_v55  ;;  %v7578_v10 = vld [vmem:[#allocation2 + $0x4e8] sm:$0xff] }
0x15f5   :  { %v7579_v55 = vld [vmem:[#allocation2 + $0x4f0] sm:$0xff] }
0x15f6   :  { %v11343_v20 = vpop.eup %11342  ;;  %2822 = vst.msk [vmem:[#allocation2 + $0x240] sm:$0xff] %vm2749_vm2, %v2231_v12  ;;  %v7600_v12 = vsub.f32 %v7576_v27, %v7592_v1  ;;  %v7601_v50 = vsub.f32 %v7577_v46, %v7593_v9 }
0x15f7   :  { %v768_v52 = vpop.permute.xlu1 %767  ;;  %v7588_v3 = vmul.f32 %v11343_v20, %v7572_v8  ;;  %v7594_v20 = vmul.f32 %v7586_v59, %v15007_v13  ;;  %v15677_v8 = vld [vmem:[#allocation61_spill] sm:$0xff] }
0x15f8   :  { %v15043_v57 = vpop.permute.xlu0 %7862  ;;  %v2241_v33 = vadd.f32 %v15675_v11, %v768_v52 }
0x15f9   :  { %10874 = vmatmul.mubr.msk.f32.gmra.mrb[188].mxu0 %vm2749_vm2, %v7588_v3  ;;  %v7602_v13 = vsub.f32 %v7578_v10, %v7594_v20  ;;  %v7596_v59 = vmul.f32 %v7588_v3, %v15014_v19  ;;  %v15681_v19 = vld [vmem:[#allocation64_spill] sm:$0xff] }
0x15fa   :  { %2824 = vst.msk [vmem:[#allocation2 + $0x250] sm:$0xff] %vm2749_vm2, %v2241_v33  ;;  %10876 = vmatprep.mubr.msk.f32.mxu0 %vm2749_vm2, %v7597_v29  ;;  %v15679_v29 = vld [vmem:[#allocation63_spill] sm:$0xff] }
0x15fb   :  { %v773_v16 = vpop.permute.xlu1 %772  ;;  %v7604_v1 = vsub.f32 %v7580_v53, %v7596_v59 }
0x15fc   :  { %v15051_v34 = vpop.permute.xlu0 %7872  ;;  %v2246_v31 = vadd.f32 %v15676_v38, %v773_v16 }
0x15fd   :  { %10877 = vmatmul.mubr.msk.f32.gmra.mrb[190].mxu0 %vm2749_vm2, %v7598_v45  ;;  %v7603_v45 = vsub.f32 %v7579_v55, %v7595_v40 }
0x15fe   :  { %2825 = vst.msk [vmem:[#allocation2 + $0x258] sm:$0xff] %vm2749_vm2, %v2246_v31  ;;  %10879 = vmatprep.mubr.msk.f32.mxu0 %vm2749_vm2, %v7599_v26 }
0x15ff   :  { %v783_v32 = vpop.permute.xlu1 %782 }
0x1600   :  { %v763_v15 = vpop.permute.xlu0 %762  ;;  %v2256_v62 = vadd.f32 %v15677_v8, %v783_v32 }
0x1601   :  { %v2236_v52 = vadd.f32 %v15678_v18, %v763_v15  ;;  %10880 = vmatmul.mubr.msk.f32.gmra.mrb[192].mxu0 %vm2749_vm2, %v7600_v12 }
0x1602   :  { %2827 = vst.msk [vmem:[#allocation2 + $0x268] sm:$0xff] %vm2749_vm2, %v2256_v62  ;;  %10882 = vmatprep.mubr.msk.f32.mxu0 %vm2749_vm2, %v7601_v50 }
0x1603   :  { %2823 = vst.msk [vmem:[#allocation2 + $0x248] sm:$0xff] %vm2749_vm2, %v2236_v52  ;;  %v793_v11 = vpop.permute.xlu1 %792 }
0x1604   :  { %v778_v33 = vpop.permute.xlu0 %777  ;;  %v2266_v42 = vadd.f32 %v15679_v29, %v793_v11 }
0x1605   :  { %v2251_v16 = vadd.f32 %v15680_v6, %v778_v33  ;;  %10883 = vmatmul.mubr.msk.f32.gmra.mrb[194].mxu0 %vm2749_vm2, %v7602_v13 }
0x1606   :  { %2829 = vst.msk [vmem:[#allocation2 + $0x278] sm:$0xff] %vm2749_vm2, %v2266_v42  ;;  %10885 = vmatprep.mubr.msk.f32.mxu0 %vm2749_vm2, %v7603_v45 }
0x1607   :  { %2826 = vst.msk [vmem:[#allocation2 + $0x260] sm:$0xff] %vm2749_vm2, %v2251_v16  ;;  %v1203_v39 = vpop.permute.xlu1 %1202 }
0x1608   :  { %v788_v56 = vpop.permute.xlu0 %787  ;;  %v2676_v38 = vadd.f32 %v14829_v24, %v1203_v39 }
0x1609   :  { %v2261_v3 = vadd.f32 %v15681_v19, %v788_v56  ;;  %10886 = vmatmul.mubr.msk.f32.gmra.mrb[196].mxu0 %vm2749_vm2, %v7604_v1 }
0x160a   :  { %2911 = vst.msk [vmem:[#allocation2 + $0x508] sm:$0xff] %vm2749_vm2, %v2676_v38 }
0x160b   :  { %2828 = vst.msk [vmem:[#allocation2 + $0x270] sm:$0xff] %vm2749_vm2, %v2261_v3  ;;  %v1213_v31 = vpop.permute.xlu1 %1212 }
0x160c   :  { %v1198_v26 = vpop.permute.xlu0 %1197  ;;  %v2686_v9 = vadd.f32 %v14833_v35, %v1213_v31 }
0x160d   :  { %v2671_v27 = vadd.f32 %v14831_v21, %v1198_v26  ;;  %v9522_v21 = vld [vmem:[%s15555_s7 + $0x200] sm:$0xff] }
0x160e   :  { %2913 = vst.msk [vmem:[#allocation2 + $0x518] sm:$0xff] %vm2749_vm2, %v2686_v9  ;;  %10904 = vmatprep.mubr.msk.f32.mxu1 %vm3527_vm4, %v9522_v21 }
0x160f   :  { %2910 = vst.msk [vmem:[#allocation2 + $0x500] sm:$0xff] %vm2749_vm2, %v2671_v27  ;;  %v1223_v32 = vpop.permute.xlu1 %1222 }
0x1610   :  { %v1208_v24 = vpop.permute.xlu0 %1207  ;;  %v2696_v15 = vadd.f32 %v14837_v58, %v1223_v32 }
0x1611   :  { %v2681_v12 = vadd.f32 %v14835_v28, %v1208_v24 }
0x1612   :  { %2915 = vst.msk [vmem:[#allocation2 + $0x528] sm:$0xff] %vm2749_vm2, %v2696_v15 }
0x1613   :  { %2912 = vst.msk [vmem:[#allocation2 + $0x510] sm:$0xff] %vm2749_vm2, %v2681_v12 }
0x1614   :  { %v1218_v46 = vpop.permute.xlu0 %1217 }
0x1615   :  { %v2691_v20 = vadd.f32 %v14839_v60, %v1218_v46 }
0x1617   :  { %2914 = vst.msk [vmem:[#allocation2 + $0x520] sm:$0xff] %vm2749_vm2, %v2691_v20 }
0x16b5   :  { %v10866_v35 = vpop.f32.mrb[182].mxu0 }
0x16b6   :  { %v7719_v8 = vpop.f32.mrb[183].mxu0  ;;  %v7799_v55 = vmul.f32 %v10866_v35, %v14860_v0 }
0x16b7   :  { %v7798_v60 = vmul.f32 %v7719_v8, %v14863_v36 }
0x16bd   :  { %v10869_v58 = vpop.f32.mrb[184].mxu0 }
0x16be   :  { %v7729_v62 = vpop.f32.mrb[185].mxu0  ;;  %v7801_v13 = vmul.f32 %v10869_v58, %v14881_v51 }
0x16bf   :  { %v7800_v29 = vmul.f32 %v7729_v62, %v14869_v14 }
0x16c5   :  { %v10872_v28 = vpop.f32.mrb[186].mxu0 }
0x16c6   :  { %v7739_v18 = vpop.f32.mrb[187].mxu0  ;;  %v7803_v56 = vmul.f32 %v10872_v28, %v14895_v2 }
0x16c7   :  { %v7802_v38 = vmul.f32 %v7739_v18, %v14884_v5  ;;  %v9523_v18 = vld [vmem:[%s15555_s7 + $0x208] sm:$0xff] }
0x16cc   :  { %v10875_v52 = vpop.f32.mrb[188].mxu0 }
0x16cd   :  { %v7749_v50 = vpop.f32.mrb[189].mxu0  ;;  %v7805_v32 = vmul.f32 %v10875_v52, %v14908_v43  ;;  %v9524_v52 = vld [vmem:[%s15555_s7 + $0x210] sm:$0xff] }
0x16ce   :  { %v7804_v15 = vmul.f32 %v7749_v50, %v14898_v41  ;;  %v9525_v50 = vld [vmem:[%s15555_s7 + $0x218] sm:$0xff] }
0x16d0   :  { %v10878_v10 = vpop.f32.mrb[190].mxu0 }
0x16d1   :  { %v7807_v40 = vadd.f32 %v10878_v10, %v7799_v55  ;;  %v7759_v11 = vpop.f32.mrb[191].mxu0  ;;  %v9526_v55 = vld [vmem:[%s15555_s7 + $0x220] sm:$0xff]  ;;  %v9528_v10 = vld [vmem:[%s15555_s7 + $0x230] sm:$0xff] }
0x16d2   :  { %v7806_v33 = vadd.f32 %v7798_v60, %v7759_v11  ;;  %v9527_v60 = vld [vmem:[%s15555_s7 + $0x228] sm:$0xff] }
0x16d3   :  { %v7815_v59 = vmax.f32 %v7807_v40, 0.0 }
0x16d4   :  { %v7814_v42 = vmax.f32 %v7806_v33, 0.0  ;;  %v10881_v6 = vpop.f32.mrb[192].mxu0 }
0x16d5   :  { %v7809_v16 = vadd.f32 %v10881_v6, %v7801_v13  ;;  %v7769_v45 = vpop.f32.mrb[193].mxu0 }
0x16d6   :  { %v11147_v53 = vpack.c.bf16 %v7815_v59, %v7814_v42  ;;  %v7808_v39 = vadd.f32 %v7800_v29, %v7769_v45 }
0x16d7   :  { %v7817_v1 = vmax.f32 %v7809_v16, 0.0 }
0x16d8   :  { %v7816_v19 = vmax.f32 %v7808_v39, 0.0  ;;  %v10884_v3 = vpop.f32.mrb[194].mxu0  ;;  %11148 = vmatprep.subr.bf16.mxu1 %v11147_v53 }
0x16d9   :  { %v7811_v31 = vadd.f32 %v10884_v3, %v7803_v56  ;;  %v7779_v26 = vpop.f32.mrb[195].mxu0  ;;  %11150 = vmatpush3.bf16.msra.mxu1 %v11147_v53 }
0x16da   :  { %v11151_v9 = vpack.c.bf16 %v7817_v1, %v7816_v19  ;;  %v7810_v27 = vadd.f32 %v7802_v38, %v7779_v26  ;;  %v9572_v26 = vld [vmem:[%s15556_s8 + $0x248] sm:$0xff] }
0x16db   :  { %v7819_v24 = vmax.f32 %v7811_v31, 0.0 }
0x16dc   :  { %v7818_v12 = vmax.f32 %v7810_v27, 0.0  ;;  %v10887_v46 = vpop.f32.mrb[196].mxu0  ;;  %11152 = vmatprep.subr.bf16.mxu1 %v11151_v9  ;;  %v385_v27 = vld [vmem:[%s15554_s6 + $0x530] sm:$0xff] }
0x16dd   :  { %v7813_v20 = vadd.f32 %v10887_v46, %v7805_v32  ;;  %v7789_v21 = vpop.f32.mrb[197].mxu0  ;;  %11154 = vmatpush3.bf16.msra.mxu1 %v11151_v9  ;;  %v9576_v9 = vld [vmem:[%s15556_s8 + $0x268] sm:$0xff]  ;;  %v9578_v32 = vld [vmem:[%s15556_s8 + $0x278] sm:$0xff]  ;;  %v301_v46 = vld [vmem:[%s15554_s6 + $0x290] sm:$0xff] }
0x16de   :  { %v11155_v35 = vpack.c.bf16 %v7819_v24, %v7818_v12  ;;  %v7812_v8 = vadd.f32 %v7804_v15, %v7789_v21  ;;  %v9571_v24 = vld [vmem:[%s15556_s8 + $0x240] sm:$0xff]  ;;  %v9573_v12 = vld [vmem:[%s15556_s8 + $0x250] sm:$0xff]  ;;  %v302_v21 = vld [vmem:[%s15554_s6 + $0x298] sm:$0xff] }
0x16df   :  { %v7821_v58 = vmax.f32 %v7813_v20, 0.0  ;;  %v299_v15 = vld [vmem:[%s15554_s6 + $0x280] sm:$0xff] }
0x16e0   :  { %v7820_v62 = vmax.f32 %v7812_v8, 0.0  ;;  %11156 = vmatprep.subr.bf16.mxu1 %v11155_v35  ;;  %v9575_v20 = vld [vmem:[%s15556_s8 + $0x260] sm:$0xff]  ;;  %v304_v8 = vld [vmem:[%s15554_s6 + $0x2a8] sm:$0xff] }
0x16e1   :  { %11158 = vmatpush3.bf16.msra.mxu1 %v11155_v35  ;;  %v9577_v35 = vld [vmem:[%s15556_s8 + $0x270] sm:$0xff] }
0x16e2   :  { %v11159_v28 = vpack.c.bf16 %v7821_v58, %v7820_v62  ;;  %v300_v58 = vld [vmem:[%s15554_s6 + $0x288] sm:$0xff]  ;;  %v306_v62 = vld [vmem:[%s15554_s6 + $0x2b8] sm:$0xff] }
0x16e4   :  { %11160 = vmatprep.subr.bf16.mxu1 %v11159_v28 }
0x16e5   :  { %11162 = vmatpush3.bf16.msra.mxu1 %v11159_v28  ;;  %v303_v28 = vld [vmem:[%s15554_s6 + $0x2a0] sm:$0xff] }
0x16e6   :  { %10916 = vmatprep.subr.msk.mxu1 %vm3298_vm3, %v14797_v25 }
0x16e8   :  { %10905 = vmatmul.mubr.msk.f32.vlgmr.msra.gmra.mrb[194].mxu1 %vm3527_vm4, %v9523_v18  ;;  %v388_v18 = vld [vmem:[%s15554_s6 + $0x548] sm:$0xff] }
0x16e9   :  { %10907 = vmatprep.mubr.msk.f32.mxu1 %vm3527_vm4, %v9524_v52  ;;  %10917 = vmatpush3.msk.msra.mxu1 %vm3298_vm3, %v14797_v25  ;;  %v9529_v25 = vld [vmem:[%s15555_s7 + $0x238] sm:$0xff]  ;;  %v305_v52 = vld [vmem:[%s15554_s6 + $0x2b0] sm:$0xff] }
0x16ec   :  { %10908 = vmatmul.mubr.msk.f32.gmra.mrb[196].mxu1 %vm3527_vm4, %v9525_v50  ;;  %v390_v50 = vld [vmem:[%s15554_s6 + $0x558] sm:$0xff] }
0x16ed   :  { %10910 = vmatprep.mubr.msk.f32.mxu1 %vm3527_vm4, %v9526_v55  ;;  %v387_v55 = vld [vmem:[%s15554_s6 + $0x540] sm:$0xff] }
0x16f0   :  { %10911 = vmatmul.mubr.msk.f32.gmra.mrb[198].mxu1 %vm3527_vm4, %v9527_v60  ;;  %v392_v60 = vld [vmem:[%s15554_s6 + $0x568] sm:$0xff] }
0x16f1   :  { %10913 = vmatprep.mubr.msk.f32.mxu1 %vm3527_vm4, %v9528_v10  ;;  %v389_v10 = vld [vmem:[%s15554_s6 + $0x550] sm:$0xff] }
0x16f4   :  { %10914 = vmatmul.mubr.msk.f32.gmra.mrb[200].mxu1 %vm3527_vm4, %v9529_v25  ;;  %v391_v25 = vld [vmem:[%s15554_s6 + $0x560] sm:$0xff] }
0x17bb   :  { %v10906_v40 = vpop.f32.mrb[194].mxu1 }
0x17bc   :  { %v15134_v11 = vadd.f32 %v10906_v40, %v15018_v37  ;;  %v7970_v33 = vpop.f32.mrb[195].mxu1 }
0x17bd   :  { %v15137_v13 = vadd.f32 %v7970_v33, %v15034_v61 }
0x17be   :  { %8019 = vadd.xlane.f32.xlu1 %v15134_v11  ;;  %v8010_v6 = vmul.f32 %v15134_v11, %v15134_v11 }
0x17bf   :  { %v10909_v59 = vpop.f32.mrb[196].mxu1  ;;  %8017 = vadd.xlane.f32.xlu0 %v15137_v13  ;;  %v8009_v61 = vmul.f32 %v15137_v13, %v15137_v13 }
0x17c0   :  { %v7980_v29 = vpop.f32.mrb[197].mxu1 }
0x17c1   :  { %v15142_v42 = vadd.f32 %v7980_v29, %v15038_v47  ;;  %v15152_v47 = vadd.f32 %v10909_v59, %v15024_v30 }
0x17c3   :  { %v10912_v16 = vpop.f32.mrb[198].mxu1  ;;  %8035 = vadd.xlane.f32.xlu0 %v8010_v6  ;;  %8021 = vadd.xlane.f32.xlu1 %v15142_v42  ;;  %v8011_v45 = vmul.f32 %v15142_v42, %v15142_v42  ;;  %v8012_v1 = vmul.f32 %v15152_v47, %v15152_v47 }
0x17c4   :  { %v7990_v37 = vpop.f32.mrb[199].mxu1  ;;  %v15164_v19 = vadd.f32 %v10912_v16, %v15028_v4 }
0x17c5   :  { %v15155_v56 = vadd.f32 %v7990_v37, %v15043_v57 }
0x17c6   :  { %v8014_v57 = vmul.f32 %v15164_v19, %v15164_v19 }
0x17c7   :  { %v10915_v53 = vpop.f32.mrb[200].mxu1  ;;  %8033 = vadd.xlane.f32.xlu0 %v8009_v61  ;;  %8037 = vadd.xlane.f32.xlu1 %v8011_v45  ;;  %v8013_v38 = vmul.f32 %v15155_v56, %v15155_v56 }
0x17c8   :  { %v8000_v39 = vpop.f32.mrb[201].mxu1  ;;  %v15176_v31 = vadd.f32 %v10915_v53, %v15032_v63  ;;  %v9574_v63 = vld [vmem:[%s15556_s8 + $0x258] sm:$0xff] }
0x17c9   :  { %v15167_v30 = vadd.f32 %v8000_v39, %v15051_v34  ;;  %v386_v34 = vld [vmem:[%s15554_s6 + $0x538] sm:$0xff] }
0x17ca   :  { %v8016_v4 = vmul.f32 %v15176_v31, %v15176_v31 }
0x17cb   :  { %8023 = vadd.xlane.f32.xlu0 %v15152_v47  ;;  %8025 = vadd.xlane.f32.xlu1 %v15155_v56  ;;  %v8015_v3 = vmul.f32 %v15167_v30, %v15167_v30 }
0x17cf   :  { %8039 = vadd.xlane.f32.xlu0 %v8012_v1  ;;  %8041 = vadd.xlane.f32.xlu1 %v8013_v38 }
0x17d3   :  { %8027 = vadd.xlane.f32.xlu0 %v15164_v19  ;;  %8029 = vadd.xlane.f32.xlu1 %v15167_v30 }
0x17d7   :  { %8043 = vadd.xlane.f32.xlu0 %v8014_v57  ;;  %8045 = vadd.xlane.f32.xlu1 %v8015_v3 }
0x17db   :  { %8031 = vadd.xlane.f32.xlu0 %v15176_v31 }
0x17df   :  { %8047 = vadd.xlane.f32.xlu0 %v8016_v4 }
0x17e8   :  { %1232 = vperm.xlu1 %11199, %v386_v34  }
0x17ec   :  { %8387 = vperm.xlu1 %11199, %v9572_v26  }
0x17f0   :  { %8397 = vperm.xlu1 %11199, %v9574_v63  }
0x17f4   :  { %8407 = vperm.xlu1 %11199, %v9576_v9  }
0x17f5   :  { %1227 = vperm.xlu0 %11198, %v385_v27  }
0x17f8   :  { %8417 = vperm.xlu1 %11199, %v9578_v32  }
0x17f9   :  { %8382 = vperm.xlu0 %11198, %v9571_v24  }
0x17fc   :  { %797 = vperm.xlu1 %11199, %v299_v15  }
0x17fd   :  { %8392 = vperm.xlu0 %11198, %v9573_v12  }
0x1800   :  { %807 = vperm.xlu1 %11199, %v301_v46  }
0x1801   :  { %8402 = vperm.xlu0 %11198, %v9575_v20  }
0x1804   :  { %812 = vperm.xlu1 %11199, %v302_v21  }
0x1805   :  { %8412 = vperm.xlu0 %11198, %v9577_v35  }
0x1808   :  { %822 = vperm.xlu1 %11199, %v304_v8  }
0x1809   :  { %802 = vperm.xlu0 %11198, %v300_v58  }
0x180c   :  { %832 = vperm.xlu1 %11199, %v306_v62  }
0x180d   :  { %817 = vperm.xlu0 %11198, %v303_v28  }
0x1810   :  { %1242 = vperm.xlu1 %11199, %v388_v18  }
0x1811   :  { %827 = vperm.xlu0 %11198, %v305_v52  }
0x1814   :  { %1252 = vperm.xlu1 %11199, %v390_v50  }
0x1815   :  { %1237 = vperm.xlu0 %11198, %v387_v55  }
0x1818   :  { %1262 = vperm.xlu1 %11199, %v392_v60  }
0x1819   :  { %1247 = vperm.xlu0 %11198, %v389_v10  }
0x181d   :  { %1257 = vperm.xlu0 %11198, %v391_v25  }
0x184b   :  { %v8020_v40 = vpop.xlane.xlu1 %8019 }
0x184c   :  { %v8018_v33 = vpop.xlane.xlu0 %8017  ;;  %v15253_v59 = vmul.f32 0.0078125, %v8020_v40 }
0x184d   :  { %v15255_v29 = vmul.f32 0.0078125, %v8018_v33 }
0x184e   :  { %v8066_v37 = vmul.f32 %v15253_v59, %v15253_v59 }
0x184f   :  { %v8065_v39 = vmul.f32 %v15255_v29, %v15255_v29 }
0x1850   :  { %v8022_v6 = vpop.xlane.xlu1 %8021  ;;  %v8036_v16 = vpop.xlane.xlu0 %8035 }
0x1851   :  { %v15259_v61 = vmul.f32 0.0078125, %v8022_v6  ;;  %v8058_v45 = vmul.f32 0.0078125, %v8036_v16 }
0x1853   :  { %v8074_v53 = vsub.f32 %v8058_v45, %v8066_v37  ;;  %v8067_v57 = vmul.f32 %v15259_v61, %v15259_v61 }
0x1854   :  { %v8038_v1 = vpop.xlane.xlu1 %8037  ;;  %v8034_v38 = vpop.xlane.xlu0 %8033 }
0x1855   :  { %v8082_v3 = vmax.f32 %v8074_v53, 0.0  ;;  %v8059_v4 = vmul.f32 0.0078125, %v8038_v1  ;;  %v8057_v34 = vmul.f32 0.0078125, %v8034_v38 }
0x1857   :  { %v8075_v26 = vsub.f32 %v8059_v4, %v8067_v57  ;;  %v8073_v63 = vsub.f32 %v8057_v34, %v8065_v39  ;;  %v8090_v9 = vadd.f32 1e-05, %v8082_v3 }
0x1858   :  { %v8026_v27 = vpop.xlane.xlu1 %8025  ;;  %v8024_v32 = vpop.xlane.xlu0 %8023 }
0x1859   :  { %v8083_v24 = vmax.f32 %v8075_v26, 0.0  ;;  %v8081_v15 = vmax.f32 %v8073_v63, 0.0  ;;  %v15265_v12 = vmul.f32 0.0078125, %v8026_v27  ;;  %v15267_v46 = vmul.f32 0.0078125, %v8024_v32 }
0x185a   :  { %11344 = vrsqrt.f32 %v8090_v9 }
0x185b   :  { %v8091_v20 = vadd.f32 1e-05, %v8083_v24  ;;  %v8089_v21 = vadd.f32 1e-05, %v8081_v15  ;;  %v8069_v58 = vmul.f32 %v15265_v12, %v15265_v12  ;;  %v8068_v62 = vmul.f32 %v15267_v46, %v15267_v46 }
0x185c   :  { %v8042_v35 = vpop.xlane.xlu1 %8041  ;;  %v8040_v8 = vpop.xlane.xlu0 %8039 }
0x185d   :  { %v8061_v28 = vmul.f32 0.0078125, %v8042_v35  ;;  %v8060_v18 = vmul.f32 0.0078125, %v8040_v8  ;;  %11346 = vrsqrt.f32 %v8089_v21  ;;  %v8106_v21 = vld [vmem:[#allocation2 + $0x248] sm:$0xff] }
0x185e   :  { %11348 = vrsqrt.f32 %v8091_v20  ;;  %v8105_v20 = vld [vmem:[#allocation2 + $0x240] sm:$0xff] }
0x185f   :  { %v8077_v52 = vsub.f32 %v8061_v28, %v8069_v58  ;;  %v8076_v50 = vsub.f32 %v8060_v18, %v8068_v62  ;;  %v8107_v28 = vld [vmem:[#allocation2 + $0x250] sm:$0xff] }
0x1860   :  { %v8030_v55 = vpop.xlane.xlu1 %8029  ;;  %v8028_v60 = vpop.xlane.xlu0 %8027 }
0x1861   :  { %v8085_v10 = vmax.f32 %v8077_v52, 0.0  ;;  %v8084_v25 = vmax.f32 %v8076_v50, 0.0  ;;  %v15273_v40 = vmul.f32 0.0078125, %v8030_v55  ;;  %v15275_v33 = vmul.f32 0.0078125, %v8028_v60 }
0x1863   :  { %v8093_v6 = vadd.f32 1e-05, %v8085_v10  ;;  %v8092_v16 = vadd.f32 1e-05, %v8084_v25  ;;  %v8071_v37 = vmul.f32 %v15273_v40, %v15273_v40  ;;  %v8070_v39 = vmul.f32 %v15275_v33, %v15275_v33  ;;  %v8109_v25 = vld [vmem:[#allocation2 + $0x260] sm:$0xff] }
0x1864   :  { %v8046_v45 = vpop.xlane.xlu1 %8045  ;;  %v8044_v53 = vpop.xlane.xlu0 %8043 }
0x1865   :  { %11350 = vrsqrt.f32 %v8093_v6  ;;  %v8063_v1 = vmul.f32 0.0078125, %v8046_v45  ;;  %v8062_v38 = vmul.f32 0.0078125, %v8044_v53  ;;  %v11345_v57 = vpop.eup %11344 }
0x1866   :  { %11352 = vrsqrt.f32 %v8092_v16  ;;  %v8122_v8 = vmul.f32 %v11345_v57, %v8106_v21 }
0x1867   :  { %v8079_v3 = vsub.f32 %v8063_v1, %v8071_v37  ;;  %v8078_v4 = vsub.f32 %v8062_v38, %v8070_v39  ;;  %v11347_v34 = vpop.eup %11346  ;;  %v8108_v37 = vld [vmem:[#allocation2 + $0x258] sm:$0xff] }
0x1868   :  { %v1233_v26 = vpop.permute.xlu1 %1232  ;;  %v8032_v63 = vpop.xlane.xlu0 %8031  ;;  %v8121_v35 = vmul.f32 %v11347_v34, %v8105_v20  ;;  %v8111_v34 = vld [vmem:[#allocation2 + $0x270] sm:$0xff] }
0x1869   :  { %v11349_v9 = vpop.eup %11348  ;;  %v8087_v27 = vmax.f32 %v8079_v3, 0.0  ;;  %v8086_v32 = vmax.f32 %v8078_v4, 0.0  ;;  %v2706_v24 = vadd.f32 %v14841_v22, %v1233_v26  ;;  %v15282_v15 = vmul.f32 0.0078125, %v8032_v63 }
0x186a   :  { %10918 = vmatprep.mubr.msk.f32.mxu1 %vm2749_vm2, %v8121_v35  ;;  %v8123_v52 = vmul.f32 %v11349_v9, %v8107_v28 }
0x186b   :  { %v8095_v58 = vadd.f32 1e-05, %v8087_v27  ;;  %v8094_v62 = vadd.f32 1e-05, %v8086_v32  ;;  %2917 = vst.msk [vmem:[#allocation2 + $0x538] sm:$0xff] %vm2749_vm2, %v2706_v24  ;;  %v8072_v22 = vmul.f32 %v15282_v15, %v15282_v15  ;;  %10919 = vmatmul.mubr.msk.f32.vlgmr.msra.gmra.mrb[202].mxu1 %vm2749_vm2, %v8122_v8  ;;  %v8110_v27 = vld [vmem:[#allocation2 + $0x268] sm:$0xff] }
0x186c   :  { %v15286_v18 = vpop.permute.xlu1 %8387  ;;  %v8048_v50 = vpop.xlane.xlu0 %8047  ;;  %10921 = vmatprep.mubr.msk.f32.mxu1 %vm2749_vm2, %v8123_v52 }
0x186d   :  { %11354 = vrsqrt.f32 %v8095_v58  ;;  %v8064_v55 = vmul.f32 0.0078125, %v8048_v50  ;;  %v8112_v50 = vld [vmem:[#allocation2 + $0x278] sm:$0xff] }
0x186e   :  { %11356 = vrsqrt.f32 %v8094_v62  ;;  %v8129_v62 = vmul.f32 %v8121_v35, %v15255_v29  ;;  %v8114_v29 = vld [vmem:[#allocation2 + $0x508] sm:$0xff] }
0x186f   :  { %v11351_v60 = vpop.eup %11350  ;;  %v8080_v10 = vsub.f32 %v8064_v55, %v8072_v22 }
0x1870   :  { %v11353_v6 = vpop.eup %11352  ;;  %v15292_v16 = vpop.permute.xlu1 %8397  ;;  %v8125_v45 = vmul.f32 %v11351_v60, %v8109_v25  ;;  %v8130_v25 = vmul.f32 %v8122_v8, %v15253_v59  ;;  %v15684_v59 = vld [vmem:[#allocation67_spill] sm:$0xff] }
0x1871   :  { %v8088_v53 = vmax.f32 %v8080_v10, 0.0  ;;  %v8124_v39 = vmul.f32 %v11353_v6, %v8108_v37  ;;  %v8113_v10 = vld [vmem:[#allocation2 + $0x500] sm:$0xff]  ;;  %v15683_v6 = vld [vmem:[#allocation68_spill] sm:$0xff] }
0x1873   :  { %v8096_v1 = vadd.f32 1e-05, %v8088_v53  ;;  %10922 = vmatmul.mubr.msk.f32.gmra.mrb[204].mxu1 %vm2749_vm2, %v8124_v39  ;;  %v8137_v53 = vsub.f32 %v8113_v10, %v8129_v62 }
0x1874   :  { %10924 = vmatprep.mubr.msk.f32.mxu1 %vm2749_vm2, %v8125_v45  ;;  %v15296_v38 = vpop.permute.xlu1 %8407  ;;  %v1228_v57 = vpop.permute.xlu0 %1227 }
0x1875   :  { %11358 = vrsqrt.f32 %v8096_v1  ;;  %v2701_v3 = vadd.f32 %v14843_v54, %v1228_v57  ;;  %v15682_v54 = vld [vmem:[#allocation66_spill] sm:$0xff]  ;;  %v8131_v1 = vmul.f32 %v8123_v52, %v15259_v61 }
0x1876   :  { %v8116_v61 = vld [vmem:[#allocation2 + $0x518] sm:$0xff] }
0x1877   :  { %v11355_v4 = vpop.eup %11354  ;;  %2916 = vst.msk [vmem:[#allocation2 + $0x530] sm:$0xff] %vm2749_vm2, %v2701_v3  ;;  %v8138_v3 = vsub.f32 %v8114_v29, %v8130_v25 }
0x1878   :  { %v11357_v26 = vpop.eup %11356  ;;  %v15300_v63 = vpop.permute.xlu1 %8417  ;;  %v8127_v32 = vmul.f32 %v11355_v4, %v8111_v34  ;;  %v8115_v4 = vld [vmem:[#allocation2 + $0x510] sm:$0xff]  ;;  %v8132_v34 = vmul.f32 %v8124_v39, %v15267_v46 }
0x1879   :  { %v15302_v9 = vpop.permute.xlu0 %8382  ;;  %v8126_v24 = vmul.f32 %v11357_v26, %v8110_v27  ;;  %v8139_v26 = vsub.f32 %v8115_v4, %v8131_v1  ;;  %v8133_v27 = vmul.f32 %v8125_v45, %v15265_v12  ;;  %v15686_v39 = vld [vmem:[#allocation65_spill] sm:$0xff]  ;;  %v8118_v45 = vld [vmem:[#allocation2 + $0x528] sm:$0xff]  ;;  %v15688_v1 = vld [vmem:[#allocation70_spill] sm:$0xff] }
0x187a   :  { %v8135_v10 = vmul.f32 %v8127_v32, %v15273_v40 }
0x187b   :  { %10925 = vmatmul.mubr.msk.f32.gmra.mrb[206].mxu1 %vm2749_vm2, %v8126_v24  ;;  %v8134_v62 = vmul.f32 %v8126_v24, %v15275_v33 }
0x187c   :  { %10927 = vmatprep.mubr.msk.f32.mxu1 %vm2749_vm2, %v8127_v32  ;;  %v798_v20 = vpop.permute.xlu1 %797 }
0x187d   :  { %v15306_v21 = vpop.permute.xlu0 %8392  ;;  %v2271_v58 = vadd.f32 %v15682_v54, %v798_v20  ;;  %v8140_v54 = vsub.f32 %v8116_v61, %v8132_v34  ;;  %v8142_v33 = vsub.f32 %v8118_v45, %v8134_v62 }
0x187e   :  { %v8119_v12 = vld [vmem:[#allocation2 + $0x530] sm:$0xff] }
0x187f   :  { %v11359_v28 = vpop.eup %11358  ;;  %2830 = vst.msk [vmem:[#allocation2 + $0x280] sm:$0xff] %vm2749_vm2, %v2271_v58  ;;  %v8117_v58 = vld [vmem:[#allocation2 + $0x520] sm:$0xff] }
0x1880   :  { %v808_v22 = vpop.permute.xlu1 %807  ;;  %v8128_v60 = vmul.f32 %v11359_v28, %v8112_v50  ;;  %v15685_v28 = vld [vmem:[#allocation69_spill] sm:$0xff] }
0x1881   :  { %v15311_v55 = vpop.permute.xlu0 %8402  ;;  %v2281_v37 = vadd.f32 %v15683_v6, %v808_v22  ;;  %v8141_v22 = vsub.f32 %v8117_v58, %v8133_v27 }
0x1882   :  { %10928 = vmatmul.mubr.msk.f32.gmra.mrb[208].mxu1 %vm2749_vm2, %v8128_v60  ;;  %v8136_v24 = vmul.f32 %v8128_v60, %v15282_v15  ;;  %v15689_v15 = vld [vmem:[#allocation72_spill] sm:$0xff] }
0x1883   :  { %2832 = vst.msk [vmem:[#allocation2 + $0x290] sm:$0xff] %vm2749_vm2, %v2281_v37  ;;  %10930 = vmatprep.mubr.msk.f32.mxu1 %vm2749_vm2, %v8137_v53  ;;  %v15687_v37 = vld [vmem:[#allocation71_spill] sm:$0xff] }
0x1884   :  { %v813_v35 = vpop.permute.xlu1 %812 }
0x1885   :  { %v15319_v57 = vpop.permute.xlu0 %8412  ;;  %v2286_v8 = vadd.f32 %v15684_v59, %v813_v35  ;;  %v8143_v35 = vsub.f32 %v8119_v12, %v8135_v10 }
0x1886   :  { %10931 = vmatmul.mubr.msk.f32.gmra.mrb[210].mxu1 %vm2749_vm2, %v8138_v3  ;;  %v8120_v3 = vld [vmem:[#allocation2 + $0x538] sm:$0xff] }
0x1887   :  { %2833 = vst.msk [vmem:[#allocation2 + $0x298] sm:$0xff] %vm2749_vm2, %v2286_v8  ;;  %10933 = vmatprep.mubr.msk.f32.mxu1 %vm2749_vm2, %v8139_v26  ;;  %v8144_v4 = vsub.f32 %v8120_v3, %v8136_v24 }
0x1888   :  { %v823_v52 = vpop.permute.xlu1 %822 }
0x1889   :  { %v803_v20 = vpop.permute.xlu0 %802  ;;  %v2296_v46 = vadd.f32 %v15685_v28, %v823_v52 }
0x188a   :  { %v2276_v50 = vadd.f32 %v15686_v39, %v803_v20  ;;  %10934 = vmatmul.mubr.msk.f32.gmra.mrb[212].mxu1 %vm2749_vm2, %v8140_v54 }
0x188b   :  { %2835 = vst.msk [vmem:[#allocation2 + $0x2a8] sm:$0xff] %vm2749_vm2, %v2296_v46  ;;  %10936 = vmatprep.mubr.msk.f32.mxu1 %vm2749_vm2, %v8141_v22 }
0x188c   :  { %2831 = vst.msk [vmem:[#allocation2 + $0x288] sm:$0xff] %vm2749_vm2, %v2276_v50  ;;  %v833_v25 = vpop.permute.xlu1 %832 }
0x188d   :  { %v818_v6 = vpop.permute.xlu0 %817  ;;  %v2306_v53 = vadd.f32 %v15687_v37, %v833_v25 }
0x188e   :  { %v2291_v29 = vadd.f32 %v15688_v1, %v818_v6  ;;  %10937 = vmatmul.mubr.msk.f32.gmra.mrb[214].mxu1 %vm2749_vm2, %v8142_v33 }
0x188f   :  { %2837 = vst.msk [vmem:[#allocation2 + $0x2b8] sm:$0xff] %vm2749_vm2, %v2306_v53  ;;  %10939 = vmatprep.mubr.msk.f32.mxu1 %vm2749_vm2, %v8143_v35 }
0x1890   :  { %2834 = vst.msk [vmem:[#allocation2 + $0x2a0] sm:$0xff] %vm2749_vm2, %v2291_v29  ;;  %v1243_v40 = vpop.permute.xlu1 %1242 }
0x1891   :  { %v828_v32 = vpop.permute.xlu0 %827  ;;  %v2716_v34 = vadd.f32 %v14845_v23, %v1243_v40 }
0x1892   :  { %v2301_v60 = vadd.f32 %v15689_v15, %v828_v32  ;;  %10940 = vmatmul.mubr.msk.f32.gmra.mrb[216].mxu1 %vm2749_vm2, %v8144_v4 }
0x1893   :  { %2919 = vst.msk [vmem:[#allocation2 + $0x548] sm:$0xff] %vm2749_vm2, %v2716_v34 }
0x1894   :  { %2836 = vst.msk [vmem:[#allocation2 + $0x2b0] sm:$0xff] %vm2749_vm2, %v2301_v60  ;;  %v1253_v59 = vpop.permute.xlu1 %1252 }
0x1895   :  { %v1238_v8 = vpop.permute.xlu0 %1237  ;;  %v2726_v26 = vadd.f32 %v14849_v17, %v1253_v59 }
0x1896   :  { %v2711_v27 = vadd.f32 %v14847_v49, %v1238_v8  ;;  %v9563_v49 = vld [vmem:[%s15555_s7 + $0x240] sm:$0xff] }
0x1897   :  { %2921 = vst.msk [vmem:[#allocation2 + $0x558] sm:$0xff] %vm2749_vm2, %v2726_v26  ;;  %10958 = vmatprep.mubr.msk.f32.mxu0 %vm3527_vm4, %v9563_v49  ;;  %v9566_v49 = vld [vmem:[%s15555_s7 + $0x258] sm:$0xff] }
0x1898   :  { %2918 = vst.msk [vmem:[#allocation2 + $0x540] sm:$0xff] %vm2749_vm2, %v2711_v27  ;;  %v1263_v61 = vpop.permute.xlu1 %1262 }
0x1899   :  { %v1248_v23 = vpop.permute.xlu0 %1247  ;;  %v2736_v52 = vadd.f32 %v14853_v7, %v1263_v61 }
0x189a   :  { %v2721_v20 = vadd.f32 %v14851_v44, %v1248_v23 }
0x189b   :  { %2923 = vst.msk [vmem:[#allocation2 + $0x568] sm:$0xff] %vm2749_vm2, %v2736_v52 }
0x189c   :  { %2920 = vst.msk [vmem:[#allocation2 + $0x550] sm:$0xff] %vm2749_vm2, %v2721_v20 }
0x189d   :  { %v1258_v54 = vpop.permute.xlu0 %1257 }
0x189e   :  { %v2731_v58 = vadd.f32 %v14855_v48, %v1258_v54 }
0x18a0   :  { %2922 = vst.msk [vmem:[#allocation2 + $0x560] sm:$0xff] %vm2749_vm2, %v2731_v58  ;;  %v11380_v58 = vld [vmem:[%s15550_s2] sm:$0x3] }
0x193e   :  { %v10920_v17 = vpop.f32.mrb[202].mxu1 }
0x193f   :  { %v8259_v62 = vpop.f32.mrb[203].mxu1  ;;  %v8339_v22 = vmul.f32 %v10920_v17, %v15134_v11  ;;  %v9567_v17 = vld [vmem:[%s15555_s7 + $0x260] sm:$0xff] }
0x1940   :  { %v8338_v48 = vmul.f32 %v8259_v62, %v15137_v13  ;;  %v9568_v62 = vld [vmem:[%s15555_s7 + $0x268] sm:$0xff] }
0x1946   :  { %v10923_v7 = vpop.f32.mrb[204].mxu1 }
0x1947   :  { %v8269_v28 = vpop.f32.mrb[205].mxu1  ;;  %v8341_v6 = vmul.f32 %v10923_v7, %v15152_v47  ;;  %v9569_v7 = vld [vmem:[%s15555_s7 + $0x270] sm:$0xff] }
0x1948   :  { %v8340_v24 = vmul.f32 %v8269_v28, %v15142_v42  ;;  %v9570_v28 = vld [vmem:[%s15555_s7 + $0x278] sm:$0xff] }
0x194e   :  { %v10926_v44 = vpop.f32.mrb[206].mxu1 }
0x194f   :  { %v8279_v46 = vpop.f32.mrb[207].mxu1  ;;  %v8343_v40 = vmul.f32 %v10926_v44, %v15164_v19 }
0x1950   :  { %v8342_v13 = vmul.f32 %v8279_v46, %v15155_v56 }
0x1955   :  { %v10929_v39 = vpop.f32.mrb[208].mxu1 }
0x1956   :  { %v8289_v50 = vpop.f32.mrb[209].mxu1  ;;  %v8345_v42 = vmul.f32 %v10929_v39, %v15176_v31  ;;  %v9564_v31 = vld [vmem:[%s15555_s7 + $0x248] sm:$0xff] }
0x1957   :  { %v8344_v8 = vmul.f32 %v8289_v50, %v15167_v30  ;;  %v9565_v30 = vld [vmem:[%s15555_s7 + $0x250] sm:$0xff] }
0x1959   :  { %v10932_v12 = vpop.f32.mrb[210].mxu1 }
0x195a   :  { %v8347_v45 = vadd.f32 %v10932_v12, %v8339_v22  ;;  %v8299_v10 = vpop.f32.mrb[211].mxu1 }
0x195b   :  { %v8346_v25 = vadd.f32 %v8338_v48, %v8299_v10 }
0x195c   :  { %v8355_v33 = vmax.f32 %v8347_v45, 0.0 }
0x195d   :  { %v8354_v37 = vmax.f32 %v8346_v25, 0.0  ;;  %v10935_v53 = vpop.f32.mrb[212].mxu1 }
0x195e   :  { %v8349_v1 = vadd.f32 %v10935_v53, %v8341_v6  ;;  %v8309_v29 = vpop.f32.mrb[213].mxu1 }
0x195f   :  { %v11163_v35 = vpack.c.bf16 %v8355_v33, %v8354_v37  ;;  %v8348_v3 = vadd.f32 %v8340_v24, %v8309_v29 }
0x1960   :  { %v8357_v11 = vmax.f32 %v8349_v1, 0.0 }
0x1961   :  { %v8356_v32 = vmax.f32 %v8348_v3, 0.0  ;;  %v10938_v4 = vpop.f32.mrb[214].mxu1  ;;  %11164 = vmatprep.subr.bf16.mxu0 %v11163_v35  ;;  %v393_v3 = vld [vmem:[%s15554_s6 + $0x570] sm:$0xff] }
0x1962   :  { %v8351_v34 = vadd.f32 %v10938_v4, %v8343_v40  ;;  %v8319_v15 = vpop.f32.mrb[215].mxu1  ;;  %11166 = vmatpush3.bf16.msra.mxu0 %v11163_v35  ;;  %v8911_v40 = vld [vmem:[#allocation3] sm:$0x1] }
0x1963   :  { %v11167_v47 = vpack.c.bf16 %v8357_v11, %v8356_v32  ;;  %v8350_v60 = vadd.f32 %v8342_v13, %v8319_v15 }
0x1964   :  { %v8359_v59 = vmax.f32 %v8351_v34, 0.0 }
0x1965   :  { %v8358_v26 = vmax.f32 %v8350_v60, 0.0  ;;  %v10941_v27 = vpop.f32.mrb[216].mxu1  ;;  %11168 = vmatprep.subr.bf16.mxu0 %v11167_v47 }
0x1966   :  { %v8353_v19 = vadd.f32 %v10941_v27, %v8345_v42  ;;  %v8329_v61 = vpop.f32.mrb[217].mxu1  ;;  %11170 = vmatpush3.bf16.msra.mxu0 %v11167_v47 }
0x1967   :  { %v11171_v56 = vpack.c.bf16 %v8359_v59, %v8358_v26  ;;  %v8352_v23 = vadd.f32 %v8344_v8, %v8329_v61 }
0x1968   :  { %v8361_v52 = vmax.f32 %v8353_v19, 0.0 }
0x1969   :  { %v8360_v20 = vmax.f32 %v8352_v23, 0.0  ;;  %11172 = vmatprep.subr.bf16.mxu0 %v11171_v56 }
0x196a   :  { %11174 = vmatpush3.bf16.msra.mxu0 %v11171_v56 }
0x196b   :  { %v11175_v54 = vpack.c.bf16 %v8361_v52, %v8360_v20 }
0x196d   :  { %11176 = vmatprep.subr.bf16.mxu0 %v11175_v54 }
0x196e   :  { %11178 = vmatpush3.bf16.msra.mxu0 %v11175_v54 }
0x196f   :  { %10970 = vmatprep.subr.msk.mxu0 %vm3298_vm3, %v11380_v58 }
0x1971   :  { %10959 = vmatmul.mubr.msk.f32.vlgmr.msra.gmra.mrb[198].mxu0 %vm3527_vm4, %v9564_v31 }
0x1972   :  { %10961 = vmatprep.mubr.msk.f32.mxu0 %vm3527_vm4, %v9565_v30  ;;  %10971 = vmatpush3.msk.msra.mxu0 %vm3298_vm3, %v11380_v58 }
0x1975   :  { %10962 = vmatmul.mubr.msk.f32.gmra.mrb[200].mxu0 %vm3527_vm4, %v9566_v49 }
0x1976   :  { %10964 = vmatprep.mubr.msk.f32.mxu0 %vm3527_vm4, %v9567_v17 }
0x1979   :  { %10965 = vmatmul.mubr.msk.f32.gmra.mrb[202].mxu0 %vm3527_vm4, %v9568_v62 }
0x197a   :  { %10967 = vmatprep.mubr.msk.f32.mxu0 %vm3527_vm4, %v9569_v7 }
0x197d   :  { %10968 = vmatmul.mubr.msk.f32.gmra.mrb[204].mxu0 %vm3527_vm4, %v9570_v28 }
0x1a44   :  { %v10960_v44 = vpop.f32.mrb[198].mxu0 }
0x1a45   :  { %v8516_v46 = vadd.f32 %v10960_v44, %v15286_v18  ;;  %v8510_v39 = vpop.f32.mrb[199].mxu0 }
0x1a46   :  { %v8511_v50 = vadd.f32 %v8510_v39, %v15302_v9 }
0x1a47   :  { %v15405_v22 = vadd.f32 %v8516_v46, %v14860_v0 }
0x1a48   :  { %v15408_v48 = vadd.f32 %v8511_v50, %v14863_v36  ;;  %v10963_v12 = vpop.f32.mrb[200].mxu0 }
0x1a49   :  { %8567 = vadd.xlane.f32.xlu1 %v15405_v22  ;;  %v8520_v45 = vpop.f32.mrb[201].mxu0  ;;  %v8558_v9 = vmul.f32 %v15405_v22, %v15405_v22  ;;  %v8526_v36 = vadd.f32 %v10963_v12, %v15292_v16 }
0x1a4a   :  { %v8521_v10 = vadd.f32 %v8520_v45, %v15306_v21  ;;  %8565 = vadd.xlane.f32.xlu0 %v15408_v48  ;;  %v8557_v21 = vmul.f32 %v15408_v48, %v15408_v48 }
0x1a4b   :  { %v15426_v37 = vadd.f32 %v8526_v36, %v14881_v51 }
0x1a4c   :  { %v15414_v25 = vadd.f32 %v8521_v10, %v14869_v14  ;;  %v10966_v18 = vpop.f32.mrb[202].mxu0 }
0x1a4d   :  { %v8530_v0 = vpop.f32.mrb[203].mxu0  ;;  %v8536_v16 = vadd.f32 %v10966_v18, %v15296_v38  ;;  %v8560_v1 = vmul.f32 %v15426_v37, %v15426_v37 }
0x1a4e   :  { %8583 = vadd.xlane.f32.xlu0 %v8558_v9  ;;  %8569 = vadd.xlane.f32.xlu1 %v15414_v25  ;;  %v8531_v6 = vadd.f32 %v8530_v0, %v15311_v55  ;;  %v8559_v14 = vmul.f32 %v15414_v25, %v15414_v25 }
0x1a4f   :  { %v15440_v51 = vadd.f32 %v8536_v16, %v14895_v2 }
0x1a50   :  { %v10969_v33 = vpop.f32.mrb[204].mxu0  ;;  %v15429_v53 = vadd.f32 %v8531_v6, %v14884_v5 }
0x1a51   :  { %v8540_v24 = vpop.f32.mrb[205].mxu0  ;;  %v8546_v38 = vadd.f32 %v10969_v33, %v15300_v63  ;;  %v394_v63 = vld [vmem:[%s15554_s6 + $0x578] sm:$0xff] }
0x1a52   :  { %8581 = vadd.xlane.f32.xlu0 %v8557_v21  ;;  %8585 = vadd.xlane.f32.xlu1 %v8559_v14  ;;  %v8541_v55 = vadd.f32 %v8540_v24, %v15319_v57  ;;  %v8561_v29 = vmul.f32 %v15429_v53, %v15429_v53  ;;  %v8562_v57 = vmul.f32 %v15440_v51, %v15440_v51 }
0x1a53   :  { %v15453_v2 = vadd.f32 %v8546_v38, %v14908_v43 }
0x1a54   :  { %v15443_v5 = vadd.f32 %v8541_v55, %v14898_v41 }
0x1a55   :  { %v8564_v41 = vmul.f32 %v15453_v2, %v15453_v2 }
0x1a56   :  { %8571 = vadd.xlane.f32.xlu0 %v15426_v37  ;;  %8573 = vadd.xlane.f32.xlu1 %v15429_v53  ;;  %v8563_v35 = vmul.f32 %v15443_v5, %v15443_v5 }
0x1a5a   :  { %8587 = vadd.xlane.f32.xlu0 %v8560_v1  ;;  %8589 = vadd.xlane.f32.xlu1 %v8561_v29 }
0x1a5e   :  { %8575 = vadd.xlane.f32.xlu0 %v15440_v51  ;;  %8577 = vadd.xlane.f32.xlu1 %v15443_v5 }
0x1a62   :  { %8591 = vadd.xlane.f32.xlu0 %v8562_v57  ;;  %8593 = vadd.xlane.f32.xlu1 %v8563_v35 }
0x1a66   :  { %8579 = vadd.xlane.f32.xlu0 %v15453_v2 }
0x1a6a   :  { %8595 = vadd.xlane.f32.xlu0 %v8564_v41 }
0x1a73   :  { %1272 = vperm.xlu1 %11199, %v394_v63  }
0x1a80   :  { %1267 = vperm.xlu0 %11198, %v393_v3  }
0x1a84   :  { %8914 = vperm.xlu0 %11198, %v8911_v40  }
0x1ad6   :  { %v8568_v43 = vpop.xlane.xlu1 %8567 }
0x1ad7   :  { %v8566_v11 = vpop.xlane.xlu0 %8565  ;;  %v15464_v13 = vmul.f32 0.0078125, %v8568_v43 }
0x1ad8   :  { %v15466_v32 = vmul.f32 0.0078125, %v8566_v11 }
0x1ad9   :  { %v8614_v15 = vmul.f32 %v15464_v13, %v15464_v13 }
0x1ada   :  { %v8613_v59 = vmul.f32 %v15466_v32, %v15466_v32 }
0x1adb   :  { %v8570_v4 = vpop.xlane.xlu1 %8569  ;;  %v8584_v34 = vpop.xlane.xlu0 %8583 }
0x1adc   :  { %v15470_v47 = vmul.f32 0.0078125, %v8570_v4  ;;  %v8606_v60 = vmul.f32 0.0078125, %v8584_v34  ;;  %v15690_v34 = vld [vmem:[#allocation7_spill] sm:$0xff] }
0x1ade   :  { %v8622_v42 = vsub.f32 %v8606_v60, %v8614_v15  ;;  %v8615_v27 = vmul.f32 %v15470_v47, %v15470_v47 }
0x1adf   :  { %v8586_v8 = vpop.xlane.xlu1 %8585  ;;  %v8582_v26 = vpop.xlane.xlu0 %8581 }
0x1ae0   :  { %v8630_v19 = vmax.f32 %v8622_v42, 0.0  ;;  %v8607_v61 = vmul.f32 0.0078125, %v8586_v8  ;;  %v8605_v56 = vmul.f32 0.0078125, %v8582_v26  ;;  %v8653_v42 = vld [vmem:[#allocation2 + $0x280] sm:$0xff] }
0x1ae2   :  { %v8623_v23 = vsub.f32 %v8607_v61, %v8615_v27  ;;  %v8621_v52 = vsub.f32 %v8605_v56, %v8613_v59  ;;  %v8638_v20 = vadd.f32 1e-05, %v8630_v19  ;;  %v8654_v59 = vld [vmem:[#allocation2 + $0x288] sm:$0xff]  ;;  %v8655_v61 = vld [vmem:[#allocation2 + $0x290] sm:$0xff] }
0x1ae3   :  { %v8574_v54 = vpop.xlane.xlu1 %8573  ;;  %v8572_v31 = vpop.xlane.xlu0 %8571 }
0x1ae4   :  { %v8631_v30 = vmax.f32 %v8623_v23, 0.0  ;;  %v8629_v58 = vmax.f32 %v8621_v52, 0.0  ;;  %v15476_v49 = vmul.f32 0.0078125, %v8574_v54  ;;  %v15478_v17 = vmul.f32 0.0078125, %v8572_v31 }
0x1ae5   :  { %11360 = vrsqrt.f32 %v8638_v20 }
0x1ae6   :  { %v8639_v62 = vadd.f32 1e-05, %v8631_v30  ;;  %v8637_v7 = vadd.f32 1e-05, %v8629_v58  ;;  %v8617_v46 = vmul.f32 %v15476_v49, %v15476_v49  ;;  %v8616_v39 = vmul.f32 %v15478_v17, %v15478_v17  ;;  %v8657_v30 = vld [vmem:[#allocation2 + $0x2a0] sm:$0xff] }
0x1ae7   :  { %v8590_v28 = vpop.xlane.xlu1 %8589  ;;  %v8588_v44 = vpop.xlane.xlu0 %8587 }
0x1ae8   :  { %v8609_v50 = vmul.f32 0.0078125, %v8590_v28  ;;  %v8608_v12 = vmul.f32 0.0078125, %v8588_v44  ;;  %11362 = vrsqrt.f32 %v8637_v7 }
0x1ae9   :  { %11364 = vrsqrt.f32 %v8639_v62  ;;  %v8656_v62 = vld [vmem:[#allocation2 + $0x298] sm:$0xff] }
0x1aea   :  { %v8625_v45 = vsub.f32 %v8609_v50, %v8617_v46  ;;  %v8624_v10 = vsub.f32 %v8608_v12, %v8616_v39  ;;  %v15691_v50 = vld [vmem:[#allocation8_spill] sm:$0xff] }
0x1aeb   :  { %v8578_v18 = vpop.xlane.xlu1 %8577  ;;  %v8576_v9 = vpop.xlane.xlu0 %8575 }
0x1aec   :  { %v8633_v0 = vmax.f32 %v8625_v45, 0.0  ;;  %v8632_v36 = vmax.f32 %v8624_v10, 0.0  ;;  %v15484_v6 = vmul.f32 0.0078125, %v8578_v18  ;;  %v15486_v33 = vmul.f32 0.0078125, %v8576_v9  ;;  %v8659_v10 = vld [vmem:[#allocation2 + $0x2b0] sm:$0xff]  ;;  %v8658_v9 = vld [vmem:[#allocation2 + $0x2a8] sm:$0xff] }
0x1aee   :  { %v8641_v21 = vadd.f32 1e-05, %v8633_v0  ;;  %v8640_v14 = vadd.f32 1e-05, %v8632_v36  ;;  %v8619_v24 = vmul.f32 %v15484_v6, %v15484_v6  ;;  %v8618_v1 = vmul.f32 %v15486_v33, %v15486_v33 }
0x1aef   :  { %v8594_v16 = vpop.xlane.xlu1 %8593  ;;  %v8592_v55 = vpop.xlane.xlu0 %8591 }
0x1af0   :  { %11366 = vrsqrt.f32 %v8641_v21  ;;  %v8611_v29 = vmul.f32 0.0078125, %v8594_v16  ;;  %v8610_v38 = vmul.f32 0.0078125, %v8592_v55  ;;  %v11361_v57 = vpop.eup %11360  ;;  %v8661_v55 = vld [vmem:[#allocation2 + $0x540] sm:$0xff] }
0x1af1   :  { %11368 = vrsqrt.f32 %v8640_v14  ;;  %v8670_v26 = vmul.f32 %v11361_v57, %v8654_v59  ;;  %v8662_v57 = vld [vmem:[#allocation2 + $0x548] sm:$0xff] }
0x1af2   :  { %v8627_v35 = vsub.f32 %v8611_v29, %v8619_v24  ;;  %v8626_v41 = vsub.f32 %v8610_v38, %v8618_v1  ;;  %v11363_v63 = vpop.eup %11362  ;;  %v8660_v24 = vld [vmem:[#allocation2 + $0x2b8] sm:$0xff] }
0x1af3   :  { %v1273_v3 = vpop.permute.xlu1 %1272  ;;  %v8580_v40 = vpop.xlane.xlu0 %8579  ;;  %v8669_v8 = vmul.f32 %v11363_v63, %v8653_v42  ;;  %v8678_v1 = vmul.f32 %v8670_v26, %v15464_v13  ;;  %v8664_v13 = vld [vmem:[#allocation2 + $0x558] sm:$0xff] }
0x1af4   :  { %v11365_v43 = vpop.eup %11364  ;;  %v8635_v11 = vmax.f32 %v8627_v35, 0.0  ;;  %v8634_v4 = vmax.f32 %v8626_v41, 0.0  ;;  %v2746_v15 = vadd.f32 %v15690_v34, %v1273_v3  ;;  %v15493_v60 = vmul.f32 0.0078125, %v8580_v40  ;;  %v8663_v41 = vld [vmem:[#allocation2 + $0x550] sm:$0xff]  ;;  %v8666_v34 = vld [vmem:[#allocation2 + $0x568] sm:$0xff] }
0x1af5   :  { %10972 = vmatprep.mubr.msk.f32.mxu0 %vm2749_vm2, %v8669_v8  ;;  %v8671_v56 = vmul.f32 %v11365_v43, %v8655_v61  ;;  %v8677_v21 = vmul.f32 %v8669_v8, %v15466_v32  ;;  %v8686_v35 = vsub.f32 %v8662_v57, %v8678_v1  ;;  %v8665_v43 = vld [vmem:[#allocation2 + $0x560] sm:$0xff] }
0x1af6   :  { %v8643_v27 = vadd.f32 1e-05, %v8635_v11  ;;  %v8642_v19 = vadd.f32 1e-05, %v8634_v4  ;;  %2925 = vst.msk [vmem:[#allocation2 + $0x578] sm:$0xff] %vm2749_vm2, %v2746_v15  ;;  %v8620_v52 = vmul.f32 %v15493_v60, %v15493_v60  ;;  %10973 = vmatmul.mubr.msk.f32.vlgmr.msra.gmra.mrb[206].mxu0 %vm2749_vm2, %v8670_v26  ;;  %v11408_v26 = vmov 0.0  }
0x1af7   :  { %v8596_v23 = vpop.xlane.xlu0 %8595  ;;  %10975 = vmatprep.mubr.msk.f32.mxu0 %vm2749_vm2, %v8671_v56  ;;  %v8685_v29 = vsub.f32 %v8661_v55, %v8677_v21  ;;  %v8679_v38 = vmul.f32 %v8671_v56, %v15470_v47  ;;  %11012 = vmatprep.mubr.msk.f32.mxu1 %vm11407_vm5, %v11408_v26 }
0x1af8   :  { %11370 = vrsqrt.f32 %v8643_v27  ;;  %v8612_v20 = vmul.f32 0.0078125, %v8596_v23 }
0x1af9   :  { %11372 = vrsqrt.f32 %v8642_v19  ;;  %v8687_v3 = vsub.f32 %v8663_v41, %v8679_v38 }
0x1afa   :  { %v11367_v54 = vpop.eup %11366  ;;  %v8628_v31 = vsub.f32 %v8612_v20, %v8620_v52 }
0x1afb   :  { %v11369_v58 = vpop.eup %11368  ;;  %v8673_v7 = vmul.f32 %v11367_v54, %v8657_v30 }
0x1afc   :  { %v8636_v28 = vmax.f32 %v8628_v31, 0.0  ;;  %v8672_v44 = vmul.f32 %v11369_v58, %v8656_v62 }
0x1afd   :  { %v8681_v32 = vmul.f32 %v8673_v7, %v15476_v49  ;;  %v8668_v59 = vld [vmem:[#allocation2 + $0x578] sm:$0xff] }
0x1afe   :  { %v8644_v46 = vadd.f32 1e-05, %v8636_v28  ;;  %10976 = vmatmul.mubr.msk.f32.gmra.mrb[208].mxu0 %vm2749_vm2, %v8672_v44  ;;  %v8680_v63 = vmul.f32 %v8672_v44, %v15478_v17 }
0x1aff   :  { %10978 = vmatprep.mubr.msk.f32.mxu0 %vm2749_vm2, %v8673_v7  ;;  %v1268_v39 = vpop.permute.xlu0 %1267  ;;  %v8689_v11 = vsub.f32 %v8665_v43, %v8681_v32 }
0x1b00   :  { %11374 = vrsqrt.f32 %v8644_v46  ;;  %v2741_v12 = vadd.f32 %v15691_v50, %v1268_v39  ;;  %v8688_v40 = vsub.f32 %v8664_v13, %v8680_v63 }
0x1b02   :  { %v11371_v45 = vpop.eup %11370  ;;  %2924 = vst.msk [vmem:[#allocation2 + $0x570] sm:$0xff] %vm2749_vm2, %v2741_v12 }
0x1b03   :  { %v11373_v18 = vpop.eup %11372  ;;  %v8675_v0 = vmul.f32 %v11371_v45, %v8659_v10  ;;  %v8915_v32 = vpop.permute.xlu0 %8914 }
0x1b04   :  { %v8674_v36 = vmul.f32 %v11373_v18, %v8658_v9 }
0x1b05   :  { %v8683_v17 = vmul.f32 %v8675_v0, %v15484_v6 }
0x1b06   :  { %10979 = vmatmul.mubr.msk.f32.gmra.mrb[210].mxu0 %vm2749_vm2, %v8674_v36  ;;  %v8682_v47 = vmul.f32 %v8674_v36, %v15486_v33  ;;  %v11406_v33 = vmov 0.0|0.0  }
0x1b07   :  { %10981 = vmatprep.mubr.msk.f32.mxu0 %vm2749_vm2, %v8675_v0  ;;  %11179 = vmatprep.subr.bf16.mxu1 %v11406_v33 }
0x1b08   :  { %v8690_v15 = vsub.f32 %v8666_v34, %v8682_v47 }
0x1b09   :  { %v8667_v4 = vld [vmem:[#allocation2 + $0x570] sm:$0xff] }
0x1b0a   :  { %v11375_v14 = vpop.eup %11374  ;;  %v8691_v42 = vsub.f32 %v8667_v4, %v8683_v17 }
0x1b0b   :  { %v8676_v16 = vmul.f32 %v11375_v14, %v8660_v24 }
0x1b0d   :  { %10982 = vmatmul.mubr.msk.f32.gmra.mrb[212].mxu0 %vm2749_vm2, %v8676_v16  ;;  %v8684_v49 = vmul.f32 %v8676_v16, %v15493_v60 }
0x1b0e   :  { %10984 = vmatprep.mubr.msk.f32.mxu0 %vm2749_vm2, %v8685_v29 }
0x1b0f   :  { %v8692_v8 = vsub.f32 %v8668_v59, %v8684_v49 }
0x1b11   :  { %10985 = vmatmul.mubr.msk.f32.gmra.mrb[214].mxu0 %vm2749_vm2, %v8686_v35 }
0x1b12   :  { %10987 = vmatprep.mubr.msk.f32.mxu0 %vm2749_vm2, %v8687_v3 }
0x1b15   :  { %10988 = vmatmul.mubr.msk.f32.gmra.mrb[216].mxu0 %vm2749_vm2, %v8688_v40 }
0x1b16   :  { %10990 = vmatprep.mubr.msk.f32.mxu0 %vm2749_vm2, %v8689_v11 }
0x1b19   :  { %10991 = vmatmul.mubr.msk.f32.gmra.mrb[218].mxu0 %vm2749_vm2, %v8690_v15 }
0x1b1a   :  { %10993 = vmatprep.mubr.msk.f32.mxu0 %vm2749_vm2, %v8691_v42 }
0x1b1d   :  { %10994 = vmatmul.mubr.msk.f32.gmra.mrb[220].mxu0 %vm2749_vm2, %v8692_v8 }
0x1bc9   :  { %v10974_v27 = vpop.f32.mrb[206].mxu0 }
0x1bca   :  { %v8807_v19 = vpop.f32.mrb[207].mxu0  ;;  %v8887_v20 = vmul.f32 %v10974_v27, %v15405_v22 }
0x1bcb   :  { %v8886_v54 = vmul.f32 %v8807_v19, %v15408_v48 }
0x1bd1   :  { %v10977_v6 = vpop.f32.mrb[208].mxu0 }
0x1bd2   :  { %v8817_v61 = vpop.f32.mrb[209].mxu0  ;;  %v8889_v7 = vmul.f32 %v10977_v6, %v15426_v37 }
0x1bd3   :  { %v8888_v44 = vmul.f32 %v8817_v61, %v15414_v25 }
0x1bd9   :  { %v10980_v56 = vpop.f32.mrb[210].mxu0 }
0x1bda   :  { %v8827_v60 = vpop.f32.mrb[211].mxu0  ;;  %v8891_v18 = vmul.f32 %v10980_v56, %v15440_v51 }
0x1bdb   :  { %v8890_v48 = vmul.f32 %v8827_v60, %v15429_v53 }
0x1be0   :  { %v10983_v23 = vpop.f32.mrb[212].mxu0 }
0x1be1   :  { %v8837_v52 = vpop.f32.mrb[213].mxu0  ;;  %v8893_v25 = vmul.f32 %v10983_v23, %v15453_v2  ;;  %v8910_v2 = vld [vmem:[%s15557_s9] sm:$0x1] }
0x1be2   :  { %v8892_v16 = vmul.f32 %v8837_v52, %v15443_v5  ;;  %v8917_v5 = vlaneseq }
0x1be4   :  { %v10986_v31 = vpop.f32.mrb[214].mxu0  ;;  %v8918_v63 = vshrl.u32 %v8917_v5, 7 }
0x1be5   :  { %v8895_v30 = vadd.f32 %v10986_v31, %v8887_v20  ;;  %v8847_v58 = vpop.f32.mrb[215].mxu0 }
0x1be6   :  { %v8894_v62 = vadd.f32 %v8886_v54, %v8847_v58  ;;  %v8919_v3 = vsub.s32 0, %v8918_v63 }
0x1be7   :  { %v8903_v28 = vmax.f32 %v8895_v30, 0.0 }
0x1be8   :  { %v8902_v46 = vmax.f32 %v8894_v62, 0.0  ;;  %v10989_v39 = vpop.f32.mrb[216].mxu0  ;;  %v8920_v13 = vrot.slane %v8915_v32, %v8919_v3 }
0x1be9   :  { %v8897_v50 = vadd.f32 %v10989_v39, %v8889_v7  ;;  %v8857_v12 = vpop.f32.mrb[217].mxu0 }
0x1bea   :  { %v11180_v45 = vpack.c.bf16 %v8903_v28, %v8902_v46  ;;  %v8896_v10 = vadd.f32 %v8888_v44, %v8857_v12 }
0x1beb   :  { %v8905_v22 = vmax.f32 %v8897_v50, 0.0 }
0x1bec   :  { %v8904_v9 = vmax.f32 %v8896_v10, 0.0  ;;  %v10992_v0 = vpop.f32.mrb[218].mxu0  ;;  %11181 = vmatpush3.bf16.msra.mxu1 %v11180_v45 }
0x1bed   :  { %v8899_v36 = vadd.f32 %v10992_v0, %v8891_v18  ;;  %v8867_v21 = vpop.f32.mrb[219].mxu0  ;;  %11182 = vmatprep.subr.bf16.mxu1 %v11406_v33 }
0x1bee   :  { %v11183_v37 = vpack.c.bf16 %v8905_v22, %v8904_v9  ;;  %v8898_v14 = vadd.f32 %v8890_v48, %v8867_v21 }
0x1bef   :  { %v8907_v24 = vmax.f32 %v8899_v36, 0.0 }
0x1bf0   :  { %v8906_v55 = vmax.f32 %v8898_v14, 0.0  ;;  %v10995_v1 = vpop.f32.mrb[220].mxu0  ;;  %11184 = vmatpush3.bf16.msra.mxu1 %v11183_v37 }
0x1bf1   :  { %v8901_v51 = vadd.f32 %v10995_v1, %v8893_v25  ;;  %v8877_v29 = vpop.f32.mrb[221].mxu0  ;;  %11185 = vmatprep.subr.bf16.mxu1 %v11406_v33 }
0x1bf2   :  { %v11186_v53 = vpack.c.bf16 %v8907_v24, %v8906_v55  ;;  %v8900_v38 = vadd.f32 %v8892_v16, %v8877_v29 }
0x1bf3   :  { %v8909_v57 = vmax.f32 %v8901_v51, 0.0 }
0x1bf4   :  { %v8908_v35 = vmax.f32 %v8900_v38, 0.0  ;;  %11187 = vmatpush3.bf16.msra.mxu1 %v11186_v53 }
0x1bf5   :  { %11188 = vmatprep.subr.bf16.mxu1 %v11406_v33 }
0x1bf6   :  { %v11189_v41 = vpack.c.bf16 %v8909_v57, %v8908_v35 }
0x1bf8   :  { %11190 = vmatpush3.bf16.msra.mxu1 %v11189_v41 }
0x1bfb   :  { %11013 = vmatmul.mubr.msk.f32.vlgmr.msra.gmra.mrb[218].mxu1 %vm3527_vm4, %v8910_v2 }
0x1cce   :  { %v8990_v40 = vpop.f32.mrb[218].mxu1 }
0x1ccf   :  { %v8991_v43 = vadd.f32 %v8990_v40, %v8920_v13  ;;  %v11014_v47 = vpop.f32.mrb[219].mxu1 }
0x1cd1   :  { %8994 = vst [vmem:[#allocation4] sm:$0x1] %v8991_v43 }
0x1cd2   :  { %11392 = shalt.err (!%p11389_p4)
}
0x1cd3   :  { %s11393_s0 = scalar_lea.hbm %s15559_s11, 16 }
0x1cd4   :  { %p11394_p5 = scmp.ne.s32.totalorder %s15559_s11, %s11393_s0  ;;  %p11397_p6 = scmp.lt.u32.totalorder %s11393_s0, %s15559_s11 }
0x1cd6   :  { %p11399_p7 = pnand %p11397_p6, %p11394_p5 }
0x1cd8   :  { %11402 = shalt.err (!%p11399_p7)
}
0x1cd9   :  { %9004 = dma.vmem_to_hbm [thread:$0]  %s9002_s12, 16, %s15559_s11, [#allocation5]  }
0x1cda   :  { %11403 = dma.done.wait [#allocation5], 16  }
0x1cdb   :  { %11404 = vsyncadd [#allocation5], 4294967280 }
0x1cdc   :  { %9008 = vsyncpa [#allocation5], 1 }

</bundles_post_ra>
